<compile_context>
chip_gen: v5e
topology: v5e:2x2
jax: 0.10.0
libtpu: 0.0.40
codegen_flags: <defaults>
</compile_context>

<pallas_src>
import math

import jax
import jax.numpy as jnp
import numpy as np
from jax.experimental import pallas as pl
from jax.experimental.pallas import tpu as pltpu

# ---- problem sizes (small, consistent with the module) ----------------------
B, H, W = 2, 8, 8          # batch, spatial
CIN, COUT = 4, 8           # dim, dim_out
EMB = 16                   # noise_level_emb_dim
GROUPS = 2                 # norm_groups (must divide CIN and COUT)
EPS = 1e-5                 # nn.GroupNorm default eps
HW = H * W
PAD = W + 1                # zero rows covering the largest 3x3 tap shift |oy*W + ox|
TAPS = [(oy, ox) for oy in (-1, 0, 1) for ox in (-1, 0, 1)]   # row-major == weight order

PARAM_ORDER = [
    "gn1_g", "gn1_b", "w1", "b1",          # block1: GroupNorm + Conv3x3
    "nw", "nb",                            # FeatureWiseAffine Linear
    "gn2_g", "gn2_b", "w2", "b2",          # block2: GroupNorm + Conv3x3
    "rw", "rb",                            # res_conv 1x1
    "agn_g", "agn_b", "wqkv", "wout", "bout",  # SelfAttention
]

# All tiny per-channel parameters are packed into ONE lane-dense (1, 128) input
# and sliced statically inside the kernel.
SMALL_PARAMS = ["gn1_g", "gn1_b", "gn2_g", "gn2_b", "agn_g", "agn_b",
                "b1", "b2", "nb", "rb", "bout"]
PACK_OFFSETS = {}
_off = 0
for _name in SMALL_PARAMS:
    _n = CIN if _name in ("gn1_g", "gn1_b") else COUT
    PACK_OFFSETS[_name] = (_off, _n)
    _off += _n
PACK_LEN = 128
assert _off <= PACK_LEN


# ---- in-kernel helpers -------------------------------------------------------
def _group_norm(x2, gamma, beta, masks, swish):
    """GroupNorm over (HW x channels-in-group), single masked pass, + optional Swish.

    x2: (HW, C) f32; gamma/beta: (1, C); masks: list of (1, C) 0/1 group masks."""
    C = x2.shape[-1]
    n = float(HW * (C // GROUPS))
    mean_c = jnp.zeros((1, C), jnp.float32)
    inv_c = jnp.zeros((1, C), jnp.float32)
    for m in masks:                       # GROUPS is tiny & static
        xm = x2 * m                       # zeros outside the group
        mu = jnp.sum(xm) / n
        var = jnp.sum(xm * x2) / n - mu * mu      # E[x^2] - mean^2 in one pass
        mean_c = mean_c + m * mu
        inv_c = inv_c + m * jax.lax.rsqrt(var + EPS)
    y = (x2 - mean_c) * (inv_c * gamma) + beta
    if swish:
        y = y * jax.nn.sigmoid(y)
    return y


def _conv3x3_im2col(x2, wcat, bias, hmasks):
    """3x3 'SAME' conv on a flattened (HW, Cin) map as a single im2col matmul.

    x2: (HW, Cin); wcat: (9*Cin, Cout); bias: (1, Cout);
    hmasks: {-1, +1} -> (HW, 1) horizontal-wrap validity masks."""
    C = x2.shape[-1]
    zeros = jnp.zeros((PAD, C), jnp.float32)
    xp = jnp.concatenate([zeros, x2, zeros], axis=0)       # (HW + 2*PAD, C), vertical zero pad
    cols = []
    for oy, ox in TAPS:
        s = oy * W + ox
        col = xp[PAD + s: PAD + s + HW, :]                 # shifted copy (OOB rows are zero)
        if ox != 0:
            col = col * hmasks[ox]                         # kill horizontal wrap-around
        cols.append(col)
    patches = jnp.concatenate(cols, axis=1)                # (HW, 9*Cin) im2col matrix
    return jnp.dot(patches, wcat, preferred_element_type=jnp.float32) + bias


# ---- the Pallas kernel (whole batch, single invocation) ----------------------
def resnet_attn_kernel(x_ref, t_ref, w1_ref, w2_ref, nw_ref, rw_ref,
                       wqkv_ref, wout_ref, p_ref, o_ref):
    pvec = p_ref[...]                                      # (1, 128) packed small params

    def sp(name):
        off, n = PACK_OFFSETS[name]
        return pvec[:, off:off + n]                        # static lane slice, (1, n)

    # --- hoisted constants, shared by both convs and both batch elements ---
    ww = jax.lax.broadcasted_iota(jnp.int32, (HW, 1), 0) % W
    hmasks = {
        -1: (ww >= 1).astype(jnp.float32),
        +1: (ww <= W - 2).astype(jnp.float32),
    }

    def group_masks(C):
        ch = jax.lax.broadcasted_iota(jnp.int32, (1, C), 1)
        cg = C // GROUPS
        return [((ch >= g * cg) & (ch < (g + 1) * cg)).astype(jnp.float32)
                for g in range(GROUPS)]

    masks_cin = group_masks(CIN)
    masks_cout = group_masks(COUT)

    w1c = w1_ref[...]          # (9*CIN, COUT)
    w2c = w2_ref[...]          # (9*COUT, COUT)
    rw = rw_ref[...]
    wqkv = wqkv_ref[...]
    wout = wout_ref[...]

    # FeatureWiseAffine linear for the whole batch at once: (B, EMB) @ (EMB, COUT)
    noise = jnp.dot(t_ref[...], nw_ref[...],
                    preferred_element_type=jnp.float32) + sp("nb")     # (B, COUT)

    inv_sqrt_c = 1.0 / math.sqrt(COUT)

    for b in range(B):                                     # static, unrolled batch loop
        x = x_ref[pl.ds(b * HW, HW), :]                    # (HW, CIN)

        # ---- ResnetBlock.block1: GroupNorm -> Swish -> Conv3x3 ----
        h = _group_norm(x, sp("gn1_g"), sp("gn1_b"), masks_cin, swish=True)
        h = _conv3x3_im2col(h, w1c, sp("b1"), hmasks)      # (HW, COUT)

        # ---- FeatureWiseAffine (use_affine_level=False) ----
        h = h + noise[b:b + 1, :]

        # ---- ResnetBlock.block2 ----
        h = _group_norm(h, sp("gn2_g"), sp("gn2_b"), masks_cout, swish=True)
        h = _conv3x3_im2col(h, w2c, sp("b2"), hmasks)

        # ---- residual 1x1 conv (dim != dim_out) ----
        hr = h + jnp.dot(x, rw, preferred_element_type=jnp.float32) + sp("rb")

        # ---- SelfAttention (n_head = 1) ----
        nrm = _group_norm(hr, sp("agn_g"), sp("agn_b"), masks_cout, swish=False)
        qkv = jnp.dot(nrm, wqkv, preferred_element_type=jnp.float32)   # (HW, 3*COUT)
        q = qkv[:, :COUT]
        k = qkv[:, COUT:2 * COUT]
        v = qkv[:, 2 * COUT:]
        attn = jax.lax.dot_general(q, k, (((1,), (1,)), ((), ())),
                                   preferred_element_type=jnp.float32) * inv_sqrt_c
        attn = jnp.exp(attn - jnp.max(attn, axis=-1, keepdims=True))
        attn = attn * pl.reciprocal(jnp.sum(attn, axis=-1, keepdims=True), approx=True)
        out = jnp.dot(attn, v, preferred_element_type=jnp.float32)     # (HW, COUT)
        out = jnp.dot(out, wout, preferred_element_type=jnp.float32) + sp("bout")

        o_ref[pl.ds(b * HW, HW), :] = out + hr


# ---- wrapper ----------------------------------------------------------------
def resnet_block_with_attn(x_nhwc, time_emb, params):
    """x_nhwc: (B, H, W, CIN) f32; time_emb: (B, EMB) f32 -> (B, H, W, COUT) f32."""
    x_flat = x_nhwc.reshape(B * HW, CIN)
    w1c = params["w1"].reshape(9 * CIN, COUT)     # (kh,kw,Cin,Cout) -> im2col weight
    w2c = params["w2"].reshape(9 * COUT, COUT)

    pvec = jnp.zeros((1, PACK_LEN), jnp.float32)
    for name in SMALL_PARAMS:
        off, n = PACK_OFFSETS[name]
        pvec = pvec.at[0, off:off + n].set(params[name].reshape(-1))

    in_specs = [pl.BlockSpec(memory_space=pltpu.MemorySpace.VMEM) for _ in range(9)]
    out = pl.pallas_call(
        resnet_attn_kernel,
        out_shape=jax.ShapeDtypeStruct((B * HW, COUT), jnp.float32),
        in_specs=in_specs,
        out_specs=pl.BlockSpec(memory_space=pltpu.MemorySpace.VMEM),
    )(x_flat, time_emb, w1c, w2c, params["nw"], params["rw"],
      params["wqkv"], params["wout"], pvec)
    return out.reshape(B, H, W, COUT)


# ---- deterministic synthetic parameters --------------------------------------
def init_params(key):
    ks = jax.random.split(key, len(PARAM_ORDER))
    shapes = {
        "gn1_g": (1, CIN), "gn1_b": (1, CIN),
        "w1": (3, 3, CIN, COUT), "b1": (1, COUT),
        "nw": (EMB, COUT), "nb": (1, COUT),
        "gn2_g": (1, COUT), "gn2_b": (1, COUT),
        "w2": (3, 3, COUT, COUT), "b2": (1, COUT),
        "rw": (CIN, COUT), "rb": (1, COUT),
        "agn_g": (1, COUT), "agn_b": (1, COUT),
        "wqkv": (COUT, 3 * COUT),
        "wout": (COUT, COUT), "bout": (1, COUT),
    }
    p = {}
    for k_, name in zip(ks, PARAM_ORDER):
        s = shapes[name]
        fan_in = s[-2] if len(s) >= 2 else 1
        scale = 0.5 / math.sqrt(max(fan_in, 1))
        p[name] = jax.random.normal(k_, s, jnp.float32) * scale
    for g in ("gn1_g", "gn2_g", "agn_g"):
        p[g] = 1.0 + 0.1 * p[g]
    return p


# ---- pure-JAX reference (independent ops) -------------------------------------
def reference(x, t, p):
    def gnorm(h, g, b):
        Bh, Hh, Wh, C = h.shape
        hr = h.reshape(Bh, Hh * Wh, GROUPS, C // GROUPS)
        mean = hr.mean(axis=(1, 3), keepdims=True)
        var = ((hr - mean) ** 2).mean(axis=(1, 3), keepdims=True)
        hn = (hr - mean) / jnp.sqrt(var + EPS)
        return hn.reshape(Bh, Hh, Wh, C) * g.reshape(1, 1, 1, C) + b.reshape(1, 1, 1, C)

    def conv3(h, wk, b):
        y = jax.lax.conv_general_dilated(h, wk, (1, 1), "SAME",
                                         dimension_numbers=("NHWC", "HWIO", "NHWC"))
        return y + b.reshape(1, 1, 1, -1)

    def swish(h):
        return h * jax.nn.sigmoid(h)

    h = conv3(swish(gnorm(x, p["gn1_g"], p["gn1_b"])), p["w1"], p["b1"])
    h = h + (t @ p["nw"] + p["nb"])[:, None, None, :]
    h = conv3(swish(gnorm(h, p["gn2_g"], p["gn2_b"])), p["w2"], p["b2"])
    hr = h + (x @ p["rw"] + p["rb"])

    nrm = gnorm(hr, p["agn_g"], p["agn_b"]).reshape(B, HW, COUT)
    qkv = nrm @ p["wqkv"]
    q, k, v = qkv[..., :COUT], qkv[..., COUT:2 * COUT], qkv[..., 2 * COUT:]
    attn = jnp.einsum("bqc,bkc->bqk", q, k) / math.sqrt(COUT)
    attn = jax.nn.softmax(attn, axis=-1)
    out = jnp.einsum("bqk,bkc->bqc", attn, v) @ p["wout"] + p["bout"]
    return hr + out.reshape(B, H, W, COUT)


if __name__ == "__main__":
    key = jax.random.PRNGKey(0)
    kx, kt, kp = jax.random.split(key, 3)
    x = jax.random.normal(kx, (B, H, W, CIN), jnp.float32)   # NHWC of the NCHW torch input
    t = jax.random.normal(kt, (B, EMB), jnp.float32)
    params = init_params(kp)

    y = resnet_block_with_attn(x, t, params)
    y = jax.block_until_ready(y)
    assert y.shape == (B, H, W, COUT)

    y_ref = reference(x, t, params)
    np.testing.assert_allclose(np.asarray(y), np.asarray(y_ref), rtol=2e-2, atol=2e-2)
    print("KERNEL_OK")
</pallas_src>

<mosaic_0001>
module attributes {stable_mosaic.version = 11 : i64} {
  func.func @resnet_attn_kernel(%arg0: memref<128x4xf32, #tpu.memory_space<vmem>>, %arg1: memref<2x16xf32, #tpu.memory_space<vmem>>, %arg2: memref<36x8xf32, #tpu.memory_space<vmem>>, %arg3: memref<72x8xf32, #tpu.memory_space<vmem>>, %arg4: memref<16x8xf32, #tpu.memory_space<vmem>>, %arg5: memref<4x8xf32, #tpu.memory_space<vmem>>, %arg6: memref<8x24xf32, #tpu.memory_space<vmem>>, %arg7: memref<8x8xf32, #tpu.memory_space<vmem>>, %arg8: memref<1x128xf32, #tpu.memory_space<vmem>>, %arg9: memref<128x8xf32, #tpu.memory_space<vmem>>) attributes {dimension_semantics = [], scalar_prefetch = 0 : i64, scratch_operands = 0 : i64, tpu.core_type = #tpu.core_type<tc>} {
    %c0 = arith.constant 0 : index
    %c0_0 = arith.constant 0 : index
    %0 = vector.load %arg8[%c0, %c0_0] : memref<1x128xf32, #tpu.memory_space<vmem>>, vector<1x128xf32>
    %1 = tpu.iota {dimensions = array<i32: 0>} : vector<64x1xi32>
    %c8_i32 = arith.constant 8 : i32
    %c0_i32 = arith.constant 0 : i32
    %2 = arith.cmpi eq, %c8_i32, %c0_i32 : i32
    %c1_i32 = arith.constant 1 : i32
    %3 = arith.select %2, %c1_i32, %c8_i32 : i32
    %4 = vector.broadcast %3 : i32 to vector<64x1xi32>
    %5 = arith.remsi %1, %4 : vector<64x1xi32>
    %c0_i32_1 = arith.constant 0 : i32
    %6 = vector.broadcast %c0_i32_1 : i32 to vector<64x1xi32>
    %7 = arith.cmpi ne, %5, %6 : vector<64x1xi32>
    %c0_i32_2 = arith.constant 0 : i32
    %8 = vector.broadcast %c0_i32_2 : i32 to vector<64x1xi32>
    %9 = arith.cmpi slt, %5, %8 : vector<64x1xi32>
    %c0_i32_3 = arith.constant 0 : i32
    %10 = arith.cmpi slt, %3, %c0_i32_3 : i32
    %11 = vector.broadcast %10 : i1 to vector<64x1xi1>
    %12 = vector.broadcast %11 : vector<64x1xi1> to vector<64x1xi1>
    %13 = arith.xori %9, %12 : vector<64x1xi1>
    %14 = arith.andi %13, %7 : vector<64x1xi1>
    %15 = vector.broadcast %3 : i32 to vector<64x1xi32>
    %16 = arith.addi %5, %15 : vector<64x1xi32>
    %17 = arith.select %14, %16, %5 : vector<64x1xi1>, vector<64x1xi32>
    %c1_i32_4 = arith.constant 1 : i32
    %18 = vector.broadcast %c1_i32_4 : i32 to vector<64x1xi32>
    %19 = arith.cmpi sge, %17, %18 : vector<64x1xi32>
    %20 = arith.extui %19 : vector<64x1xi1> to vector<64x1xi32>
    %21 = arith.sitofp %20 : vector<64x1xi32> to vector<64x1xf32>
    %c6_i32 = arith.constant 6 : i32
    %22 = vector.broadcast %c6_i32 : i32 to vector<64x1xi32>
    %23 = arith.cmpi sle, %17, %22 : vector<64x1xi32>
    %24 = arith.extui %23 : vector<64x1xi1> to vector<64x1xi32>
    %25 = arith.sitofp %24 : vector<64x1xi32> to vector<64x1xf32>
    %26 = tpu.iota {dimensions = array<i32: 1>} : vector<1x4xi32>
    %c0_i32_5 = arith.constant 0 : i32
    %27 = vector.broadcast %c0_i32_5 : i32 to vector<1x4xi32>
    %28 = arith.cmpi sge, %26, %27 : vector<1x4xi32>
    %c2_i32 = arith.constant 2 : i32
    %29 = vector.broadcast %c2_i32 : i32 to vector<1x4xi32>
    %30 = arith.cmpi slt, %26, %29 : vector<1x4xi32>
    %31 = arith.andi %28, %30 : vector<1x4xi1>
    %32 = arith.extui %31 : vector<1x4xi1> to vector<1x4xi32>
    %33 = arith.sitofp %32 : vector<1x4xi32> to vector<1x4xf32>
    %c2_i32_6 = arith.constant 2 : i32
    %34 = vector.broadcast %c2_i32_6 : i32 to vector<1x4xi32>
    %35 = arith.cmpi sge, %26, %34 : vector<1x4xi32>
    %c4_i32 = arith.constant 4 : i32
    %36 = vector.broadcast %c4_i32 : i32 to vector<1x4xi32>
    %37 = arith.cmpi slt, %26, %36 : vector<1x4xi32>
    %38 = arith.andi %35, %37 : vector<1x4xi1>
    %39 = arith.extui %38 : vector<1x4xi1> to vector<1x4xi32>
    %40 = arith.sitofp %39 : vector<1x4xi32> to vector<1x4xf32>
    %41 = tpu.iota {dimensions = array<i32: 1>} : vector<1x8xi32>
    %c0_i32_7 = arith.constant 0 : i32
    %42 = vector.broadcast %c0_i32_7 : i32 to vector<1x8xi32>
    %43 = arith.cmpi sge, %41, %42 : vector<1x8xi32>
    %c4_i32_8 = arith.constant 4 : i32
    %44 = vector.broadcast %c4_i32_8 : i32 to vector<1x8xi32>
    %45 = arith.cmpi slt, %41, %44 : vector<1x8xi32>
    %46 = arith.andi %43, %45 : vector<1x8xi1>
    %47 = arith.extui %46 : vector<1x8xi1> to vector<1x8xi32>
    %48 = arith.sitofp %47 : vector<1x8xi32> to vector<1x8xf32>
    %c4_i32_9 = arith.constant 4 : i32
    %49 = vector.broadcast %c4_i32_9 : i32 to vector<1x8xi32>
    %50 = arith.cmpi sge, %41, %49 : vector<1x8xi32>
    %c8_i32_10 = arith.constant 8 : i32
    %51 = vector.broadcast %c8_i32_10 : i32 to vector<1x8xi32>
    %52 = arith.cmpi slt, %41, %51 : vector<1x8xi32>
    %53 = arith.andi %50, %52 : vector<1x8xi1>
    %54 = arith.extui %53 : vector<1x8xi1> to vector<1x8xi32>
    %55 = arith.sitofp %54 : vector<1x8xi32> to vector<1x8xf32>
    %c0_11 = arith.constant 0 : index
    %c0_12 = arith.constant 0 : index
    %56 = vector.load %arg2[%c0_11, %c0_12] : memref<36x8xf32, #tpu.memory_space<vmem>>, vector<36x8xf32>
    %c0_13 = arith.constant 0 : index
    %c0_14 = arith.constant 0 : index
    %57 = vector.load %arg3[%c0_13, %c0_14] : memref<72x8xf32, #tpu.memory_space<vmem>>, vector<72x8xf32>
    %c0_15 = arith.constant 0 : index
    %c0_16 = arith.constant 0 : index
    %58 = vector.load %arg5[%c0_15, %c0_16] : memref<4x8xf32, #tpu.memory_space<vmem>>, vector<4x8xf32>
    %c0_17 = arith.constant 0 : index
    %c0_18 = arith.constant 0 : index
    %59 = vector.load %arg6[%c0_17, %c0_18] : memref<8x24xf32, #tpu.memory_space<vmem>>, vector<8x24xf32>
    %c0_19 = arith.constant 0 : index
    %c0_20 = arith.constant 0 : index
    %60 = vector.load %arg7[%c0_19, %c0_20] : memref<8x8xf32, #tpu.memory_space<vmem>>, vector<8x8xf32>
    %c0_21 = arith.constant 0 : index
    %c0_22 = arith.constant 0 : index
    %61 = vector.load %arg1[%c0_21, %c0_22] : memref<2x16xf32, #tpu.memory_space<vmem>>, vector<2x16xf32>
    %c0_23 = arith.constant 0 : index
    %c0_24 = arith.constant 0 : index
    %62 = vector.load %arg4[%c0_23, %c0_24] : memref<16x8xf32, #tpu.memory_space<vmem>>, vector<16x8xf32>
    %cst = arith.constant dense<0.000000e+00> : vector<2x8xf32>
    %63 = tpu.matmul %61, %62, %cst {dimension_numbers = #tpu.dot_dimension_numbers<[1], [0], [0], [1], [0, 0, 1, 1], [], []>} : vector<2x16xf32>, vector<16x8xf32>, vector<2x8xf32> -> vector<2x8xf32>
    %64 = vector.extract_strided_slice %0 {offsets = [0, 56], sizes = [1, 8], strides = [1, 1]} : vector<1x128xf32> to vector<1x8xf32>
    %65 = vector.broadcast %64 : vector<1x8xf32> to vector<2x8xf32>
    %66 = arith.addf %63, %65 : vector<2x8xf32>
    %c0_25 = arith.constant 0 : index
    %c0_26 = arith.constant 0 : index
    %67 = vector.load %arg0[%c0_25, %c0_26] : memref<128x4xf32, #tpu.memory_space<vmem>>, vector<64x4xf32>
    %68 = vector.extract_strided_slice %0 {offsets = [0, 0], sizes = [1, 4], strides = [1, 1]} : vector<1x128xf32> to vector<1x4xf32>
    %69 = vector.extract_strided_slice %0 {offsets = [0, 4], sizes = [1, 4], strides = [1, 1]} : vector<1x128xf32> to vector<1x4xf32>
    %cst_27 = arith.constant 0.000000e+00 : f32
    %70 = vector.broadcast %cst_27 : f32 to vector<1x4xf32>
    %cst_28 = arith.constant 0.000000e+00 : f32
    %71 = vector.broadcast %cst_28 : f32 to vector<1x4xf32>
    %72 = vector.broadcast %33 : vector<1x4xf32> to vector<64x4xf32>
    %73 = arith.mulf %67, %72 : vector<64x4xf32>
    %74 = vector.shape_cast %73 : vector<64x4xf32> to vector<1x64x4xf32>
    %cst_29 = arith.constant dense<0.000000e+00> : vector<1xf32>
    %75 = vector.multi_reduction <add>, %74, %cst_29 [1, 2] : vector<1x64x4xf32> to vector<1xf32>
    %76 = vector.shape_cast %75 : vector<1xf32> to vector<1x1x1xf32>
    %77 = vector.extract %76[0, 0, 0] : f32 from vector<1x1x1xf32>
    %cst_30 = arith.constant 1.280000e+02 : f32
    %78 = arith.divf %77, %cst_30 : f32
    %79 = arith.mulf %73, %67 : vector<64x4xf32>
    %80 = vector.shape_cast %79 : vector<64x4xf32> to vector<1x64x4xf32>
    %cst_31 = arith.constant dense<0.000000e+00> : vector<1xf32>
    %81 = vector.multi_reduction <add>, %80, %cst_31 [1, 2] : vector<1x64x4xf32> to vector<1xf32>
    %82 = vector.shape_cast %81 : vector<1xf32> to vector<1x1x1xf32>
    %83 = vector.extract %82[0, 0, 0] : f32 from vector<1x1x1xf32>
    %cst_32 = arith.constant 1.280000e+02 : f32
    %84 = arith.divf %83, %cst_32 : f32
    %85 = arith.mulf %78, %78 : f32
    %86 = arith.subf %84, %85 : f32
    %87 = vector.broadcast %78 : f32 to vector<1x4xf32>
    %88 = arith.mulf %33, %87 : vector<1x4xf32>
    %89 = arith.addf %70, %88 : vector<1x4xf32>
    %cst_33 = arith.constant 9.99999974E-6 : f32
    %90 = arith.addf %86, %cst_33 : f32
    %91 = math.rsqrt %90 : f32
    %92 = vector.broadcast %91 : f32 to vector<1x4xf32>
    %93 = arith.mulf %33, %92 : vector<1x4xf32>
    %94 = arith.addf %71, %93 : vector<1x4xf32>
    %95 = vector.broadcast %40 : vector<1x4xf32> to vector<64x4xf32>
    %96 = arith.mulf %67, %95 : vector<64x4xf32>
    %97 = vector.shape_cast %96 : vector<64x4xf32> to vector<1x64x4xf32>
    %cst_34 = arith.constant dense<0.000000e+00> : vector<1xf32>
    %98 = vector.multi_reduction <add>, %97, %cst_34 [1, 2] : vector<1x64x4xf32> to vector<1xf32>
    %99 = vector.shape_cast %98 : vector<1xf32> to vector<1x1x1xf32>
    %100 = vector.extract %99[0, 0, 0] : f32 from vector<1x1x1xf32>
    %cst_35 = arith.constant 1.280000e+02 : f32
    %101 = arith.divf %100, %cst_35 : f32
    %102 = arith.mulf %96, %67 : vector<64x4xf32>
    %103 = vector.shape_cast %102 : vector<64x4xf32> to vector<1x64x4xf32>
    %cst_36 = arith.constant dense<0.000000e+00> : vector<1xf32>
    %104 = vector.multi_reduction <add>, %103, %cst_36 [1, 2] : vector<1x64x4xf32> to vector<1xf32>
    %105 = vector.shape_cast %104 : vector<1xf32> to vector<1x1x1xf32>
    %106 = vector.extract %105[0, 0, 0] : f32 from vector<1x1x1xf32>
    %cst_37 = arith.constant 1.280000e+02 : f32
    %107 = arith.divf %106, %cst_37 : f32
    %108 = arith.mulf %101, %101 : f32
    %109 = arith.subf %107, %108 : f32
    %110 = vector.broadcast %101 : f32 to vector<1x4xf32>
    %111 = arith.mulf %40, %110 : vector<1x4xf32>
    %112 = arith.addf %89, %111 : vector<1x4xf32>
    %cst_38 = arith.constant 9.99999974E-6 : f32
    %113 = arith.addf %109, %cst_38 : f32
    %114 = math.rsqrt %113 : f32
    %115 = vector.broadcast %114 : f32 to vector<1x4xf32>
    %116 = arith.mulf %40, %115 : vector<1x4xf32>
    %117 = arith.addf %94, %116 : vector<1x4xf32>
    %118 = vector.broadcast %112 : vector<1x4xf32> to vector<64x4xf32>
    %119 = arith.subf %67, %118 : vector<64x4xf32>
    %120 = arith.mulf %117, %68 : vector<1x4xf32>
    %121 = vector.broadcast %120 : vector<1x4xf32> to vector<64x4xf32>
    %122 = arith.mulf %119, %121 : vector<64x4xf32>
    %123 = vector.broadcast %69 : vector<1x4xf32> to vector<64x4xf32>
    %124 = arith.addf %122, %123 : vector<64x4xf32>
    %125 = arith.negf %124 : vector<64x4xf32>
    %126 = math.exp %125 : vector<64x4xf32>
    %cst_39 = arith.constant 1.000000e+00 : f32
    %127 = vector.broadcast %cst_39 : f32 to vector<64x4xf32>
    %128 = arith.addf %127, %126 : vector<64x4xf32>
    %129 = arith.divf %127, %128 : vector<64x4xf32>
    %130 = arith.mulf %124, %129 : vector<64x4xf32>
    %131 = vector.extract_strided_slice %0 {offsets = [0, 40], sizes = [1, 8], strides = [1, 1]} : vector<1x128xf32> to vector<1x8xf32>
    %cst_40 = arith.constant 0.000000e+00 : f32
    %132 = vector.broadcast %cst_40 : f32 to vector<9x4xf32>
    %133 = tpu.concatenate %132, %130, %132 in 0 : vector<9x4xf32>, vector<64x4xf32>, vector<9x4xf32> -> vector<82x4xf32>
    %134 = vector.extract_strided_slice %133 {offsets = [0, 0], sizes = [64, 4], strides = [1, 1]} : vector<82x4xf32> to vector<64x4xf32>
    %135 = vector.broadcast %21 : vector<64x1xf32> to vector<64x4xf32>
    %136 = arith.mulf %134, %135 : vector<64x4xf32>
    %137 = vector.extract_strided_slice %133 {offsets = [1, 0], sizes = [64, 4], strides = [1, 1]} : vector<82x4xf32> to vector<64x4xf32>
    %138 = vector.extract_strided_slice %133 {offsets = [2, 0], sizes = [64, 4], strides = [1, 1]} : vector<82x4xf32> to vector<64x4xf32>
    %139 = vector.broadcast %25 : vector<64x1xf32> to vector<64x4xf32>
    %140 = arith.mulf %138, %139 : vector<64x4xf32>
    %141 = vector.extract_strided_slice %133 {offsets = [8, 0], sizes = [64, 4], strides = [1, 1]} : vector<82x4xf32> to vector<64x4xf32>
    %142 = vector.broadcast %21 : vector<64x1xf32> to vector<64x4xf32>
    %143 = arith.mulf %141, %142 : vector<64x4xf32>
    %144 = vector.extract_strided_slice %133 {offsets = [9, 0], sizes = [64, 4], strides = [1, 1]} : vector<82x4xf32> to vector<64x4xf32>
    %145 = vector.extract_strided_slice %133 {offsets = [10, 0], sizes = [64, 4], strides = [1, 1]} : vector<82x4xf32> to vector<64x4xf32>
    %146 = vector.broadcast %25 : vector<64x1xf32> to vector<64x4xf32>
    %147 = arith.mulf %145, %146 : vector<64x4xf32>
    %148 = vector.extract_strided_slice %133 {offsets = [16, 0], sizes = [64, 4], strides = [1, 1]} : vector<82x4xf32> to vector<64x4xf32>
    %149 = vector.broadcast %21 : vector<64x1xf32> to vector<64x4xf32>
    %150 = arith.mulf %148, %149 : vector<64x4xf32>
    %151 = vector.extract_strided_slice %133 {offsets = [17, 0], sizes = [64, 4], strides = [1, 1]} : vector<82x4xf32> to vector<64x4xf32>
    %152 = vector.extract_strided_slice %133 {offsets = [18, 0], sizes = [64, 4], strides = [1, 1]} : vector<82x4xf32> to vector<64x4xf32>
    %153 = vector.broadcast %25 : vector<64x1xf32> to vector<64x4xf32>
    %154 = arith.mulf %152, %153 : vector<64x4xf32>
    %155 = tpu.concatenate %136, %137, %140, %143, %144, %147, %150, %151, %154 in 1 : vector<64x4xf32>, vector<64x4xf32>, vector<64x4xf32>, vector<64x4xf32>, vector<64x4xf32>, vector<64x4xf32>, vector<64x4xf32>, vector<64x4xf32>, vector<64x4xf32> -> vector<64x36xf32>
    %cst_41 = arith.constant dense<0.000000e+00> : vector<64x8xf32>
    %156 = tpu.matmul %155, %56, %cst_41 {dimension_numbers = #tpu.dot_dimension_numbers<[1], [0], [0], [1], [0, 0, 1, 1], [], []>} : vector<64x36xf32>, vector<36x8xf32>, vector<64x8xf32> -> vector<64x8xf32>
    %157 = vector.broadcast %131 : vector<1x8xf32> to vector<64x8xf32>
    %158 = arith.addf %156, %157 : vector<64x8xf32>
    %159 = vector.extract_strided_slice %66 {offsets = [0, 0], sizes = [1, 8], strides = [1, 1]} : vector<2x8xf32> to vector<1x8xf32>
    %160 = vector.broadcast %159 : vector<1x8xf32> to vector<64x8xf32>
    %161 = arith.addf %158, %160 : vector<64x8xf32>
    %162 = vector.extract_strided_slice %0 {offsets = [0, 8], sizes = [1, 8], strides = [1, 1]} : vector<1x128xf32> to vector<1x8xf32>
    %163 = vector.extract_strided_slice %0 {offsets = [0, 16], sizes = [1, 8], strides = [1, 1]} : vector<1x128xf32> to vector<1x8xf32>
    %cst_42 = arith.constant 0.000000e+00 : f32
    %164 = vector.broadcast %cst_42 : f32 to vector<1x8xf32>
    %cst_43 = arith.constant 0.000000e+00 : f32
    %165 = vector.broadcast %cst_43 : f32 to vector<1x8xf32>
    %166 = vector.broadcast %48 : vector<1x8xf32> to vector<64x8xf32>
    %167 = arith.mulf %161, %166 : vector<64x8xf32>
    %168 = vector.shape_cast %167 : vector<64x8xf32> to vector<1x64x8xf32>
    %cst_44 = arith.constant dense<0.000000e+00> : vector<1xf32>
    %169 = vector.multi_reduction <add>, %168, %cst_44 [1, 2] : vector<1x64x8xf32> to vector<1xf32>
    %170 = vector.shape_cast %169 : vector<1xf32> to vector<1x1x1xf32>
    %171 = vector.extract %170[0, 0, 0] : f32 from vector<1x1x1xf32>
    %cst_45 = arith.constant 2.560000e+02 : f32
    %172 = arith.divf %171, %cst_45 : f32
    %173 = arith.mulf %167, %161 : vector<64x8xf32>
    %174 = vector.shape_cast %173 : vector<64x8xf32> to vector<1x64x8xf32>
    %cst_46 = arith.constant dense<0.000000e+00> : vector<1xf32>
    %175 = vector.multi_reduction <add>, %174, %cst_46 [1, 2] : vector<1x64x8xf32> to vector<1xf32>
    %176 = vector.shape_cast %175 : vector<1xf32> to vector<1x1x1xf32>
    %177 = vector.extract %176[0, 0, 0] : f32 from vector<1x1x1xf32>
    %cst_47 = arith.constant 2.560000e+02 : f32
    %178 = arith.divf %177, %cst_47 : f32
    %179 = arith.mulf %172, %172 : f32
    %180 = arith.subf %178, %179 : f32
    %181 = vector.broadcast %172 : f32 to vector<1x8xf32>
    %182 = arith.mulf %48, %181 : vector<1x8xf32>
    %183 = arith.addf %164, %182 : vector<1x8xf32>
    %cst_48 = arith.constant 9.99999974E-6 : f32
    %184 = arith.addf %180, %cst_48 : f32
    %185 = math.rsqrt %184 : f32
    %186 = vector.broadcast %185 : f32 to vector<1x8xf32>
    %187 = arith.mulf %48, %186 : vector<1x8xf32>
    %188 = arith.addf %165, %187 : vector<1x8xf32>
    %189 = vector.broadcast %55 : vector<1x8xf32> to vector<64x8xf32>
    %190 = arith.mulf %161, %189 : vector<64x8xf32>
    %191 = vector.shape_cast %190 : vector<64x8xf32> to vector<1x64x8xf32>
    %cst_49 = arith.constant dense<0.000000e+00> : vector<1xf32>
    %192 = vector.multi_reduction <add>, %191, %cst_49 [1, 2] : vector<1x64x8xf32> to vector<1xf32>
    %193 = vector.shape_cast %192 : vector<1xf32> to vector<1x1x1xf32>
    %194 = vector.extract %193[0, 0, 0] : f32 from vector<1x1x1xf32>
    %cst_50 = arith.constant 2.560000e+02 : f32
    %195 = arith.divf %194, %cst_50 : f32
    %196 = arith.mulf %190, %161 : vector<64x8xf32>
    %197 = vector.shape_cast %196 : vector<64x8xf32> to vector<1x64x8xf32>
    %cst_51 = arith.constant dense<0.000000e+00> : vector<1xf32>
    %198 = vector.multi_reduction <add>, %197, %cst_51 [1, 2] : vector<1x64x8xf32> to vector<1xf32>
    %199 = vector.shape_cast %198 : vector<1xf32> to vector<1x1x1xf32>
    %200 = vector.extract %199[0, 0, 0] : f32 from vector<1x1x1xf32>
    %cst_52 = arith.constant 2.560000e+02 : f32
    %201 = arith.divf %200, %cst_52 : f32
    %202 = arith.mulf %195, %195 : f32
    %203 = arith.subf %201, %202 : f32
    %204 = vector.broadcast %195 : f32 to vector<1x8xf32>
    %205 = arith.mulf %55, %204 : vector<1x8xf32>
    %206 = arith.addf %183, %205 : vector<1x8xf32>
    %cst_53 = arith.constant 9.99999974E-6 : f32
    %207 = arith.addf %203, %cst_53 : f32
    %208 = math.rsqrt %207 : f32
    %209 = vector.broadcast %208 : f32 to vector<1x8xf32>
    %210 = arith.mulf %55, %209 : vector<1x8xf32>
    %211 = arith.addf %188, %210 : vector<1x8xf32>
    %212 = vector.broadcast %206 : vector<1x8xf32> to vector<64x8xf32>
    %213 = arith.subf %161, %212 : vector<64x8xf32>
    %214 = arith.mulf %211, %162 : vector<1x8xf32>
    %215 = vector.broadcast %214 : vector<1x8xf32> to vector<64x8xf32>
    %216 = arith.mulf %213, %215 : vector<64x8xf32>
    %217 = vector.broadcast %163 : vector<1x8xf32> to vector<64x8xf32>
    %218 = arith.addf %216, %217 : vector<64x8xf32>
    %219 = arith.negf %218 : vector<64x8xf32>
    %220 = math.exp %219 : vector<64x8xf32>
    %cst_54 = arith.constant 1.000000e+00 : f32
    %221 = vector.broadcast %cst_54 : f32 to vector<64x8xf32>
    %222 = arith.addf %221, %220 : vector<64x8xf32>
    %223 = arith.divf %221, %222 : vector<64x8xf32>
    %224 = arith.mulf %218, %223 : vector<64x8xf32>
    %225 = vector.extract_strided_slice %0 {offsets = [0, 48], sizes = [1, 8], strides = [1, 1]} : vector<1x128xf32> to vector<1x8xf32>
    %cst_55 = arith.constant 0.000000e+00 : f32
    %226 = vector.broadcast %cst_55 : f32 to vector<9x8xf32>
    %227 = tpu.concatenate %226, %224, %226 in 0 : vector<9x8xf32>, vector<64x8xf32>, vector<9x8xf32> -> vector<82x8xf32>
    %228 = vector.extract_strided_slice %227 {offsets = [0, 0], sizes = [64, 8], strides = [1, 1]} : vector<82x8xf32> to vector<64x8xf32>
    %229 = vector.broadcast %21 : vector<64x1xf32> to vector<64x8xf32>
    %230 = arith.mulf %228, %229 : vector<64x8xf32>
    %231 = vector.extract_strided_slice %227 {offsets = [1, 0], sizes = [64, 8], strides = [1, 1]} : vector<82x8xf32> to vector<64x8xf32>
    %232 = vector.extract_strided_slice %227 {offsets = [2, 0], sizes = [64, 8], strides = [1, 1]} : vector<82x8xf32> to vector<64x8xf32>
    %233 = vector.broadcast %25 : vector<64x1xf32> to vector<64x8xf32>
    %234 = arith.mulf %232, %233 : vector<64x8xf32>
    %235 = vector.extract_strided_slice %227 {offsets = [8, 0], sizes = [64, 8], strides = [1, 1]} : vector<82x8xf32> to vector<64x8xf32>
    %236 = vector.broadcast %21 : vector<64x1xf32> to vector<64x8xf32>
    %237 = arith.mulf %235, %236 : vector<64x8xf32>
    %238 = vector.extract_strided_slice %227 {offsets = [9, 0], sizes = [64, 8], strides = [1, 1]} : vector<82x8xf32> to vector<64x8xf32>
    %239 = vector.extract_strided_slice %227 {offsets = [10, 0], sizes = [64, 8], strides = [1, 1]} : vector<82x8xf32> to vector<64x8xf32>
    %240 = vector.broadcast %25 : vector<64x1xf32> to vector<64x8xf32>
    %241 = arith.mulf %239, %240 : vector<64x8xf32>
    %242 = vector.extract_strided_slice %227 {offsets = [16, 0], sizes = [64, 8], strides = [1, 1]} : vector<82x8xf32> to vector<64x8xf32>
    %243 = vector.broadcast %21 : vector<64x1xf32> to vector<64x8xf32>
    %244 = arith.mulf %242, %243 : vector<64x8xf32>
    %245 = vector.extract_strided_slice %227 {offsets = [17, 0], sizes = [64, 8], strides = [1, 1]} : vector<82x8xf32> to vector<64x8xf32>
    %246 = vector.extract_strided_slice %227 {offsets = [18, 0], sizes = [64, 8], strides = [1, 1]} : vector<82x8xf32> to vector<64x8xf32>
    %247 = vector.broadcast %25 : vector<64x1xf32> to vector<64x8xf32>
    %248 = arith.mulf %246, %247 : vector<64x8xf32>
    %249 = tpu.concatenate %230, %231, %234, %237, %238, %241, %244, %245, %248 in 1 : vector<64x8xf32>, vector<64x8xf32>, vector<64x8xf32>, vector<64x8xf32>, vector<64x8xf32>, vector<64x8xf32>, vector<64x8xf32>, vector<64x8xf32>, vector<64x8xf32> -> vector<64x72xf32>
    %cst_56 = arith.constant dense<0.000000e+00> : vector<64x8xf32>
    %250 = tpu.matmul %249, %57, %cst_56 {dimension_numbers = #tpu.dot_dimension_numbers<[1], [0], [0], [1], [0, 0, 1, 1], [], []>} : vector<64x72xf32>, vector<72x8xf32>, vector<64x8xf32> -> vector<64x8xf32>
    %251 = vector.broadcast %225 : vector<1x8xf32> to vector<64x8xf32>
    %252 = arith.addf %250, %251 : vector<64x8xf32>
    %cst_57 = arith.constant dense<0.000000e+00> : vector<64x8xf32>
    %253 = tpu.matmul %67, %58, %cst_57 {dimension_numbers = #tpu.dot_dimension_numbers<[1], [0], [0], [1], [0, 0, 1, 1], [], []>} : vector<64x4xf32>, vector<4x8xf32>, vector<64x8xf32> -> vector<64x8xf32>
    %254 = arith.addf %252, %253 : vector<64x8xf32>
    %255 = vector.extract_strided_slice %0 {offsets = [0, 64], sizes = [1, 8], strides = [1, 1]} : vector<1x128xf32> to vector<1x8xf32>
    %256 = vector.broadcast %255 : vector<1x8xf32> to vector<64x8xf32>
    %257 = arith.addf %254, %256 : vector<64x8xf32>
    %258 = vector.extract_strided_slice %0 {offsets = [0, 24], sizes = [1, 8], strides = [1, 1]} : vector<1x128xf32> to vector<1x8xf32>
    %259 = vector.extract_strided_slice %0 {offsets = [0, 32], sizes = [1, 8], strides = [1, 1]} : vector<1x128xf32> to vector<1x8xf32>
    %cst_58 = arith.constant 0.000000e+00 : f32
    %260 = vector.broadcast %cst_58 : f32 to vector<1x8xf32>
    %cst_59 = arith.constant 0.000000e+00 : f32
    %261 = vector.broadcast %cst_59 : f32 to vector<1x8xf32>
    %262 = vector.broadcast %48 : vector<1x8xf32> to vector<64x8xf32>
    %263 = arith.mulf %257, %262 : vector<64x8xf32>
    %264 = vector.shape_cast %263 : vector<64x8xf32> to vector<1x64x8xf32>
    %cst_60 = arith.constant dense<0.000000e+00> : vector<1xf32>
    %265 = vector.multi_reduction <add>, %264, %cst_60 [1, 2] : vector<1x64x8xf32> to vector<1xf32>
    %266 = vector.shape_cast %265 : vector<1xf32> to vector<1x1x1xf32>
    %267 = vector.extract %266[0, 0, 0] : f32 from vector<1x1x1xf32>
    %cst_61 = arith.constant 2.560000e+02 : f32
    %268 = arith.divf %267, %cst_61 : f32
    %269 = arith.mulf %263, %257 : vector<64x8xf32>
    %270 = vector.shape_cast %269 : vector<64x8xf32> to vector<1x64x8xf32>
    %cst_62 = arith.constant dense<0.000000e+00> : vector<1xf32>
    %271 = vector.multi_reduction <add>, %270, %cst_62 [1, 2] : vector<1x64x8xf32> to vector<1xf32>
    %272 = vector.shape_cast %271 : vector<1xf32> to vector<1x1x1xf32>
    %273 = vector.extract %272[0, 0, 0] : f32 from vector<1x1x1xf32>
    %cst_63 = arith.constant 2.560000e+02 : f32
    %274 = arith.divf %273, %cst_63 : f32
    %275 = arith.mulf %268, %268 : f32
    %276 = arith.subf %274, %275 : f32
    %277 = vector.broadcast %268 : f32 to vector<1x8xf32>
    %278 = arith.mulf %48, %277 : vector<1x8xf32>
    %279 = arith.addf %260, %278 : vector<1x8xf32>
    %cst_64 = arith.constant 9.99999974E-6 : f32
    %280 = arith.addf %276, %cst_64 : f32
    %281 = math.rsqrt %280 : f32
    %282 = vector.broadcast %281 : f32 to vector<1x8xf32>
    %283 = arith.mulf %48, %282 : vector<1x8xf32>
    %284 = arith.addf %261, %283 : vector<1x8xf32>
    %285 = vector.broadcast %55 : vector<1x8xf32> to vector<64x8xf32>
    %286 = arith.mulf %257, %285 : vector<64x8xf32>
    %287 = vector.shape_cast %286 : vector<64x8xf32> to vector<1x64x8xf32>
    %cst_65 = arith.constant dense<0.000000e+00> : vector<1xf32>
    %288 = vector.multi_reduction <add>, %287, %cst_65 [1, 2] : vector<1x64x8xf32> to vector<1xf32>
    %289 = vector.shape_cast %288 : vector<1xf32> to vector<1x1x1xf32>
    %290 = vector.extract %289[0, 0, 0] : f32 from vector<1x1x1xf32>
    %cst_66 = arith.constant 2.560000e+02 : f32
    %291 = arith.divf %290, %cst_66 : f32
    %292 = arith.mulf %286, %257 : vector<64x8xf32>
    %293 = vector.shape_cast %292 : vector<64x8xf32> to vector<1x64x8xf32>
    %cst_67 = arith.constant dense<0.000000e+00> : vector<1xf32>
    %294 = vector.multi_reduction <add>, %293, %cst_67 [1, 2] : vector<1x64x8xf32> to vector<1xf32>
    %295 = vector.shape_cast %294 : vector<1xf32> to vector<1x1x1xf32>
    %296 = vector.extract %295[0, 0, 0] : f32 from vector<1x1x1xf32>
    %cst_68 = arith.constant 2.560000e+02 : f32
    %297 = arith.divf %296, %cst_68 : f32
    %298 = arith.mulf %291, %291 : f32
    %299 = arith.subf %297, %298 : f32
    %300 = vector.broadcast %291 : f32 to vector<1x8xf32>
    %301 = arith.mulf %55, %300 : vector<1x8xf32>
    %302 = arith.addf %279, %301 : vector<1x8xf32>
    %cst_69 = arith.constant 9.99999974E-6 : f32
    %303 = arith.addf %299, %cst_69 : f32
    %304 = math.rsqrt %303 : f32
    %305 = vector.broadcast %304 : f32 to vector<1x8xf32>
    %306 = arith.mulf %55, %305 : vector<1x8xf32>
    %307 = arith.addf %284, %306 : vector<1x8xf32>
    %308 = vector.broadcast %302 : vector<1x8xf32> to vector<64x8xf32>
    %309 = arith.subf %257, %308 : vector<64x8xf32>
    %310 = arith.mulf %307, %258 : vector<1x8xf32>
    %311 = vector.broadcast %310 : vector<1x8xf32> to vector<64x8xf32>
    %312 = arith.mulf %309, %311 : vector<64x8xf32>
    %313 = vector.broadcast %259 : vector<1x8xf32> to vector<64x8xf32>
    %314 = arith.addf %312, %313 : vector<64x8xf32>
    %cst_70 = arith.constant dense<0.000000e+00> : vector<64x24xf32>
    %315 = tpu.matmul %314, %59, %cst_70 {dimension_numbers = #tpu.dot_dimension_numbers<[1], [0], [0], [1], [0, 0, 1, 1], [], []>} : vector<64x8xf32>, vector<8x24xf32>, vector<64x24xf32> -> vector<64x24xf32>
    %316 = vector.extract_strided_slice %315 {offsets = [0, 0], sizes = [64, 8], strides = [1, 1]} : vector<64x24xf32> to vector<64x8xf32>
    %317 = vector.extract_strided_slice %315 {offsets = [0, 8], sizes = [64, 8], strides = [1, 1]} : vector<64x24xf32> to vector<64x8xf32>
    %318 = vector.extract_strided_slice %315 {offsets = [0, 16], sizes = [64, 8], strides = [1, 1]} : vector<64x24xf32> to vector<64x8xf32>
    %cst_71 = arith.constant dense<0.000000e+00> : vector<64x64xf32>
    %319 = tpu.matmul %316, %317, %cst_71 {dimension_numbers = #tpu.dot_dimension_numbers<[1], [1], [0], [0], [0, 0, 1, 0], [], []>} : vector<64x8xf32>, vector<64x8xf32>, vector<64x64xf32> -> vector<64x64xf32>
    %cst_72 = arith.constant 0.353553385 : f32
    %320 = vector.broadcast %cst_72 : f32 to vector<64x64xf32>
    %321 = arith.mulf %319, %320 : vector<64x64xf32>
    %cst_73 = arith.constant dense<0xFF800000> : vector<64xf32>
    %322 = vector.multi_reduction <maximumf>, %321, %cst_73 [1] : vector<64x64xf32> to vector<64xf32>
    %323 = vector.shape_cast %322 : vector<64xf32> to vector<64x1xf32>
    %324 = vector.broadcast %323 : vector<64x1xf32> to vector<64x64xf32>
    %325 = arith.subf %321, %324 : vector<64x64xf32>
    %326 = math.exp %325 : vector<64x64xf32>
    %cst_74 = arith.constant dense<0.000000e+00> : vector<64xf32>
    %327 = vector.multi_reduction <add>, %326, %cst_74 [1] : vector<64x64xf32> to vector<64xf32>
    %328 = vector.shape_cast %327 : vector<64xf32> to vector<64x1xf32>
    %329 = tpu.reciprocal %328 {approx = true} : vector<64x1xf32> -> vector<64x1xf32>
    %330 = vector.broadcast %329 : vector<64x1xf32> to vector<64x64xf32>
    %331 = arith.mulf %326, %330 : vector<64x64xf32>
    %cst_75 = arith.constant dense<0.000000e+00> : vector<64x8xf32>
    %332 = tpu.matmul %331, %318, %cst_75 {dimension_numbers = #tpu.dot_dimension_numbers<[1], [0], [0], [1], [0, 0, 1, 1], [], []>} : vector<64x64xf32>, vector<64x8xf32>, vector<64x8xf32> -> vector<64x8xf32>
    %cst_76 = arith.constant dense<0.000000e+00> : vector<64x8xf32>
    %333 = tpu.matmul %332, %60, %cst_76 {dimension_numbers = #tpu.dot_dimension_numbers<[1], [0], [0], [1], [0, 0, 1, 1], [], []>} : vector<64x8xf32>, vector<8x8xf32>, vector<64x8xf32> -> vector<64x8xf32>
    %334 = vector.extract_strided_slice %0 {offsets = [0, 72], sizes = [1, 8], strides = [1, 1]} : vector<1x128xf32> to vector<1x8xf32>
    %335 = vector.broadcast %334 : vector<1x8xf32> to vector<64x8xf32>
    %336 = arith.addf %333, %335 : vector<64x8xf32>
    %337 = arith.addf %336, %257 : vector<64x8xf32>
    %c0_77 = arith.constant 0 : index
    %c0_78 = arith.constant 0 : index
    %338 = vector.load %arg9[%c0_77, %c0_78] : memref<128x8xf32, #tpu.memory_space<vmem>>, vector<64x8xf32>
    tpu.vector_store %arg9[%c0_77, %c0_78], %337 {strides = array<i32>} : memref<128x8xf32, #tpu.memory_space<vmem>>, vector<64x8xf32>,
    %c64 = arith.constant 64 : index
    %c0_79 = arith.constant 0 : index
    %339 = vector.load %arg0[%c64, %c0_79] : memref<128x4xf32, #tpu.memory_space<vmem>>, vector<64x4xf32>
    %340 = vector.extract_strided_slice %0 {offsets = [0, 0], sizes = [1, 4], strides = [1, 1]} : vector<1x128xf32> to vector<1x4xf32>
    %341 = vector.extract_strided_slice %0 {offsets = [0, 4], sizes = [1, 4], strides = [1, 1]} : vector<1x128xf32> to vector<1x4xf32>
    %cst_80 = arith.constant 0.000000e+00 : f32
    %342 = vector.broadcast %cst_80 : f32 to vector<1x4xf32>
    %cst_81 = arith.constant 0.000000e+00 : f32
    %343 = vector.broadcast %cst_81 : f32 to vector<1x4xf32>
    %344 = vector.broadcast %33 : vector<1x4xf32> to vector<64x4xf32>
    %345 = arith.mulf %339, %344 : vector<64x4xf32>
    %346 = vector.shape_cast %345 : vector<64x4xf32> to vector<1x64x4xf32>
    %cst_82 = arith.constant dense<0.000000e+00> : vector<1xf32>
    %347 = vector.multi_reduction <add>, %346, %cst_82 [1, 2] : vector<1x64x4xf32> to vector<1xf32>
    %348 = vector.shape_cast %347 : vector<1xf32> to vector<1x1x1xf32>
    %349 = vector.extract %348[0, 0, 0] : f32 from vector<1x1x1xf32>
    %cst_83 = arith.constant 1.280000e+02 : f32
    %350 = arith.divf %349, %cst_83 : f32
    %351 = arith.mulf %345, %339 : vector<64x4xf32>
    %352 = vector.shape_cast %351 : vector<64x4xf32> to vector<1x64x4xf32>
    %cst_84 = arith.constant dense<0.000000e+00> : vector<1xf32>
    %353 = vector.multi_reduction <add>, %352, %cst_84 [1, 2] : vector<1x64x4xf32> to vector<1xf32>
    %354 = vector.shape_cast %353 : vector<1xf32> to vector<1x1x1xf32>
    %355 = vector.extract %354[0, 0, 0] : f32 from vector<1x1x1xf32>
    %cst_85 = arith.constant 1.280000e+02 : f32
    %356 = arith.divf %355, %cst_85 : f32
    %357 = arith.mulf %350, %350 : f32
    %358 = arith.subf %356, %357 : f32
    %359 = vector.broadcast %350 : f32 to vector<1x4xf32>
    %360 = arith.mulf %33, %359 : vector<1x4xf32>
    %361 = arith.addf %342, %360 : vector<1x4xf32>
    %cst_86 = arith.constant 9.99999974E-6 : f32
    %362 = arith.addf %358, %cst_86 : f32
    %363 = math.rsqrt %362 : f32
    %364 = vector.broadcast %363 : f32 to vector<1x4xf32>
    %365 = arith.mulf %33, %364 : vector<1x4xf32>
    %366 = arith.addf %343, %365 : vector<1x4xf32>
    %367 = vector.broadcast %40 : vector<1x4xf32> to vector<64x4xf32>
    %368 = arith.mulf %339, %367 : vector<64x4xf32>
    %369 = vector.shape_cast %368 : vector<64x4xf32> to vector<1x64x4xf32>
    %cst_87 = arith.constant dense<0.000000e+00> : vector<1xf32>
    %370 = vector.multi_reduction <add>, %369, %cst_87 [1, 2] : vector<1x64x4xf32> to vector<1xf32>
    %371 = vector.shape_cast %370 : vector<1xf32> to vector<1x1x1xf32>
    %372 = vector.extract %371[0, 0, 0] : f32 from vector<1x1x1xf32>
    %cst_88 = arith.constant 1.280000e+02 : f32
    %373 = arith.divf %372, %cst_88 : f32
    %374 = arith.mulf %368, %339 : vector<64x4xf32>
    %375 = vector.shape_cast %374 : vector<64x4xf32> to vector<1x64x4xf32>
    %cst_89 = arith.constant dense<0.000000e+00> : vector<1xf32>
    %376 = vector.multi_reduction <add>, %375, %cst_89 [1, 2] : vector<1x64x4xf32> to vector<1xf32>
    %377 = vector.shape_cast %376 : vector<1xf32> to vector<1x1x1xf32>
    %378 = vector.extract %377[0, 0, 0] : f32 from vector<1x1x1xf32>
    %cst_90 = arith.constant 1.280000e+02 : f32
    %379 = arith.divf %378, %cst_90 : f32
    %380 = arith.mulf %373, %373 : f32
    %381 = arith.subf %379, %380 : f32
    %382 = vector.broadcast %373 : f32 to vector<1x4xf32>
    %383 = arith.mulf %40, %382 : vector<1x4xf32>
    %384 = arith.addf %361, %383 : vector<1x4xf32>
    %cst_91 = arith.constant 9.99999974E-6 : f32
    %385 = arith.addf %381, %cst_91 : f32
    %386 = math.rsqrt %385 : f32
    %387 = vector.broadcast %386 : f32 to vector<1x4xf32>
    %388 = arith.mulf %40, %387 : vector<1x4xf32>
    %389 = arith.addf %366, %388 : vector<1x4xf32>
    %390 = vector.broadcast %384 : vector<1x4xf32> to vector<64x4xf32>
    %391 = arith.subf %339, %390 : vector<64x4xf32>
    %392 = arith.mulf %389, %340 : vector<1x4xf32>
    %393 = vector.broadcast %392 : vector<1x4xf32> to vector<64x4xf32>
    %394 = arith.mulf %391, %393 : vector<64x4xf32>
    %395 = vector.broadcast %341 : vector<1x4xf32> to vector<64x4xf32>
    %396 = arith.addf %394, %395 : vector<64x4xf32>
    %397 = arith.negf %396 : vector<64x4xf32>
    %398 = math.exp %397 : vector<64x4xf32>
    %cst_92 = arith.constant 1.000000e+00 : f32
    %399 = vector.broadcast %cst_92 : f32 to vector<64x4xf32>
    %400 = arith.addf %399, %398 : vector<64x4xf32>
    %401 = arith.divf %399, %400 : vector<64x4xf32>
    %402 = arith.mulf %396, %401 : vector<64x4xf32>
    %403 = vector.extract_strided_slice %0 {offsets = [0, 40], sizes = [1, 8], strides = [1, 1]} : vector<1x128xf32> to vector<1x8xf32>
    %cst_93 = arith.constant 0.000000e+00 : f32
    %404 = vector.broadcast %cst_93 : f32 to vector<9x4xf32>
    %405 = tpu.concatenate %404, %402, %404 in 0 : vector<9x4xf32>, vector<64x4xf32>, vector<9x4xf32> -> vector<82x4xf32>
    %406 = vector.extract_strided_slice %405 {offsets = [0, 0], sizes = [64, 4], strides = [1, 1]} : vector<82x4xf32> to vector<64x4xf32>
    %407 = vector.broadcast %21 : vector<64x1xf32> to vector<64x4xf32>
    %408 = arith.mulf %406, %407 : vector<64x4xf32>
    %409 = vector.extract_strided_slice %405 {offsets = [1, 0], sizes = [64, 4], strides = [1, 1]} : vector<82x4xf32> to vector<64x4xf32>
    %410 = vector.extract_strided_slice %405 {offsets = [2, 0], sizes = [64, 4], strides = [1, 1]} : vector<82x4xf32> to vector<64x4xf32>
    %411 = vector.broadcast %25 : vector<64x1xf32> to vector<64x4xf32>
    %412 = arith.mulf %410, %411 : vector<64x4xf32>
    %413 = vector.extract_strided_slice %405 {offsets = [8, 0], sizes = [64, 4], strides = [1, 1]} : vector<82x4xf32> to vector<64x4xf32>
    %414 = vector.broadcast %21 : vector<64x1xf32> to vector<64x4xf32>
    %415 = arith.mulf %413, %414 : vector<64x4xf32>
    %416 = vector.extract_strided_slice %405 {offsets = [9, 0], sizes = [64, 4], strides = [1, 1]} : vector<82x4xf32> to vector<64x4xf32>
    %417 = vector.extract_strided_slice %405 {offsets = [10, 0], sizes = [64, 4], strides = [1, 1]} : vector<82x4xf32> to vector<64x4xf32>
    %418 = vector.broadcast %25 : vector<64x1xf32> to vector<64x4xf32>
    %419 = arith.mulf %417, %418 : vector<64x4xf32>
    %420 = vector.extract_strided_slice %405 {offsets = [16, 0], sizes = [64, 4], strides = [1, 1]} : vector<82x4xf32> to vector<64x4xf32>
    %421 = vector.broadcast %21 : vector<64x1xf32> to vector<64x4xf32>
    %422 = arith.mulf %420, %421 : vector<64x4xf32>
    %423 = vector.extract_strided_slice %405 {offsets = [17, 0], sizes = [64, 4], strides = [1, 1]} : vector<82x4xf32> to vector<64x4xf32>
    %424 = vector.extract_strided_slice %405 {offsets = [18, 0], sizes = [64, 4], strides = [1, 1]} : vector<82x4xf32> to vector<64x4xf32>
    %425 = vector.broadcast %25 : vector<64x1xf32> to vector<64x4xf32>
    %426 = arith.mulf %424, %425 : vector<64x4xf32>
    %427 = tpu.concatenate %408, %409, %412, %415, %416, %419, %422, %423, %426 in 1 : vector<64x4xf32>, vector<64x4xf32>, vector<64x4xf32>, vector<64x4xf32>, vector<64x4xf32>, vector<64x4xf32>, vector<64x4xf32>, vector<64x4xf32>, vector<64x4xf32> -> vector<64x36xf32>
    %cst_94 = arith.constant dense<0.000000e+00> : vector<64x8xf32>
    %428 = tpu.matmul %427, %56, %cst_94 {dimension_numbers = #tpu.dot_dimension_numbers<[1], [0], [0], [1], [0, 0, 1, 1], [], []>} : vector<64x36xf32>, vector<36x8xf32>, vector<64x8xf32> -> vector<64x8xf32>
    %429 = vector.broadcast %403 : vector<1x8xf32> to vector<64x8xf32>
    %430 = arith.addf %428, %429 : vector<64x8xf32>
    %431 = vector.extract_strided_slice %66 {offsets = [1, 0], sizes = [1, 8], strides = [1, 1]} : vector<2x8xf32> to vector<1x8xf32>
    %432 = vector.broadcast %431 : vector<1x8xf32> to vector<64x8xf32>
    %433 = arith.addf %430, %432 : vector<64x8xf32>
    %434 = vector.extract_strided_slice %0 {offsets = [0, 8], sizes = [1, 8], strides = [1, 1]} : vector<1x128xf32> to vector<1x8xf32>
    %435 = vector.extract_strided_slice %0 {offsets = [0, 16], sizes = [1, 8], strides = [1, 1]} : vector<1x128xf32> to vector<1x8xf32>
    %cst_95 = arith.constant 0.000000e+00 : f32
    %436 = vector.broadcast %cst_95 : f32 to vector<1x8xf32>
    %cst_96 = arith.constant 0.000000e+00 : f32
    %437 = vector.broadcast %cst_96 : f32 to vector<1x8xf32>
    %438 = vector.broadcast %48 : vector<1x8xf32> to vector<64x8xf32>
    %439 = arith.mulf %433, %438 : vector<64x8xf32>
    %440 = vector.shape_cast %439 : vector<64x8xf32> to vector<1x64x8xf32>
    %cst_97 = arith.constant dense<0.000000e+00> : vector<1xf32>
    %441 = vector.multi_reduction <add>, %440, %cst_97 [1, 2] : vector<1x64x8xf32> to vector<1xf32>
    %442 = vector.shape_cast %441 : vector<1xf32> to vector<1x1x1xf32>
    %443 = vector.extract %442[0, 0, 0] : f32 from vector<1x1x1xf32>
    %cst_98 = arith.constant 2.560000e+02 : f32
    %444 = arith.divf %443, %cst_98 : f32
    %445 = arith.mulf %439, %433 : vector<64x8xf32>
    %446 = vector.shape_cast %445 : vector<64x8xf32> to vector<1x64x8xf32>
    %cst_99 = arith.constant dense<0.000000e+00> : vector<1xf32>
    %447 = vector.multi_reduction <add>, %446, %cst_99 [1, 2] : vector<1x64x8xf32> to vector<1xf32>
    %448 = vector.shape_cast %447 : vector<1xf32> to vector<1x1x1xf32>
    %449 = vector.extract %448[0, 0, 0] : f32 from vector<1x1x1xf32>
    %cst_100 = arith.constant 2.560000e+02 : f32
    %450 = arith.divf %449, %cst_100 : f32
    %451 = arith.mulf %444, %444 : f32
    %452 = arith.subf %450, %451 : f32
    %453 = vector.broadcast %444 : f32 to vector<1x8xf32>
    %454 = arith.mulf %48, %453 : vector<1x8xf32>
    %455 = arith.addf %436, %454 : vector<1x8xf32>
    %cst_101 = arith.constant 9.99999974E-6 : f32
    %456 = arith.addf %452, %cst_101 : f32
    %457 = math.rsqrt %456 : f32
    %458 = vector.broadcast %457 : f32 to vector<1x8xf32>
    %459 = arith.mulf %48, %458 : vector<1x8xf32>
    %460 = arith.addf %437, %459 : vector<1x8xf32>
    %461 = vector.broadcast %55 : vector<1x8xf32> to vector<64x8xf32>
    %462 = arith.mulf %433, %461 : vector<64x8xf32>
    %463 = vector.shape_cast %462 : vector<64x8xf32> to vector<1x64x8xf32>
    %cst_102 = arith.constant dense<0.000000e+00> : vector<1xf32>
    %464 = vector.multi_reduction <add>, %463, %cst_102 [1, 2] : vector<1x64x8xf32> to vector<1xf32>
    %465 = vector.shape_cast %464 : vector<1xf32> to vector<1x1x1xf32>
    %466 = vector.extract %465[0, 0, 0] : f32 from vector<1x1x1xf32>
    %cst_103 = arith.constant 2.560000e+02 : f32
    %467 = arith.divf %466, %cst_103 : f32
    %468 = arith.mulf %462, %433 : vector<64x8xf32>
    %469 = vector.shape_cast %468 : vector<64x8xf32> to vector<1x64x8xf32>
    %cst_104 = arith.constant dense<0.000000e+00> : vector<1xf32>
    %470 = vector.multi_reduction <add>, %469, %cst_104 [1, 2] : vector<1x64x8xf32> to vector<1xf32>
    %471 = vector.shape_cast %470 : vector<1xf32> to vector<1x1x1xf32>
    %472 = vector.extract %471[0, 0, 0] : f32 from vector<1x1x1xf32>
    %cst_105 = arith.constant 2.560000e+02 : f32
    %473 = arith.divf %472, %cst_105 : f32
    %474 = arith.mulf %467, %467 : f32
    %475 = arith.subf %473, %474 : f32
    %476 = vector.broadcast %467 : f32 to vector<1x8xf32>
    %477 = arith.mulf %55, %476 : vector<1x8xf32>
    %478 = arith.addf %455, %477 : vector<1x8xf32>
    %cst_106 = arith.constant 9.99999974E-6 : f32
    %479 = arith.addf %475, %cst_106 : f32
    %480 = math.rsqrt %479 : f32
    %481 = vector.broadcast %480 : f32 to vector<1x8xf32>
    %482 = arith.mulf %55, %481 : vector<1x8xf32>
    %483 = arith.addf %460, %482 : vector<1x8xf32>
    %484 = vector.broadcast %478 : vector<1x8xf32> to vector<64x8xf32>
    %485 = arith.subf %433, %484 : vector<64x8xf32>
    %486 = arith.mulf %483, %434 : vector<1x8xf32>
    %487 = vector.broadcast %486 : vector<1x8xf32> to vector<64x8xf32>
    %488 = arith.mulf %485, %487 : vector<64x8xf32>
    %489 = vector.broadcast %435 : vector<1x8xf32> to vector<64x8xf32>
    %490 = arith.addf %488, %489 : vector<64x8xf32>
    %491 = arith.negf %490 : vector<64x8xf32>
    %492 = math.exp %491 : vector<64x8xf32>
    %cst_107 = arith.constant 1.000000e+00 : f32
    %493 = vector.broadcast %cst_107 : f32 to vector<64x8xf32>
    %494 = arith.addf %493, %492 : vector<64x8xf32>
    %495 = arith.divf %493, %494 : vector<64x8xf32>
    %496 = arith.mulf %490, %495 : vector<64x8xf32>
    %497 = vector.extract_strided_slice %0 {offsets = [0, 48], sizes = [1, 8], strides = [1, 1]} : vector<1x128xf32> to vector<1x8xf32>
    %cst_108 = arith.constant 0.000000e+00 : f32
    %498 = vector.broadcast %cst_108 : f32 to vector<9x8xf32>
    %499 = tpu.concatenate %498, %496, %498 in 0 : vector<9x8xf32>, vector<64x8xf32>, vector<9x8xf32> -> vector<82x8xf32>
    %500 = vector.extract_strided_slice %499 {offsets = [0, 0], sizes = [64, 8], strides = [1, 1]} : vector<82x8xf32> to vector<64x8xf32>
    %501 = vector.broadcast %21 : vector<64x1xf32> to vector<64x8xf32>
    %502 = arith.mulf %500, %501 : vector<64x8xf32>
    %503 = vector.extract_strided_slice %499 {offsets = [1, 0], sizes = [64, 8], strides = [1, 1]} : vector<82x8xf32> to vector<64x8xf32>
    %504 = vector.extract_strided_slice %499 {offsets = [2, 0], sizes = [64, 8], strides = [1, 1]} : vector<82x8xf32> to vector<64x8xf32>
    %505 = vector.broadcast %25 : vector<64x1xf32> to vector<64x8xf32>
    %506 = arith.mulf %504, %505 : vector<64x8xf32>
    %507 = vector.extract_strided_slice %499 {offsets = [8, 0], sizes = [64, 8], strides = [1, 1]} : vector<82x8xf32> to vector<64x8xf32>
    %508 = vector.broadcast %21 : vector<64x1xf32> to vector<64x8xf32>
    %509 = arith.mulf %507, %508 : vector<64x8xf32>
    %510 = vector.extract_strided_slice %499 {offsets = [9, 0], sizes = [64, 8], strides = [1, 1]} : vector<82x8xf32> to vector<64x8xf32>
    %511 = vector.extract_strided_slice %499 {offsets = [10, 0], sizes = [64, 8], strides = [1, 1]} : vector<82x8xf32> to vector<64x8xf32>
    %512 = vector.broadcast %25 : vector<64x1xf32> to vector<64x8xf32>
    %513 = arith.mulf %511, %512 : vector<64x8xf32>
    %514 = vector.extract_strided_slice %499 {offsets = [16, 0], sizes = [64, 8], strides = [1, 1]} : vector<82x8xf32> to vector<64x8xf32>
    %515 = vector.broadcast %21 : vector<64x1xf32> to vector<64x8xf32>
    %516 = arith.mulf %514, %515 : vector<64x8xf32>
    %517 = vector.extract_strided_slice %499 {offsets = [17, 0], sizes = [64, 8], strides = [1, 1]} : vector<82x8xf32> to vector<64x8xf32>
    %518 = vector.extract_strided_slice %499 {offsets = [18, 0], sizes = [64, 8], strides = [1, 1]} : vector<82x8xf32> to vector<64x8xf32>
    %519 = vector.broadcast %25 : vector<64x1xf32> to vector<64x8xf32>
    %520 = arith.mulf %518, %519 : vector<64x8xf32>
    %521 = tpu.concatenate %502, %503, %506, %509, %510, %513, %516, %517, %520 in 1 : vector<64x8xf32>, vector<64x8xf32>, vector<64x8xf32>, vector<64x8xf32>, vector<64x8xf32>, vector<64x8xf32>, vector<64x8xf32>, vector<64x8xf32>, vector<64x8xf32> -> vector<64x72xf32>
    %cst_109 = arith.constant dense<0.000000e+00> : vector<64x8xf32>
    %522 = tpu.matmul %521, %57, %cst_109 {dimension_numbers = #tpu.dot_dimension_numbers<[1], [0], [0], [1], [0, 0, 1, 1], [], []>} : vector<64x72xf32>, vector<72x8xf32>, vector<64x8xf32> -> vector<64x8xf32>
    %523 = vector.broadcast %497 : vector<1x8xf32> to vector<64x8xf32>
    %524 = arith.addf %522, %523 : vector<64x8xf32>
    %cst_110 = arith.constant dense<0.000000e+00> : vector<64x8xf32>
    %525 = tpu.matmul %339, %58, %cst_110 {dimension_numbers = #tpu.dot_dimension_numbers<[1], [0], [0], [1], [0, 0, 1, 1], [], []>} : vector<64x4xf32>, vector<4x8xf32>, vector<64x8xf32> -> vector<64x8xf32>
    %526 = arith.addf %524, %525 : vector<64x8xf32>
    %527 = vector.extract_strided_slice %0 {offsets = [0, 64], sizes = [1, 8], strides = [1, 1]} : vector<1x128xf32> to vector<1x8xf32>
    %528 = vector.broadcast %527 : vector<1x8xf32> to vector<64x8xf32>
    %529 = arith.addf %526, %528 : vector<64x8xf32>
    %530 = vector.extract_strided_slice %0 {offsets = [0, 24], sizes = [1, 8], strides = [1, 1]} : vector<1x128xf32> to vector<1x8xf32>
    %531 = vector.extract_strided_slice %0 {offsets = [0, 32], sizes = [1, 8], strides = [1, 1]} : vector<1x128xf32> to vector<1x8xf32>
    %cst_111 = arith.constant 0.000000e+00 : f32
    %532 = vector.broadcast %cst_111 : f32 to vector<1x8xf32>
    %cst_112 = arith.constant 0.000000e+00 : f32
    %533 = vector.broadcast %cst_112 : f32 to vector<1x8xf32>
    %534 = vector.broadcast %48 : vector<1x8xf32> to vector<64x8xf32>
    %535 = arith.mulf %529, %534 : vector<64x8xf32>
    %536 = vector.shape_cast %535 : vector<64x8xf32> to vector<1x64x8xf32>
    %cst_113 = arith.constant dense<0.000000e+00> : vector<1xf32>
    %537 = vector.multi_reduction <add>, %536, %cst_113 [1, 2] : vector<1x64x8xf32> to vector<1xf32>
    %538 = vector.shape_cast %537 : vector<1xf32> to vector<1x1x1xf32>
    %539 = vector.extract %538[0, 0, 0] : f32 from vector<1x1x1xf32>
    %cst_114 = arith.constant 2.560000e+02 : f32
    %540 = arith.divf %539, %cst_114 : f32
    %541 = arith.mulf %535, %529 : vector<64x8xf32>
    %542 = vector.shape_cast %541 : vector<64x8xf32> to vector<1x64x8xf32>
    %cst_115 = arith.constant dense<0.000000e+00> : vector<1xf32>
    %543 = vector.multi_reduction <add>, %542, %cst_115 [1, 2] : vector<1x64x8xf32> to vector<1xf32>
    %544 = vector.shape_cast %543 : vector<1xf32> to vector<1x1x1xf32>
    %545 = vector.extract %544[0, 0, 0] : f32 from vector<1x1x1xf32>
    %cst_116 = arith.constant 2.560000e+02 : f32
    %546 = arith.divf %545, %cst_116 : f32
    %547 = arith.mulf %540, %540 : f32
    %548 = arith.subf %546, %547 : f32
    %549 = vector.broadcast %540 : f32 to vector<1x8xf32>
    %550 = arith.mulf %48, %549 : vector<1x8xf32>
    %551 = arith.addf %532, %550 : vector<1x8xf32>
    %cst_117 = arith.constant 9.99999974E-6 : f32
    %552 = arith.addf %548, %cst_117 : f32
    %553 = math.rsqrt %552 : f32
    %554 = vector.broadcast %553 : f32 to vector<1x8xf32>
    %555 = arith.mulf %48, %554 : vector<1x8xf32>
    %556 = arith.addf %533, %555 : vector<1x8xf32>
    %557 = vector.broadcast %55 : vector<1x8xf32> to vector<64x8xf32>
    %558 = arith.mulf %529, %557 : vector<64x8xf32>
    %559 = vector.shape_cast %558 : vector<64x8xf32> to vector<1x64x8xf32>
    %cst_118 = arith.constant dense<0.000000e+00> : vector<1xf32>
    %560 = vector.multi_reduction <add>, %559, %cst_118 [1, 2] : vector<1x64x8xf32> to vector<1xf32>
    %561 = vector.shape_cast %560 : vector<1xf32> to vector<1x1x1xf32>
    %562 = vector.extract %561[0, 0, 0] : f32 from vector<1x1x1xf32>
    %cst_119 = arith.constant 2.560000e+02 : f32
    %563 = arith.divf %562, %cst_119 : f32
    %564 = arith.mulf %558, %529 : vector<64x8xf32>
    %565 = vector.shape_cast %564 : vector<64x8xf32> to vector<1x64x8xf32>
    %cst_120 = arith.constant dense<0.000000e+00> : vector<1xf32>
    %566 = vector.multi_reduction <add>, %565, %cst_120 [1, 2] : vector<1x64x8xf32> to vector<1xf32>
    %567 = vector.shape_cast %566 : vector<1xf32> to vector<1x1x1xf32>
    %568 = vector.extract %567[0, 0, 0] : f32 from vector<1x1x1xf32>
    %cst_121 = arith.constant 2.560000e+02 : f32
    %569 = arith.divf %568, %cst_121 : f32
    %570 = arith.mulf %563, %563 : f32
    %571 = arith.subf %569, %570 : f32
    %572 = vector.broadcast %563 : f32 to vector<1x8xf32>
    %573 = arith.mulf %55, %572 : vector<1x8xf32>
    %574 = arith.addf %551, %573 : vector<1x8xf32>
    %cst_122 = arith.constant 9.99999974E-6 : f32
    %575 = arith.addf %571, %cst_122 : f32
    %576 = math.rsqrt %575 : f32
    %577 = vector.broadcast %576 : f32 to vector<1x8xf32>
    %578 = arith.mulf %55, %577 : vector<1x8xf32>
    %579 = arith.addf %556, %578 : vector<1x8xf32>
    %580 = vector.broadcast %574 : vector<1x8xf32> to vector<64x8xf32>
    %581 = arith.subf %529, %580 : vector<64x8xf32>
    %582 = arith.mulf %579, %530 : vector<1x8xf32>
    %583 = vector.broadcast %582 : vector<1x8xf32> to vector<64x8xf32>
    %584 = arith.mulf %581, %583 : vector<64x8xf32>
    %585 = vector.broadcast %531 : vector<1x8xf32> to vector<64x8xf32>
    %586 = arith.addf %584, %585 : vector<64x8xf32>
    %cst_123 = arith.constant dense<0.000000e+00> : vector<64x24xf32>
    %587 = tpu.matmul %586, %59, %cst_123 {dimension_numbers = #tpu.dot_dimension_numbers<[1], [0], [0], [1], [0, 0, 1, 1], [], []>} : vector<64x8xf32>, vector<8x24xf32>, vector<64x24xf32> -> vector<64x24xf32>
    %588 = vector.extract_strided_slice %587 {offsets = [0, 0], sizes = [64, 8], strides = [1, 1]} : vector<64x24xf32> to vector<64x8xf32>
    %589 = vector.extract_strided_slice %587 {offsets = [0, 8], sizes = [64, 8], strides = [1, 1]} : vector<64x24xf32> to vector<64x8xf32>
    %590 = vector.extract_strided_slice %587 {offsets = [0, 16], sizes = [64, 8], strides = [1, 1]} : vector<64x24xf32> to vector<64x8xf32>
    %cst_124 = arith.constant dense<0.000000e+00> : vector<64x64xf32>
    %591 = tpu.matmul %588, %589, %cst_124 {dimension_numbers = #tpu.dot_dimension_numbers<[1], [1], [0], [0], [0, 0, 1, 0], [], []>} : vector<64x8xf32>, vector<64x8xf32>, vector<64x64xf32> -> vector<64x64xf32>
    %cst_125 = arith.constant 0.353553385 : f32
    %592 = vector.broadcast %cst_125 : f32 to vector<64x64xf32>
    %593 = arith.mulf %591, %592 : vector<64x64xf32>
    %cst_126 = arith.constant dense<0xFF800000> : vector<64xf32>
    %594 = vector.multi_reduction <maximumf>, %593, %cst_126 [1] : vector<64x64xf32> to vector<64xf32>
    %595 = vector.shape_cast %594 : vector<64xf32> to vector<64x1xf32>
    %596 = vector.broadcast %595 : vector<64x1xf32> to vector<64x64xf32>
    %597 = arith.subf %593, %596 : vector<64x64xf32>
    %598 = math.exp %597 : vector<64x64xf32>
    %cst_127 = arith.constant dense<0.000000e+00> : vector<64xf32>
    %599 = vector.multi_reduction <add>, %598, %cst_127 [1] : vector<64x64xf32> to vector<64xf32>
    %600 = vector.shape_cast %599 : vector<64xf32> to vector<64x1xf32>
    %601 = tpu.reciprocal %600 {approx = true} : vector<64x1xf32> -> vector<64x1xf32>
    %602 = vector.broadcast %601 : vector<64x1xf32> to vector<64x64xf32>
    %603 = arith.mulf %598, %602 : vector<64x64xf32>
    %cst_128 = arith.constant dense<0.000000e+00> : vector<64x8xf32>
    %604 = tpu.matmul %603, %590, %cst_128 {dimension_numbers = #tpu.dot_dimension_numbers<[1], [0], [0], [1], [0, 0, 1, 1], [], []>} : vector<64x64xf32>, vector<64x8xf32>, vector<64x8xf32> -> vector<64x8xf32>
    %cst_129 = arith.constant dense<0.000000e+00> : vector<64x8xf32>
    %605 = tpu.matmul %604, %60, %cst_129 {dimension_numbers = #tpu.dot_dimension_numbers<[1], [0], [0], [1], [0, 0, 1, 1], [], []>} : vector<64x8xf32>, vector<8x8xf32>, vector<64x8xf32> -> vector<64x8xf32>
    %606 = vector.extract_strided_slice %0 {offsets = [0, 72], sizes = [1, 8], strides = [1, 1]} : vector<1x128xf32> to vector<1x8xf32>
    %607 = vector.broadcast %606 : vector<1x8xf32> to vector<64x8xf32>
    %608 = arith.addf %605, %607 : vector<64x8xf32>
    %609 = arith.addf %608, %529 : vector<64x8xf32>
    %c64_130 = arith.constant 64 : index
    %c0_131 = arith.constant 0 : index
    %610 = vector.load %arg9[%c64_130, %c0_131] : memref<128x8xf32, #tpu.memory_space<vmem>>, vector<64x8xf32>
    tpu.vector_store %arg9[%c64_130, %c0_131], %609 {strides = array<i32>} : memref<128x8xf32, #tpu.memory_space<vmem>>, vector<64x8xf32>,
    return
  }
}

</mosaic_0001>

<bundles_post_ra>
// kernel: tpu_custom_call.1
= control target key start
LH: loop header
LB: loop body
LE: loop exit
PB: predicated region body
PF: predicated region fallthrough
CT: control target
= control target key end

     0   :  { %v33_v0 = vlaneseq  ;;  %v10685_v6 = vmov 0.0   ;;  %vm10729_vm1 = vcmask 31744   ;;  %s6083_s30 = smov 124   ;;  %s6085_s28 = smov 24   ;;  %s10673_s0 = inlined_call_operand.vmem [shape: f32[128,4], index: 0, kind: input, shape index: {}]   ;;  %s10674_s8 = inlined_call_operand.vmem [shape: f32[1,128], index: 8, kind: input, shape index: {}]   ;;  %s10675_s2 = inlined_call_operand.vmem [shape: f32[36,8], index: 2, kind: input, shape index: {}]   ;;  %s10676_s4 = inlined_call_operand.vmem [shape: f32[16,8], index: 4, kind: input, shape index: {}]   ;;  %s10677_s1 = inlined_call_operand.vmem [shape: f32[2,16], index: 1, kind: input, shape index: {}]   ;;  %s10678_s3 = inlined_call_operand.vmem [shape: f32[72,8], index: 3, kind: input, shape index: {}]   ;;  %s10679_s5 = inlined_call_operand.vmem [shape: f32[4,8], index: 5, kind: input, shape index: {}]   ;;  %s10680_s6 = inlined_call_operand.vmem [shape: f32[8,24], index: 6, kind: input, shape index: {}]   ;;  %s10681_s7 = inlined_call_operand.vmem [shape: f32[8,8], index: 7, kind: input, shape index: {}]   ;;  %s10682_s9 = inlined_call_operand.vmem [shape: f32[128,8], index: 9, kind: output, shape index: {}]  }
   0x1   :  { %v6160_v2 = vld [vmem:[%s10673_s0] sm:$0xff]  ;;  %v6165_v3 = vld [vmem:[%s10673_s0 + $0x8] sm:$0xff]  ;;  %v6170_v4 = vld [vmem:[%s10673_s0 + $0x10] sm:$0xff]  ;;  %s6086_s29 = smov 28  }
   0x2   :  { %v6155_v1 = vand.u32 127, %v33_v0  ;;  %v6176_v5 = vld [vmem:[%s10673_s0 + $0x18] sm:$0xff]  ;;  %v6184_v8 = vld [vmem:[%s10673_s0 + $0x20] sm:$0xff]  ;;  %v6189_v9 = vld [vmem:[%s10673_s0 + $0x28] sm:$0xff] }
   0x3   :  { %v6200_v13 = vld [vmem:[%s10673_s0 + $0x30] sm:$0xff]  ;;  %v6212_v19 = vld [vmem:[%s10673_s0 + $0x38] sm:$0xff] }
   0x4   :  { %vm189_vm0 = vcmp.lt.s32.totalorder %v6155_v1, 2  ;;  %vm193_vm2 = vcmp.ge.s32.totalorder %v6155_v1, 2  ;;  %vm194_vm3 = vcmp.lt.s32.totalorder %v6155_v1, 4 }
   0x5   :  { %v6179_v7 = vsel %vm189_vm0, 1.0, %v10685_v6  ;;  %vm195_vm4 = vmand %vm193_vm2, %vm194_vm3 }
   0x6   :  { %10818 = vst [vmem:[#allocation2_spill] sm:$0xff] %v6179_v7  ;;  %v263_v10 = vmul.f32 %v6179_v7, %v6160_v2  ;;  %v264_v11 = vmul.f32 %v6179_v7, %v6165_v3  ;;  %v265_v12 = vmul.f32 %v6179_v7, %v6170_v4  ;;  %v266_v14 = vmul.f32 %v6179_v7, %v6176_v5 }
   0x7   :  { %v267_v15 = vmul.f32 %v6179_v7, %v6184_v8  ;;  %v268_v20 = vmul.f32 %v6179_v7, %v6189_v9  ;;  %v269_v22 = vmul.f32 %v6179_v7, %v6200_v13  ;;  %v270_v29 = vmul.f32 %v6179_v7, %v6212_v19 }
   0x8   :  { %v272_v16 = vsel %vm10729_vm1, %v263_v10, 0.0  ;;  %v273_v17 = vsel %vm10729_vm1, %v264_v11, 0.0  ;;  %v275_v18 = vsel %vm10729_vm1, %v265_v12, 0.0  ;;  %v277_v23 = vsel %vm10729_vm1, %v266_v14, 0.0 }
   0x9   :  { %v274_v21 = vadd.f32 %v273_v17, %v272_v16  ;;  %v305_v24 = vmul.f32 %v263_v10, %v6160_v2  ;;  %v306_v25 = vmul.f32 %v264_v11, %v6165_v3  ;;  %v307_v27 = vmul.f32 %v265_v12, %v6170_v4 }
   0xa   :  { %v308_v28 = vmul.f32 %v266_v14, %v6176_v5  ;;  %v279_v30 = vsel %vm10729_vm1, %v267_v15, 0.0  ;;  %v309_v33 = vmul.f32 %v267_v15, %v6184_v8  ;;  %v281_v36 = vsel %vm10729_vm1, %v268_v20, 0.0 }
   0xb   :  { %v276_v26 = vadd.f32 %v275_v18, %v274_v21  ;;  %v313_v31 = vsel %vm10729_vm1, %v305_v24, 0.0  ;;  %v314_v34 = vsel %vm10729_vm1, %v306_v25, 0.0  ;;  %v316_v35 = vsel %vm10729_vm1, %v307_v27, 0.0 }
   0xc   :  { %v283_v37 = vsel %vm10729_vm1, %v269_v22, 0.0  ;;  %v310_v38 = vmul.f32 %v268_v20, %v6189_v9  ;;  %v315_v39 = vadd.f32 %v314_v34, %v313_v31  ;;  %v311_v41 = vmul.f32 %v269_v22, %v6200_v13 }
   0xd   :  { %v278_v32 = vadd.f32 %v277_v23, %v276_v26  ;;  %v318_v42 = vsel %vm10729_vm1, %v308_v28, 0.0  ;;  %v6240_v43 = vsel %vm195_vm4, 1.0, %v10685_v6  ;;  %v285_v49 = vsel %vm10729_vm1, %v270_v29, 0.0 }
   0xe   :  { %10819 = vst [vmem:[#allocation3_spill] sm:$0xff] %v6240_v43  ;;  %v317_v44 = vadd.f32 %v316_v35, %v315_v39  ;;  %v367_v45 = vmul.f32 %v6240_v43, %v6160_v2  ;;  %v368_v46 = vmul.f32 %v6240_v43, %v6165_v3  ;;  %v369_v47 = vmul.f32 %v6240_v43, %v6170_v4 }
   0xf   :  { %v280_v40 = vadd.f32 %v279_v30, %v278_v32  ;;  %v320_v50 = vsel %vm10729_vm1, %v309_v33, 0.0  ;;  %v370_v51 = vmul.f32 %v6240_v43, %v6176_v5  ;;  %v312_v52 = vmul.f32 %v270_v29, %v6212_v19 }
  0x10   :  { %v319_v53 = vadd.f32 %v318_v42, %v317_v44  ;;  %v322_v54 = vsel %vm10729_vm1, %v310_v38, 0.0  ;;  %v375_v55 = vsel %vm10729_vm1, %v367_v45, 0.0  ;;  %v371_v57 = vmul.f32 %v6240_v43, %v6184_v8 }
  0x11   :  { %v282_v48 = vadd.f32 %v281_v36, %v280_v40  ;;  %v376_v58 = vsel %vm10729_vm1, %v368_v46, 0.0  ;;  %v378_v59 = vsel %vm10729_vm1, %v369_v47, 0.0  ;;  %v324_v61 = vsel %vm10729_vm1, %v311_v41, 0.0 }
  0x12   :  { %v321_v60 = vadd.f32 %v320_v50, %v319_v53  ;;  %v377_v62 = vadd.f32 %v376_v58, %v375_v55  ;;  %v372_v10 = vmul.f32 %v6240_v43, %v6189_v9  ;;  %v380_v11 = vsel %vm10729_vm1, %v370_v51, 0.0 }
  0x13   :  { %v284_v56 = vadd.f32 %v283_v37, %v282_v48  ;;  %v408_v12 = vmul.f32 %v367_v45, %v6160_v2  ;;  %v409_v16 = vmul.f32 %v368_v46, %v6165_v3  ;;  %v410_v17 = vmul.f32 %v369_v47, %v6170_v4 }
  0x14   :  { %v323_v14 = vadd.f32 %v322_v54, %v321_v60  ;;  %v379_v15 = vadd.f32 %v378_v59, %v377_v62  ;;  %v326_v18 = vsel %vm10729_vm1, %v312_v52, 0.0  ;;  %v373_v20 = vmul.f32 %v6240_v43, %v6200_v13 }
  0x15   :  { %v286_v63 = vadd.f32 %v285_v49, %v284_v56  ;;  %v382_v21 = vsel %vm10729_vm1, %v371_v57, 0.0  ;;  %v411_v22 = vmul.f32 %v370_v51, %v6176_v5  ;;  %v374_v24 = vmul.f32 %v6240_v43, %v6212_v19 }
  0x16   :  { %v325_v23 = vadd.f32 %v324_v61, %v323_v14  ;;  %v381_v25 = vadd.f32 %v380_v11, %v379_v15  ;;  %v416_v26 = vsel %vm10729_vm1, %v408_v12, 0.0  ;;  %v384_v27 = vsel %vm10729_vm1, %v372_v10, 0.0 }
  0x17   :  { %287 = vadd.xlane.f32.xlu0 %v286_v63  ;;  %v412_v28 = vmul.f32 %v371_v57, %v6184_v8  ;;  %v417_v29 = vsel %vm10729_vm1, %v409_v16, 0.0  ;;  %v419_v30 = vsel %vm10729_vm1, %v410_v17, 0.0  ;;  %v386_v34 = vsel %vm10729_vm1, %v373_v20, 0.0 }
  0x18   :  { %v383_v31 = vadd.f32 %v382_v21, %v381_v25  ;;  %v418_v32 = vadd.f32 %v417_v29, %v416_v26  ;;  %v327_v33 = vadd.f32 %v326_v18, %v325_v23  ;;  %v413_v35 = vmul.f32 %v372_v10, %v6189_v9 }
  0x19   :  { %v421_v36 = vsel %vm10729_vm1, %v411_v22, 0.0  ;;  %v388_v39 = vsel %vm10729_vm1, %v374_v24, 0.0  ;;  %v414_v40 = vmul.f32 %v373_v20, %v6200_v13  ;;  %v423_v41 = vsel %vm10729_vm1, %v412_v28, 0.0 }
  0x1a   :  { %v385_v37 = vadd.f32 %v384_v27, %v383_v31  ;;  %v420_v38 = vadd.f32 %v419_v30, %v418_v32  ;;  %v415_v45 = vmul.f32 %v374_v24, %v6212_v19  ;;  %v425_v46 = vsel %vm10729_vm1, %v413_v35, 0.0  ;;  %v5824_v24 = vld [vmem:[%s10674_s8] ss:$0 sm:$0xff] }
  0x1b   :  { %v427_v49 = vsel %vm10729_vm1, %v414_v40, 0.0  ;;  %v6082_v54 = vmov 128.0   ;;  %488 = vrot.lane.b32.xlu2 %v5824_v24, %s6083_s30  ;;  %s6087_s30 = smov 4  }
  0x1c   :  { %v387_v42 = vadd.f32 %v386_v34, %v385_v37  ;;  %v422_v44 = vadd.f32 %v421_v36, %v420_v38  ;;  %v429_v51 = vsel %vm10729_vm1, %v415_v45, 0.0  ;;  %5825 = vrcp.f32 %v6082_v54 }
  0x1e   :  { %v389_v47 = vadd.f32 %v388_v39, %v387_v42  ;;  %v424_v48 = vadd.f32 %v423_v41, %v422_v44 }
  0x1f   :  { %328 = vadd.xlane.f32.xlu0 %v327_v33 }
  0x20   :  { %390 = vadd.xlane.f32.xlu1 %v389_v47  ;;  %v426_v50 = vadd.f32 %v425_v46, %v424_v48 }
  0x22   :  { %v428_v52 = vadd.f32 %v427_v49, %v426_v50  ;;  %v5826_v55 = vpop.eup %5825 }
  0x23   :  { %v297_v56 = vmul.f32 128.0, %v5826_v55  ;;  %vm301_vm5 = vweird.f32 %v5826_v55 }
  0x24   :  { %v430_v53 = vadd.f32 %v429_v51, %v428_v52 }
  0x25   :  { %v298_v57 = vsub.f32 1.0, %v297_v56 }
  0x27   :  { %v299_v61 = vmul.f32 %v5826_v55, %v298_v57 }
  0x28   :  { %431 = vadd.xlane.f32.xlu1 %v430_v53 }
  0x29   :  { %v300_v10 = vadd.f32 %v5826_v55, %v299_v61 }
  0x2b   :  { %v302_v17 = vsel %vm301_vm5, %v5826_v55, %v300_v10  ;;  %v32_v10 = vld [vmem:[%s10674_s8] sm:$0x1] }
  0x8a   :  { %v288_v58 = vpop.xlane.xlu0 %287 }
  0x8b   :  { %v289_v59 = vrot.slane %v288_v58, 4 }
  0x8d   :  { %v290_v60 = vadd.f32 %v289_v59, %v288_v58 }
  0x8f   :  { %v291_v62 = vrot.slane %v290_v60, 2 }
  0x91   :  { %v292_v63 = vadd.f32 %v291_v62, %v290_v60 }
  0x92   :  { %v329_v11 = vpop.xlane.xlu0 %328 }
  0x93   :  { %v330_v12 = vrot.slane %v329_v11, 4  ;;  %v293_v14 = vrot.slane %v292_v63, 1  ;;  %v391_v23 = vpop.xlane.xlu1 %390 }
  0x94   :  { %v392_v26 = vrot.slane %v391_v23, 4 }
  0x95   :  { %v331_v15 = vadd.f32 %v330_v12, %v329_v11  ;;  %v294_v16 = vadd.f32 %v293_v14, %v292_v63  ;;  %v6312_v11 = vshrl.u32 %v33_v0, 7 }
  0x96   :  { %v393_v29 = vadd.f32 %v392_v26, %v391_v23 }
  0x97   :  { %5685 = vpush %v294_v16  ;;  %v332_v18 = vrot.slane %v331_v15, 2 }
  0x98   :  { %5687 = vpush %v302_v17  ;;  %v394_v31 = vrot.slane %v393_v29, 2 }
  0x99   :  { %v333_v20 = vadd.f32 %v332_v18, %v331_v15  ;;  %v36_v15 = vadd.s32 16, %v6312_v11 }
  0x9a   :  { %v395_v36 = vadd.f32 %v394_v31, %v393_v29  ;;  %v46_v31 = vand.u32 7, %v6312_v11 }
  0x9b   :  { %v334_v21 = vrot.slane %v333_v20, 1  ;;  %v432_v25 = vpop.xlane.xlu1 %431  ;;  %v60_v26 = vand.u32 7, %v36_v15 }
  0x9c   :  { %v433_v27 = vrot.slane %v432_v25, 4  ;;  %v396_v40 = vrot.slane %v395_v36, 1  ;;  %vm162_vm14 = vcmp.le.s32.totalorder %v46_v31, 6  ;;  %vm138_vm2 = vcmp.ge.s32.totalorder %v46_v31, 1 }
  0x9d   :  { %v335_v22 = vadd.f32 %v334_v21, %v333_v20  ;;  %vm164_vm12 = vcmp.le.s32.totalorder %v60_v26, 6  ;;  %vm140_vm13 = vcmp.ge.s32.totalorder %v60_v26, 1 }
  0x9e   :  { %v434_v30 = vadd.f32 %v433_v27, %v432_v25  ;;  %v397_v45 = vadd.f32 %v396_v40, %v395_v36  ;;  %v37_v27 = vadd.s32 24, %v6312_v11  ;;  %v6352_v40 = vsel %vm164_vm12, 1.0, %v10685_v6 }
  0x9f   :  { %5689 = vpush %v335_v22  ;;  %v6323_v22 = vpop.permute.xlu2 %488 }
  0xa0   :  { %v435_v33 = vrot.slane %v434_v30, 2  ;;  %10820 = vst [vmem:[#allocation4_spill] sm:$0xff] %v6323_v22 }
  0xa2   :  { %v436_v37 = vadd.f32 %v435_v33, %v434_v30 }
  0xa4   :  { %v437_v41 = vrot.slane %v436_v37, 1 }
  0xa6   :  { %v438_v46 = vadd.f32 %v437_v41, %v436_v37 }
  0xc8   :  { %s5686_s25 = spop %5685 }
  0xc9   :  { %s6288_s26 = spop %5687 }
  0xca   :  { %s6291_s27 = smul.f32 %s6288_s26, %s5686_s25 }
  0xcc   :  { %s346_s11 = smul.f32 %s6291_s27, %s6291_s27  ;;  %v348_v47 = vstv %s6291_s27  ;;  %s6084_s27 = smov 12  }
  0xcd   :  { %v349_v49 = vmul.f32 %v6179_v7, %v348_v47  ;;  %v5499_v47 = vsel %vm162_vm14, 1.0, %v10685_v6 }
  0xd0   :  { %s5690_s10 = spop %5689 }
  0xd1   :  { %s345_s12 = smul.f32 %s5690_s10, %s6288_s26  ;;  %s6088_s10 = smov 16  }
  0xd3   :  { %s347_s13 = ssub.f32 %s345_s12, %s346_s11  ;;  %s6089_s11 = smov 8  }
  0xd4   :  { %s6090_s12 = smov 20  }
  0xd5   :  { %s351_s14 = sadd.f32 1e-05, %s347_s13  ;;  %s6091_s13 = smov 32  }
  0xd7   :  { %v352_v28 = vstv %s351_s14 }
  0xd8   :  { %5827 = vrsqrt.f32 %v352_v28  ;;  %vm359_vm7 = vweird.f32 %v352_v28 }
  0xde   :  { %v5828_v32 = vpop.eup %5827 }
  0xdf   :  { %v354_v34 = vmul.f32 %v5828_v32, %v352_v28  ;;  %vm360_vm6 = vweird.f32 %v5828_v32 }
  0xe0   :  { %vm361_vm8 = vmor %vm359_vm7, %vm360_vm6 }
  0xe1   :  { %v355_v35 = vmul.f32 %v5828_v32, %v354_v34  ;;  %v67_v34 = vand.u32 7, %v37_v27 }
  0xe3   :  { %v356_v38 = vmul.f32 0.5, %v355_v35  ;;  %vm165_vm15 = vcmp.le.s32.totalorder %v67_v34, 6  ;;  %vm141_vm4 = vcmp.ge.s32.totalorder %v67_v34, 1 }
  0xe5   :  { %v357_v39 = vsub.f32 1.5, %v356_v38  ;;  %v39_v38 = vadd.s32 40, %v6312_v11 }
  0xe7   :  { %v358_v42 = vmul.f32 %v5828_v32, %v357_v39 }
  0xe9   :  { %v362_v44 = vsel %vm361_vm8, %v5828_v32, %v358_v42 }
  0xea   :  { %5691 = vpush %v362_v44 }
  0xeb   :  { %5693 = vpush %v397_v45 }
  0xec   :  { %5695 = vpush %v438_v46 }
 0x11b   :  { %s5692_s15 = spop %5691 }
 0x11c   :  { %s5694_s16 = spop %5693  ;;  %v364_v60 = vstv %s5692_s15 }
 0x11d   :  { %s407_s17 = smul.f32 %s5694_s16, %s6288_s26  ;;  %s5696_s18 = spop %5695  ;;  %v365_v62 = vmul.f32 %v6179_v7, %v364_v60 }
 0x11e   :  { %s448_s19 = smul.f32 %s5696_s18, %s6288_s26  ;;  %s6092_s16 = smov 88  }
 0x11f   :  { %s449_s20 = smul.f32 %s407_s17, %s407_s17  ;;  %v451_v48 = vstv %s407_s17 }
 0x120   :  { %v452_v50 = vmul.f32 %v6240_v43, %v451_v48  ;;  %v81_v48 = vand.u32 7, %v39_v38 }
 0x121   :  { %s450_s21 = ssub.f32 %s448_s19, %s449_s20  ;;  %s6094_s20 = smov 112  }
 0x122   :  { %v6304_v51 = vadd.f32 %v452_v50, %v349_v49  ;;  %vm143_vm6 = vcmp.ge.s32.totalorder %v81_v48, 1  ;;  %vm167_vm7 = vcmp.le.s32.totalorder %v81_v48, 6 }
 0x123   :  { %s454_s22 = sadd.f32 1e-05, %s450_s21  ;;  %s6095_s21 = smov 120  }
 0x124   :  { %v471_v16 = vsub.f32 %v6165_v3, %v6304_v51  ;;  %v472_v18 = vsub.f32 %v6170_v4, %v6304_v51  ;;  %v470_v20 = vsub.f32 %v6160_v2, %v6304_v51  ;;  %v473_v21 = vsub.f32 %v6176_v5, %v6304_v51 }
 0x125   :  { %v455_v52 = vstv %s454_s22  ;;  %v35_v5 = vadd.s32 8, %v6312_v11  ;;  %v474_v36 = vsub.f32 %v6184_v8, %v6304_v51  ;;  %v475_v37 = vsub.f32 %v6189_v9, %v6304_v51 }
 0x126   :  { %5829 = vrsqrt.f32 %v455_v52  ;;  %vm462_vm10 = vweird.f32 %v455_v52  ;;  %v476_v39 = vsub.f32 %v6200_v13, %v6304_v51  ;;  %v477_v41 = vsub.f32 %v6212_v19, %v6304_v51 }
 0x127   :  { %v53_v35 = vand.u32 7, %v35_v5  ;;  %v6357_v9 = vsel %vm140_vm13, 1.0, %v10685_v6  ;;  %v714_v13 = vrot.slane %v6352_v40, 6  ;;  %v6367_v51 = vsel %vm165_vm15, 1.0, %v10685_v6 }
 0x128   :  { %v10689_v60 = vrot.slane %v6367_v51, 6  ;;  %vm10768_vm15 = vcmask 1040384  }
 0x129   :  { %vm163_vm0 = vcmp.le.s32.totalorder %v53_v35, 6  ;;  %vm139_vm5 = vcmp.ge.s32.totalorder %v53_v35, 1 }
 0x12a   :  { %v6397_v15 = vsel %vm139_vm5, 1.0, %v10685_v6 }
 0x12c   :  { %v5830_v53 = vpop.eup %5829 }
 0x12d   :  { %v457_v54 = vmul.f32 %v5830_v53, %v455_v52  ;;  %vm463_vm9 = vweird.f32 %v5830_v53  ;;  %v6370_v52 = vsel %vm163_vm0, 1.0, %v10685_v6 }
 0x12e   :  { %vm464_vm11 = vmor %vm462_vm10, %vm463_vm9 }
 0x12f   :  { %v458_v55 = vmul.f32 %v5830_v53, %v457_v54 }
 0x131   :  { %v459_v56 = vmul.f32 0.5, %v458_v55 }
 0x133   :  { %v460_v57 = vsub.f32 1.5, %v459_v56  ;;  %v6378_v56 = vsel %vm138_vm2, 1.0, %v10685_v6 }
 0x134   :  { %10821 = vst [vmem:[#allocation5_spill] sm:$0xff] %v6378_v56 }
 0x135   :  { %v461_v58 = vmul.f32 %v5830_v53, %v460_v57 }
 0x137   :  { %v465_v59 = vsel %vm464_vm11, %v5830_v53, %v461_v58 }
 0x138   :  { %5697 = vpush %v465_v59  ;;  %v6382_v59 = vrot.slane %v5499_v47, 6 }
 0x13a   :  { %10822 = vst [vmem:[#allocation6_spill] sm:$0xff] %v6382_v59 }
 0x169   :  { %s5698_s23 = spop %5697 }
 0x16a   :  { %v467_v61 = vstv %s5698_s23 }
 0x16b   :  { %v468_v63 = vmul.f32 %v6240_v43, %v467_v61  ;;  %v712_v61 = vrot.slane %v6370_v52, 6 }
 0x16d   :  { %v469_v12 = vadd.f32 %v468_v63, %v365_v62 }
 0x16f   :  { %v478_v14 = vmul.f32 %v469_v12, %v32_v10  ;;  %v6392_v10 = vsel %vm141_vm4, 1.0, %v10685_v6 }
 0x171   :  { %v479_v17 = vperm.slane %v478_v14, 0 }
 0x173   :  { %v481_v0 = vmul.f32 %v479_v17, %v471_v16  ;;  %v482_v23 = vmul.f32 %v479_v17, %v472_v18  ;;  %v480_v24 = vmul.f32 %v479_v17, %v470_v20  ;;  %v483_v25 = vmul.f32 %v479_v17, %v473_v21 }
 0x174   :  { %v484_v8 = vmul.f32 %v479_v17, %v474_v36  ;;  %v485_v42 = vmul.f32 %v479_v17, %v475_v37  ;;  %v486_v44 = vmul.f32 %v479_v17, %v476_v39  ;;  %v487_v45 = vmul.f32 %v479_v17, %v477_v41 }
 0x175   :  { %v6327_v3 = vadd.f32 %v6323_v22, %v481_v0  ;;  %v6330_v4 = vadd.f32 %v6323_v22, %v482_v23  ;;  %v6333_v2 = vadd.f32 %v6323_v22, %v480_v24  ;;  %v6337_v28 = vadd.f32 %v6323_v22, %v483_v25 }
 0x176   :  { %v6362_v49 = vadd.f32 %v6323_v22, %v484_v8  ;;  %v6373_v53 = vadd.f32 %v6323_v22, %v485_v42  ;;  %v6400_v16 = vsel %vm143_vm6, 1.0, %v10685_v6  ;;  %v6406_v20 = vsel %vm167_vm7, 1.0, %v10685_v6 }
 0x177   :  { %v5513_v29 = vmul.f32 -1.442695, %v6327_v3  ;;  %v5514_v30 = vmul.f32 -1.442695, %v6330_v4  ;;  %v5512_v32 = vmul.f32 -1.442695, %v6333_v2  ;;  %v6411_v0 = vadd.f32 %v6323_v22, %v486_v44 }
 0x178   :  { %v5515_v33 = vmul.f32 -1.442695, %v6337_v28  ;;  %v5516_v57 = vmul.f32 -1.442695, %v6362_v49  ;;  %v5517_v12 = vmul.f32 -1.442695, %v6373_v53  ;;  %v6414_v23 = vadd.f32 %v6323_v22, %v487_v45 }
 0x179   :  { %5831 = vpow2.f32 %v5513_v29  ;;  %v5518_v38 = vmul.f32 -1.442695, %v6411_v0  ;;  %v720_v44 = vrot.slane %v6406_v20, 6 }
 0x17a   :  { %5833 = vpow2.f32 %v5514_v30 }
 0x17b   :  { %5835 = vpow2.f32 %v5512_v32 }
 0x17c   :  { %5837 = vpow2.f32 %v5515_v33 }
 0x17f   :  { %v5832_v46 = vpop.eup %5831 }
 0x180   :  { %v5834_v19 = vpop.eup %5833  ;;  %v6364_v50 = vadd.f32 1.0, %v5832_v46 }
 0x181   :  { %v5836_v54 = vpop.eup %5835  ;;  %v6375_v55 = vadd.f32 1.0, %v5834_v19 }
 0x182   :  { %v5838_v58 = vpop.eup %5837  ;;  %5839 = vrcp.f32 %v6364_v50  ;;  %v6387_v62 = vadd.f32 1.0, %v5836_v54  ;;  %v555_v14 = vand.u32 2147483647, %v6364_v50  ;;  %v557_v17 = vand.u32 2147483648, %v6364_v50 }
 0x183   :  { %5841 = vrcp.f32 %v6375_v55  ;;  %v6389_v63 = vadd.f32 1.0, %v5838_v58  ;;  %v570_v18 = vand.u32 2147483647, %v6375_v55  ;;  %v572_v21 = vand.u32 2147483648, %v6375_v55 }
 0x184   :  { %5843 = vpow2.f32 %v5516_v57  ;;  %vm551_vm8 = vweird.f32 %v6364_v50  ;;  %vm566_vm9 = vweird.f32 %v6375_v55  ;;  %v542_v25 = vand.u32 2147483648, %v6387_v62 }
 0x185   :  { %5845 = vrcp.f32 %v6387_v62  ;;  %vm6420_vm10 = vcmp.eq.f32.partialorder %v555_v14, 8.507059e+37  ;;  %v540_v29 = vand.u32 2147483647, %v6387_v62  ;;  %v587_v30 = vand.u32 2147483648, %v6389_v63 }
 0x186   :  { %5847 = vrcp.f32 %v6389_v63  ;;  %v558_v31 = vor.u32 1.1754944e-38, %v557_v17  ;;  %vm6427_vm11 = vcmp.eq.f32.partialorder %v570_v18, 8.507059e+37  ;;  %v585_v34 = vand.u32 2147483647, %v6389_v63 }
 0x187   :  { %5849 = vpow2.f32 %v5517_v12  ;;  %v573_v37 = vor.u32 1.1754944e-38, %v572_v21  ;;  %vm536_vm12 = vweird.f32 %v6387_v62  ;;  %v543_v8 = vor.u32 1.1754944e-38, %v542_v25 }
 0x188   :  { %v5840_v24 = vpop.eup %5839  ;;  %vm581_vm13 = vweird.f32 %v6389_v63  ;;  %vm6439_vm0 = vcmp.eq.f32.partialorder %v540_v29, 8.507059e+37  ;;  %v588_v19 = vor.u32 1.1754944e-38, %v587_v30  ;;  %vm6444_vm4 = vcmp.eq.f32.partialorder %v585_v34, 8.507059e+37 }
 0x189   :  { %v5842_v26 = vpop.eup %5841  ;;  %v547_v27 = vmul.f32 %v5840_v24, %v6364_v50  ;;  %vm552_vm14 = vweird.f32 %v5840_v24  ;;  %v5519_v29 = vmul.f32 -1.442695, %v6414_v23 }
 0x18a   :  { %v562_v32 = vmul.f32 %v5842_v26, %v6375_v55  ;;  %v5844_v35 = vpop.eup %5843  ;;  %vm567_vm2 = vweird.f32 %v5842_v26  ;;  %vm553_vm5 = vmor %vm551_vm8, %vm552_vm14 }
 0x18b   :  { %v548_v36 = vsub.f32 1.0, %v547_v27  ;;  %v5846_v39 = vpop.eup %5845  ;;  %v6435_v42 = vadd.f32 1.0, %v5844_v35  ;;  %v6455_v27 = vadd.s32 48, %v6312_v11  ;;  %vm568_vm6 = vmor %vm566_vm9, %vm567_vm2 }
 0x18c   :  { %v563_v41 = vsub.f32 1.0, %v562_v32  ;;  %v5848_v45 = vpop.eup %5847  ;;  %v532_v47 = vmul.f32 %v5846_v39, %v6387_v62  ;;  %vm537_vm7 = vweird.f32 %v5846_v39 }
 0x18d   :  { %v549_v46 = vmul.f32 %v5840_v24, %v548_v36  ;;  %v5850_v54 = vpop.eup %5849  ;;  %v577_v58 = vmul.f32 %v5848_v45, %v6389_v63  ;;  %5851 = vrcp.f32 %v6435_v42  ;;  %vm582_vm8 = vweird.f32 %v5848_v45  ;;  %vm538_vm9 = vmor %vm536_vm12, %vm537_vm7 }
 0x18e   :  { %v564_v57 = vmul.f32 %v5842_v26, %v563_v41  ;;  %v533_v17 = vsub.f32 1.0, %v532_v47  ;;  %v6449_v18 = vadd.f32 1.0, %v5850_v54  ;;  %5853 = vpow2.f32 %v5518_v38 }
 0x18f   :  { %v550_v14 = vadd.f32 %v5840_v24, %v549_v46  ;;  %v578_v25 = vsub.f32 1.0, %v577_v58  ;;  %v600_v54 = vand.u32 2147483647, %v6435_v42 }
 0x190   :  { %v565_v21 = vadd.f32 %v5842_v26, %v564_v57  ;;  %v534_v32 = vmul.f32 %v5846_v39, %v533_v17  ;;  %5855 = vrcp.f32 %v6449_v18  ;;  %vm611_vm12 = vweird.f32 %v6449_v18 }
 0x191   :  { %v554_v30 = vsel %vm553_vm5, %v5840_v24, %v550_v14  ;;  %v579_v35 = vmul.f32 %v5848_v45, %v578_v25  ;;  %v6467_v24 = vadd.s32 32, %v6312_v11  ;;  %5857 = vpow2.f32 %v5519_v29 }
 0x192   :  { %v559_v34 = vsel %vm6420_vm10, %v558_v31, %v554_v30  ;;  %v569_v50 = vsel %vm568_vm6, %v5842_v26, %v565_v21  ;;  %v535_v41 = vadd.f32 %v5846_v39, %v534_v32  ;;  %v602_v26 = vand.u32 2147483648, %v6435_v42  ;;  %vm583_vm10 = vmor %vm581_vm13, %vm582_vm8 }
 0x193   :  { %v574_v36 = vsel %vm6427_vm11, %v573_v37, %v569_v50  ;;  %v652_v38 = vmul.f32 %v559_v34, %v6327_v3  ;;  %v5852_v55 = vpop.eup %5851  ;;  %v580_v5 = vadd.f32 %v5848_v45, %v579_v35  ;;  %vm596_vm11 = vweird.f32 %v6435_v42 }
 0x194   :  { %v653_v46 = vmul.f32 %v574_v36, %v6330_v4  ;;  %v5854_v31 = vpop.eup %5853  ;;  %v539_v33 = vsel %vm538_vm9, %v5846_v39, %v535_v41  ;;  %v592_v3 = vmul.f32 %v5852_v55, %v6435_v42  ;;  %v603_v21 = vor.u32 1.1754944e-38, %v602_v26 }
 0x195   :  { %v669_v47 = vrot.slane %v652_v38, 7  ;;  %v544_v4 = vsel %vm6439_vm0, %v543_v8, %v539_v33  ;;  %v584_v62 = vsel %vm583_vm10, %v5848_v45, %v580_v5  ;;  %vm597_vm13 = vweird.f32 %v5852_v55 }
 0x196   :  { %v671_v37 = vrot.slane %v653_v46, 7  ;;  %v5856_v57 = vpop.eup %5855  ;;  %v651_v58 = vmul.f32 %v544_v4, %v6333_v2  ;;  %v589_v39 = vsel %vm6444_vm4, %v588_v19, %v584_v62  ;;  %v593_v14 = vsub.f32 1.0, %v592_v3  ;;  %vm598_vm14 = vmor %vm596_vm11, %vm597_vm13 }
 0x197   :  { %v654_v17 = vmul.f32 %v589_v39, %v6337_v28  ;;  %v607_v8 = vmul.f32 %v5856_v57, %v6449_v18  ;;  %v5858_v2 = vpop.eup %5857  ;;  %v615_v29 = vand.u32 2147483647, %v6449_v18  ;;  %v6492_v30 = vadd.f32 1.0, %v5854_v31 }
 0x198   :  { %v6485_v63 = vsel %vm10768_vm15, %v669_v47, %v671_v37  ;;  %v668_v48 = vrot.slane %v651_v58, 7  ;;  %v594_v25 = vmul.f32 %v5852_v55, %v593_v14  ;;  %v617_v50 = vand.u32 2147483648, %v6449_v18 }
 0x199   :  { %v746_v45 = vmul.f32 %v6357_v9, %v6485_v63  ;;  %v673_v12 = vrot.slane %v654_v17, 7  ;;  %v608_v19 = vsub.f32 1.0, %v607_v8  ;;  %v88_v41 = vand.u32 7, %v6455_v27 }
 0x19a   :  { %v6496_v28 = vsel %vm10768_vm15, 0.0, %v668_v48  ;;  %v6499_v32 = vsel %vm10768_vm15, %v668_v48, %v669_v47  ;;  %v595_v34 = vadd.f32 %v5852_v55, %v594_v25  ;;  %vm601_vm0 = vcmp.eq.f32.partialorder %v600_v54, 8.507059e+37 }
 0x19b   :  { %885 = vrot.lane.b32.xlu0 %v746_v45, %s6084_s27  ;;  %v744_v35 = vmul.f32 %v6378_v56, %v6496_v28  ;;  %v761_v36 = vmul.f32 %v6378_v56, %v6499_v32  ;;  %v6507_v38 = vsel %vm10768_vm15, %v671_v37, %v673_v12  ;;  %v609_v5 = vmul.f32 %v5856_v57, %v608_v19 }
 0x19c   :  { %v599_v46 = vsel %vm598_vm14, %v5852_v55, %v595_v34  ;;  %vm612_vm2 = vweird.f32 %v5856_v57  ;;  %vm6515_vm4 = vcmp.eq.f32.partialorder %v615_v29, 8.507059e+37  ;;  %5859 = vrcp.f32 %v6492_v30 }
 0x19d   :  { %881 = vrot.lane.b32.xlu1 %v744_v35, %s6084_s27  ;;  %990 = vrot.lane.b32.xlu2 %v761_v36, %s6085_s28  ;;  %v604_v26 = vsel %vm601_vm0, %v603_v21, %v599_v46  ;;  %v74_v42 = vand.u32 7, %v6467_v24  ;;  %v610_v47 = vadd.f32 %v5856_v57, %v609_v5  ;;  %v618_v27 = vor.u32 1.1754944e-38, %v617_v50  ;;  %vm613_vm5 = vmor %vm611_vm12, %vm612_vm2 }
 0x19e   :  { %v655_v55 = vmul.f32 %v604_v26, %v6362_v49  ;;  %v6524_v33 = vmul.f32 %v6397_v15, %v6485_v63  ;;  %v763_v3 = vmul.f32 %v6357_v9, %v6507_v38  ;;  %v630_v37 = vand.u32 2147483647, %v6492_v30 }
 0x19f   :  { %v632_v4 = vand.u32 2147483648, %v6492_v30  ;;  %vm168_vm6 = vcmp.le.s32.totalorder %v88_v41, 6  ;;  %v614_v24 = vsel %vm613_vm5, %v5856_v57, %v610_v47  ;;  %vm144_vm7 = vcmp.ge.s32.totalorder %v88_v41, 1 }
 0x1a0   :  { %v675_v62 = vrot.slane %v655_v55, 7  ;;  %v6533_v49 = vsel %vm168_vm6, 1.0, %v10685_v6  ;;  %v747_v54 = vmul.f32 %v6392_v10, %v6507_v38  ;;  %v745_v58 = vmul.f32 %v6397_v15, %v6499_v32 }
 0x1a1   :  { %v619_v18 = vsel %vm6515_vm4, %v618_v27, %v614_v24  ;;  %vm166_vm8 = vcmp.le.s32.totalorder %v74_v42, 6  ;;  %vm142_vm9 = vcmp.ge.s32.totalorder %v74_v42, 1  ;;  %v6548_v14 = vadd.f32 1.0, %v5858_v2 }
 0x1a2   :  { %v6543_v39 = vmul.f32 %v619_v18, %v6373_v53  ;;  %v6546_v57 = vsel %vm10768_vm15, %v673_v12, %v675_v62  ;;  %v5860_v17 = vpop.eup %5859  ;;  %vm626_vm10 = vweird.f32 %v6492_v30  ;;  %v633_v21 = vor.u32 1.1754944e-38, %v632_v4 }
 0x1a3   :  { %994 = vrot.lane.b32.xlu0 %v763_v3, %s6085_s28  ;;  %v6552_v8 = vsel %vm144_vm7, 1.0, %v10685_v6  ;;  %v10692_v45 = vrot.slane %v6533_v49, 6  ;;  %v622_v53 = vmul.f32 %v5860_v17, %v6492_v30  ;;  %vm6557_vm11 = vcmp.eq.f32.partialorder %v630_v37, 8.507059e+37 }
 0x1a4   :  { %v677_v48 = vrot.slane %v6543_v39, 7  ;;  %v6562_v2 = vsel %vm166_vm8, 1.0, %v10685_v6  ;;  %5861 = vrcp.f32 %v6548_v14  ;;  %v764_v12 = vmul.f32 %v6392_v10, %v6546_v57 }
 0x1a5   :  { %887 = vrot.lane.b32.xlu1 %v747_v54, %s6084_s27  ;;  %883 = vrot.lane.b32.xlu2 %v745_v58, %s6084_s27  ;;  %v6570_v19 = vsel %vm142_vm9, 1.0, %v10685_v6  ;;  %vm10767_vm12 = vcmask 1046528   ;;  %v784_v29 = vrot.slane %v6499_v32, 1  ;;  %v623_v50 = vsub.f32 1.0, %v622_v53 }
 0x1a6   :  { %v6576_v34 = vsel %vm10768_vm15, %v675_v62, %v677_v48  ;;  %v786_v35 = vrot.slane %v6485_v63, 1  ;;  %v788_v36 = vrot.slane %v6507_v38, 1  ;;  %vm627_vm13 = vweird.f32 %v5860_v17 }
 0x1a7   :  { %v749_v41 = vmul.f32 %v6400_v16, %v6576_v34  ;;  %v10690_v46 = vrot.slane %v6562_v2, 6  ;;  %v645_v5 = vand.u32 2147483647, %v6548_v14  ;;  %v624_v26 = vmul.f32 %v5860_v17, %v623_v50  ;;  %vm628_vm0 = vmor %vm626_vm10, %vm627_vm13 }
 0x1a8   :  { %v6585_v31 = vsel %vm10767_vm12, %v784_v29, %v786_v35  ;;  %v6588_v42 = vsel %vm10767_vm12, %v786_v35, %v788_v36  ;;  %v10683_v47 = vrot.slane %v6496_v28, 1  ;;  %v748_v27 = vmul.f32 %v6570_v19, %v6546_v57 }
 0x1a9   :  { %v41_v55 = vadd.s32 56, %v6312_v11  ;;  %v790_v3 = vrot.slane %v6546_v57, 1  ;;  %v792_v37 = vrot.slane %v6576_v34, 1  ;;  %v625_v24 = vadd.f32 %v5860_v17, %v624_v26 }
 0x1aa   :  { %v5862_v4 = vpop.eup %5861  ;;  %v647_v62 = vand.u32 2147483648, %v6548_v14  ;;  %v6601_v54 = vsel %vm10767_vm12, %v10683_v47, %v784_v29  ;;  %vm710_vm14 = vcmask 1041408   ;;  %vm641_vm2 = vweird.f32 %v6548_v14 }
 0x1ab   :  { %891 = vrot.lane.b32.xlu0 %v749_v41, %s6084_s27  ;;  %v637_v11 = vmul.f32 %v5862_v4, %v6548_v14  ;;  %v95_v58 = vand.u32 7, %v41_v55  ;;  %v6609_v18 = vsel %vm10767_vm12, %v788_v36, %v790_v3  ;;  %v629_v53 = vsel %vm628_vm0, %v5860_v17, %v625_v24 }
 0x1ac   :  { %vm6611_vm4 = vcmp.eq.f32.partialorder %v645_v5, 8.507059e+37  ;;  %v6616_v29 = vsel %vm10767_vm12, %v790_v3, %v792_v37  ;;  %v6622_v30 = vsel %vm710_vm14, %v6382_v59, %v712_v61  ;;  %v634_v17 = vsel %vm6557_vm11, %v633_v21, %v629_v53 }
 0x1ad   :  { %10837 = vst [vmem:[#allocation7_spill] sm:$0xff] %v6622_v30  ;;  %996 = vrot.lane.b32.xlu1 %v764_v12, %s6085_s28  ;;  %992 = vrot.lane.b32.xlu2 %v6524_v33, %s6085_s28  ;;  %v638_v35 = vsub.f32 1.0, %v637_v11  ;;  %vm145_vm5 = vcmp.ge.s32.totalorder %v95_v58, 1  ;;  %vm169_vm6 = vcmp.le.s32.totalorder %v95_v58, 6  ;;  %v657_v36 = vmul.f32 %v634_v17, %v6411_v0 }
 0x1ae   :  { %v648_v41 = vor.u32 1.1754944e-38, %v647_v62  ;;  %v6632_v5 = vmul.f32 %v6570_v19, %v6576_v34  ;;  %v6636_v26 = vmul.f32 %v6622_v30, %v6496_v28  ;;  %vm642_vm7 = vweird.f32 %v5862_v4 }
 0x1af   :  { %v639_v12 = vmul.f32 %v5862_v4, %v638_v35  ;;  %v6639_v33 = vsel %vm145_vm5, 1.0, %v10685_v6  ;;  %v5506_v21 = vsel %vm169_vm6, 1.0, %v10685_v6  ;;  %v679_v25 = vrot.slane %v657_v36, 7  ;;  %vm643_vm9 = vmor %vm641_vm2, %vm642_vm7 }
 0x1b0   :  { %vm10765_vm8 = vcmask 1045504   ;;  %v6647_v0 = vsel %vm710_vm14, %v712_v61, %v714_v13  ;;  %v6654_v55 = vsel %vm710_vm14, %v714_v13, %v10689_v60  ;;  %v10684_v40 = vrot.slane %v6636_v26, 2 }
 0x1b1   :  { %10838 = vst [vmem:[#allocation8_spill] sm:$0xff] %v6647_v0  ;;  %v640_v3 = vadd.f32 %v5862_v4, %v639_v12  ;;  %v737_v24 = vmul.f32 %v6647_v0, %v6499_v32  ;;  %v6660_v62 = vmul.f32 %v6654_v55, %v6485_v63  ;;  %v754_v52 = vmul.f32 %v6647_v0, %v6485_v63 }
 0x1b2   :  { %10839 = vst [vmem:[#allocation9_spill] sm:$0xff] %v6654_v55  ;;  %v6667_v61 = vsel %vm10768_vm15, %v677_v48, %v679_v25  ;;  %v6674_v13 = vmul.f32 %v6654_v55, %v6507_v38  ;;  %v753_v11 = vmul.f32 %v6622_v30, %v6499_v32  ;;  %vm10730_vm10 = vcmask 1043456  }
 0x1b3   :  { %v766_v58 = vmul.f32 %v6400_v16, %v6667_v61  ;;  %v750_v39 = vmul.f32 %v6552_v8, %v6667_v61  ;;  %v644_v48 = vsel %vm643_vm9, %v5862_v4, %v640_v3  ;;  %v794_v53 = vrot.slane %v6667_v61, 1 }
 0x1b4   :  { %v649_v14 = vsel %vm6611_vm4, %v648_v41, %v644_v48  ;;  %v835_v17 = vrot.slane %v737_v24, 2  ;;  %v10688_v35 = vrot.slane %v6660_v62, 2  ;;  %v944_v36 = vrot.slane %v754_v52, 2 }
 0x1b5   :  { %1000 = vrot.lane.b32.xlu0 %v766_v58, %s6085_s28  ;;  %893 = vrot.lane.b32.xlu1 %v750_v39, %s6084_s27  ;;  %v658_v12 = vmul.f32 %v649_v14, %v6414_v23  ;;  %v6690_v47 = vsel %vm10767_vm12, %v792_v37, %v794_v53  ;;  %v10687_v4 = vrot.slane %v6674_v13, 2  ;;  %v942_v3 = vrot.slane %v753_v11, 2 }
 0x1b6   :  { %889 = vrot.lane.b32.xlu2 %v748_v27, %s6084_s27  ;;  %v6697_v50 = vsel %vm10765_vm8, %v835_v17, %v10688_v35  ;;  %v6702_v41 = vsel %vm10765_vm8, %v10684_v40, %v835_v17  ;;  %v752_v23 = vmul.f32 %v6382_v59, %v6496_v28  ;;  %v771_v37 = vmul.f32 %v6647_v0, %v6507_v38 }
 0x1b7   :  { %v681_v24 = vrot.slane %v658_v12, 7  ;;  %v6711_v27 = vsel %vm10765_vm8, %v944_v36, %v10687_v4  ;;  %v6714_v52 = vsel %vm10765_vm8, %v942_v3, %v944_v36  ;;  %v772_v11 = vmul.f32 %v6654_v55, %v6546_v57 }
 0x1b8   :  { %v941_v58 = vrot.slane %v752_v23, 2  ;;  %v1051_v39 = vrot.slane %v771_v37, 2  ;;  %v770_v48 = vmul.f32 %v6622_v30, %v6485_v63  ;;  %v769_v14 = vmul.f32 %v6382_v59, %v6499_v32 }
 0x1b9   :  { %v682_v17 = vsel %vm10768_vm15, %v679_v25, %v681_v24  ;;  %v6724_v12 = vsel %vm10768_vm15, %v681_v24, 0.0  ;;  %v1053_v40 = vrot.slane %v772_v11, 2  ;;  %v6731_v36 = vsel %vm710_vm14, %v10690_v46, %v720_v44 }
 0x1ba   :  { %10840 = vst [vmem:[#allocation10_spill] sm:$0xff] %v6731_v36  ;;  %v767_v23 = vmul.f32 %v6552_v8, %v682_v17  ;;  %v751_v37 = vmul.f32 %v6639_v33, %v682_v17  ;;  %v796_v6 = vrot.slane %v682_v17, 1  ;;  %v10691_v4 = vrot.slane %v6724_v12, 1 }
 0x1bb   :  { %v6737_v25 = vsel %vm10765_vm8, %v941_v58, %v942_v3  ;;  %v6740_v24 = vsel %vm10765_vm8, %v1051_v39, %v1053_v40  ;;  %v1049_v11 = vrot.slane %v770_v48, 2  ;;  %v1048_v35 = vrot.slane %v769_v14, 2 }
 0x1bc   :  { %v6743_v60 = vsel %vm10767_vm12, %v794_v53, %v796_v6  ;;  %v6748_v46 = vsel %vm10767_vm12, %v796_v6, %v10691_v4  ;;  %v6755_v3 = vsel %vm710_vm14, %v720_v44, %v10692_v45  ;;  %v740_v58 = vmul.f32 %v6731_v36, %v6546_v57 }
 0x1bd   :  { %10841 = vst [vmem:[#allocation11_spill] sm:$0xff] %v6755_v3  ;;  %1002 = vrot.lane.b32.xlu1 %v767_v23, %s6085_s28  ;;  %1015 = vrot.lane.b32.xlu0 %v6585_v31, %s6086_s29  ;;  %v6762_v53 = vrot.slane %v5506_v21, 6  ;;  %v6765_v6 = vsel %vm10765_vm8, %v1049_v11, %v1051_v39  ;;  %v6768_v48 = vsel %vm10765_vm8, %v1048_v35, %v1049_v11  ;;  %v10843_v14 = vrot.slane %v6562_v2, 6 }
 0x1be   :  { %v741_v20 = vmul.f32 %v6755_v3, %v6576_v34  ;;  %998 = vrot.lane.b32.xlu2 %v6632_v5, %s6085_s28  ;;  %v841_v44 = vrot.slane %v740_v58, 2  ;;  %v10844_v23 = vrot.slane %v6367_v51, 6  ;;  %v757_v39 = vmul.f32 %v6731_v36, %v6576_v34 }
 0x1bf   :  { %10842 = vst [vmem:[#allocation12_spill] sm:$0xff] %v6762_v53  ;;  %v758_v35 = vmul.f32 %v6755_v3, %v6667_v61  ;;  %v774_v2 = vmul.f32 %v6731_v36, %v6667_v61  ;;  %v10848_v36 = vrot.slane %v6660_v62, 2  ;;  %vm10762_vm11 = vcmask 130048  }
 0x1c0   :  { %v6779_v21 = vsel %vm710_vm14, %v10844_v23, %v10843_v14  ;;  %v843_v11 = vrot.slane %v741_v20, 2  ;;  %v950_v51 = vrot.slane %v757_v39, 2  ;;  %v775_v14 = vmul.f32 %v6755_v3, %v682_v17 }
 0x1c1   :  { %10845 = vst [vmem:[#allocation13_spill] sm:$0xff] %v6779_v21  ;;  %v739_v4 = vmul.f32 %v6779_v21, %v6507_v38  ;;  %v756_v5 = vmul.f32 %v6779_v21, %v6546_v57  ;;  %v952_v58 = vrot.slane %v758_v35, 2  ;;  %v773_v23 = vmul.f32 %v6779_v21, %v6576_v34 }
 0x1c2   :  { %v6795_v45 = vsel %vm10765_vm8, %v841_v44, %v843_v11  ;;  %v1057_v43 = vrot.slane %v774_v2, 2  ;;  %v1059_v55 = vrot.slane %v775_v14, 2  ;;  %v10846_v39 = vrot.slane %v6533_v49, 6 }
 0x1c3   :  { %v839_v20 = vrot.slane %v739_v4, 2  ;;  %v948_v22 = vrot.slane %v756_v5, 2  ;;  %v6798_v7 = vsel %vm10765_vm8, %v950_v51, %v952_v58  ;;  %v1055_v0 = vrot.slane %v773_v23, 2 }
 0x1c4   :  { %v6804_v35 = vsel %vm710_vm14, %v10846_v39, %v6762_v53  ;;  %v10849_v2 = vrot.slane %v6674_v13, 2  ;;  %v6823_v49 = vsel %vm10765_vm8, %v1057_v43, %v1059_v55  ;;  %vm10764_vm13 = vcmask 64512  }
 0x1c5   :  { %10847 = vst [vmem:[#allocation14_spill] sm:$0xff] %v6804_v35  ;;  %v6807_v3 = vsel %vm10765_vm8, %v839_v20, %v841_v44  ;;  %v6812_v4 = vsel %vm10765_vm8, %v10848_v36, %v839_v20  ;;  %v6815_v5 = vsel %vm10765_vm8, %v948_v22, %v950_v51  ;;  %v6826_v23 = vsel %vm10765_vm8, %v1055_v0, %v1057_v43 }
 0x1c6   :  { %v6820_v14 = vsel %vm10765_vm8, %v10849_v2, %v948_v22  ;;  %v6829_v44 = vsel %vm10765_vm8, %v1053_v40, %v1055_v0  ;;  %v742_v62 = vmul.f32 %v6804_v35, %v6667_v61  ;;  %804 = vrot.lane.b32.xlu0 %v6588_v42, %s6087_s30  ;;  %800 = vrot.lane.b32.xlu1 %v6601_v54, %s6087_s30  ;;  %v10850_v2 = vmov 0.0  }
 0x1c7   :  { %v743_v22 = vmul.f32 %v6762_v53, %v682_v17  ;;  %v759_v13 = vmul.f32 %v6804_v35, %v682_v17  ;;  %895 = vrot.lane.b32.xlu2 %v751_v37, %s6084_s27  ;;  %v760_v0 = vmul.f32 %v6762_v53, %v6724_v12  ;;  %v6844_v51 = vmul.f32 %v6804_v35, %v6724_v12 }
 0x1c8   :  { %v845_v43 = vrot.slane %v742_v62, 2  ;;  %v6850_v21 = vrot.slane %v10850_v2, 1  ;;  %vm10728_vm14 = vcmask 97280   ;;  %vm10727_vm0 = vcmask 162816  }
 0x1c9   :  { %v847_v40 = vrot.slane %v743_v22, 2  ;;  %v954_v36 = vrot.slane %v759_v13, 2  ;;  %v956_v39 = vrot.slane %v760_v0, 2  ;;  %v1061_v62 = vrot.slane %v6844_v51, 2 }
 0x1ca   :  { %v6847_v20 = vsel %vm10765_vm8, %v843_v11, %v845_v43  ;;  %10851 = vst [vmem:[#allocation15_spill] sm:$0xff] %v6850_v21  ;;  %vm10758_vm2 = vcmask 195584   ;;  %vm10726_vm4 = vcmask 228352   ;;  %vm10731_vm5 = vcmask 261120  }
 0x1cb   :  { %v6853_v17 = vsel %vm10765_vm8, %v845_v43, %v847_v40  ;;  %v6856_v37 = vsel %vm10765_vm8, %v952_v58, %v954_v36  ;;  %v6860_v22 = vsel %vm10765_vm8, %v954_v36, %v956_v39  ;;  %v6865_v11 = vsel %vm10765_vm8, %v1059_v55, %v1061_v62  ;;  %v7016_v36 = vld [vmem:[%s10674_s8] ss:$0 sm:$0xff] }
 0x1cc   :  { %v10852_v58 = vrot.slane %v6496_v28, 1  ;;  %v10854_v55 = vrot.slane %v6636_v26, 2  ;;  %vm10725_vm6 = vcmask 293888   ;;  %vm201_vm7 = vcmp.ge.s32.totalorder %v6155_v1, 4 }
 0x1cd   :  { %vm202_vm9 = vcmp.lt.s32.totalorder %v6155_v1, 8 }
 0x1ce   :  { %914 = vrot.lane.b32.xlu0 %v6609_v18, %s6088_s10  ;;  %910 = vrot.lane.b32.xlu1 %v6585_v31, %s6088_s10  ;;  %v783_v13 = vsel %vm10767_vm12, %v6850_v21, %v10852_v58  ;;  %v768_v58 = vmul.f32 %v6639_v33, %v6724_v12 }
 0x1cf   :  { %798 = vrot.lane.b32.xlu2 %v783_v13, %s6087_s30  ;;  %v209_v13 = vld [vmem:[%s10675_s2 + $0x18] sm:$0xff] }
 0x1d6   :  { %1021 = vrot.lane.b32.xlu0 %v6616_v29, %s6086_s29  ;;  %1017 = vrot.lane.b32.xlu1 %v6588_v42, %s6086_s29 }
 0x1d7   :  { %908 = vrot.lane.b32.xlu2 %v6601_v54, %s6088_s10  ;;  %v735_v54 = vmul.f32 0.0, %v6382_v59 }
 0x1de   :  { %810 = vrot.lane.b32.xlu0 %v6690_v47, %s6087_s30  ;;  %806 = vrot.lane.b32.xlu1 %v6609_v18, %s6087_s30 }
 0x1df   :  { %802 = vrot.lane.b32.xlu2 %v6585_v31, %s6087_s30  ;;  %v6901_v31 = vrot.slane %v735_v54, 2  ;;  %v208_v54 = vld [vmem:[%s10675_s2 + $0x10] sm:$0xff] }
 0x1e1   :  { %10853 = vst [vmem:[#allocation16_spill] sm:$0xff] %v6901_v31  ;;  %v834_v43 = vsel %vm10765_vm8, %v6901_v31, %v10854_v55  ;;  %v223_v55 = vld [vmem:[%s10677_s1] sm:$0x3]  ;;  %s6093_s1 = smov 72  }
 0x1e6   :  { %920 = vrot.lane.b32.xlu0 %v6743_v60, %s6088_s10  ;;  %916 = vrot.lane.b32.xlu1 %v6616_v29, %s6088_s10 }
 0x1e7   :  { %912 = vrot.lane.b32.xlu2 %v6588_v42, %s6088_s10 }
 0x1ee   :  { %1027 = vrot.lane.b32.xlu0 %v6748_v46, %s6086_s29  ;;  %1023 = vrot.lane.b32.xlu1 %v6690_v47, %s6086_s29 }
 0x1ef   :  { %1019 = vrot.lane.b32.xlu2 %v6609_v18, %s6086_s29 }
 0x1f6   :  { %849 = vrot.lane.b32.xlu0 %v834_v43, %s6089_s11  ;;  %812 = vrot.lane.b32.xlu1 %v6743_v60, %s6087_s30 }
 0x1f7   :  { %808 = vrot.lane.b32.xlu2 %v6616_v29, %s6087_s30  ;;  %v6912_v42 = vpop.permute.xlu2 %990 }
 0x1fe   :  { %853 = vrot.lane.b32.xlu1 %v6697_v50, %s6089_s11  ;;  %851 = vrot.lane.b32.xlu0 %v6702_v41, %s6089_s11 }
 0x1ff   :  { %918 = vrot.lane.b32.xlu2 %v6690_v47, %s6088_s10  ;;  %v6920_v18 = vpop.permute.xlu2 %883 }
 0x206   :  { %962 = vrot.lane.b32.xlu1 %v6711_v27, %s6090_s12  ;;  %960 = vrot.lane.b32.xlu0 %v6714_v52, %s6090_s12 }
 0x207   :  { %1025 = vrot.lane.b32.xlu2 %v6743_v60, %s6086_s29  ;;  %v6928_v29 = vpop.permute.xlu2 %992 }
 0x20d   :  { %v6930_v26 = vpop.permute.xlu0 %885 }
 0x20e   :  { %1069 = vrot.lane.b32.xlu1 %v6740_v24, %s6091_s13  ;;  %1067 = vrot.lane.b32.xlu0 %v6765_v6, %s6091_s13 }
 0x20f   :  { %958 = vrot.lane.b32.xlu2 %v6737_v25, %s6090_s12  ;;  %v6938_v47 = vpop.permute.xlu1 %881 }
 0x210   :  { %v6940_v50 = vpop.permute.xlu2 %889 }
 0x215   :  { %v6942_v41 = vpop.permute.xlu0 %994 }
 0x216   :  { %859 = vrot.lane.b32.xlu1 %v6795_v45, %s6089_s11  ;;  %857 = vrot.lane.b32.xlu0 %v6807_v3, %s6089_s11 }
 0x217   :  { %1065 = vrot.lane.b32.xlu2 %v6768_v48, %s6091_s13  ;;  %v6950_v60 = vpop.permute.xlu1 %887 }
 0x218   :  { %v6952_v27 = vpop.permute.xlu2 %998 }
 0x21d   :  { %v6958_v52 = vpop.permute.xlu0 %891 }
 0x21e   :  { %968 = vrot.lane.b32.xlu1 %v6798_v7, %s6090_s12  ;;  %966 = vrot.lane.b32.xlu0 %v6815_v5, %s6090_s12  ;;  %v10855_v5 = vrot.slane %v6724_v12, 1  ;;  %v224_v12 = vld [vmem:[%s10676_s4] sm:$0xff] }
 0x21f   :  { %855 = vrot.lane.b32.xlu2 %v6812_v4, %s6089_s11  ;;  %v6962_v45 = vpop.permute.xlu1 %996 }
 0x221   :  { %v6964_v25 = vpop.permute.xlu2 %895 }
 0x226   :  { %1075 = vrot.lane.b32.xlu1 %v6823_v49, %s6091_s13  ;;  %1073 = vrot.lane.b32.xlu0 %v6826_v23, %s6091_s13  ;;  %v777_v49 = vmul.f32 0.0, %v6762_v53 }
 0x227   :  { %964 = vrot.lane.b32.xlu2 %v6820_v14, %s6090_s12  ;;  %v6972_v7 = vpop.permute.xlu0 %1000  ;;  %v6974_v24 = vpop.permute.xlu1 %893  ;;  %v1014_v14 = vsel %vm10767_vm12, %v10855_v5, %v6850_v21 }
 0x228   :  { %v7006_v0 = vrot.slane %v777_v49, 2  ;;  %v207_v49 = vld [vmem:[%s10675_s2 + $0x8] sm:$0xff] }
 0x229   :  { %v6976_v3 = vpop.permute.xlu2 %798 }
 0x22a   :  { %10856 = vst [vmem:[#allocation17_spill] sm:$0xff] %v7006_v0  ;;  %v1064_v40 = vsel %vm10765_vm8, %v1061_v62, %v7006_v0 }
 0x22e   :  { %922 = vrot.lane.b32.xlu1 %v6748_v46, %s6088_s10  ;;  %863 = vrot.lane.b32.xlu0 %v6853_v17, %s6089_s11 }
 0x22f   :  { %1071 = vrot.lane.b32.xlu2 %v6829_v44, %s6091_s13  ;;  %v6984_v6 = vpop.permute.xlu1 %1002  ;;  %v6986_v48 = vpop.permute.xlu0 %1015 }
 0x231   :  { %v6988_v4 = vpop.permute.xlu2 %908 }
 0x236   :  { %1029 = vrot.lane.b32.xlu1 %v1014_v14, %s6086_s29  ;;  %972 = vrot.lane.b32.xlu0 %v6860_v22, %s6090_s12 }
 0x237   :  { %861 = vrot.lane.b32.xlu2 %v6847_v20, %s6089_s11 }
 0x238   :  { %v7000_v46 = vpop.permute.xlu0 %804  ;;  %v7002_v23 = vpop.permute.xlu1 %800 }
 0x239   :  { %v7004_v44 = vpop.permute.xlu2 %802 }
 0x23e   :  { %1079 = vrot.lane.b32.xlu0 %v1064_v40, %s6091_s13  ;;  %1159 = vrot.lane.b32.xlu1 %v7016_v36, %s6092_s16  ;;  %v206_v40 = vld [vmem:[%s10675_s2] sm:$0xff] }
 0x23f   :  { %970 = vrot.lane.b32.xlu2 %v6856_v37, %s6090_s12  ;;  %v210_v37 = vld [vmem:[%s10675_s2 + $0x20] sm:$0xf] }
 0x240   :  { %v7021_v20 = vpop.permute.xlu0 %914  ;;  %v7023_v39 = vpop.permute.xlu1 %910  ;;  %5520 = vmatpush.msk.msra.mxu1 %vm10730_vm10, %v210_v37 }
 0x241   :  { %v7025_v51 = vpop.permute.xlu2 %912 }
 0x242   :  { %1203 = vmatpush.msra.mxu1 %v209_v13 }
 0x244   :  { %1204 = vmatpush.msra.mxu1 %v208_v54 }
 0x246   :  { %1205 = vmatpush.msra.mxu1 %v207_v49 }
 0x247   :  { %1077 = vrot.lane.b32.xlu2 %v6865_v11, %s6091_s13  ;;  %v225_v11 = vld [vmem:[%s10676_s4 + $0x8] sm:$0xff] }
 0x248   :  { %v7029_v17 = vpop.permute.xlu0 %1021  ;;  %v7031_v62 = vpop.permute.xlu1 %1017  ;;  %249 = vmatpush.msra.mxu0 %v225_v11  ;;  %1206 = vmatpush.msra.mxu1 %v206_v40 }
 0x249   :  { %v7033_v22 = vpop.permute.xlu2 %1019 }
 0x24a   :  { %250 = vmatpush.msra.mxu0 %v224_v12 }
 0x24b   :  { %5511 = vmatmul.msk.f32.vlgmr.msra.gmra.mxu0 %vm10762_vm11, %v223_v55  ;;  %v7084_v55 = vmul.f32 0.0, %v6378_v56 }
 0x24d   :  { %10857 = vst [vmem:[#allocation18_spill] sm:$0xff] %v7084_v55  ;;  %v1089_v49 = vsel %vm10729_vm1, %v7084_v55, %v6976_v3  ;;  %v695_v3 = vmul.f32 %v6397_v15, %v6496_v28  ;;  %v696_v28 = vmul.f32 %v6357_v9, %v6499_v32  ;;  %v697_v32 = vmul.f32 %v6392_v10, %v6485_v63 }
 0x24f   :  { %1004 = vrot.lane.b32.xlu2 %v768_v58, %s6085_s28 }
 0x250   :  { %v7057_v43 = vpop.permute.xlu0 %810  ;;  %v7059_v5 = vpop.permute.xlu1 %806 }
 0x251   :  { %v7061_v14 = vpop.permute.xlu2 %808 }
 0x257   :  { %228 = vrot.lane.b32.xlu2 %v7016_v36, %s6093_s1 }
 0x258   :  { %v7071_v58 = vpop.permute.xlu0 %920  ;;  %v7073_v37 = vpop.permute.xlu1 %916 }
 0x259   :  { %v7075_v13 = vpop.permute.xlu2 %918 }
 0x260   :  { %v7077_v11 = vpop.permute.xlu0 %1027  ;;  %v7079_v12 = vpop.permute.xlu1 %1023 }
 0x261   :  { %v7081_v54 = vpop.permute.xlu2 %1025 }
 0x268   :  { %v850_v40 = vpop.permute.xlu0 %849  ;;  %v7089_v0 = vpop.permute.xlu1 %812 }
 0x269   :  { %v1098_v31 = vsel %vm10764_vm13, %v1089_v49, %v850_v40  ;;  %v959_v21 = vpop.permute.xlu2 %958 }
 0x26a   :  { %v1107_v53 = vsel %vm10728_vm14, %v1098_v31, %v6938_v47 }
 0x26b   :  { %v1115_v35 = vsel %vm10762_vm11, %v1107_v53, %v6988_v4  ;;  %v1090_v53 = vsel %vm10729_vm1, %v695_v3, %v7002_v23 }
 0x26c   :  { %v1124_v59 = vsel %vm10727_vm0, %v1115_v35, %v959_v21 }
 0x26d   :  { %v1133_v30 = vsel %vm10758_vm2, %v1124_v59, %v6912_v42 }
 0x26e   :  { %v1142_v31 = vsel %vm10726_vm4, %v1133_v30, %v6986_v48  ;;  %v1091_v48 = vsel %vm10729_vm1, %v696_v28, %v7004_v44 }
 0x270   :  { %v854_v49 = vpop.permute.xlu1 %853  ;;  %v852_v40 = vpop.permute.xlu0 %851 }
 0x271   :  { %v1066_v55 = vpop.permute.xlu2 %1065  ;;  %v1099_v35 = vsel %vm10764_vm13, %v1090_v53, %v852_v40 }
 0x272   :  { %v1151_v21 = vsel %vm10731_vm5, %v1142_v31, %v1066_v55  ;;  %v1108_v59 = vsel %vm10728_vm14, %v1099_v35, %v6920_v18  ;;  %v1100_v55 = vsel %vm10764_vm13, %v1091_v48, %v854_v49 }
 0x273   :  { %5521 = vmatmul.msk.f32.vlgmr.msra.gmra.mxu1 %vm10725_vm6, %v1151_v21  ;;  %v1116_v30 = vsel %vm10762_vm11, %v1108_v59, %v7023_v39  ;;  %v1109_v18 = vsel %vm10728_vm14, %v1100_v55, %v6930_v26 }
 0x274   :  { %v1117_v44 = vsel %vm10762_vm11, %v1109_v18, %v7025_v51  ;;  %v698_v51 = vmul.f32 %v6570_v19, %v6507_v38 }
 0x278   :  { %v963_v42 = vpop.permute.xlu1 %962  ;;  %v961_v47 = vpop.permute.xlu0 %960 }
 0x279   :  { %v856_v4 = vpop.permute.xlu2 %855  ;;  %v1125_v23 = vsel %vm10727_vm0, %v1116_v30, %v961_v47  ;;  %v1126_v21 = vsel %vm10727_vm0, %v1117_v44, %v963_v42 }
 0x27a   :  { %v1134_v3 = vsel %vm10758_vm2, %v1125_v23, %v6928_v29  ;;  %v1092_v29 = vsel %vm10729_vm1, %v697_v32, %v7000_v46  ;;  %v1135_v26 = vsel %vm10758_vm2, %v1126_v21, %v6942_v41  ;;  %v1093_v41 = vsel %vm10729_vm1, %v698_v51, %v7059_v5 }
 0x27b   :  { %v1143_v39 = vsel %vm10726_vm4, %v1134_v3, %v7031_v62  ;;  %v1101_v63 = vsel %vm10764_vm13, %v1092_v29, %v856_v4  ;;  %v1144_v46 = vsel %vm10726_vm4, %v1135_v26, %v7033_v22 }
 0x27c   :  { %v1110_v62 = vsel %vm10728_vm14, %v1101_v63, %v6950_v60 }
 0x27d   :  { %v1118_v28 = vsel %vm10762_vm11, %v1110_v62, %v7021_v20  ;;  %v699_v20 = vmul.f32 %v6400_v16, %v6546_v57 }
 0x280   :  { %v1070_v40 = vpop.permute.xlu1 %1069  ;;  %v1068_v31 = vpop.permute.xlu0 %1067 }
 0x281   :  { %v965_v53 = vpop.permute.xlu2 %964  ;;  %v1152_v49 = vsel %vm10731_vm5, %v1143_v39, %v1068_v31  ;;  %v1153_v47 = vsel %vm10731_vm5, %v1144_v46, %v1070_v40 }
 0x282   :  { %5522 = vmatmul.msk.f32.gmra.mxu1 %vm10725_vm6, %v1152_v49  ;;  %v1127_v4 = vsel %vm10727_vm0, %v1118_v28, %v965_v53 }
 0x283   :  { %v1136_v60 = vsel %vm10758_vm2, %v1127_v4, %v6962_v45  ;;  %v1094_v45 = vsel %vm10729_vm1, %v699_v20, %v7061_v14 }
 0x284   :  { %v1145_v48 = vsel %vm10726_vm4, %v1136_v60, %v7029_v17 }
 0x288   :  { %v860_v35 = vpop.permute.xlu1 %859  ;;  %v858_v59 = vpop.permute.xlu0 %857 }
 0x289   :  { %v1072_v42 = vpop.permute.xlu2 %1071  ;;  %v1102_v38 = vsel %vm10764_vm13, %v1093_v41, %v858_v59  ;;  %v1103_v57 = vsel %vm10764_vm13, %v1094_v45, %v860_v35 }
 0x28a   :  { %5523 = vmatmul.msk.f32.gmra.mxu1 %vm10725_vm6, %v1153_v47  ;;  %v1111_v22 = vsel %vm10728_vm14, %v1102_v38, %v6940_v50  ;;  %v1154_v3 = vsel %vm10731_vm5, %v1145_v48, %v1072_v42  ;;  %v1112_v17 = vsel %vm10728_vm14, %v1103_v57, %v6958_v52 }
 0x28b   :  { %v1119_v55 = vsel %vm10762_vm11, %v1111_v22, %v7073_v37  ;;  %v700_v37 = vmul.f32 %v6552_v8, %v6576_v34  ;;  %v1120_v14 = vsel %vm10762_vm11, %v1112_v17, %v7075_v13  ;;  %v701_v13 = vmul.f32 %v6639_v33, %v6667_v61 }
 0x28d   :  { %v1095_v44 = vsel %vm10729_vm1, %v700_v37, %v7057_v43  ;;  %v1096_v26 = vsel %vm10729_vm1, %v701_v13, %v7089_v0 }
 0x290   :  { %v967_v30 = vpop.permute.xlu0 %966  ;;  %v969_v23 = vpop.permute.xlu1 %968 }
 0x291   :  { %v862_v5 = vpop.permute.xlu2 %861  ;;  %v1128_v18 = vsel %vm10727_vm0, %v1119_v55, %v967_v30 }
 0x292   :  { %5524 = vmatmul.msk.f32.gmra.mxu1 %vm10725_vm6, %v1154_v3  ;;  %v1137_v50 = vsel %vm10758_vm2, %v1128_v18, %v6952_v27  ;;  %v1129_v27 = vsel %vm10727_vm0, %v1120_v14, %v969_v23  ;;  %v1104_v52 = vsel %vm10764_vm13, %v1095_v44, %v862_v5  ;;  %v7230_v18 = vsel %vm194_vm3, 1.0, %v10850_v2 }
 0x293   :  { %v1146_v40 = vsel %vm10726_vm4, %v1137_v50, %v7079_v12  ;;  %v1138_v53 = vsel %vm10758_vm2, %v1129_v27, %v6972_v7  ;;  %v1113_v12 = vsel %vm10728_vm14, %v1104_v52, %v6974_v24  ;;  %10860 = vst [vmem:[#allocation21_spill] sm:$0xff] %v7230_v18 }
 0x294   :  { %v1147_v43 = vsel %vm10726_vm4, %v1138_v53, %v7081_v54  ;;  %v1121_v29 = vsel %vm10762_vm11, %v1113_v12, %v7071_v58 }
 0x298   :  { %v1074_v32 = vpop.permute.xlu0 %1073  ;;  %v1076_v34 = vpop.permute.xlu1 %1075 }
 0x299   :  { %v971_v31 = vpop.permute.xlu2 %970  ;;  %v1155_v39 = vsel %vm10731_vm5, %v1146_v40, %v1074_v32  ;;  %v1156_v63 = vsel %vm10731_vm5, %v1147_v43, %v1076_v34 }
 0x29a   :  { %5525 = vmatmul.msk.f32.gmra.mxu1 %vm10725_vm6, %v1155_v39  ;;  %v1130_v7 = vsel %vm10727_vm0, %v1121_v29, %v971_v31 }
 0x29b   :  { %v1139_v61 = vsel %vm10758_vm2, %v1130_v7, %v6984_v6 }
 0x29c   :  { %v1148_v51 = vsel %vm10726_vm4, %v1139_v61, %v7077_v11 }
 0x2a0   :  { %v864_v49 = vpop.permute.xlu0 %863  ;;  %v923_v62 = vpop.permute.xlu1 %922 }
 0x2a1   :  { %v1078_v21 = vpop.permute.xlu2 %1077  ;;  %v1105_v24 = vsel %vm10764_vm13, %v1096_v26, %v864_v49 }
 0x2a2   :  { %5526 = vmatmul.msk.f32.gmra.mxu1 %vm10725_vm6, %v1156_v63  ;;  %v1114_v54 = vsel %vm10728_vm14, %v1105_v24, %v6964_v25  ;;  %v1157_v0 = vsel %vm10731_vm5, %v1148_v51, %v1078_v21 }
 0x2a3   :  { %v1122_v35 = vsel %vm10762_vm11, %v1114_v54, %v923_v62 }
 0x2a8   :  { %v973_v58 = vpop.permute.xlu0 %972  ;;  %v1030_v6 = vpop.permute.xlu1 %1029 }
 0x2a9   :  { %v1005_v59 = vpop.permute.xlu2 %1004  ;;  %v1131_v46 = vsel %vm10727_vm0, %v1122_v35, %v973_v58 }
 0x2aa   :  { %5527 = vmatmul.msk.f32.gmra.mxu1 %vm10725_vm6, %v1157_v0  ;;  %v1140_v28 = vsel %vm10758_vm2, %v1131_v46, %v1005_v59 }
 0x2ab   :  { %v1149_v47 = vsel %vm10726_vm4, %v1140_v28, %v1030_v6 }
 0x2b0   :  { %v1080_v42 = vpop.permute.xlu0 %1079  ;;  %v7214_v30 = vpop.permute.xlu1 %1159 }
 0x2b1   :  { %v1158_v25 = vsel %vm10731_vm5, %v1149_v47, %v1080_v42  ;;  %v229_v38 = vpop.permute.xlu2 %228  ;;  %10859 = vst [vmem:[#allocation20_spill] sm:$0xff] %v7214_v30 }
 0x2b2   :  { %5528 = vmatmul.msk.f32.gmra.mxu1 %vm10725_vm6, %v1158_v25  ;;  %vm203_vm6 = vmand %vm201_vm7, %vm202_vm9 }
 0x2b3   :  { %v7236_v50 = vsel %vm203_vm6, 1.0, %v10850_v2 }
 0x2b4   :  { %10861 = vst [vmem:[#allocation22_spill] sm:$0xff] %v7236_v50 }
 0x2c8   :  { %v252_v60 = vpop.f32.mrf.mxu0 }
 0x2c9   :  { %v7212_v20 = vadd.f32 %v252_v60, %v229_v38 }
 0x2cb   :  { %10858 = vst [vmem:[#allocation19_spill] sm:$0xff] %v7212_v20  ;;  %v7219_v48 = vperm.slane %v7212_v20, 0 }
 0x2f0   :  { %v1208_v11 = vpop.f32.mrf.mxu1 }
 0x2f1   :  { %v1209_v5 = vadd.f32 %v1208_v11, %v7214_v30 }
 0x2f3   :  { %v7225_v45 = vadd.f32 %v7219_v48, %v1209_v5 }
 0x2f5   :  { %v1241_v32 = vmul.f32 %v7230_v18, %v7225_v45  ;;  %v1344_v31 = vmul.f32 %v7236_v50, %v7225_v45 }
 0x2f7   :  { %v1282_v52 = vmul.f32 %v1241_v32, %v7225_v45  ;;  %v1385_v12 = vmul.f32 %v1344_v31, %v7225_v45  ;;  %v1352_v21 = vsel %vm10764_vm13, %v1344_v31, 0.0  ;;  %v1249_v26 = vsel %vm10764_vm13, %v1241_v32, 0.0 }
 0x2f9   :  { %v1290_v62 = vsel %vm10764_vm13, %v1282_v52, 0.0  ;;  %v1393_v0 = vsel %vm10764_vm13, %v1385_v12, 0.0 }
 0x2ff   :  { %v1211_v41 = vpop.f32.mrf.mxu1 }
 0x300   :  { %v1212_v23 = vadd.f32 %v1211_v41, %v7214_v30 }
 0x302   :  { %v7233_v57 = vadd.f32 %v7219_v48, %v1212_v23 }
 0x304   :  { %v1242_v40 = vmul.f32 %v7230_v18, %v7233_v57  ;;  %v1345_v2 = vmul.f32 %v7236_v50, %v7233_v57 }
 0x306   :  { %v1283_v34 = vmul.f32 %v1242_v40, %v7233_v57  ;;  %v1386_v13 = vmul.f32 %v1345_v2, %v7233_v57  ;;  %v1353_v49 = vsel %vm10764_vm13, %v1345_v2, 0.0  ;;  %v1250_v61 = vsel %vm10764_vm13, %v1242_v40, 0.0 }
 0x307   :  { %v1214_v4 = vpop.f32.mrf.mxu1  ;;  %v1354_v58 = vadd.f32 %v1353_v49, %v1352_v21  ;;  %v1251_v25 = vadd.f32 %v1250_v61, %v1249_v26 }
 0x308   :  { %v1215_v3 = vadd.f32 %v1214_v4, %v7214_v30  ;;  %v1291_v35 = vsel %vm10764_vm13, %v1283_v34, 0.0  ;;  %v1394_v6 = vsel %vm10764_vm13, %v1386_v13, 0.0 }
 0x309   :  { %v1292_v23 = vadd.f32 %v1291_v35, %v1290_v62 }
 0x30a   :  { %v7240_v37 = vadd.f32 %v7219_v48, %v1215_v3 }
 0x30c   :  { %v1346_v27 = vmul.f32 %v7236_v50, %v7240_v37  ;;  %v1243_v43 = vmul.f32 %v7230_v18, %v7240_v37 }
 0x30e   :  { %v1355_v24 = vsel %vm10764_vm13, %v1346_v27, 0.0  ;;  %v1284_v28 = vmul.f32 %v1243_v43, %v7240_v37  ;;  %v1252_v38 = vsel %vm10764_vm13, %v1243_v43, 0.0  ;;  %v1387_v60 = vmul.f32 %v1346_v27, %v7240_v37 }
 0x30f   :  { %v1217_v22 = vpop.f32.mrf.mxu1  ;;  %v1356_v42 = vadd.f32 %v1355_v24, %v1354_v58 }
 0x310   :  { %v1218_v17 = vadd.f32 %v1217_v22, %v7214_v30  ;;  %v1293_v40 = vsel %vm10764_vm13, %v1284_v28, 0.0  ;;  %v1396_v34 = vsel %vm10764_vm13, %v1387_v60, 0.0 }
 0x311   :  { %v1294_v43 = vadd.f32 %v1293_v40, %v1292_v23 }
 0x312   :  { %v7252_v39 = vadd.f32 %v7219_v48, %v1218_v17 }
 0x314   :  { %v1347_v29 = vmul.f32 %v7236_v50, %v7252_v39  ;;  %v1244_v63 = vmul.f32 %v7230_v18, %v7252_v39 }
 0x316   :  { %v1357_v47 = vsel %vm10764_vm13, %v1347_v29, 0.0  ;;  %v1285_v11 = vmul.f32 %v1244_v63, %v7252_v39  ;;  %v1254_v22 = vsel %vm10764_vm13, %v1244_v63, 0.0  ;;  %v1388_v2 = vmul.f32 %v1347_v29, %v7252_v39 }
 0x317   :  { %v1220_v55 = vpop.f32.mrf.mxu1 }
 0x318   :  { %v1221_v1 = vadd.f32 %v1220_v55, %v7214_v30  ;;  %v1395_v55 = vadd.f32 %v1394_v6, %v1393_v0  ;;  %v1295_v31 = vsel %vm10764_vm13, %v1285_v11, 0.0 }
 0x319   :  { %v1296_v62 = vadd.f32 %v1295_v31, %v1294_v43  ;;  %v6096_v43 = vmov 256.0  }
 0x31a   :  { %v7260_v53 = vadd.f32 %v7219_v48, %v1221_v1  ;;  %v1358_v1 = vadd.f32 %v1357_v47, %v1356_v42  ;;  %v1397_v58 = vadd.f32 %v1396_v34, %v1395_v55  ;;  %v1398_v47 = vsel %vm10764_vm13, %v1388_v2, 0.0 }
 0x31b   :  { %5863 = vrcp.f32 %v6096_v43 }
 0x31c   :  { %v1245_v51 = vmul.f32 %v7230_v18, %v7260_v53  ;;  %v1348_v46 = vmul.f32 %v7236_v50, %v7260_v53 }
 0x31e   :  { %v1286_v5 = vmul.f32 %v1245_v51, %v7260_v53  ;;  %v1359_v17 = vsel %vm10764_vm13, %v1348_v46, 0.0  ;;  %v1256_v27 = vsel %vm10764_vm13, %v1245_v51, 0.0 }
 0x31f   :  { %v1223_v14 = vpop.f32.mrf.mxu1  ;;  %v1360_v13 = vadd.f32 %v1359_v17, %v1358_v1 }
 0x320   :  { %v1224_v44 = vadd.f32 %v1223_v14, %v7214_v30  ;;  %v1253_v14 = vadd.f32 %v1252_v38, %v1251_v25  ;;  %v1297_v21 = vsel %vm10764_vm13, %v1286_v5, 0.0 }
 0x321   :  { %v1298_v42 = vadd.f32 %v1297_v21, %v1296_v62  ;;  %v5864_v21 = vpop.eup %5863 }
 0x322   :  { %v7274_v7 = vadd.f32 %v7219_v48, %v1224_v44  ;;  %v1255_v49 = vadd.f32 %v1254_v22, %v1253_v14  ;;  %v1399_v14 = vadd.f32 %v1398_v47, %v1397_v58  ;;  %vm1278_vm3 = vweird.f32 %v5864_v21 }
 0x324   :  { %v1246_v4 = vmul.f32 %v7230_v18, %v7274_v7  ;;  %v1349_v3 = vmul.f32 %v7236_v50, %v7274_v7  ;;  %v1257_v61 = vadd.f32 %v1256_v27, %v1255_v49 }
 0x326   :  { %v1287_v52 = vmul.f32 %v1246_v4, %v7274_v7  ;;  %v1361_v26 = vsel %vm10764_vm13, %v1349_v3, 0.0  ;;  %v1258_v29 = vsel %vm10764_vm13, %v1246_v4, 0.0  ;;  %v1390_v11 = vmul.f32 %v1349_v3, %v7274_v7 }
 0x327   :  { %v1226_v54 = vpop.f32.mrf.mxu1  ;;  %v1362_v28 = vadd.f32 %v1361_v26, %v1360_v13  ;;  %v1259_v6 = vadd.f32 %v1258_v29, %v1257_v61 }
 0x328   :  { %v1227_v59 = vadd.f32 %v1226_v54, %v7214_v30  ;;  %v1389_v54 = vmul.f32 %v1348_v46, %v7260_v53  ;;  %v1402_v2 = vsel %vm10764_vm13, %v1390_v11, 0.0 }
 0x32a   :  { %v7291_v41 = vadd.f32 %v7219_v48, %v1227_v59  ;;  %v1299_v59 = vsel %vm10764_vm13, %v1287_v52, 0.0  ;;  %v1400_v22 = vsel %vm10764_vm13, %v1389_v54, 0.0 }
 0x32b   :  { %v1300_v60 = vadd.f32 %v1299_v59, %v1298_v42  ;;  %v1401_v52 = vadd.f32 %v1400_v22, %v1399_v14 }
 0x32c   :  { %v1247_v32 = vmul.f32 %v7230_v18, %v7291_v41  ;;  %v1350_v44 = vmul.f32 %v7236_v50, %v7291_v41 }
 0x32e   :  { %v1288_v24 = vmul.f32 %v1247_v32, %v7291_v41  ;;  %v1363_v35 = vsel %vm10764_vm13, %v1350_v44, 0.0  ;;  %v1260_v0 = vsel %vm10764_vm13, %v1247_v32, 0.0  ;;  %v1391_v17 = vmul.f32 %v1350_v44, %v7291_v41 }
 0x32f   :  { %v1229_v12 = vpop.f32.mrf.mxu1  ;;  %v1364_v4 = vadd.f32 %v1363_v35, %v1362_v28  ;;  %v1261_v38 = vadd.f32 %v1260_v0, %v1259_v6 }
 0x330   :  { %v1230_v63 = vadd.f32 %v1229_v12, %v7214_v30  ;;  %v1404_v34 = vsel %vm10764_vm13, %v1391_v17, 0.0  ;;  %v1403_v12 = vadd.f32 %v1402_v2, %v1401_v52 }
 0x332   :  { %v7319_v51 = vadd.f32 %v7219_v48, %v1230_v63  ;;  %v1301_v48 = vsel %vm10764_vm13, %v1288_v24, 0.0  ;;  %v1405_v13 = vadd.f32 %v1404_v34, %v1403_v12  ;;  %v1274_v63 = vmul.f32 256.0, %v5864_v21 }
 0x333   :  { %v1302_v1 = vadd.f32 %v1301_v48, %v1300_v60 }
 0x334   :  { %v1351_v25 = vmul.f32 %v7236_v50, %v7319_v51  ;;  %v1248_v46 = vmul.f32 %v7230_v18, %v7319_v51  ;;  %v1275_v26 = vsub.f32 1.0, %v1274_v63 }
 0x336   :  { %v1365_v5 = vsel %vm10764_vm13, %v1351_v25, 0.0  ;;  %v1262_v23 = vsel %vm10764_vm13, %v1248_v46, 0.0  ;;  %v1289_v55 = vmul.f32 %v1248_v46, %v7319_v51  ;;  %v1392_v3 = vmul.f32 %v1351_v25, %v7319_v51 }
 0x337   :  { %v1366_v32 = vadd.f32 %v1365_v5, %v1364_v4  ;;  %v1263_v40 = vadd.f32 %v1262_v23, %v1261_v38  ;;  %v1276_v58 = vmul.f32 %v5864_v21, %v1275_v26 }
 0x338   :  { %v1303_v31 = vsel %vm10764_vm13, %v1289_v55, 0.0  ;;  %v1406_v44 = vsel %vm10764_vm13, %v1392_v3, 0.0 }
 0x339   :  { %1367 = vadd.xlane.f32.xlu1 %v1366_v32  ;;  %1264 = vadd.xlane.f32.xlu0 %v1263_v40  ;;  %v1304_v27 = vadd.f32 %v1303_v31, %v1302_v1  ;;  %v1407_v49 = vadd.f32 %v1406_v44, %v1405_v13  ;;  %v1277_v28 = vadd.f32 %v5864_v21, %v1276_v58 }
 0x33b   :  { %1305 = vadd.xlane.f32.xlu2 %v1304_v27  ;;  %v1279_v25 = vsel %vm1278_vm3, %v5864_v21, %v1277_v28 }
 0x341   :  { %1408 = vadd.xlane.f32.xlu0 %v1407_v49 }
 0x352   :  { %1468 = vrot.lane.b32.xlu1 %v7016_v36, %s6094_s20 }
 0x353   :  { %1455 = vrot.lane.b32.xlu2 %v7016_v36, %s6095_s21 }
 0x3ac   :  { %v1265_v29 = vpop.xlane.xlu0 %1264  ;;  %v1368_v11 = vpop.xlane.xlu1 %1367 }
 0x3ad   :  { %v1266_v24 = vrot.slane %v1265_v29, 4  ;;  %v1369_v38 = vrot.slane %v1368_v11, 4 }
 0x3ae   :  { %v1306_v61 = vpop.xlane.xlu2 %1305 }
 0x3af   :  { %v1267_v62 = vadd.f32 %v1266_v24, %v1265_v29  ;;  %v1307_v54 = vrot.slane %v1306_v61, 4  ;;  %v1370_v5 = vadd.f32 %v1369_v38, %v1368_v11 }
 0x3b1   :  { %v1308_v35 = vadd.f32 %v1307_v54, %v1306_v61  ;;  %v1268_v0 = vrot.slane %v1267_v62, 2  ;;  %v1371_v55 = vrot.slane %v1370_v5, 2 }
 0x3b3   :  { %v1269_v59 = vadd.f32 %v1268_v0, %v1267_v62  ;;  %v1309_v6 = vrot.slane %v1308_v35, 2  ;;  %v1372_v14 = vadd.f32 %v1371_v55, %v1370_v5 }
 0x3b4   :  { %v1409_v4 = vpop.xlane.xlu0 %1408 }
 0x3b5   :  { %v1270_v42 = vrot.slane %v1269_v59, 1  ;;  %v1310_v47 = vadd.f32 %v1309_v6, %v1308_v35  ;;  %v1410_v60 = vrot.slane %v1409_v4, 4  ;;  %v1373_v27 = vrot.slane %v1372_v14, 1 }
 0x3b7   :  { %v1271_v36 = vadd.f32 %v1270_v42, %v1269_v59  ;;  %v1311_v46 = vrot.slane %v1310_v47, 1  ;;  %v1411_v23 = vadd.f32 %v1410_v60, %v1409_v4  ;;  %v1374_v44 = vadd.f32 %v1373_v27, %v1372_v14 }
 0x3b9   :  { %5699 = vpush %v1271_v36  ;;  %v1312_v48 = vadd.f32 %v1311_v46, %v1310_v47  ;;  %v1412_v32 = vrot.slane %v1411_v23, 2  ;;  %v7360_v47 = vpop.permute.xlu2 %1455 }
 0x3ba   :  { %5701 = vpush %v1279_v25 }
 0x3bb   :  { %5703 = vpush %v1312_v48  ;;  %v1413_v31 = vadd.f32 %v1412_v32, %v1411_v23 }
 0x3bc   :  { %10862 = vst [vmem:[#allocation23_spill] sm:$0xff] %v7360_v47 }
 0x3bd   :  { %v1414_v52 = vrot.slane %v1413_v31, 1 }
 0x3bf   :  { %v1415_v13 = vadd.f32 %v1414_v52, %v1413_v31 }
 0x3c4   :  { %v7365_v4 = vpop.permute.xlu1 %1468 }
 0x3c5   :  { %10863 = vst [vmem:[#allocation24_spill] sm:$0xff] %v7365_v4 }
 0x3ea   :  { %s5700_s22 = spop %5699 }
 0x3eb   :  { %s7345_s23 = spop %5701 }
 0x3ec   :  { %s7348_s24 = smul.f32 %s7345_s23, %s5700_s22  ;;  %s5704_s25 = spop %5703 }
 0x3ed   :  { %s1322_s14 = smul.f32 %s5704_s25, %s7345_s23 }
 0x3ee   :  { %s1323_s15 = smul.f32 %s7348_s24, %s7348_s24  ;;  %v1325_v49 = vstv %s7348_s24 }
 0x3ef   :  { %v1326_v21 = vmul.f32 %v7230_v18, %v1325_v49 }
 0x3f0   :  { %s1324_s16 = ssub.f32 %s1322_s14, %s1323_s15 }
 0x3f2   :  { %s1328_s4 = sadd.f32 1e-05, %s1324_s16  ;;  %s6097_s16 = smov 48  }
 0x3f4   :  { %v1329_v22 = vstv %s1328_s4  ;;  %s6098_s4 = smov 56  }
 0x3f5   :  { %5865 = vrsqrt.f32 %v1329_v22  ;;  %vm1336_vm7 = vweird.f32 %v1329_v22 }
 0x3fb   :  { %v5866_v17 = vpop.eup %5865 }
 0x3fc   :  { %v1331_v40 = vmul.f32 %v5866_v17, %v1329_v22  ;;  %vm1337_vm6 = vweird.f32 %v5866_v17 }
 0x3fd   :  { %vm1338_vm9 = vmor %vm1336_vm7, %vm1337_vm6 }
 0x3fe   :  { %v1332_v1 = vmul.f32 %v5866_v17, %v1331_v40 }
 0x400   :  { %v1333_v3 = vmul.f32 0.5, %v1332_v1 }
 0x402   :  { %v1334_v2 = vsub.f32 1.5, %v1333_v3 }
 0x404   :  { %v1335_v34 = vmul.f32 %v5866_v17, %v1334_v2 }
 0x406   :  { %v1339_v12 = vsel %vm1338_vm9, %v5866_v17, %v1335_v34 }
 0x407   :  { %5705 = vpush %v1339_v12 }
 0x408   :  { %5707 = vpush %v1374_v44 }
 0x409   :  { %5709 = vpush %v1415_v13 }
 0x438   :  { %s5706_s17 = spop %5705 }
 0x439   :  { %s5708_s18 = spop %5707  ;;  %v1341_v59 = vstv %s5706_s17  ;;  %s10749_s17 = smov 40  }
 0x43a   :  { %s1384_s19 = smul.f32 %s5708_s18, %s7345_s23  ;;  %s5710_s1 = spop %5709  ;;  %v1342_v6 = vmul.f32 %v7230_v18, %v1341_v59 }
 0x43b   :  { %s1425_s22 = smul.f32 %s5710_s1, %s7345_s23  ;;  %s10747_s18 = smov 64  }
 0x43c   :  { %s1426_s25 = smul.f32 %s1384_s19, %s1384_s19  ;;  %v1428_v43 = vstv %s1384_s19  ;;  %s6103_s19 = smov 104  }
 0x43d   :  { %v1429_v63 = vmul.f32 %v7236_v50, %v1428_v43 }
 0x43e   :  { %s1427_s14 = ssub.f32 %s1425_s22, %s1426_s25 }
 0x43f   :  { %v1430_v26 = vadd.f32 %v1429_v63, %v1326_v21 }
 0x440   :  { %s1431_s15 = sadd.f32 1e-05, %s1427_s14 }
 0x441   :  { %v1448_v48 = vsub.f32 %v7233_v57, %v1430_v26  ;;  %v1449_v11 = vsub.f32 %v7240_v37, %v1430_v26  ;;  %v1447_v17 = vsub.f32 %v7225_v45, %v1430_v26  ;;  %v1450_v32 = vsub.f32 %v7252_v39, %v1430_v26 }
 0x442   :  { %v1432_v29 = vstv %s1431_s15  ;;  %v1451_v40 = vsub.f32 %v7260_v53, %v1430_v26  ;;  %v1452_v1 = vsub.f32 %v7274_v7, %v1430_v26  ;;  %v1453_v3 = vsub.f32 %v7291_v41, %v1430_v26 }
 0x443   :  { %5867 = vrsqrt.f32 %v1432_v29  ;;  %vm1439_vm6 = vweird.f32 %v1432_v29  ;;  %v1454_v2 = vsub.f32 %v7319_v51, %v1430_v26 }
 0x449   :  { %v5868_v24 = vpop.eup %5867 }
 0x44a   :  { %v1434_v61 = vmul.f32 %v5868_v24, %v1432_v29  ;;  %vm1440_vm3 = vweird.f32 %v5868_v24 }
 0x44b   :  { %vm1441_vm7 = vmor %vm1439_vm6, %vm1440_vm3 }
 0x44c   :  { %v1435_v62 = vmul.f32 %v5868_v24, %v1434_v61 }
 0x44e   :  { %v1436_v54 = vmul.f32 0.5, %v1435_v62 }
 0x450   :  { %v1437_v58 = vsub.f32 1.5, %v1436_v54 }
 0x452   :  { %v1438_v35 = vmul.f32 %v5868_v24, %v1437_v58 }
 0x454   :  { %v1442_v0 = vsel %vm1441_vm7, %v5868_v24, %v1438_v35 }
 0x455   :  { %5711 = vpush %v1442_v0 }
 0x486   :  { %s5712_s24 = spop %5711 }
 0x487   :  { %v1444_v28 = vstv %s5712_s24  ;;  %s6101_s24 = smov 80  }
 0x488   :  { %v1445_v42 = vmul.f32 %v7236_v50, %v1444_v28 }
 0x48a   :  { %v1446_v36 = vadd.f32 %v1445_v42, %v1342_v6 }
 0x48c   :  { %v1458_v25 = vmul.f32 %v7360_v47, %v1446_v36 }
 0x48e   :  { %v1459_v46 = vperm.slane %v1458_v25, 0 }
 0x490   :  { %v1461_v38 = vmul.f32 %v1459_v46, %v1448_v48  ;;  %v1462_v60 = vmul.f32 %v1459_v46, %v1449_v11  ;;  %v1460_v57 = vmul.f32 %v1459_v46, %v1447_v17  ;;  %v1463_v52 = vmul.f32 %v1459_v46, %v1450_v32 }
 0x491   :  { %v1464_v34 = vmul.f32 %v1459_v46, %v1451_v40  ;;  %v1465_v12 = vmul.f32 %v1459_v46, %v1452_v1  ;;  %v1466_v13 = vmul.f32 %v1459_v46, %v1453_v3  ;;  %v1467_v39 = vmul.f32 %v1459_v46, %v1454_v2 }
 0x492   :  { %v7368_v22 = vadd.f32 %v7365_v4, %v1461_v38  ;;  %v7371_v5 = vadd.f32 %v7365_v4, %v1462_v60  ;;  %v7377_v37 = vadd.f32 %v7365_v4, %v1460_v57  ;;  %v7386_v53 = vadd.f32 %v7365_v4, %v1463_v52 }
 0x493   :  { %v7389_v7 = vadd.f32 %v7365_v4, %v1464_v34  ;;  %v7392_v41 = vadd.f32 %v7365_v4, %v1465_v12  ;;  %v7401_v54 = vadd.f32 %v7365_v4, %v1466_v13  ;;  %v7404_v0 = vadd.f32 %v7365_v4, %v1467_v39 }
 0x494   :  { %v5530_v23 = vmul.f32 -1.442695, %v7368_v22  ;;  %v5531_v55 = vmul.f32 -1.442695, %v7371_v5  ;;  %v5529_v31 = vmul.f32 -1.442695, %v7377_v37 }
 0x495   :  { %v5532_v51 = vmul.f32 -1.442695, %v7386_v53  ;;  %v5533_v49 = vmul.f32 -1.442695, %v7389_v7  ;;  %v5534_v21 = vmul.f32 -1.442695, %v7392_v41 }
 0x496   :  { %5869 = vpow2.f32 %v5530_v23  ;;  %v5535_v48 = vmul.f32 -1.442695, %v7401_v54 }
 0x497   :  { %5871 = vpow2.f32 %v5531_v55  ;;  %v5536_v55 = vmul.f32 -1.442695, %v7404_v0 }
 0x498   :  { %5873 = vpow2.f32 %v5529_v31 }
 0x49c   :  { %v5870_v14 = vpop.eup %5869 }
 0x49d   :  { %v5872_v27 = vpop.eup %5871  ;;  %v1504_v45 = vadd.f32 1.0, %v5870_v14 }
 0x49e   :  { %v1505_v44 = vadd.f32 1.0, %v5872_v27  ;;  %v5874_v43 = vpop.eup %5873 }
 0x49f   :  { %5875 = vrcp.f32 %v1504_v45  ;;  %v7397_v26 = vadd.f32 1.0, %v5874_v43  ;;  %v1535_v61 = vand.u32 2147483647, %v1504_v45  ;;  %v1537_v35 = vand.u32 2147483648, %v1504_v45 }
 0x4a0   :  { %5877 = vrcp.f32 %v1505_v44  ;;  %v1550_v28 = vand.u32 2147483647, %v1505_v44  ;;  %v1552_v6 = vand.u32 2147483648, %v1505_v44  ;;  %vm1531_vm9 = vweird.f32 %v1504_v45 }
 0x4a1   :  { %5879 = vpow2.f32 %v5532_v51  ;;  %vm1546_vm6 = vweird.f32 %v1505_v44  ;;  %vm7406_vm7 = vcmp.eq.f32.partialorder %v1535_v61, 8.507059e+37  ;;  %v1538_v60 = vor.u32 1.1754944e-38, %v1537_v35 }
 0x4a2   :  { %5881 = vpow2.f32 %v5533_v49  ;;  %vm1551_vm14 = vcmp.eq.f32.partialorder %v1550_v28, 8.507059e+37  ;;  %v1553_v32 = vor.u32 1.1754944e-38, %v1552_v6  ;;  %v1520_v3 = vand.u32 2147483647, %v7397_v26 }
 0x4a3   :  { %5883 = vrcp.f32 %v7397_v26 }
 0x4a4   :  { %5885 = vpow2.f32 %v5534_v21 }
 0x4a5   :  { %v5876_v63 = vpop.eup %5875 }
 0x4a6   :  { %v5878_v29 = vpop.eup %5877  ;;  %v1527_v24 = vmul.f32 %v5876_v63, %v1504_v45  ;;  %vm1532_vm3 = vweird.f32 %v5876_v63  ;;  %v1522_v45 = vand.u32 2147483648, %v7397_v26 }
 0x4a7   :  { %v1542_v62 = vmul.f32 %v5878_v29, %v1505_v44  ;;  %v5880_v36 = vpop.eup %5879  ;;  %vm1547_vm4 = vweird.f32 %v5878_v29  ;;  %vm1533_vm0 = vmor %vm1531_vm9, %vm1532_vm3 }
 0x4a8   :  { %v1528_v58 = vsub.f32 1.0, %v1527_v24  ;;  %v5882_v11 = vpop.eup %5881  ;;  %v7411_v23 = vadd.f32 1.0, %v5880_v36  ;;  %vm1548_vm1 = vmor %vm1546_vm6, %vm1547_vm4 }
 0x4a9   :  { %v1543_v59 = vsub.f32 1.0, %v1542_v62  ;;  %v5884_v17 = vpop.eup %5883  ;;  %v7414_v40 = vadd.f32 1.0, %v5882_v11 }
 0x4aa   :  { %v1529_v42 = vmul.f32 %v5876_v63, %v1528_v58  ;;  %v5886_v1 = vpop.eup %5885  ;;  %v1512_v31 = vmul.f32 %v5884_v17, %v7397_v26  ;;  %5887 = vrcp.f32 %v7411_v23  ;;  %v1565_v13 = vand.u32 2147483647, %v7411_v23 }
 0x4ab   :  { %v1544_v46 = vmul.f32 %v5878_v29, %v1543_v59  ;;  %5889 = vpow2.f32 %v5535_v48  ;;  %v7429_v39 = vadd.f32 1.0, %v5886_v1  ;;  %v1567_v43 = vand.u32 2147483648, %v7411_v23 }
 0x4ac   :  { %v1530_v38 = vadd.f32 %v5876_v63, %v1529_v42  ;;  %v1513_v12 = vsub.f32 1.0, %v1512_v31  ;;  %5891 = vpow2.f32 %v5536_v55  ;;  %vm1561_vm4 = vweird.f32 %v7411_v23 }
 0x4ad   :  { %v1545_v57 = vadd.f32 %v5878_v29, %v1544_v46  ;;  %5893 = vrcp.f32 %v7414_v40  ;;  %vm7443_vm3 = vcmp.eq.f32.partialorder %v1565_v13, 8.507059e+37  ;;  %v1568_v28 = vor.u32 1.1754944e-38, %v1567_v43 }
 0x4ae   :  { %v1534_v14 = vsel %vm1533_vm0, %v5876_v63, %v1530_v38  ;;  %v1514_v49 = vmul.f32 %v5884_v17, %v1513_v12  ;;  %5895 = vrcp.f32 %v7429_v39  ;;  %vm1521_vm0 = vcmp.eq.f32.partialorder %v1520_v3, 8.507059e+37 }
 0x4af   :  { %v1539_v2 = vsel %vm7406_vm7, %v1538_v60, %v1534_v14  ;;  %v1549_v27 = vsel %vm1548_vm1, %v5878_v29, %v1545_v57  ;;  %vm1517_vm1 = vweird.f32 %v5884_v17  ;;  %v1523_v63 = vor.u32 1.1754944e-38, %v1522_v45 }
 0x4b0   :  { %v1554_v52 = vsel %vm1551_vm14, %v1553_v32, %v1549_v27  ;;  %v1632_v34 = vmul.f32 %v1539_v2, %v7368_v22  ;;  %vm1516_vm14 = vweird.f32 %v7397_v26  ;;  %v5888_v22 = vpop.eup %5887  ;;  %v1580_v26 = vand.u32 2147483647, %v7414_v40 }
 0x4b1   :  { %v7426_v44 = vmul.f32 %v1554_v52, %v7371_v5  ;;  %v1515_v5 = vadd.f32 %v5884_v17, %v1514_v49  ;;  %v5890_v29 = vpop.eup %5889  ;;  %vm1518_vm9 = vmor %vm1516_vm14, %vm1517_vm1  ;;  %v1557_v61 = vmul.f32 %v5888_v22, %v7411_v23  ;;  %v1582_v6 = vand.u32 2147483648, %v7414_v40 }
 0x4b2   :  { %v1648_v51 = vrot.slane %v1632_v34, 7  ;;  %v5892_v58 = vpop.eup %5891  ;;  %vm1576_vm6 = vweird.f32 %v7414_v40  ;;  %v1595_v46 = vand.u32 2147483647, %v7429_v39  ;;  %vm1591_vm7 = vweird.f32 %v7429_v39 }
 0x4b3   :  { %v1650_v21 = vrot.slane %v7426_v44, 7  ;;  %v1519_v59 = vsel %vm1518_vm9, %v5884_v17, %v1515_v5  ;;  %v5894_v42 = vpop.eup %5893  ;;  %v1558_v25 = vsub.f32 1.0, %v1557_v61  ;;  %v1597_v38 = vand.u32 2147483648, %v7429_v39 }
 0x4b4   :  { %v1524_v36 = vsel %vm1521_vm0, %v1523_v63, %v1519_v59  ;;  %v1572_v11 = vmul.f32 %v5894_v42, %v7414_v40  ;;  %v7458_v60 = vadd.f32 1.0, %v5890_v29  ;;  %v5896_v55 = vpop.eup %5895  ;;  %vm1562_vm1 = vweird.f32 %v5888_v22 }
 0x4b5   :  { %v7440_v24 = vsel %vm10768_vm15, %v1648_v51, %v1650_v21  ;;  %v1631_v48 = vmul.f32 %v1524_v36, %v7377_v37  ;;  %v1559_v17 = vmul.f32 %v5888_v22, %v1558_v25  ;;  %vm7464_vm14 = vcmp.eq.f32.partialorder %v1580_v26, 8.507059e+37  ;;  %vm1563_vm9 = vmor %vm1561_vm4, %vm1562_vm1 }
 0x4b6   :  { %v1690_v35 = vmul.f32 %v6357_v9, %v7440_v24  ;;  %v7462_v57 = vmul.f32 %v6397_v15, %v7440_v24  ;;  %v1573_v1 = vsub.f32 1.0, %v1572_v11  ;;  %v1583_v14 = vor.u32 1.1754944e-38, %v1582_v6 }
 0x4b7   :  { %v1647_v37 = vrot.slane %v1631_v48, 7  ;;  %v1587_v31 = vmul.f32 %v5896_v55, %v7429_v39  ;;  %v1560_v3 = vadd.f32 %v5888_v22, %v1559_v17  ;;  %vm1577_vm0 = vweird.f32 %v5894_v42 }
 0x4b8   :  { %1822 = vrot.lane.b32.xlu1 %v1690_v35, %s6085_s28  ;;  %5897 = vrcp.f32 %v7458_v60  ;;  %v7470_v2 = vadd.f32 1.0, %v5892_v58  ;;  %v1574_v52 = vmul.f32 %v5894_v42, %v1573_v1  ;;  %vm7484_vm10 = vcmp.eq.f32.partialorder %v1595_v46, 8.507059e+37  ;;  %vm1578_vm4 = vmor %vm1576_vm6, %vm1577_vm0 }
 0x4b9   :  { %v7473_v27 = vsel %vm10768_vm15, 0.0, %v1647_v37  ;;  %v7476_v45 = vsel %vm10768_vm15, %v1647_v37, %v1648_v51  ;;  %v1588_v34 = vsub.f32 1.0, %v1587_v31  ;;  %v1564_v49 = vsel %vm1563_vm9, %v5888_v22, %v1560_v3 }
 0x4ba   :  { %v1688_v12 = vmul.f32 %v6378_v56, %v7473_v27  ;;  %v1689_v13 = vmul.f32 %v6397_v15, %v7476_v45  ;;  %v1569_v51 = vsel %vm7443_vm3, %v1568_v28, %v1564_v49  ;;  %v1575_v5 = vadd.f32 %v5894_v42, %v1574_v52 }
 0x4bb   :  { %v1589_v63 = vmul.f32 %v5896_v55, %v1588_v34  ;;  %vm1592_vm5 = vweird.f32 %v5896_v55  ;;  %v1634_v23 = vmul.f32 %v1569_v51, %v7386_v53  ;;  %v1598_v22 = vor.u32 1.1754944e-38, %v1597_v38 }
 0x4bc   :  { %1818 = vrot.lane.b32.xlu0 %v1688_v12, %s6085_s28  ;;  %1820 = vrot.lane.b32.xlu2 %v1689_v13, %s6085_s28  ;;  %v10734_v29 = vrot.slane %v7473_v27, 1  ;;  %v1724_v61 = vrot.slane %v7476_v45, 1  ;;  %v1579_v62 = vsel %vm1578_vm4, %v5894_v42, %v1575_v5  ;;  %v1610_v58 = vand.u32 2147483647, %v7458_v60  ;;  %vm1593_vm3 = vmor %vm1591_vm7, %vm1592_vm5 }
 0x4bd   :  { %v1590_v26 = vadd.f32 %v5896_v55, %v1589_v63  ;;  %5899 = vrcp.f32 %v7470_v2  ;;  %v1652_v59 = vrot.slane %v1634_v23, 7  ;;  %v1584_v53 = vsel %vm7464_vm14, %v1583_v14, %v1579_v62  ;;  %v10876_v62 = vld [vmem:[#allocation7_spill] sm:$0xff] }
 0x4be   :  { %v5898_v35 = vpop.eup %5897  ;;  %v1612_v40 = vand.u32 2147483648, %v7458_v60  ;;  %v7509_v28 = vsel %vm10767_vm12, %v10734_v29, %v1724_v61  ;;  %v1635_v42 = vmul.f32 %v1584_v53, %v7389_v7  ;;  %vm1606_vm6 = vweird.f32 %v7458_v60 }
 0x4bf   :  { %v1594_v6 = vsel %vm1593_vm3, %v5896_v55, %v1590_v26  ;;  %v1602_v36 = vmul.f32 %v5898_v35, %v7458_v60  ;;  %v7517_v25 = vsel %vm10768_vm15, %v1650_v21, %v1652_v59  ;;  %v1705_v39 = vmul.f32 %v6378_v56, %v7476_v45  ;;  %v10877_v26 = vld [vmem:[#allocation6_spill] sm:$0xff] }
 0x4c0   :  { %v1599_v46 = vsel %vm7484_vm10, %v1598_v22, %v1594_v6  ;;  %v1627_v48 = vand.u32 2147483648, %v7470_v2  ;;  %v1707_v7 = vmul.f32 %v6357_v9, %v7517_v25  ;;  %v1654_v38 = vrot.slane %v1635_v42, 7  ;;  %v10878_v6 = vld [vmem:[#allocation8_spill] sm:$0xff] }
 0x4c1   :  { %v7527_v11 = vmul.f32 %v1599_v46, %v7392_v41  ;;  %v1625_v44 = vand.u32 2147483647, %v7470_v2  ;;  %v1603_v55 = vsub.f32 1.0, %v1602_v36  ;;  %vm7530_vm5 = vcmp.eq.f32.partialorder %v1610_v58, 8.507059e+37 }
 0x4c2   :  { %v1613_v17 = vor.u32 1.1754944e-38, %v1612_v40  ;;  %v1726_v32 = vrot.slane %v7440_v24, 1  ;;  %1931 = vrot.lane.b32.xlu1 %v1707_v7, %s6097_s16  ;;  %v7538_v41 = vsel %vm10768_vm15, %v1652_v59, %v1654_v38  ;;  %vm1607_vm10 = vweird.f32 %v5898_v35 }
 0x4c3   :  { %v5900_v37 = vpop.eup %5899  ;;  %v1656_v1 = vrot.slane %v7527_v11, 7  ;;  %vm1621_vm7 = vweird.f32 %v7470_v2  ;;  %v1728_v14 = vrot.slane %v7517_v25, 1  ;;  %v1691_v31 = vmul.f32 %v6392_v10, %v7517_v25  ;;  %vm1608_vm0 = vmor %vm1606_vm6, %vm1607_vm10 }
 0x4c4   :  { %1927 = vrot.lane.b32.xlu0 %v1705_v39, %s6097_s16  ;;  %1929 = vrot.lane.b32.xlu2 %v7462_v57, %s6097_s16  ;;  %v1692_v3 = vmul.f32 %v6570_v19, %v7538_v41  ;;  %v1604_v52 = vmul.f32 %v5898_v35, %v1603_v55  ;;  %v1628_v34 = vor.u32 1.1754944e-38, %v1627_v48  ;;  %v1617_v13 = vmul.f32 %v5900_v37, %v7470_v2 }
 0x4c5   :  { %v7550_v12 = vsel %vm10768_vm15, %v1654_v38, %v1656_v1  ;;  %vm7553_vm1 = vcmp.eq.f32.partialorder %v1625_v44, 8.507059e+37  ;;  %v7558_v43 = vsel %vm10767_vm12, %v1724_v61, %v1726_v32  ;;  %v7561_v57 = vsel %vm10767_vm12, %v1726_v32, %v1728_v14 }
 0x4c6   :  { %v1693_v51 = vmul.f32 %v6400_v16, %v7550_v12  ;;  %v1605_v5 = vadd.f32 %v5898_v35, %v1604_v52  ;;  %vm1622_vm14 = vweird.f32 %v5900_v37  ;;  %v1730_v63 = vrot.slane %v7538_v41, 1 }
 0x4c7   :  { %v1618_v23 = vsub.f32 1.0, %v1617_v13  ;;  %v1732_v22 = vrot.slane %v7550_v12, 1  ;;  %v7572_v61 = vmul.f32 %v7473_v27, %v10876_v62  ;;  %v1696_v58 = vmul.f32 %v7473_v27, %v10877_v26  ;;  %vm1623_vm9 = vmor %vm1621_vm7, %vm1622_vm14 }
 0x4c8   :  { %v1609_v59 = vsel %vm1608_vm0, %v5898_v35, %v1605_v5  ;;  %v7577_v53 = vsel %vm10767_vm12, %v1728_v14, %v1730_v63  ;;  %v1697_v40 = vmul.f32 %v7476_v45, %v10876_v62  ;;  %v1681_v60 = vmul.f32 %v7476_v45, %v10878_v6 }
 0x4c9   :  { %v1614_v42 = vsel %vm7530_vm5, %v1613_v17, %v1609_v59  ;;  %v1619_v36 = vmul.f32 %v5900_v37, %v1618_v23  ;;  %v7586_v39 = vsel %vm10767_vm12, %v1730_v63, %v1732_v22  ;;  %v10733_v46 = vrot.slane %v7572_v61, 2  ;;  %v10880_v23 = vld [vmem:[#allocation13_spill] sm:$0xff] }
 0x4ca   :  { %v1637_v35 = vmul.f32 %v1614_v42, %v7401_v54  ;;  %v1878_v48 = vrot.slane %v1696_v58, 2  ;;  %v1879_v7 = vrot.slane %v1697_v40, 2  ;;  %v1772_v11 = vrot.slane %v1681_v60, 2  ;;  %1828 = vrot.lane.b32.xlu1 %v1693_v51, %s6085_s28 }
 0x4cb   :  { %v1708_v38 = vmul.f32 %v6392_v10, %v7538_v41  ;;  %v1620_v44 = vadd.f32 %v5900_v37, %v1619_v36  ;;  %v1713_v55 = vmul.f32 %v7476_v45, %v10877_v26  ;;  %v1714_v21 = vmul.f32 %v7440_v24, %v10876_v62 }
 0x4cc   :  { %1824 = vrot.lane.b32.xlu0 %v1691_v31, %s6085_s28  ;;  %1826 = vrot.lane.b32.xlu2 %v1692_v3, %s6085_s28  ;;  %v1658_v54 = vrot.slane %v1637_v35, 7  ;;  %v7603_v17 = vsel %vm10765_vm8, %v1878_v48, %v1879_v7  ;;  %v7608_v32 = vsel %vm10765_vm8, %v10733_v46, %v1772_v11  ;;  %v1698_v14 = vmul.f32 %v7440_v24, %v10878_v6  ;;  %v10879_v3 = vld [vmem:[#allocation9_spill] sm:$0xff]  ;;  %v10883_v46 = vld [vmem:[#allocation14_spill] sm:$0xff] }
 0x4cd   :  { %v1624_v52 = vsel %vm1623_vm9, %v5900_v37, %v1620_v44  ;;  %v1984_v31 = vrot.slane %v1713_v55, 2  ;;  %v1985_v13 = vrot.slane %v1714_v21, 2  ;;  %v1682_v51 = vmul.f32 %v7440_v24, %v10879_v3  ;;  %v10881_v21 = vld [vmem:[#allocation10_spill] sm:$0xff] }
 0x4ce   :  { %v7615_v2 = vsel %vm10768_vm15, %v1656_v1, %v1658_v54  ;;  %v1629_v5 = vsel %vm7553_vm1, %v1628_v34, %v1624_v52  ;;  %v1881_v63 = vrot.slane %v1698_v14, 2  ;;  %v1683_v58 = vmul.f32 %v7517_v25, %v10880_v23 }
 0x4cf   :  { %v1710_v59 = vmul.f32 %v6400_v16, %v7615_v2  ;;  %v1709_v37 = vmul.f32 %v6570_v19, %v7550_v12  ;;  %v1638_v40 = vmul.f32 %v1629_v5, %v7404_v0  ;;  %v1734_v60 = vrot.slane %v7615_v2, 1 }
 0x4d0   :  { %v7628_v1 = vsel %vm10765_vm8, %v1984_v31, %v1985_v13  ;;  %v7631_v49 = vsel %vm10765_vm8, %v1879_v7, %v1881_v63  ;;  %v1774_v34 = vrot.slane %v1682_v51, 2  ;;  %v1776_v42 = vrot.slane %v1683_v58, 2 }
 0x4d1   :  { %v1660_v36 = vrot.slane %v1638_v40, 7  ;;  %v7634_v35 = vsel %vm10767_vm12, %v1732_v22, %v1734_v60  ;;  %v1715_v48 = vmul.f32 %v7517_v25, %v10878_v6  ;;  %v1699_v0 = vmul.f32 %v7517_v25, %v10879_v3 }
 0x4d2   :  { %v7641_v44 = vsel %vm10765_vm8, %v1774_v34, %v1776_v42  ;;  %v7644_v55 = vsel %vm10765_vm8, %v1772_v11, %v1774_v34  ;;  %v1700_v7 = vmul.f32 %v7538_v41, %v10880_v23  ;;  %v1684_v14 = vmul.f32 %v7538_v41, %v10881_v21  ;;  %1937 = vrot.lane.b32.xlu1 %v1710_v59, %s6097_s16 }
 0x4d3   :  { %v1661_v22 = vsel %vm10768_vm15, %v1658_v54, %v1660_v36  ;;  %v7653_v52 = vsel %vm10768_vm15, %v1660_v36, 0.0  ;;  %v1987_v31 = vrot.slane %v1715_v48, 2  ;;  %v1883_v51 = vrot.slane %v1699_v0, 2 }
 0x4d4   :  { %1933 = vrot.lane.b32.xlu0 %v1708_v38, %s6097_s16  ;;  %1935 = vrot.lane.b32.xlu2 %v1709_v37, %s6097_s16  ;;  %v1694_v11 = vmul.f32 %v6552_v8, %v7615_v2  ;;  %v1736_v5 = vrot.slane %v1661_v22, 1  ;;  %v10732_v58 = vrot.slane %v7653_v52, 1  ;;  %v1885_v59 = vrot.slane %v1700_v7, 2 }
 0x4d5   :  { %v7661_v40 = vsel %vm10765_vm8, %v1985_v13, %v1987_v31  ;;  %v7664_v54 = vsel %vm10765_vm8, %v1881_v63, %v1883_v51  ;;  %v1778_v34 = vrot.slane %v1684_v14, 2  ;;  %v1716_v37 = vmul.f32 %v7538_v41, %v10879_v3 }
 0x4d6   :  { %v7667_v36 = vsel %vm10767_vm12, %v1734_v60, %v1736_v5  ;;  %v7672_v38 = vsel %vm10767_vm12, %v1736_v5, %v10732_v58  ;;  %v1717_v13 = vmul.f32 %v7550_v12, %v10880_v23  ;;  %v1695_v48 = vmul.f32 %v6639_v33, %v1661_v22  ;;  %v10882_v5 = vld [vmem:[#allocation11_spill] sm:$0xff] }
 0x4d7   :  { %v7680_v63 = vsel %vm10765_vm8, %v1883_v51, %v1885_v59  ;;  %v7683_v0 = vsel %vm10765_vm8, %v1776_v42, %v1778_v34  ;;  %v1701_v60 = vmul.f32 %v7550_v12, %v10881_v21  ;;  %v1989_v7 = vrot.slane %v1716_v37, 2 }
 0x4d8   :  { %v1991_v14 = vrot.slane %v1717_v13, 2  ;;  %v1685_v58 = vmul.f32 %v7550_v12, %v10882_v5  ;;  %v1686_v29 = vmul.f32 %v7615_v2, %v10883_v46  ;;  %v1718_v47 = vmul.f32 %v7615_v2, %v10881_v21 }
 0x4d9   :  { %v1887_v4 = vrot.slane %v1701_v60, 2  ;;  %v1702_v51 = vmul.f32 %v7615_v2, %v10882_v5  ;;  %v1703_v42 = vmul.f32 %v1661_v22, %v10883_v46  ;;  %v7700_v37 = vsel %vm10765_vm8, %v1987_v31, %v1989_v7 }
 0x4da   :  { %v7697_v20 = vsel %vm10765_vm8, %v1989_v7, %v1991_v14  ;;  %v1780_v13 = vrot.slane %v1685_v58, 2  ;;  %v1782_v30 = vrot.slane %v1686_v29, 2  ;;  %1845 = vrot.lane.b32.xlu1 %v7509_v28, %s6091_s13  ;;  %v1993_v21 = vrot.slane %v1718_v47, 2  ;;  %v10884_v29 = vld [vmem:[#allocation12_spill] sm:$0xff] }
 0x4db   :  { %v7705_v60 = vsel %vm10765_vm8, %v1885_v59, %v1887_v4  ;;  %v1889_v23 = vrot.slane %v1702_v51, 2  ;;  %v1891_v3 = vrot.slane %v1703_v42, 2  ;;  %v1687_v58 = vmul.f32 %v1661_v22, %v10884_v29 }
 0x4dc   :  { %1830 = vrot.lane.b32.xlu0 %v1694_v11, %s6085_s28  ;;  %1832 = vrot.lane.b32.xlu2 %v1695_v48, %s6085_s28  ;;  %v7710_v6 = vsel %vm10765_vm8, %v1780_v13, %v1782_v30  ;;  %v7713_v31 = vsel %vm10765_vm8, %v1778_v34, %v1780_v13  ;;  %v7717_v7 = vsel %vm10765_vm8, %v1991_v14, %v1993_v21  ;;  %vm10755_vm4 = vcmask 326656  }
 0x4dd   :  { %v7720_v59 = vsel %vm10765_vm8, %v1889_v23, %v1891_v3  ;;  %v7723_v47 = vsel %vm10765_vm8, %v1887_v4, %v1889_v23  ;;  %v1719_v11 = vmul.f32 %v1661_v22, %v10882_v5  ;;  %v1784_v48 = vrot.slane %v1687_v58, 2 }
 0x4de   :  { %v7728_v51 = vmul.f32 %v7653_v52, %v10883_v46  ;;  %v1704_v34 = vmul.f32 %v7653_v52, %v10884_v29  ;;  %v1711_v23 = vmul.f32 %v6552_v8, %v1661_v22  ;;  %vm10892_vm3 = vcmask 261120  }
 0x4df   :  { %v1995_v42 = vrot.slane %v1719_v11, 2  ;;  %v7733_v14 = vsel %vm10765_vm8, %v1782_v30, %v1784_v48  ;;  %v10885_v30 = vrot.slane %v7473_v27, 1  ;;  %v214_v11 = vld [vmem:[%s10678_s3 + $0x18] sm:$0xff]  ;;  %v1712_v48 = vmul.f32 %v6639_v33, %v7653_v52  ;;  %vm10893_vm1 = vmmov %vm10892_vm3 }
 0x4e0   :  { %v1997_v13 = vrot.slane %v7728_v51, 2  ;;  %v1893_v26 = vrot.slane %v1704_v34, 2  ;;  %v10889_v34 = vld [vmem:[#allocation17_spill] sm:$0xff]  ;;  %vm10754_vm6 = vcmask 392192   ;;  %vm10752_vm5 = vcmask 457728  }
 0x4e1   :  { %v7737_v4 = vsel %vm10765_vm8, %v1993_v21, %v1995_v42  ;;  %v10886_v21 = vld [vmem:[#allocation15_spill] sm:$0xff]  ;;  %vm10757_vm10 = vcmask 523264   ;;  %vm10751_vm7 = vcmask 588800   ;;  %vm10894_vm14 = vcmask 1043456  }
 0x4e2   :  { %v7743_v58 = vsel %vm10765_vm8, %v1995_v42, %v1997_v13  ;;  %v7746_v46 = vsel %vm10765_vm8, %v1891_v3, %v1893_v26  ;;  %1952 = vrot.lane.b32.xlu1 %v7558_v43, %s6098_s4  ;;  %v1723_v22 = vsel %vm10767_vm12, %v10886_v21, %v10885_v30  ;;  %v1999_v42 = vsel %vm10765_vm8, %v1997_v13, %v10889_v34  ;;  %vm10895_vm0 = vmmov %vm10894_vm14 }
 0x4e3   :  { %v10890_v30 = vrot.slane %v7653_v52, 1  ;;  %vm10896_vm9 = vcmask 31744  }
 0x4e4   :  { %1939 = vrot.lane.b32.xlu0 %v1711_v23, %s6097_s16  ;;  %1742 = vrot.lane.b32.xlu2 %v7558_v43, %s6089_s11 }
 0x4ea   :  { %1744 = vrot.lane.b32.xlu1 %v7561_v57, %s6089_s11 }
 0x4ec   :  { %1738 = vrot.lane.b32.xlu0 %v1723_v22, %s6089_s11  ;;  %1849 = vrot.lane.b32.xlu2 %v7561_v57, %s6091_s13  ;;  %v7930_v22 = vld [vmem:[%s10674_s8] ss:$0 sm:$0xff] }
 0x4f2   :  { %1851 = vrot.lane.b32.xlu1 %v7577_v53, %s6091_s13 }
 0x4f4   :  { %1740 = vrot.lane.b32.xlu0 %v7509_v28, %s6089_s11  ;;  %1956 = vrot.lane.b32.xlu2 %v7577_v53, %s6098_s4  ;;  %v10887_v28 = vrot.slane %v7572_v61, 2 }
 0x4fa   :  { %1958 = vrot.lane.b32.xlu1 %v7586_v39, %s6098_s4 }
 0x4fc   :  { %1847 = vrot.lane.b32.xlu0 %v7558_v43, %s6091_s13  ;;  %1748 = vrot.lane.b32.xlu2 %v7586_v39, %s6089_s11  ;;  %v10888_v43 = vld [vmem:[#allocation16_spill] sm:$0xff] }
 0x502   :  { %1750 = vrot.lane.b32.xlu1 %v7634_v35, %s6089_s11 }
 0x504   :  { %1954 = vrot.lane.b32.xlu0 %v7561_v57, %s6098_s4  ;;  %1855 = vrot.lane.b32.xlu2 %v7634_v35, %s6091_s13  ;;  %v1771_v57 = vsel %vm10765_vm8, %v10888_v43, %v10887_v28 }
 0x50a   :  { %1857 = vrot.lane.b32.xlu1 %v7667_v36, %s6091_s13 }
 0x50c   :  { %1746 = vrot.lane.b32.xlu0 %v7577_v53, %s6089_s11  ;;  %1962 = vrot.lane.b32.xlu2 %v7667_v36, %s6098_s4 }
 0x512   :  { %1964 = vrot.lane.b32.xlu1 %v7672_v38, %s6098_s4 }
 0x514   :  { %1853 = vrot.lane.b32.xlu0 %v7586_v39, %s6091_s13  ;;  %1786 = vrot.lane.b32.xlu2 %v1771_v57, %s6088_s10 }
 0x516   :  { %v7795_v26 = vpop.permute.xlu2 %1820 }
 0x51a   :  { %1788 = vrot.lane.b32.xlu1 %v7608_v32, %s6088_s10 }
 0x51c   :  { %1960 = vrot.lane.b32.xlu0 %v7634_v35, %s6098_s4  ;;  %1895 = vrot.lane.b32.xlu2 %v7603_v17, %s10749_s17 }
 0x51e   :  { %v7803_v61 = vpop.permute.xlu2 %1929 }
 0x522   :  { %1897 = vrot.lane.b32.xlu1 %v7631_v49, %s10749_s17 }
 0x524   :  { %1752 = vrot.lane.b32.xlu0 %v7667_v36, %s6089_s11  ;;  %2000 = vrot.lane.b32.xlu2 %v7628_v1, %s10747_s18 }
 0x526   :  { %v7811_v53 = vpop.permute.xlu2 %1826 }
 0x52a   :  { %2002 = vrot.lane.b32.xlu1 %v7661_v40, %s10747_s18  ;;  %v7815_v39 = vpop.permute.xlu1 %1822 }
 0x52c   :  { %1792 = vrot.lane.b32.xlu2 %v7641_v44, %s6088_s10  ;;  %1790 = vrot.lane.b32.xlu0 %v7644_v55, %s6088_s10 }
 0x52e   :  { %v7821_v17 = vpop.permute.xlu0 %1818  ;;  %v7823_v32 = vpop.permute.xlu2 %1935 }
 0x532   :  { %1794 = vrot.lane.b32.xlu1 %v7683_v0, %s6088_s10  ;;  %v219_v0 = vld [vmem:[%s10678_s3 + $0x40] sm:$0xff] }
 0x533   :  { %2127 = vmatpush.msra.mxu2 %v219_v0 }
 0x534   :  { %1901 = vrot.lane.b32.xlu2 %v7680_v63, %s10749_s17  ;;  %1899 = vrot.lane.b32.xlu0 %v7664_v54, %s10749_s17  ;;  %v7831_v3 = vpop.permute.xlu1 %1931 }
 0x536   :  { %v7833_v1 = vpop.permute.xlu0 %1927  ;;  %v7835_v49 = vpop.permute.xlu2 %1832 }
 0x53a   :  { %1903 = vrot.lane.b32.xlu1 %v7705_v60, %s10749_s17  ;;  %v217_v60 = vld [vmem:[%s10678_s3 + $0x30] sm:$0xff] }
 0x53c   :  { %2006 = vrot.lane.b32.xlu2 %v7697_v20, %s10747_s18  ;;  %2004 = vrot.lane.b32.xlu0 %v7700_v37, %s10747_s18  ;;  %v7843_v35 = vpop.permute.xlu1 %1828  ;;  %v218_v37 = vld [vmem:[%s10678_s3 + $0x38] sm:$0xff] }
 0x53d   :  { %2128 = vmatpush.msra.mxu2 %v218_v37 }
 0x53e   :  { %v7845_v44 = vpop.permute.xlu0 %1824  ;;  %v7847_v55 = vpop.permute.xlu2 %1742 }
 0x53f   :  { %2129 = vmatpush.msra.mxu2 %v217_v60 }
 0x542   :  { %2008 = vrot.lane.b32.xlu1 %v7717_v7, %s10747_s18 }
 0x544   :  { %1798 = vrot.lane.b32.xlu2 %v7710_v6, %s6088_s10  ;;  %1796 = vrot.lane.b32.xlu0 %v7713_v31, %s6088_s10  ;;  %v7855_v40 = vpop.permute.xlu1 %1937  ;;  %v216_v31 = vld [vmem:[%s10678_s3 + $0x28] sm:$0xff] }
 0x545   :  { %2130 = vmatpush.msra.mxu2 %v216_v31  ;;  %v10891_v31 = vld [vmem:[#allocation18_spill] sm:$0xff] }
 0x546   :  { %v7857_v20 = vpop.permute.xlu0 %1933  ;;  %v7859_v54 = vpop.permute.xlu2 %1849 }
 0x54a   :  { %1800 = vrot.lane.b32.xlu1 %v7733_v14, %s6088_s10  ;;  %v213_v14 = vld [vmem:[%s10678_s3 + $0x10] sm:$0xff] }
 0x54c   :  { %1907 = vrot.lane.b32.xlu2 %v7720_v59, %s10749_s17  ;;  %1905 = vrot.lane.b32.xlu0 %v7723_v47, %s10749_s17  ;;  %v1846_v36 = vpop.permute.xlu1 %1845 }
 0x54e   :  { %v7867_v6 = vpop.permute.xlu0 %1830  ;;  %v7869_v63 = vpop.permute.xlu2 %1956 }
 0x552   :  { %1909 = vrot.lane.b32.xlu1 %v7746_v46, %s10749_s17  ;;  %v215_v46 = vld [vmem:[%s10678_s3 + $0x20] sm:$0xff] }
 0x553   :  { %2131 = vmatpush.msra.mxu2 %v215_v46 }
 0x554   :  { %2012 = vrot.lane.b32.xlu2 %v7743_v58, %s10747_s18  ;;  %2010 = vrot.lane.b32.xlu0 %v7737_v4, %s10747_s18  ;;  %v1953_v7 = vpop.permute.xlu1 %1952  ;;  %v212_v4 = vld [vmem:[%s10678_s3 + $0x8] sm:$0xff]  ;;  %v211_v58 = vld [vmem:[%s10678_s3] sm:$0xff] }
 0x555   :  { %2132 = vmatpush.msra.mxu2 %v214_v11 }
 0x556   :  { %v7889_v59 = vpop.permute.xlu0 %1939  ;;  %v7891_v47 = vpop.permute.xlu2 %1748 }
 0x557   :  { %2133 = vmatpush.msra.mxu2 %v213_v14 }
 0x559   :  { %2134 = vmatpush.msra.mxu2 %v212_v4 }
 0x55a   :  { %2014 = vrot.lane.b32.xlu1 %v1999_v42, %s10747_s18 }
 0x55b   :  { %2135 = vmatpush.msra.mxu2 %v211_v58 }
 0x55c   :  { %1941 = vrot.lane.b32.xlu2 %v1712_v48, %s6097_s16  ;;  %1859 = vrot.lane.b32.xlu0 %v7672_v38, %s6091_s13  ;;  %v7915_v23 = vpop.permute.xlu1 %1744  ;;  %v1951_v38 = vsel %vm10767_vm12, %v10890_v30, %v10886_v21 }
 0x55e   :  { %v1739_v51 = vpop.permute.xlu0 %1738  ;;  %v7917_v13 = vpop.permute.xlu2 %1855 }
 0x55f   :  { %v2024_v46 = vsel %vm10764_vm13, %v10891_v31, %v1739_v51 }
 0x564   :  { %1966 = vrot.lane.b32.xlu0 %v1951_v38, %s6098_s4  ;;  %2092 = vrot.lane.b32.xlu2 %v7930_v22, %s6101_s24  ;;  %v7933_v28 = vpop.permute.xlu1 %1851 }
 0x566   :  { %v1741_v57 = vpop.permute.xlu0 %1740  ;;  %v7935_v0 = vpop.permute.xlu2 %1962 }
 0x56c   :  { %2237 = vrot.lane.b32.xlu0 %v7930_v22, %s10747_s18  ;;  %v7939_v52 = vpop.permute.xlu1 %1958  ;;  %s6102_s18 = smov 96  }
 0x56e   :  { %v1848_v37 = vpop.permute.xlu0 %1847  ;;  %v1787_v60 = vpop.permute.xlu2 %1786 }
 0x56f   :  { %v2032_v11 = vsel %vm10762_vm11, %v2024_v46, %v1787_v60 }
 0x570   :  { %v2040_v48 = vsel %vm10758_vm2, %v2032_v11, %v7821_v17 }
 0x571   :  { %v2048_v58 = vsel %vm10892_vm3, %v2040_v48, %v1846_v36  ;;  %vm10897_vm3 = vmmov %vm10895_vm0 }
 0x574   :  { %v7946_v42 = vpop.permute.xlu1 %1750 }
 0x576   :  { %v1955_v14 = vpop.permute.xlu0 %1954  ;;  %v1896_v4 = vpop.permute.xlu2 %1895 }
 0x577   :  { %v2057_v30 = vsel %vm10755_vm4, %v2048_v58, %v1896_v4 }
 0x578   :  { %v2066_v38 = vsel %vm10754_vm6, %v2057_v30, %v7833_v1  ;;  %v1673_v1 = vmul.f32 %v6397_v15, %v7473_v27  ;;  %v220_v27 = vld [vmem:[%s10679_s5] sm:$0xf] }
 0x579   :  { %v2075_v46 = vsel %vm10752_vm5, %v2066_v38, %v1953_v7  ;;  %5676 = vmatpush.msk.msra.mxu3 %vm10894_vm14, %v220_v27  ;;  %5545 = vmatpush.msk.msrb.mxu2 %vm10895_vm0, %v220_v27  ;;  %v6053_v27 = vld [vmem:[%s10675_s2] sm:$0xff]  ;;  %vm10899_vm14 = vcmask 261120  }
 0x57a   :  { %v2025_v30 = vsel %vm10764_vm13, %v1673_v1, %v1741_v57 }
 0x57c   :  { %v7952_v51 = vpop.permute.xlu1 %1857 }
 0x57e   :  { %v7954_v60 = vpop.permute.xlu0 %1746  ;;  %v2001_v17 = vpop.permute.xlu2 %2000 }
 0x57f   :  { %v2084_v11 = vsel %vm10757_vm10, %v2075_v46, %v2001_v17 }
 0x580   :  { %5537 = vmatmul.msk.f32.vlgmr.msra.gmra.mxu2 %vm10751_vm7, %v2084_v11 }
 0x584   :  { %v7959_v36 = vpop.permute.xlu1 %1964 }
 0x586   :  { %v7961_v48 = vpop.permute.xlu0 %1853  ;;  %v1793_v34 = vpop.permute.xlu2 %1792 }
 0x58c   :  { %v1789_v4 = vpop.permute.xlu1 %1788 }
 0x58d   :  { %v2033_v31 = vsel %vm10762_vm11, %v2025_v30, %v1789_v4  ;;  %v1674_v4 = vmul.f32 %v6357_v9, %v7476_v45 }
 0x58e   :  { %v7965_v58 = vpop.permute.xlu0 %1960  ;;  %v2041_v7 = vsel %vm10758_vm2, %v2033_v31, %v7795_v26  ;;  %v6047_v26 = vld [vmem:[%s10673_s0 + $0x18] sm:$0xff] }
 0x58f   :  { %v2049_v46 = vsel %vm10893_vm1, %v2041_v7, %v1848_v37  ;;  %5549 = vmatmul.msk.f32.vlgmr.msra.gmra.mxu3 %vm10896_vm9, %v6047_v26  ;;  %v6048_v37 = vld [vmem:[%s10675_s2 + $0x20] sm:$0xf]  ;;  %v6049_v31 = vld [vmem:[%s10675_s2 + $0x18] sm:$0xff]  ;;  %vm10898_vm1 = vmmov %vm10896_vm9 }
 0x590   :  { %5602 = vmatpush.msk.msra.mxu2 %vm10897_vm3, %v6048_v37  ;;  %v1675_v37 = vmul.f32 %v6392_v10, %v7440_v24  ;;  %vm10900_vm0 = vmmov %vm10898_vm1 }
 0x591   :  { %vm10901_vm9 = vmmov %vm10899_vm14 }
 0x592   :  { %3802 = vmatpush.msra.mxu2 %v6049_v31  ;;  %vm10902_vm3 = vmmov %vm10900_vm0 }
 0x594   :  { %v1898_v38 = vpop.permute.xlu1 %1897 }
 0x595   :  { %v2058_v11 = vsel %vm10755_vm4, %v2049_v46, %v1898_v38  ;;  %v6050_v38 = vld [vmem:[%s10675_s2 + $0x10] sm:$0xff]  ;;  %v2026_v46 = vsel %vm10764_vm13, %v1674_v4, %v7847_v55 }
 0x596   :  { %v7971_v17 = vpop.permute.xlu0 %1752  ;;  %v2067_v57 = vsel %vm10754_vm6, %v2058_v11, %v7803_v61  ;;  %3803 = vmatpush.msra.mxu2 %v6050_v38  ;;  %v6052_v11 = vld [vmem:[%s10673_s0 + $0x20] sm:$0xff] }
 0x597   :  { %v2076_v61 = vsel %vm10752_vm5, %v2067_v57, %v1955_v14  ;;  %v6051_v14 = vld [vmem:[%s10675_s2 + $0x8] sm:$0xff]  ;;  %5550 = vmatmul.msk.f32.gmra.mxu3 %vm10898_vm1, %v6052_v11  ;;  %v1902_v57 = vpop.permute.xlu2 %1901  ;;  %vm10903_vm1 = vmmov %vm10901_vm9 }
 0x598   :  { %3804 = vmatpush.msra.mxu2 %v6051_v14 }
 0x59a   :  { %3805 = vmatpush.msra.mxu2 %v6053_v27 }
 0x59c   :  { %v2003_v1 = vpop.permute.xlu1 %2002 }
 0x59d   :  { %v2085_v7 = vsel %vm10757_vm10, %v2076_v61, %v2003_v1  ;;  %v2027_v61 = vsel %vm10764_vm13, %v1675_v37, %v7915_v23  ;;  %v1676_v23 = vmul.f32 %v6570_v19, %v7517_v25  ;;  %v6055_v25 = vld [vmem:[%s10673_s0 + $0x30] sm:$0xff] }
 0x59e   :  { %v1791_v30 = vpop.permute.xlu0 %1790  ;;  %5538 = vmatmul.msk.f32.gmra.mxu2 %vm10751_vm7, %v2085_v7  ;;  %v6054_v7 = vld [vmem:[%s10673_s0 + $0x28] sm:$0xff] }
 0x59f   :  { %v2034_v45 = vsel %vm10762_vm11, %v2026_v46, %v1791_v30  ;;  %v2035_v30 = vsel %vm10762_vm11, %v2027_v61, %v1793_v34  ;;  %5551 = vmatmul.msk.f32.gmra.mxu3 %vm10900_vm0, %v6054_v7 }
 0x5a0   :  { %v2042_v55 = vsel %vm10758_vm2, %v2034_v45, %v7815_v39  ;;  %v2043_v39 = vsel %vm10758_vm2, %v2035_v30, %v7845_v44 }
 0x5a1   :  { %v2050_v1 = vsel %vm10899_vm14, %v2042_v55, %v7859_v54  ;;  %v2007_v54 = vpop.permute.xlu2 %2006  ;;  %v2051_v46 = vsel %vm10901_vm9, %v2043_v39, %v7933_v28  ;;  %vm10904_vm14 = vmmov %vm10900_vm0 }
 0x5a2   :  { %v2060_v11 = vsel %vm10755_vm4, %v2051_v46, %v1902_v57  ;;  %vm10905_vm0 = vmmov %vm10903_vm1 }
 0x5a3   :  { %vm10906_vm9 = vmmov %vm10905_vm0 }
 0x5a4   :  { %v1795_v26 = vpop.permute.xlu1 %1794 }
 0x5a6   :  { %v1900_v31 = vpop.permute.xlu0 %1899 }
 0x5a7   :  { %v2059_v4 = vsel %vm10755_vm4, %v2050_v1, %v1900_v31  ;;  %5552 = vmatmul.msk.f32.gmra.mxu3 %vm10902_vm3, %v6055_v25  ;;  %vm10907_vm3 = vmmov %vm10905_vm0 }
 0x5a8   :  { %v2068_v24 = vsel %vm10754_vm6, %v2059_v4, %v7831_v3  ;;  %v2028_v3 = vsel %vm10764_vm13, %v1676_v23, %v7954_v60  ;;  %v1677_v60 = vmul.f32 %v6400_v16, %v7538_v41 }
 0x5a9   :  { %v2077_v34 = vsel %vm10752_vm5, %v2068_v24, %v7869_v63  ;;  %v2036_v44 = vsel %vm10762_vm11, %v2028_v3, %v1795_v26  ;;  %v2069_v63 = vsel %vm10754_vm6, %v2060_v11, %v7857_v20  ;;  %v1799_v55 = vpop.permute.xlu2 %1798 }
 0x5aa   :  { %v2044_v28 = vsel %vm10758_vm2, %v2036_v44, %v7811_v53  ;;  %v2078_v57 = vsel %vm10752_vm5, %v2069_v63, %v7939_v52  ;;  %v2029_v31 = vsel %vm10764_vm13, %v1677_v60, %v7891_v47  ;;  %v6056_v52 = vld [vmem:[%s10673_s0 + $0x38] sm:$0xff]  ;;  %v1678_v47 = vmul.f32 %v6552_v8, %v7550_v12 }
 0x5ab   :  { %v2052_v26 = vsel %vm10903_vm1, %v2044_v28, %v7961_v48  ;;  %v2087_v37 = vsel %vm10757_vm10, %v2078_v57, %v2007_v54  ;;  %vm10908_vm1 = vmmov %vm10904_vm14  ;;  %v6059_v57 = vld [vmem:[%s10673_s0 + $0x10] sm:$0xff] }
 0x5ac   :  { %v1904_v14 = vpop.permute.xlu1 %1903  ;;  %v2030_v24 = vsel %vm10764_vm13, %v1678_v47, %v7946_v42 }
 0x5ad   :  { %v2061_v20 = vsel %vm10755_vm4, %v2052_v26, %v1904_v14 }
 0x5ae   :  { %v2005_v38 = vpop.permute.xlu0 %2004  ;;  %v2070_v48 = vsel %vm10754_vm6, %v2061_v20, %v7823_v32 }
 0x5af   :  { %v2086_v45 = vsel %vm10757_vm10, %v2077_v34, %v2005_v38  ;;  %5553 = vmatmul.msk.f32.gmra.mxu3 %vm10904_vm14, %v6056_v52  ;;  %v2079_v4 = vsel %vm10752_vm5, %v2070_v48, %v7965_v58  ;;  %vm10909_vm14 = vmmov %vm10908_vm1 }
 0x5b0   :  { %5539 = vmatmul.msk.f32.gmra.mxu2 %vm10751_vm7, %v2086_v45 }
 0x5b1   :  { %v1908_v39 = vpop.permute.xlu2 %1907 }
 0x5b4   :  { %v2009_v41 = vpop.permute.xlu1 %2008 }
 0x5b5   :  { %v2088_v7 = vsel %vm10757_vm10, %v2079_v4, %v2009_v41 }
 0x5b6   :  { %v1797_v27 = vpop.permute.xlu0 %1796 }
 0x5b7   :  { %v2037_v53 = vsel %vm10762_vm11, %v2029_v31, %v1797_v27  ;;  %v6058_v27 = vld [vmem:[%s10673_s0 + $0x8] sm:$0xff] }
 0x5b8   :  { %5540 = vmatmul.msk.f32.gmra.mxu2 %vm10751_vm7, %v2087_v37  ;;  %v2045_v1 = vsel %vm10758_vm2, %v2037_v53, %v7843_v35  ;;  %v2038_v35 = vsel %vm10762_vm11, %v2030_v24, %v1799_v55 }
 0x5b9   :  { %v2053_v30 = vsel %vm10905_vm0, %v2045_v1, %v7917_v13  ;;  %v2046_v58 = vsel %vm10758_vm2, %v2038_v35, %v7867_v6  ;;  %v2013_v14 = vpop.permute.xlu2 %2012  ;;  %vm10910_vm0 = vmmov %vm10908_vm1 }
 0x5ba   :  { %v2054_v42 = vsel %vm10906_vm9, %v2046_v58, %v7952_v51  ;;  %vm10922_vm9 = vmmov %vm10910_vm0 }
 0x5bb   :  { %v2063_v34 = vsel %vm10755_vm4, %v2054_v42, %v1908_v39 }
 0x5bc   :  { %v1801_v54 = vpop.permute.xlu1 %1800  ;;  %v2072_v6 = vsel %vm10754_vm6, %v2063_v34, %v7889_v59 }
 0x5bd   :  { %v2081_v3 = vsel %vm10752_vm5, %v2072_v6, %v7959_v36 }
 0x5be   :  { %v1906_v61 = vpop.permute.xlu0 %1905  ;;  %v2090_v44 = vsel %vm10757_vm10, %v2081_v3, %v2013_v14 }
 0x5bf   :  { %v2062_v32 = vsel %vm10755_vm4, %v2053_v30, %v1906_v61 }
 0x5c0   :  { %5541 = vmatmul.msk.f32.gmra.mxu2 %vm10751_vm7, %v2088_v7  ;;  %v2071_v12 = vsel %vm10754_vm6, %v2062_v32, %v7855_v40  ;;  %v1679_v40 = vmul.f32 %v6639_v33, %v7615_v2 }
 0x5c1   :  { %v2080_v23 = vsel %vm10752_vm5, %v2071_v12, %v7935_v0  ;;  %v1942_v59 = vpop.permute.xlu2 %1941 }
 0x5c2   :  { %v2031_v46 = vsel %vm10764_vm13, %v1679_v40, %v7971_v17 }
 0x5c3   :  { %v2039_v0 = vsel %vm10762_vm11, %v2031_v46, %v1801_v54 }
 0x5c4   :  { %v1910_v45 = vpop.permute.xlu1 %1909  ;;  %v2047_v11 = vsel %vm10758_vm2, %v2039_v0, %v7835_v49  ;;  %v6057_v49 = vld [vmem:[%s10673_s0] sm:$0xff] }
 0x5c6   :  { %v2011_v13 = vpop.permute.xlu0 %2010 }
 0x5c7   :  { %v2089_v38 = vsel %vm10757_vm10, %v2080_v23, %v2011_v13 }
 0x5c8   :  { %5542 = vmatmul.msk.f32.gmra.mxu2 %vm10751_vm7, %v2089_v38 }
 0x5c9   :  { %v8126_v61 = vpop.permute.xlu2 %2092 }
 0x5ca   :  { %10911 = vst [vmem:[#allocation25_spill] sm:$0xff] %v8126_v61 }
 0x5cc   :  { %v2015_v28 = vpop.permute.xlu1 %2014 }
 0x5ce   :  { %v1860_v51 = vpop.permute.xlu0 %1859 }
 0x5cf   :  { %v2055_v2 = vsel %vm10907_vm3, %v2047_v11, %v1860_v51  ;;  %vm10923_vm3 = vmmov %vm10910_vm0 }
 0x5d0   :  { %5543 = vmatmul.msk.f32.gmra.mxu2 %vm10751_vm7, %v2090_v44  ;;  %v2064_v17 = vsel %vm10755_vm4, %v2055_v2, %v1910_v45 }
 0x5d1   :  { %v2073_v63 = vsel %vm10754_vm6, %v2064_v17, %v1942_v59 }
 0x5d6   :  { %v1967_v25 = vpop.permute.xlu0 %1966 }
 0x5d7   :  { %v2082_v60 = vsel %vm10752_vm5, %v2073_v63, %v1967_v25 }
 0x5d8   :  { %v2091_v36 = vsel %vm10757_vm10, %v2082_v60, %v2015_v28 }
 0x5d9   :  { %5544 = vmatmul.msk.f32.gmra.mxu2 %vm10751_vm7, %v2091_v36  ;;  %vm10930_vm7 = vmmov %vm10910_vm0 }
 0x5de   :  { %v8130_v24 = vpop.permute.xlu0 %2237 }
 0x5df   :  { %10912 = vst [vmem:[#allocation26_spill] sm:$0xff] %v8130_v24 }
 0x5e1   :  { %5546 = vmatmul.msk.f32.vlgmr.msrb.gmra.mxu2 %vm10908_vm1, %v6057_v49  ;;  %vm10924_vm1 = vmmov %vm10910_vm0 }
 0x5e9   :  { %5547 = vmatmul.msk.f32.gmra.mxu2 %vm10909_vm14, %v6058_v27  ;;  %vm10925_vm14 = vmmov %vm10910_vm0 }
 0x5f1   :  { %5548 = vmatmul.msk.f32.gmra.mxu2 %vm10910_vm0, %v6059_v57 }
 0x603   :  { %v2137_v55 = vpop.f32.mrf.mxu2 }
 0x604   :  { %v2138_v54 = vadd.f32 %v2137_v55, %v8126_v61 }
 0x612   :  { %v2214_v53 = vpop.f32.mrf.mxu3 }
 0x61a   :  { %v2217_v52 = vpop.f32.mrf.mxu3 }
 0x621   :  { %v2140_v26 = vpop.f32.mrf.mxu2 }
 0x622   :  { %v2220_v47 = vpop.f32.mrf.mxu3  ;;  %v2141_v23 = vadd.f32 %v2140_v26, %v8126_v61 }
 0x62a   :  { %v2223_v39 = vpop.f32.mrf.mxu3 }
 0x632   :  { %v2226_v59 = vpop.f32.mrf.mxu3 }
 0x633   :  { %v2143_v37 = vpop.f32.mrf.mxu2 }
 0x634   :  { %v2144_v17 = vadd.f32 %v2143_v37, %v8126_v61 }
 0x63b   :  { %v2146_v31 = vpop.f32.mrf.mxu2 }
 0x63c   :  { %v2147_v4 = vadd.f32 %v2146_v31, %v8126_v61 }
 0x63e   :  { %v2232_v7 = vadd.f32 %v2214_v53, %v2147_v4 }
 0x640   :  { %v8133_v12 = vadd.f32 %v8130_v24, %v2232_v7 }
 0x642   :  { %10913 = vst [vmem:[#allocation27_spill] sm:$0xff] %v8133_v12  ;;  %v2251_v38 = vmul.f32 %v7230_v18, %v8133_v12  ;;  %v2354_v40 = vmul.f32 %v7236_v50, %v8133_v12 }
 0x643   :  { %v2149_v20 = vpop.f32.mrf.mxu2 }
 0x644   :  { %v2150_v30 = vadd.f32 %v2149_v20, %v8126_v61  ;;  %v2292_v3 = vmul.f32 %v2251_v38, %v8133_v12  ;;  %v2395_v2 = vmul.f32 %v2354_v40, %v8133_v12  ;;  %v2364_v57 = vsel %vm10764_vm13, %v2354_v40, 0.0 }
 0x645   :  { %v2261_v55 = vsel %vm10764_vm13, %v2251_v38, 0.0 }
 0x646   :  { %v2233_v35 = vadd.f32 %v2217_v52, %v2150_v30  ;;  %v2302_v26 = vsel %vm10764_vm13, %v2292_v3, 0.0 }
 0x648   :  { %v8137_v58 = vadd.f32 %v8130_v24, %v2233_v35 }
 0x64a   :  { %10914 = vst [vmem:[#allocation28_spill] sm:$0xff] %v8137_v58  ;;  %v2252_v0 = vmul.f32 %v7230_v18, %v8137_v58  ;;  %v2355_v44 = vmul.f32 %v7236_v50, %v8137_v58 }
 0x64b   :  { %v2152_v41 = vpop.f32.mrf.mxu2 }
 0x64c   :  { %v2153_v42 = vadd.f32 %v2152_v41, %v8126_v61  ;;  %v2293_v49 = vmul.f32 %v2252_v0, %v8137_v58  ;;  %v2366_v20 = vsel %vm10764_vm13, %v2355_v44, 0.0  ;;  %v2263_v53 = vsel %vm10764_vm13, %v2252_v0, 0.0 }
 0x64d   :  { %v2405_v41 = vsel %vm10764_vm13, %v2395_v2, 0.0 }
 0x64e   :  { %v2234_v45 = vadd.f32 %v2220_v47, %v2153_v42  ;;  %v2396_v47 = vmul.f32 %v2355_v44, %v8137_v58  ;;  %v2304_v7 = vsel %vm10764_vm13, %v2293_v49, 0.0 }
 0x650   :  { %v8170_v27 = vadd.f32 %v8130_v24, %v2234_v45 }
 0x652   :  { %10917 = vst [vmem:[#allocation31_spill] sm:$0xff] %v8170_v27  ;;  %v2253_v38 = vmul.f32 %v7230_v18, %v8170_v27 }
 0x653   :  { %v2155_v48 = vpop.f32.mrf.mxu2 }
 0x654   :  { %v2156_v6 = vadd.f32 %v2155_v48, %v8126_v61 }
 0x656   :  { %v2235_v28 = vadd.f32 %v2223_v39, %v2156_v6  ;;  %v2356_v39 = vmul.f32 %v7236_v50, %v8170_v27 }
 0x658   :  { %v8182_v4 = vadd.f32 %v8130_v24, %v2235_v28 }
 0x65a   :  { %10918 = vst [vmem:[#allocation32_spill] sm:$0xff] %v8182_v4  ;;  %v2254_v49 = vmul.f32 %v7230_v18, %v8182_v4 }
 0x65c   :  { %v2158_v1 = vpop.f32.mrf.mxu2 }
 0x65d   :  { %v2159_v11 = vadd.f32 %v2158_v1, %v8126_v61 }
 0x65f   :  { %v2236_v37 = vadd.f32 %v2226_v59, %v2159_v11 }
 0x664   :  { %v2205_v32 = vpop.f32.mrf.mxu2 }
 0x665   :  { %v2229_v13 = vadd.f32 %v2205_v32, %v2138_v54 }
 0x667   :  { %v8147_v14 = vadd.f32 %v8130_v24, %v2229_v13 }
 0x669   :  { %10915 = vst [vmem:[#allocation29_spill] sm:$0xff] %v8147_v14  ;;  %v2351_v60 = vmul.f32 %v7236_v50, %v8147_v14  ;;  %v2248_v36 = vmul.f32 %v7230_v18, %v8147_v14 }
 0x66b   :  { %v2289_v30 = vmul.f32 %v2248_v36, %v8147_v14  ;;  %v2392_v32 = vmul.f32 %v2351_v60, %v8147_v14  ;;  %v2359_v42 = vsel %vm10764_vm13, %v2351_v60, 0.0 }
 0x66c   :  { %v2208_v34 = vpop.f32.mrf.mxu2 }
 0x66d   :  { %v2230_v46 = vadd.f32 %v2208_v34, %v2141_v23  ;;  %v8195_v23 = vadd.f32 %v8130_v24, %v2236_v37  ;;  %v2256_v34 = vsel %vm10764_vm13, %v2248_v36, 0.0  ;;  %v2297_v11 = vsel %vm10764_vm13, %v2289_v30, 0.0 }
 0x66e   :  { %v2400_v44 = vsel %vm10764_vm13, %v2392_v32, 0.0 }
 0x66f   :  { %v8152_v51 = vadd.f32 %v8130_v24, %v2230_v46  ;;  %10920 = vst [vmem:[#allocation34_spill] sm:$0xff] %v8195_v23 }
 0x671   :  { %10916 = vst [vmem:[#allocation30_spill] sm:$0xff] %v8152_v51  ;;  %v2352_v25 = vmul.f32 %v7236_v50, %v8152_v51  ;;  %v2249_v63 = vmul.f32 %v7230_v18, %v8152_v51 }
 0x673   :  { %v2290_v48 = vmul.f32 %v2249_v63, %v8152_v51  ;;  %v2393_v1 = vmul.f32 %v2352_v25, %v8152_v51  ;;  %v2360_v54 = vsel %vm10764_vm13, %v2352_v25, 0.0  ;;  %v2257_v13 = vsel %vm10764_vm13, %v2249_v63, 0.0 }
 0x674   :  { %v2211_v31 = vpop.f32.mrf.mxu2  ;;  %v2361_v45 = vadd.f32 %v2360_v54, %v2359_v42  ;;  %v2258_v3 = vadd.f32 %v2257_v13, %v2256_v34  ;;  %v2357_v54 = vmul.f32 %v7236_v50, %v8182_v4  ;;  %v2255_v13 = vmul.f32 %v7230_v18, %v8195_v23 }
 0x675   :  { %v2231_v52 = vadd.f32 %v2211_v31, %v2144_v17  ;;  %v2298_v6 = vsel %vm10764_vm13, %v2290_v48, 0.0  ;;  %v2401_v0 = vsel %vm10764_vm13, %v2393_v1, 0.0  ;;  %v2294_v42 = vmul.f32 %v2253_v38, %v8170_v27 }
 0x676   :  { %v2299_v60 = vadd.f32 %v2298_v6, %v2297_v11  ;;  %v2402_v36 = vadd.f32 %v2401_v0, %v2400_v44  ;;  %v2397_v34 = vmul.f32 %v2356_v39, %v8170_v27 }
 0x677   :  { %v8188_v35 = vadd.f32 %v8130_v24, %v2231_v52  ;;  %v2407_v52 = vsel %vm10764_vm13, %v2396_v47, 0.0  ;;  %v2265_v47 = vsel %vm10764_vm13, %v2253_v38, 0.0  ;;  %v10997_v24 = vld [vmem:[#allocation10_spill] sm:$0xff] }
 0x679   :  { %10919 = vst [vmem:[#allocation33_spill] sm:$0xff] %v8188_v35  ;;  %v2353_v40 = vmul.f32 %v7236_v50, %v8188_v35  ;;  %v2250_v46 = vmul.f32 %v7230_v18, %v8188_v35 }
 0x67b   :  { %v2362_v2 = vsel %vm10764_vm13, %v2353_v40, 0.0  ;;  %v2259_v17 = vsel %vm10764_vm13, %v2250_v46, 0.0  ;;  %v2291_v59 = vmul.f32 %v2250_v46, %v8188_v35  ;;  %v2394_v25 = vmul.f32 %v2353_v40, %v8188_v35 }
 0x67c   :  { %v2363_v63 = vadd.f32 %v2362_v2, %v2361_v45  ;;  %v2260_v28 = vadd.f32 %v2259_v17, %v2258_v3  ;;  %v2295_v45 = vmul.f32 %v2254_v49, %v8182_v4  ;;  %v2370_v17 = vsel %vm10764_vm13, %v2357_v54, 0.0 }
 0x67d   :  { %v2300_v37 = vsel %vm10764_vm13, %v2291_v59, 0.0  ;;  %v2403_v31 = vsel %vm10764_vm13, %v2394_v25, 0.0 }
 0x67e   :  { %v2365_v48 = vadd.f32 %v2364_v57, %v2363_v63  ;;  %v2262_v1 = vadd.f32 %v2261_v55, %v2260_v28  ;;  %v2301_v30 = vadd.f32 %v2300_v37, %v2299_v60  ;;  %v2404_v32 = vadd.f32 %v2403_v31, %v2402_v36 }
 0x67f   :  { %v2358_v57 = vmul.f32 %v7236_v50, %v8195_v23  ;;  %v2368_v55 = vsel %vm10764_vm13, %v2356_v39, 0.0  ;;  %v2409_v39 = vsel %vm10764_vm13, %v2397_v34, 0.0  ;;  %v2269_v63 = vsel %vm10764_vm13, %v2255_v13, 0.0  ;;  %v8255_v34 = vld [vmem:[%s10673_s0 + $0x50] sm:$0xff] }
 0x680   :  { %v2367_v40 = vadd.f32 %v2366_v20, %v2365_v48  ;;  %v2264_v46 = vadd.f32 %v2263_v53, %v2262_v1  ;;  %v2303_v6 = vadd.f32 %v2302_v26, %v2301_v30  ;;  %v2406_v0 = vadd.f32 %v2405_v41, %v2404_v32 }
 0x681   :  { %v2267_v20 = vsel %vm10764_vm13, %v2254_v49, 0.0  ;;  %v2296_v26 = vmul.f32 %v2255_v13, %v8195_v23  ;;  %v2306_v53 = vsel %vm10764_vm13, %v2294_v42, 0.0  ;;  %v2372_v38 = vsel %vm10764_vm13, %v2358_v57, 0.0  ;;  %v8250_v42 = vld [vmem:[%s10673_s0 + $0x48] sm:$0xff] }
 0x682   :  { %v2369_v3 = vadd.f32 %v2368_v55, %v2367_v40  ;;  %v2266_v11 = vadd.f32 %v2265_v47, %v2264_v46  ;;  %v2305_v44 = vadd.f32 %v2304_v7, %v2303_v6  ;;  %v2408_v2 = vadd.f32 %v2407_v52, %v2406_v0  ;;  %v8260_v40 = vld [vmem:[%s10673_s0 + $0x58] sm:$0xff]  ;;  %v8265_v46 = vld [vmem:[%s10673_s0 + $0x60] sm:$0xff]  ;;  %v8276_v47 = vld [vmem:[%s10673_s0 + $0x68] sm:$0xff] }
 0x683   :  { %v2308_v7 = vsel %vm10764_vm13, %v2295_v45, 0.0  ;;  %v2398_v28 = vmul.f32 %v2357_v54, %v8182_v4  ;;  %v2310_v31 = vsel %vm10764_vm13, %v2296_v26, 0.0  ;;  %v2399_v48 = vmul.f32 %v2358_v57, %v8195_v23  ;;  %v8245_v54 = vld [vmem:[%s10673_s0 + $0x40] sm:$0xff] }
 0x684   :  { %v2371_v41 = vadd.f32 %v2370_v17, %v2369_v3  ;;  %v2268_v59 = vadd.f32 %v2267_v20, %v2266_v11  ;;  %v2307_v25 = vadd.f32 %v2306_v53, %v2305_v44  ;;  %v2410_v37 = vadd.f32 %v2409_v39, %v2408_v2  ;;  %v10921_v6 = vld [vmem:[#allocation2_spill] sm:$0xff]  ;;  %v8287_v2 = vld [vmem:[%s10673_s0 + $0x70] sm:$0xff] }
 0x685   :  { %v2411_v1 = vsel %vm10764_vm13, %v2398_v28, 0.0  ;;  %v2413_v32 = vsel %vm10764_vm13, %v2399_v48, 0.0  ;;  %v2925_v0 = vmul.f32 %v10921_v6, %v8245_v54  ;;  %v2926_v57 = vmul.f32 %v10921_v6, %v8250_v42 }
 0x686   :  { %v2373_v60 = vadd.f32 %v2372_v38, %v2371_v41  ;;  %v2270_v36 = vadd.f32 %v2269_v63, %v2268_v59  ;;  %v2309_v49 = vadd.f32 %v2308_v7, %v2307_v25  ;;  %v2412_v30 = vadd.f32 %v2411_v1, %v2410_v37  ;;  %v8297_v59 = vld [vmem:[%s10673_s0 + $0x78] sm:$0xff] }
 0x687   :  { %v2927_v55 = vmul.f32 %v10921_v6, %v8255_v34  ;;  %v2928_v45 = vmul.f32 %v10921_v6, %v8260_v40  ;;  %v2929_v3 = vmul.f32 %v10921_v6, %v8265_v46  ;;  %v2933_v11 = vsel %vm10922_vm9, %v2925_v0, 0.0  ;;  %vm10926_vm9 = vmmov %vm10910_vm0 }
 0x688   :  { %2374 = vadd.xlane.f32.xlu0 %v2373_v60  ;;  %2271 = vadd.xlane.f32.xlu1 %v2270_v36  ;;  %v2311_v52 = vadd.f32 %v2310_v31, %v2309_v49  ;;  %v2414_v13 = vadd.f32 %v2413_v32, %v2412_v30  ;;  %v2934_v44 = vsel %vm10923_vm3, %v2926_v57, 0.0  ;;  %v2930_v26 = vmul.f32 %v10921_v6, %v8276_v47  ;;  %vm10927_vm3 = vmmov %vm10910_vm0 }
 0x689   :  { %v2935_v17 = vadd.f32 %v2934_v44, %v2933_v11  ;;  %v2936_v20 = vsel %vm10924_vm1, %v2927_v55, 0.0  ;;  %v2938_v53 = vsel %vm10925_vm14, %v2928_v45, 0.0  ;;  %v2966_v41 = vmul.f32 %v2925_v0, %v8245_v54  ;;  %vm10928_vm1 = vmmov %vm10910_vm0 }
 0x68a   :  { %2312 = vadd.xlane.f32.xlu2 %v2311_v52  ;;  %v2967_v39 = vmul.f32 %v2926_v57, %v8250_v42  ;;  %v2968_v38 = vmul.f32 %v2927_v55, %v8255_v34  ;;  %v2969_v63 = vmul.f32 %v2928_v45, %v8260_v40  ;;  %v2931_v7 = vmul.f32 %v10921_v6, %v8287_v2  ;;  %vm10929_vm14 = vmmov %vm10910_vm0 }
 0x68b   :  { %v2937_v25 = vadd.f32 %v2936_v20, %v2935_v17  ;;  %v2940_v28 = vsel %vm10910_vm0, %v2929_v3, 0.0  ;;  %v2970_v60 = vmul.f32 %v2929_v3, %v8265_v46  ;;  %v2974_v49 = vsel %vm10926_vm9, %v2966_v41, 0.0  ;;  %vm10931_vm9 = vmmov %vm10910_vm0 }
 0x68c   :  { %v2975_v37 = vsel %vm10927_vm3, %v2967_v39, 0.0  ;;  %v2977_v31 = vsel %vm10928_vm1, %v2968_v38, 0.0  ;;  %v2932_v52 = vmul.f32 %v10921_v6, %v8297_v59  ;;  %v2942_v48 = vsel %vm10929_vm14, %v2930_v26, 0.0  ;;  %vm10932_vm3 = vmmov %vm10910_vm0 }
 0x68d   :  { %v2939_v36 = vadd.f32 %v2938_v53, %v2937_v25  ;;  %v2976_v1 = vadd.f32 %v2975_v37, %v2974_v49  ;;  %v2971_v32 = vmul.f32 %v2930_v26, %v8276_v47  ;;  %v2944_v0 = vsel %vm10910_vm0, %v2931_v7, 0.0  ;;  %vm10933_vm1 = vmmov %vm10910_vm0 }
 0x68e   :  { %v2972_v45 = vmul.f32 %v2931_v7, %v8287_v2  ;;  %v2981_v3 = vsel %vm10931_vm9, %v2970_v60, 0.0  ;;  %v2946_v11 = vsel %vm10932_vm3, %v2932_v52, 0.0  ;;  %v2973_v20 = vmul.f32 %v2932_v52, %v8297_v59  ;;  %vm10934_vm14 = vmmov %vm10910_vm0 }
 0x68f   :  { %v2941_v30 = vadd.f32 %v2940_v28, %v2939_v36  ;;  %v2978_v57 = vadd.f32 %v2977_v31, %v2976_v1  ;;  %v2983_v53 = vsel %vm10933_vm1, %v2971_v32, 0.0  ;;  %vm10937_vm9 = vmmov %vm10910_vm0 }
 0x690   :  { %2415 = vadd.xlane.f32.xlu1 %v2414_v13  ;;  %v2979_v13 = vsel %vm10930_vm7, %v2969_v63, 0.0  ;;  %v2985_v25 = vsel %vm10934_vm14, %v2972_v45, 0.0  ;;  %vm10935_vm7 = vmmov %vm10910_vm0 }
 0x691   :  { %v2943_v55 = vadd.f32 %v2942_v48, %v2941_v30  ;;  %v2980_v44 = vadd.f32 %v2979_v13, %v2978_v57  ;;  %v2987_v7 = vsel %vm10935_vm7, %v2973_v20, 0.0  ;;  %vm10938_vm3 = vmmov %vm10910_vm0 }
 0x692   :  { %vm10939_vm1 = vmmov %vm10910_vm0 }
 0x693   :  { %v2945_v17 = vadd.f32 %v2944_v0, %v2943_v55  ;;  %v2982_v41 = vadd.f32 %v2981_v3, %v2980_v44  ;;  %v10936_v55 = vld [vmem:[#allocation3_spill] sm:$0xff]  ;;  %vm10940_vm14 = vmmov %vm10910_vm0 }
 0x694   :  { %v3028_v45 = vmul.f32 %v10936_v55, %v8245_v54  ;;  %v3029_v3 = vmul.f32 %v10936_v55, %v8250_v42  ;;  %v3031_v44 = vmul.f32 %v10936_v55, %v8260_v40  ;;  %vm10941_vm7 = vmmov %vm10910_vm0 }
 0x695   :  { %v2947_v26 = vadd.f32 %v2946_v11, %v2945_v17  ;;  %v2984_v38 = vadd.f32 %v2983_v53, %v2982_v41  ;;  %v3030_v11 = vmul.f32 %v10936_v55, %v8255_v34  ;;  %v3032_v17 = vmul.f32 %v10936_v55, %v8265_v46 }
 0x696   :  { %v3036_v20 = vsel %vm10910_vm0, %v3028_v45, 0.0  ;;  %v3037_v53 = vsel %vm10937_vm9, %v3029_v3, 0.0  ;;  %vm10942_vm9 = vmmov %vm10910_vm0 }
 0x697   :  { %2948 = vadd.xlane.f32.xlu2 %v2947_v26  ;;  %v2986_v60 = vadd.f32 %v2985_v25, %v2984_v38  ;;  %v3039_v41 = vsel %vm10938_vm3, %v3030_v11, 0.0  ;;  %v3038_v26 = vadd.f32 %v3037_v53, %v3036_v20  ;;  %v3033_v25 = vmul.f32 %v10936_v55, %v8276_v47  ;;  %vm10943_vm3 = vmmov %vm10910_vm0 }
 0x699   :  { %v2988_v37 = vadd.f32 %v2987_v7, %v2986_v60  ;;  %v3040_v38 = vadd.f32 %v3039_v41, %v3038_v26  ;;  %v3043_v7 = vsel %vm10940_vm14, %v3032_v17, 0.0  ;;  %v3069_v60 = vmul.f32 %v3028_v45, %v8245_v54  ;;  %vm10945_vm14 = vmmov %vm10910_vm0 }
 0x69b   :  { %2989 = vadd.xlane.f32.xlu0 %v2988_v37  ;;  %v3035_v37 = vmul.f32 %v10936_v55, %v8297_v59 }
 0x69d   :  { %v3049_v45 = vsel %vm10945_vm14, %v3035_v37, 0.0 }
 0x6fb   :  { %v2272_v39 = vpop.xlane.xlu1 %2271 }
 0x6fc   :  { %v2273_v63 = vrot.slane %v2272_v39, 4 }
 0x6fd   :  { %v2313_v28 = vpop.xlane.xlu2 %2312 }
 0x6fe   :  { %v2274_v36 = vadd.f32 %v2273_v63, %v2272_v39  ;;  %v2314_v49 = vrot.slane %v2313_v28, 4  ;;  %v3041_v39 = vsel %vm10939_vm1, %v3031_v44, 0.0  ;;  %v3034_v63 = vmul.f32 %v10936_v55, %v8287_v2  ;;  %vm10944_vm1 = vmmov %vm10910_vm0 }
 0x700   :  { %v2315_v31 = vadd.f32 %v2314_v49, %v2313_v28  ;;  %v2275_v48 = vrot.slane %v2274_v36, 2  ;;  %v3042_v28 = vadd.f32 %v3041_v39, %v3040_v38  ;;  %v3071_v49 = vmul.f32 %v3030_v11, %v8255_v34  ;;  %v2375_v38 = vpop.xlane.xlu0 %2374 }
 0x701   :  { %v3075_v41 = vmul.f32 %v3034_v63, %v8287_v2 }
 0x702   :  { %v2276_v52 = vadd.f32 %v2275_v48, %v2274_v36  ;;  %v2316_v1 = vrot.slane %v2315_v31, 2  ;;  %v3070_v36 = vmul.f32 %v3029_v3, %v8250_v42  ;;  %v3044_v48 = vadd.f32 %v3043_v7, %v3042_v28 }
 0x703   :  { %v3076_v7 = vmul.f32 %v3035_v37, %v8297_v59 }
 0x704   :  { %v2277_v30 = vrot.slane %v2276_v52, 1  ;;  %v2317_v32 = vadd.f32 %v2316_v1, %v2315_v31  ;;  %v3045_v31 = vsel %vm10941_vm7, %v3033_v25, 0.0  ;;  %v3047_v1 = vsel %vm10910_vm0, %v3034_v63, 0.0  ;;  %vm10946_vm7 = vmmov %vm10910_vm0 }
 0x706   :  { %v2278_v13 = vadd.f32 %v2277_v30, %v2276_v52  ;;  %v2318_v0 = vrot.slane %v2317_v32, 1  ;;  %v3072_v52 = vmul.f32 %v3031_v44, %v8260_v40  ;;  %v3073_v30 = vmul.f32 %v3032_v17, %v8265_v46 }
 0x707   :  { %v3074_v44 = vmul.f32 %v3033_v25, %v8276_v47  ;;  %v2416_v25 = vpop.xlane.xlu1 %2415 }
 0x708   :  { %5713 = vpush %v2278_v13  ;;  %v2319_v57 = vadd.f32 %v2318_v0, %v2317_v32  ;;  %v3046_v32 = vadd.f32 %v3045_v31, %v3044_v48  ;;  %v3077_v13 = vsel %vm10942_vm9, %v3069_v60, 0.0  ;;  %v3078_v0 = vsel %vm10943_vm3, %v3070_v36, 0.0  ;;  %vm10947_vm9 = vmmov %vm10910_vm0 }
 0x709   :  { %v3079_v3 = vadd.f32 %v3078_v0, %v3077_v13  ;;  %v3082_v17 = vsel %vm10946_vm7, %v3072_v52, 0.0  ;;  %v3084_v26 = vsel %vm10910_vm0, %v3073_v30, 0.0  ;;  %v3086_v28 = vsel %vm10947_vm9, %v3074_v44, 0.0  ;;  %vm10948_vm3 = vmmov %vm10910_vm0 }
 0x70a   :  { %5715 = vpush %v2319_v57  ;;  %v3080_v57 = vsel %vm10944_vm1, %v3071_v49, 0.0  ;;  %v3048_v11 = vadd.f32 %v3047_v1, %v3046_v32  ;;  %v3088_v36 = vsel %vm10948_vm3, %v3075_v41, 0.0  ;;  %v2376_v49 = vrot.slane %v2375_v38, 4  ;;  %vm10949_vm1 = vmmov %vm10910_vm0 }
 0x70b   :  { %v3081_v20 = vadd.f32 %v3080_v57, %v3079_v3  ;;  %v2417_v48 = vrot.slane %v2416_v25, 4  ;;  %v3090_v63 = vsel %vm10949_vm1, %v3076_v7, 0.0 }
 0x70c   :  { %v3050_v53 = vadd.f32 %v3049_v45, %v3048_v11  ;;  %v2377_v30 = vadd.f32 %v2376_v49, %v2375_v38  ;;  %v2949_v49 = vpop.xlane.xlu2 %2948 }
 0x70d   :  { %v3083_v39 = vadd.f32 %v3082_v17, %v3081_v20  ;;  %v2418_v37 = vadd.f32 %v2417_v48, %v2416_v25 }
 0x70e   :  { %3051 = vadd.xlane.f32.xlu1 %v3050_v53  ;;  %v2378_v13 = vrot.slane %v2377_v30, 2 }
 0x70f   :  { %v3085_v60 = vadd.f32 %v3084_v26, %v3083_v39  ;;  %v2419_v57 = vrot.slane %v2418_v37, 2 }
 0x710   :  { %v2379_v11 = vadd.f32 %v2378_v13, %v2377_v30 }
 0x711   :  { %v3087_v31 = vadd.f32 %v3086_v28, %v3085_v60  ;;  %v2420_v44 = vadd.f32 %v2419_v57, %v2418_v37 }
 0x712   :  { %v2380_v53 = vrot.slane %v2379_v11, 1 }
 0x713   :  { %v3089_v1 = vadd.f32 %v3088_v36, %v3087_v31  ;;  %v2421_v41 = vrot.slane %v2420_v44, 1  ;;  %v2990_v31 = vpop.xlane.xlu0 %2989 }
 0x714   :  { %v2381_v38 = vadd.f32 %v2380_v53, %v2379_v11 }
 0x715   :  { %v3091_v32 = vadd.f32 %v3090_v63, %v3089_v1  ;;  %v2422_v7 = vadd.f32 %v2421_v41, %v2420_v44  ;;  %v2991_v63 = vrot.slane %v2990_v31, 4 }
 0x717   :  { %3092 = vadd.xlane.f32.xlu2 %v3091_v32  ;;  %v2992_v30 = vadd.f32 %v2991_v63, %v2990_v31 }
 0x719   :  { %v2993_v13 = vrot.slane %v2992_v30, 2 }
 0x727   :  { %2475 = vrot.lane.b32.xlu1 %v7930_v22, %s6102_s18 }
 0x72f   :  { %2462 = vrot.lane.b32.xlu2 %v7930_v22, %s6103_s19  ;;  %v2950_v22 = vrot.slane %v2949_v49, 4 }
 0x731   :  { %v2951_v1 = vadd.f32 %v2950_v22, %v2949_v49 }
 0x733   :  { %v2952_v32 = vrot.slane %v2951_v1, 2 }
 0x739   :  { %s5714_s2 = spop %5713 }
 0x73a   :  { %s8355_s22 = smul.f32 %s5714_s2, %s7345_s23 }
 0x73b   :  { %s5716_s25 = spop %5715 }
 0x73c   :  { %s2330_s14 = smul.f32 %s8355_s22, %s8355_s22  ;;  %v2332_v28 = vstv %s8355_s22 }
 0x73d   :  { %s2329_s15 = smul.f32 %s5716_s25, %s7345_s23  ;;  %v2333_v60 = vmul.f32 %v7230_v18, %v2332_v28 }
 0x73f   :  { %s2331_s24 = ssub.f32 %s2329_s15, %s2330_s14 }
 0x741   :  { %s2335_s17 = sadd.f32 1e-05, %s2331_s24 }
 0x743   :  { %v2336_v52 = vstv %s2335_s17 }
 0x744   :  { %5901 = vrsqrt.f32 %v2336_v52  ;;  %vm2343_vm7 = vweird.f32 %v2336_v52 }
 0x74a   :  { %v5902_v0 = vpop.eup %5901 }
 0x74b   :  { %v2338_v45 = vmul.f32 %v5902_v0, %v2336_v52  ;;  %vm2344_vm14 = vweird.f32 %v5902_v0 }
 0x74c   :  { %vm2345_vm0 = vmor %vm2343_vm7, %vm2344_vm14 }
 0x74d   :  { %v2339_v3 = vmul.f32 %v5902_v0, %v2338_v45  ;;  %v2953_v45 = vadd.f32 %v2952_v32, %v2951_v1 }
 0x74f   :  { %v2340_v17 = vmul.f32 0.5, %v2339_v3  ;;  %v2994_v3 = vadd.f32 %v2993_v13, %v2992_v30 }
 0x751   :  { %v2341_v20 = vsub.f32 1.5, %v2340_v17  ;;  %v2954_v17 = vrot.slane %v2953_v45, 1 }
 0x753   :  { %v2342_v26 = vmul.f32 %v5902_v0, %v2341_v20  ;;  %v2995_v20 = vrot.slane %v2994_v3, 1 }
 0x755   :  { %v2346_v39 = vsel %vm2345_vm0, %v5902_v0, %v2342_v26  ;;  %v2955_v26 = vadd.f32 %v2954_v17, %v2953_v45 }
 0x756   :  { %5717 = vpush %v2346_v39  ;;  %v2996_v39 = vadd.f32 %v2995_v20, %v2994_v3 }
 0x757   :  { %5719 = vpush %v2381_v38  ;;  %v221_v38 = vld [vmem:[%s10680_s6] sm:$0xff] }
 0x758   :  { %5721 = vpush %v2422_v7  ;;  %2525 = vmatpush.msrb.mxu0 %v221_v38 }
 0x787   :  { %s8370_s1 = spop %5717 }
 0x788   :  { %s5720_s2 = spop %5719  ;;  %v2348_v28 = vstv %s8370_s1 }
 0x789   :  { %s2391_s25 = smul.f32 %s5720_s2, %s7345_s23  ;;  %s5722_s14 = spop %5721 }
 0x78a   :  { %s2432_s15 = smul.f32 %s5722_s14, %s7345_s23  ;;  %v3093_v7 = vpop.xlane.xlu2 %3092 }
 0x78b   :  { %s2433_s24 = smul.f32 %s2391_s25, %s2391_s25  ;;  %v2435_v25 = vstv %s2391_s25  ;;  %v3094_v13 = vrot.slane %v3093_v7, 4 }
 0x78c   :  { %v2436_v36 = vmul.f32 %v7236_v50, %v2435_v25  ;;  %v3052_v25 = vpop.xlane.xlu1 %3051 }
 0x78d   :  { %s2434_s17 = ssub.f32 %s2432_s15, %s2433_s24  ;;  %v3053_v1 = vrot.slane %v3052_v25, 4  ;;  %v3095_v38 = vadd.f32 %v3094_v13, %v3093_v7 }
 0x78e   :  { %v8377_v48 = vadd.f32 %v2436_v36, %v2333_v60  ;;  %v2349_v36 = vmul.f32 %v7230_v18, %v2348_v28 }
 0x78f   :  { %s2438_s18 = sadd.f32 1e-05, %s2434_s17 }
 0x790   :  { %v2455_v32 = vsub.f32 %v8152_v51, %v8377_v48  ;;  %v2458_v45 = vsub.f32 %v8137_v58, %v8377_v48  ;;  %v2460_v28 = vsub.f32 %v8182_v4, %v8377_v48 }
 0x791   :  { %v2439_v52 = vstv %s2438_s18 }
 0x792   :  { %5903 = vrsqrt.f32 %v2439_v52  ;;  %vm2446_vm3 = vweird.f32 %v2439_v52  ;;  %v8389_v31 = vpop.permute.xlu2 %2462 }
 0x793   :  { %10950 = vst [vmem:[#allocation2_spill] sm:$0xff] %v8389_v31 }
 0x798   :  { %v5904_v37 = vpop.eup %5903 }
 0x799   :  { %v2441_v0 = vmul.f32 %v5904_v37, %v2439_v52  ;;  %vm2447_vm9 = vweird.f32 %v5904_v37  ;;  %v2454_v52 = vsub.f32 %v8147_v14, %v8377_v48 }
 0x79a   :  { %vm2448_vm1 = vmor %vm2446_vm3, %vm2447_vm9 }
 0x79b   :  { %v2442_v57 = vmul.f32 %v5904_v37, %v2441_v0  ;;  %v8400_v0 = vpop.permute.xlu1 %2475 }
 0x79c   :  { %10951 = vst [vmem:[#allocation3_spill] sm:$0xff] %v8400_v0 }
 0x79d   :  { %v2443_v11 = vmul.f32 0.5, %v2442_v57  ;;  %v2457_v57 = vsub.f32 %v8133_v12, %v8377_v48 }
 0x79f   :  { %v2444_v44 = vsub.f32 1.5, %v2443_v11 }
 0x7a1   :  { %v2445_v53 = vmul.f32 %v5904_v37, %v2444_v44 }
 0x7a3   :  { %v2449_v41 = vsel %vm2448_vm1, %v5904_v37, %v2445_v53  ;;  %v2456_v37 = vsub.f32 %v8188_v35, %v8377_v48 }
 0x7a4   :  { %5723 = vpush %v2449_v41  ;;  %v3054_v41 = vadd.f32 %v3053_v1, %v3052_v25  ;;  %v3096_v25 = vrot.slane %v3095_v38, 2 }
 0x7a5   :  { %5725 = vpush %v2955_v26 }
 0x7a6   :  { %5727 = vpush %v2996_v39  ;;  %v2459_v39 = vsub.f32 %v8170_v27, %v8377_v48  ;;  %v3097_v7 = vadd.f32 %v3096_v25, %v3095_v38 }
 0x7d5   :  { %s5724_s2 = spop %5723 }
 0x7d6   :  { %v2451_v60 = vstv %s5724_s2  ;;  %s5726_s25 = spop %5725 }
 0x7d7   :  { %v2452_v49 = vmul.f32 %v7236_v50, %v2451_v60  ;;  %s8386_s14 = smul.f32 %s5726_s25, %s6288_s26  ;;  %s5728_s15 = spop %5727  ;;  %v2461_v60 = vsub.f32 %v8195_v23, %v8377_v48 }
 0x7d8   :  { %s3006_s24 = smul.f32 %s5728_s15, %s6288_s26 }
 0x7d9   :  { %v2453_v22 = vadd.f32 %v2452_v49, %v2349_v36  ;;  %s3007_s17 = smul.f32 %s8386_s14, %s8386_s14 }
 0x7db   :  { %s3008_s18 = ssub.f32 %s3006_s24, %s3007_s17  ;;  %v2465_v63 = vmul.f32 %v8389_v31, %v2453_v22  ;;  %v10996_v31 = vld [vmem:[#allocation14_spill] sm:$0xff] }
 0x7dd   :  { %s3012_s1 = sadd.f32 1e-05, %s3008_s18  ;;  %v2466_v30 = vperm.slane %v2465_v63, 0  ;;  %v3055_v63 = vrot.slane %v3054_v41, 2 }
 0x7df   :  { %v3013_v3 = vstv %s3012_s1  ;;  %v2467_v11 = vmul.f32 %v2466_v30, %v2454_v52  ;;  %v2468_v44 = vmul.f32 %v2466_v30, %v2455_v32  ;;  %v2469_v17 = vmul.f32 %v2466_v30, %v2456_v37 }
 0x7e0   :  { %5905 = vrsqrt.f32 %v3013_v3  ;;  %v2470_v20 = vmul.f32 %v2466_v30, %v2457_v57  ;;  %v2471_v53 = vmul.f32 %v2466_v30, %v2458_v45  ;;  %v2472_v36 = vmul.f32 %v2466_v30, %v2459_v39 }
 0x7e1   :  { %v2478_v26 = vadd.f32 %v8400_v0, %v2467_v11  ;;  %v2473_v49 = vmul.f32 %v2466_v30, %v2460_v28  ;;  %v2474_v22 = vmul.f32 %v2466_v30, %v2461_v60  ;;  %v2479_v37 = vadd.f32 %v8400_v0, %v2468_v44 }
 0x7e2   :  { %v3056_v57 = vadd.f32 %v3055_v63, %v3054_v41  ;;  %v3098_v11 = vrot.slane %v3097_v7, 1  ;;  %vm3020_vm7 = vweird.f32 %v3013_v3  ;;  %v2480_v28 = vadd.f32 %v8400_v0, %v2469_v17 }
 0x7e3   :  { %5554 = vmatmul.msk.f32.vlgmr.msrb.gmra.mxu0 %vm10764_vm13, %v2478_v26  ;;  %v2481_v44 = vadd.f32 %v8400_v0, %v2470_v20  ;;  %v2483_v41 = vadd.f32 %v8400_v0, %v2472_v36  ;;  %v2484_v17 = vadd.f32 %v8400_v0, %v2473_v49  ;;  %v2485_v38 = vadd.f32 %v8400_v0, %v2474_v22 }
 0x7e4   :  { %v3057_v48 = vrot.slane %v3056_v57, 1  ;;  %v3099_v60 = vadd.f32 %v3098_v11, %v3097_v7  ;;  %v3009_v20 = vstv %s8386_s14 }
 0x7e5   :  { %v3010_v36 = vmul.f32 %v10921_v6, %v3009_v20  ;;  %v10952_v20 = vld [vmem:[#allocation4_spill] sm:$0xff] }
 0x7e6   :  { %v5906_v52 = vpop.eup %5905  ;;  %v3058_v39 = vadd.f32 %v3057_v48, %v3056_v57 }
 0x7e7   :  { %v3015_v1 = vmul.f32 %v5906_v52, %v3013_v3  ;;  %vm3021_vm14 = vweird.f32 %v5906_v52  ;;  %v2482_v3 = vadd.f32 %v8400_v0, %v2471_v53 }
 0x7e8   :  { %vm3022_vm0 = vmor %vm3020_vm7, %vm3021_vm14 }
 0x7e9   :  { %v3016_v32 = vmul.f32 %v5906_v52, %v3015_v1 }
 0x7eb   :  { %5555 = vmatmul.msk.f32.gmra.mxu0 %vm10764_vm13, %v2479_v37  ;;  %v3017_v13 = vmul.f32 0.5, %v3016_v32 }
 0x7ed   :  { %v3018_v45 = vsub.f32 1.5, %v3017_v13 }
 0x7ef   :  { %v3019_v26 = vmul.f32 %v5906_v52, %v3018_v45 }
 0x7f1   :  { %v3023_v30 = vsel %vm3022_vm0, %v5906_v52, %v3019_v26 }
 0x7f2   :  { %5729 = vpush %v3023_v30  ;;  %v6060_v30 = vld [vmem:[%s10674_s8] sm:$0x1] }
 0x7f3   :  { %5731 = vpush %v3058_v39  ;;  %5556 = vmatmul.msk.f32.gmra.mxu0 %vm10764_vm13, %v2480_v28 }
 0x7f4   :  { %5733 = vpush %v3099_v60 }
 0x7fb   :  { %5557 = vmatmul.msk.f32.gmra.mxu0 %vm10764_vm13, %v2481_v44 }
 0x803   :  { %5558 = vmatmul.msk.f32.gmra.mxu0 %vm10764_vm13, %v2482_v3 }
 0x80b   :  { %5559 = vmatmul.msk.f32.gmra.mxu0 %vm10764_vm13, %v2483_v41 }
 0x813   :  { %5560 = vmatmul.msk.f32.gmra.mxu0 %vm10764_vm13, %v2484_v17 }
 0x81b   :  { %5561 = vmatmul.msk.f32.gmra.mxu0 %vm10764_vm13, %v2485_v38 }
 0x823   :  { %s5730_s22 = spop %5729 }
 0x824   :  { %s5732_s19 = spop %5731  ;;  %v3025_v13 = vstv %s5730_s22 }
 0x825   :  { %s3068_s2 = smul.f32 %s5732_s19, %s6288_s26  ;;  %s5734_s25 = spop %5733  ;;  %v3026_v48 = vmul.f32 %v10921_v6, %v3025_v13 }
 0x826   :  { %s3109_s15 = smul.f32 %s5734_s25, %s6288_s26 }
 0x827   :  { %s3110_s24 = smul.f32 %s3068_s2, %s3068_s2  ;;  %v3112_v53 = vstv %s3068_s2 }
 0x828   :  { %v3113_v63 = vmul.f32 %v10936_v55, %v3112_v53 }
 0x829   :  { %s3111_s17 = ssub.f32 %s3109_s15, %s3110_s24 }
 0x82a   :  { %v3114_v49 = vadd.f32 %v3113_v63, %v3010_v36 }
 0x82b   :  { %s3115_s18 = sadd.f32 1e-05, %s3111_s17 }
 0x82c   :  { %v3133_v60 = vsub.f32 %v8255_v34, %v3114_v49  ;;  %v3134_v44 = vsub.f32 %v8260_v40, %v3114_v49  ;;  %v3131_v17 = vsub.f32 %v8245_v54, %v3114_v49  ;;  %v3132_v38 = vsub.f32 %v8250_v42, %v3114_v49 }
 0x82d   :  { %v3116_v52 = vstv %s3115_s18  ;;  %v3135_v6 = vsub.f32 %v8265_v46, %v3114_v49  ;;  %v3137_v34 = vsub.f32 %v8287_v2, %v3114_v49  ;;  %v3138_v40 = vsub.f32 %v8297_v59, %v3114_v49 }
 0x82e   :  { %5907 = vrsqrt.f32 %v3116_v52  ;;  %vm3123_vm3 = vweird.f32 %v3116_v52 }
 0x834   :  { %v5908_v22 = vpop.eup %5907 }
 0x835   :  { %v3118_v25 = vmul.f32 %v5908_v22, %v3116_v52  ;;  %vm3124_vm9 = vweird.f32 %v5908_v22 }
 0x836   :  { %vm3125_vm1 = vmor %vm3123_vm3, %vm3124_vm9 }
 0x837   :  { %v3119_v1 = vmul.f32 %v5908_v22, %v3118_v25 }
 0x839   :  { %v3120_v32 = vmul.f32 0.5, %v3119_v1 }
 0x83b   :  { %v3121_v37 = vsub.f32 1.5, %v3120_v32 }
 0x83d   :  { %v3122_v57 = vmul.f32 %v5908_v22, %v3121_v37 }
 0x83f   :  { %v3126_v7 = vsel %vm3125_vm1, %v5908_v22, %v3122_v57 }
 0x840   :  { %5735 = vpush %v3126_v7 }
 0x871   :  { %s5736_s26 = spop %5735 }
 0x872   :  { %v3128_v45 = vstv %s5736_s26 }
 0x873   :  { %v3129_v11 = vmul.f32 %v10936_v55, %v3128_v45  ;;  %v3136_v55 = vsub.f32 %v8276_v47, %v3114_v49 }
 0x875   :  { %v3130_v26 = vadd.f32 %v3129_v11, %v3026_v48 }
 0x877   :  { %v3139_v39 = vmul.f32 %v6060_v30, %v3130_v26 }
 0x879   :  { %v3140_v28 = vperm.slane %v3139_v39, 0 }
 0x87b   :  { %v3143_v3 = vmul.f32 %v3140_v28, %v3133_v60  ;;  %v3144_v41 = vmul.f32 %v3140_v28, %v3134_v44  ;;  %v3141_v63 = vmul.f32 %v3140_v28, %v3131_v17  ;;  %v3142_v52 = vmul.f32 %v3140_v28, %v3132_v38 }
 0x87c   :  { %v3145_v22 = vmul.f32 %v3140_v28, %v3135_v6  ;;  %v3146_v54 = vmul.f32 %v3140_v28, %v3136_v55  ;;  %v3147_v25 = vmul.f32 %v3140_v28, %v3137_v34  ;;  %v3148_v47 = vmul.f32 %v3140_v28, %v3138_v40 }
 0x87d   :  { %v8445_v53 = vadd.f32 %v3143_v3, %v10952_v20  ;;  %v8448_v36 = vadd.f32 %v3144_v41, %v10952_v20  ;;  %v8455_v1 = vadd.f32 %v3141_v63, %v10952_v20  ;;  %v8458_v32 = vadd.f32 %v3142_v52, %v10952_v20 }
 0x87e   :  { %v8461_v2 = vadd.f32 %v3145_v22, %v10952_v20  ;;  %v8464_v59 = vadd.f32 %v3146_v54, %v10952_v20  ;;  %v8470_v7 = vadd.f32 %v3147_v25, %v10952_v20  ;;  %v8474_v45 = vadd.f32 %v3148_v47, %v10952_v20 }
 0x87f   :  { %v5596_v42 = vmul.f32 -1.442695, %v8445_v53  ;;  %v5597_v46 = vmul.f32 -1.442695, %v8448_v36  ;;  %v5594_v49 = vmul.f32 -1.442695, %v8455_v1 }
 0x880   :  { %v5595_v37 = vmul.f32 -1.442695, %v8458_v32  ;;  %v5598_v57 = vmul.f32 -1.442695, %v8461_v2  ;;  %v5599_v13 = vmul.f32 -1.442695, %v8464_v59 }
 0x881   :  { %5909 = vpow2.f32 %v5596_v42  ;;  %v5600_v30 = vmul.f32 -1.442695, %v8470_v7  ;;  %v5601_v28 = vmul.f32 -1.442695, %v8474_v45 }
 0x882   :  { %5911 = vpow2.f32 %v5597_v46 }
 0x883   :  { %5913 = vpow2.f32 %v5594_v49 }
 0x884   :  { %5915 = vpow2.f32 %v5595_v37 }
 0x885   :  { %5917 = vpow2.f32 %v5598_v57 }
 0x886   :  { %5919 = vpow2.f32 %v5599_v13 }
 0x887   :  { %v5910_v48 = vpop.eup %5909 }
 0x888   :  { %v5912_v11 = vpop.eup %5911  ;;  %v8476_v26 = vadd.f32 1.0, %v5910_v48 }
 0x889   :  { %v8479_v39 = vadd.f32 1.0, %v5912_v11  ;;  %v5914_v60 = vpop.eup %5913 }
 0x88a   :  { %5921 = vrcp.f32 %v8476_v26  ;;  %v5916_v44 = vpop.eup %5915  ;;  %v8484_v41 = vadd.f32 1.0, %v5914_v60  ;;  %v3228_v38 = vand.u32 2147483647, %v8476_v26  ;;  %v3230_v6 = vand.u32 2147483648, %v8476_v26 }
 0x88b   :  { %5923 = vrcp.f32 %v8479_v39  ;;  %v5918_v3 = vpop.eup %5917  ;;  %v8486_v17 = vadd.f32 1.0, %v5916_v44  ;;  %v3243_v20 = vand.u32 2147483647, %v8479_v39  ;;  %v3245_v34 = vand.u32 2147483648, %v8479_v39 }
 0x88c   :  { %5925 = vpow2.f32 %v5600_v30  ;;  %v8490_v55 = vadd.f32 1.0, %v5918_v3  ;;  %v5920_v40 = vpop.eup %5919  ;;  %v3200_v63 = vand.u32 2147483648, %v8484_v41  ;;  %vm3224_vm14 = vweird.f32 %v8476_v26 }
 0x88d   :  { %5927 = vpow2.f32 %v5601_v28  ;;  %vm3239_vm7 = vweird.f32 %v8479_v39  ;;  %v3215_v22 = vand.u32 2147483648, %v8486_v17  ;;  %vm8502_vm0 = vcmp.eq.f32.partialorder %v3228_v38, 8.507059e+37 }
 0x88e   :  { %5929 = vrcp.f32 %v8484_v41  ;;  %v3231_v25 = vor.u32 1.1754944e-38, %v3230_v6  ;;  %v3198_v47 = vand.u32 2147483647, %v8484_v41  ;;  %vm8508_vm9 = vcmp.eq.f32.partialorder %v3243_v20, 8.507059e+37 }
 0x88f   :  { %5931 = vrcp.f32 %v8486_v17  ;;  %v3246_v13 = vor.u32 1.1754944e-38, %v3245_v34  ;;  %v3213_v48 = vand.u32 2147483647, %v8486_v17  ;;  %vm3194_vm3 = vweird.f32 %v8484_v41 }
 0x890   :  { %v5922_v52 = vpop.eup %5921  ;;  %5933 = vrcp.f32 %v8490_v55  ;;  %v3201_v28 = vor.u32 1.1754944e-38, %v3200_v63  ;;  %v3258_v60 = vand.u32 2147483647, %v8490_v55  ;;  %v8515_v44 = vadd.f32 1.0, %v5920_v40 }
 0x891   :  { %v5924_v54 = vpop.eup %5923  ;;  %v3220_v42 = vmul.f32 %v5922_v52, %v8476_v26  ;;  %vm3225_vm1 = vweird.f32 %v5922_v52  ;;  %vm3209_vm5 = vweird.f32 %v8486_v17  ;;  %v3216_v6 = vor.u32 1.1754944e-38, %v3215_v22 }
 0x892   :  { %v5926_v49 = vpop.eup %5925  ;;  %v3235_v37 = vmul.f32 %v5924_v54, %v8479_v39  ;;  %v3260_v20 = vand.u32 2147483648, %v8490_v55  ;;  %vm3240_vm6 = vweird.f32 %v5924_v54  ;;  %vm8520_vm4 = vcmp.eq.f32.partialorder %v3198_v47, 8.507059e+37  ;;  %vm3226_vm13 = vmor %vm3224_vm14, %vm3225_vm1 }
 0x893   :  { %v5928_v11 = vpop.eup %5927  ;;  %v3221_v30 = vsub.f32 1.0, %v3220_v42  ;;  %5935 = vrcp.f32 %v8515_v44  ;;  %vm8527_vm2 = vcmp.eq.f32.partialorder %v3213_v48, 8.507059e+37  ;;  %vm8536_vm11 = vcmp.eq.f32.partialorder %v3258_v60, 8.507059e+37  ;;  %vm3241_vm12 = vmor %vm3239_vm7, %vm3240_vm6 }
 0x894   :  { %v5930_v3 = vpop.eup %5929  ;;  %v3236_v38 = vsub.f32 1.0, %v3235_v37  ;;  %v8533_v27 = vadd.f32 1.0, %v5928_v11  ;;  %v3261_v51 = vor.u32 1.1754944e-38, %v3260_v20 }
 0x895   :  { %v5932_v34 = vpop.eup %5931  ;;  %v3222_v23 = vmul.f32 %v5922_v52, %v3221_v30  ;;  %v3190_v42 = vmul.f32 %v5930_v3, %v8484_v41  ;;  %v8531_v30 = vadd.f32 1.0, %v5926_v49  ;;  %vm3195_vm8 = vweird.f32 %v5930_v3 }
 0x896   :  { %v5934_v40 = vpop.eup %5933  ;;  %v3237_v63 = vmul.f32 %v5924_v54, %v3236_v38  ;;  %v3205_v37 = vmul.f32 %v5932_v34, %v8486_v17  ;;  %vm3210_vm15 = vweird.f32 %v5932_v34 }
 0x897   :  { %v3223_v47 = vadd.f32 %v5922_v52, %v3222_v23  ;;  %v3191_v58 = vsub.f32 1.0, %v3190_v42  ;;  %v3250_v12 = vmul.f32 %v5934_v40, %v8490_v55  ;;  %vm3255_vm10 = vweird.f32 %v5934_v40 }
 0x898   :  { %v3238_v48 = vadd.f32 %v5924_v54, %v3237_v63  ;;  %v3206_v38 = vsub.f32 1.0, %v3205_v37  ;;  %5937 = vrcp.f32 %v8531_v30  ;;  %v3288_v35 = vand.u32 2147483647, %v8531_v30 }
 0x899   :  { %v3227_v49 = vsel %vm3226_vm13, %v5922_v52, %v3223_v47  ;;  %v3192_v23 = vmul.f32 %v5930_v3, %v3191_v58  ;;  %v3251_v11 = vsub.f32 1.0, %v3250_v12  ;;  %v5936_v26 = vpop.eup %5935  ;;  %vm3196_vm13 = vmor %vm3194_vm3, %vm3195_vm8  ;;  %vm10963_vm8 = vweird.f32 %v8490_v55 }
 0x89a   :  { %v3232_v60 = vsel %vm8502_vm0, %v3231_v25, %v3227_v49  ;;  %v3242_v42 = vsel %vm3241_vm12, %v5924_v54, %v3238_v48  ;;  %v3207_v14 = vmul.f32 %v5932_v34, %v3206_v38  ;;  %v3265_v58 = vmul.f32 %v5936_v26, %v8515_v44  ;;  %vm3211_vm12 = vmor %vm3209_vm5, %vm3210_vm15 }
 0x89b   :  { %v3247_v63 = vsel %vm8508_vm9, %v3246_v13, %v3242_v42  ;;  %v3311_v20 = vmul.f32 %v3232_v60, %v8445_v53  ;;  %v3193_v52 = vadd.f32 %v5930_v3, %v3192_v23  ;;  %v3252_v37 = vmul.f32 %v5934_v40, %v3251_v11  ;;  %vm3256_vm14 = vmor %vm10963_vm8, %vm3255_vm10 }
 0x89c   :  { %v3312_v39 = vmul.f32 %v3247_v63, %v8448_v36  ;;  %v3208_v12 = vadd.f32 %v5932_v34, %v3207_v14  ;;  %v3275_v54 = vand.u32 2147483648, %v8515_v44  ;;  %vm3270_vm6 = vweird.f32 %v5936_v26 }
 0x89d   :  { %v3328_v46 = vrot.slane %v3311_v20, 7  ;;  %v3197_v25 = vsel %vm3196_vm13, %v5930_v3, %v3193_v52  ;;  %v3253_v53 = vadd.f32 %v5934_v40, %v3252_v37  ;;  %v3266_v14 = vsub.f32 1.0, %v3265_v58 }
 0x89e   :  { %v3330_v57 = vrot.slane %v3312_v39, 7  ;;  %v3202_v36 = vsel %vm8520_vm4, %v3201_v28, %v3197_v25  ;;  %v3212_v13 = vsel %vm3211_vm12, %v5932_v34, %v3208_v12  ;;  %vm10964_vm15 = vcmask 1040384   ;;  %v5938_v11 = vpop.eup %5937 }
 0x89f   :  { %v3309_v41 = vmul.f32 %v3202_v36, %v8455_v1  ;;  %v3217_v3 = vsel %vm8527_vm2, %v3216_v6, %v3212_v13  ;;  %v3257_v47 = vsel %vm3256_vm14, %v5934_v40, %v3253_v53  ;;  %v3267_v34 = vmul.f32 %v5936_v26, %v3266_v14  ;;  %vm10965_vm4 = vmmov %vm10964_vm15 }
 0x8a0   :  { %v8570_v17 = vsel %vm10964_vm15, %v3328_v46, %v3330_v57  ;;  %v3310_v4 = vmul.f32 %v3217_v3, %v8458_v32  ;;  %v3262_v28 = vsel %vm8536_vm11, %v3261_v51, %v3257_v47  ;;  %v3273_v6 = vand.u32 2147483647, %v8515_v44  ;;  %vm10966_vm5 = vmmov %vm10965_vm4 }
 0x8a1   :  { %v3369_v55 = vmul.f32 %v6392_v10, %v8570_v17  ;;  %v3325_v48 = vrot.slane %v3309_v41, 7  ;;  %v3313_v1 = vmul.f32 %v3262_v28, %v8461_v2  ;;  %v3268_v22 = vadd.f32 %v5936_v26, %v3267_v34  ;;  %vm10967_vm10 = vmmov %vm10965_vm4 }
 0x8a2   :  { %v3326_v40 = vrot.slane %v3310_v4, 7  ;;  %vm3269_vm2 = vweird.f32 %v8515_v44  ;;  %v3276_v38 = vor.u32 1.1754944e-38, %v3275_v54  ;;  %5939 = vrcp.f32 %v8533_v27  ;;  %vm10968_vm7 = vmmov %vm10965_vm4 }
 0x8a3   :  { %3502 = vrot.lane.b32.xlu1 %v3369_v55, %s6084_s27  ;;  %v8582_v32 = vsel %vm10965_vm4, 0.0, %v3325_v48  ;;  %v3332_v51 = vrot.slane %v3313_v1, 7  ;;  %vm3271_vm11 = vmor %vm3269_vm2, %vm3270_vm6  ;;  %vm3274_vm0 = vcmp.eq.f32.partialorder %v3273_v6, 8.507059e+37  ;;  %v3290_v63 = vand.u32 2147483648, %v8531_v30 }
 0x8a4   :  { %v3366_v2 = vmul.f32 %v6378_v56, %v8582_v32  ;;  %v8590_v49 = vsel %vm10966_vm5, %v3325_v48, %v3326_v40  ;;  %v8593_v44 = vsel %vm10967_vm10, %v3326_v40, %v3328_v46  ;;  %v3272_v23 = vsel %vm3271_vm11, %v5936_v26, %v3268_v22  ;;  %vm10971_vm12 = vmmov %vm10965_vm4 }
 0x8a5   :  { %v3383_v60 = vmul.f32 %v6378_v56, %v8590_v49  ;;  %v8598_v42 = vsel %vm10968_vm7, %v3330_v57, %v3332_v51  ;;  %v3277_v20 = vsel %vm3274_vm0, %v3276_v38, %v3272_v23  ;;  %v3280_v52 = vmul.f32 %v5938_v11, %v8531_v30 }
 0x8a6   :  { %3496 = vrot.lane.b32.xlu2 %v3366_v2, %s6084_s27  ;;  %v3384_v26 = vmul.f32 %v6397_v15, %v8593_v44  ;;  %v3367_v37 = vmul.f32 %v6397_v15, %v8590_v49  ;;  %vm3284_vm9 = vweird.f32 %v8531_v30  ;;  %v3314_v39 = vmul.f32 %v3277_v20, %v8464_v59  ;;  %v10974_v2 = vld [vmem:[#allocation6_spill] sm:$0xff] }
 0x8a7   :  { %3605 = vrot.lane.b32.xlu0 %v3383_v60, %s6085_s28  ;;  %v3386_v12 = vmul.f32 %v6392_v10, %v8598_v42  ;;  %v3281_v58 = vsub.f32 1.0, %v3280_v52  ;;  %vm3285_vm3 = vweird.f32 %v5938_v11  ;;  %vm8612_vm1 = vcmp.eq.f32.partialorder %v3288_v35, 8.507059e+37 }
 0x8a8   :  { %vm3299_vm13 = vweird.f32 %v8533_v27  ;;  %v5940_v46 = vpop.eup %5939  ;;  %v3291_v25 = vor.u32 1.1754944e-38, %v3290_v63  ;;  %v3334_v53 = vrot.slane %v3314_v39, 7  ;;  %v3402_v57 = vrot.slane %v8590_v49, 1  ;;  %vm3286_vm14 = vmor %vm3284_vm9, %vm3285_vm3 }
 0x8a9   :  { %v3404_v36 = vrot.slane %v8593_v44, 1  ;;  %v3282_v13 = vmul.f32 %v5938_v11, %v3281_v58  ;;  %v3370_v59 = vmul.f32 %v6570_v19, %v8598_v42  ;;  %v3368_v14 = vmul.f32 %v6357_v9, %v8593_v44  ;;  %v10980_v58 = vld [vmem:[#allocation8_spill] sm:$0xff] }
 0x8aa   :  { %v3295_v41 = vmul.f32 %v5940_v46, %v8533_v27  ;;  %v3303_v3 = vand.u32 2147483647, %v8533_v27  ;;  %v8627_v47 = vsel %vm10971_vm12, %v3332_v51, %v3334_v53  ;;  %vm10972_vm6 = vcmask 1046528   ;;  %vm10988_vm12 = vmmov %vm10968_vm7 }
 0x8ab   :  { %3611 = vrot.lane.b32.xlu1 %v3386_v12, %s6085_s28  ;;  %v8630_v4 = vsel %vm10972_vm6, %v3402_v57, %v3404_v36  ;;  %v3406_v28 = vrot.slane %v8570_v17, 1  ;;  %v3283_v34 = vadd.f32 %v5938_v11, %v3282_v13  ;;  %vm3300_vm8 = vweird.f32 %v5940_v46  ;;  %vm10973_vm15 = vmmov %vm10972_vm6 }
 0x8ac   :  { %v3296_v55 = vsub.f32 1.0, %v3295_v41  ;;  %v3305_v48 = vand.u32 2147483648, %v8533_v27  ;;  %v10771_v6 = vrot.slane %v8582_v32, 1  ;;  %v3408_v40 = vrot.slane %v8598_v42, 1  ;;  %vm10977_vm4 = vmmov %vm10972_vm6  ;;  %v10982_v41 = vld [vmem:[#allocation13_spill] sm:$0xff] }
 0x8ad   :  { %v8638_v1 = vsel %vm10973_vm15, %v3404_v36, %v3406_v28  ;;  %v3410_v22 = vrot.slane %v8627_v47, 1  ;;  %v3287_v38 = vsel %vm3286_vm14, %v5938_v11, %v3283_v34  ;;  %v8646_v35 = vmul.f32 %v8582_v32, %v10876_v62  ;;  %vm10978_vm11 = vmmov %vm10977_vm4 }
 0x8ae   :  { %3607 = vrot.lane.b32.xlu2 %v3384_v26, %s6085_s28  ;;  %v3297_v51 = vmul.f32 %v5940_v46, %v3296_v55  ;;  %v3374_v30 = vmul.f32 %v8582_v32, %v10974_v2  ;;  %v3292_v23 = vsel %vm8612_vm1, %v3291_v25, %v3287_v38  ;;  %vm8653_vm2 = vcmp.eq.f32.partialorder %v3303_v3, 8.507059e+37  ;;  %vm10979_vm5 = vmmov %vm10977_vm4  ;;  %v10981_v25 = vld [vmem:[#allocation9_spill] sm:$0xff] }
 0x8af   :  { %3498 = vrot.lane.b32.xlu0 %v3367_v37, %s6084_s27  ;;  %v8660_v11 = vsel %vm10977_vm4, %v10771_v6, %v3402_v57  ;;  %v8663_v63 = vsel %vm10978_vm11, %v3406_v28, %v3408_v40  ;;  %v3315_v20 = vmul.f32 %v3292_v23, %v8470_v7  ;;  %v3306_v26 = vor.u32 1.1754944e-38, %v3305_v48  ;;  %vm3301_vm10 = vmor %vm3299_vm13, %vm3300_vm8 }
 0x8b0   :  { %v3298_v52 = vadd.f32 %v5940_v46, %v3297_v51  ;;  %v8667_v37 = vsel %vm10979_vm5, %v3408_v40, %v3410_v22  ;;  %v3375_v39 = vmul.f32 %v8590_v49, %v10876_v62  ;;  %v3556_v12 = vrot.slane %v3374_v30, 2  ;;  %vm10987_vm13 = vmmov %vm10977_vm4 }
 0x8b1   :  { %v3359_v54 = vmul.f32 %v8590_v49, %v10980_v58  ;;  %v3360_v57 = vmul.f32 %v8593_v44, %v10981_v25  ;;  %v3336_v7 = vrot.slane %v3315_v20, 7  ;;  %v10770_v13 = vrot.slane %v8646_v35, 2  ;;  %vm10989_vm6 = vmmov %vm10968_vm7 }
 0x8b2   :  { %v3302_v36 = vsel %vm3301_vm10, %v5940_v46, %v3298_v52  ;;  %v8681_v3 = vmul.f32 %v8570_v17, %v10982_v41  ;;  %v3557_v28 = vrot.slane %v3375_v39, 2  ;;  %v3377_v46 = vmul.f32 %v8570_v17, %v10981_v25  ;;  %vm10990_vm8 = vmmov %vm10977_vm4 }
 0x8b3   :  { %v3307_v27 = vsel %vm8653_vm2, %v3306_v26, %v3302_v36  ;;  %v3450_v34 = vrot.slane %v3359_v54, 2  ;;  %v3452_v55 = vrot.slane %v3360_v57, 2  ;;  %v8686_v48 = vsel %vm10968_vm7, %v3334_v53, %v3336_v7  ;;  %vm10991_vm14 = vmmov %vm10977_vm4 }
 0x8b4   :  { %v3316_v40 = vmul.f32 %v3307_v27, %v8474_v45  ;;  %v3454_v38 = vrot.slane %v8681_v3, 2  ;;  %v3372_v51 = vmul.f32 %v6552_v8, %v8686_v48  ;;  %v3385_v30 = vmul.f32 %v6357_v9, %v8570_v17 }
 0x8b5   :  { %v3412_v23 = vrot.slane %v8686_v48, 1  ;;  %vm10983_vm0 = vcmask 1045504   ;;  %v3561_v39 = vrot.slane %v3377_v46, 2  ;;  %v3392_v36 = vmul.f32 %v8593_v44, %v10876_v62 }
 0x8b6   :  { %v8698_v60 = vsel %vm10983_vm0, %v3556_v12, %v3557_v28  ;;  %3504 = vrot.lane.b32.xlu2 %v3370_v59, %s6084_s27  ;;  %v3338_v53 = vrot.slane %v3316_v40, 7  ;;  %vm10984_vm9 = vmmov %vm10983_vm0  ;;  %3508 = vrot.lane.b32.xlu1 %v3372_v51, %s6084_s27  ;;  %v3378_v59 = vmul.f32 %v8598_v42, %v10982_v41  ;;  %v3391_v12 = vmul.f32 %v8590_v49, %v10974_v2 }
 0x8b7   :  { %v8704_v45 = vsel %vm10984_vm9, %v10770_v13, %v3450_v34  ;;  %vm10985_vm3 = vmmov %vm10983_vm0  ;;  %3500 = vrot.lane.b32.xlu0 %v3368_v14, %s6084_s27  ;;  %v8715_v26 = vsel %vm10987_vm13, %v3410_v22, %v3412_v23  ;;  %v3376_v14 = vmul.f32 %v8593_v44, %v10980_v58  ;;  %v3387_v3 = vmul.f32 %v6570_v19, %v8627_v47 }
 0x8b8   :  { %v8707_v20 = vsel %vm10985_vm3, %v3452_v55, %v3454_v38  ;;  %vm10986_vm1 = vmmov %vm10983_vm0  ;;  %v3339_v54 = vsel %vm10988_vm12, %v3336_v7, %v3338_v53  ;;  %v8723_v57 = vsel %vm10989_vm6, %v3338_v53, 0.0  ;;  %v3662_v40 = vrot.slane %v3391_v12, 2 }
 0x8b9   :  { %v8710_v52 = vsel %vm10986_vm1, %v3450_v34, %v3452_v55  ;;  %v3389_v22 = vmul.f32 %v6552_v8, %v3339_v54  ;;  %v3414_v27 = vrot.slane %v3339_v54, 1  ;;  %v10774_v34 = vrot.slane %v8723_v57, 1  ;;  %vm10992_vm15 = vmmov %vm10983_vm0 }
 0x8ba   :  { %v3563_v55 = vrot.slane %v3378_v59, 2  ;;  %v3663_v7 = vrot.slane %v3392_v36, 2  ;;  %v3559_v46 = vrot.slane %v3376_v14, 2  ;;  %v3394_v13 = vmul.f32 %v8598_v42, %v10981_v25  ;;  %vm10993_vm2 = vmmov %vm10983_vm0 }
 0x8bb   :  { %v8734_v51 = vsel %vm10990_vm8, %v3412_v23, %v3414_v27  ;;  %v8739_v53 = vsel %vm10991_vm14, %v3414_v27, %v10774_v34  ;;  %v3395_v6 = vmul.f32 %v8627_v47, %v10982_v41  ;;  %vm10994_vm4 = vmmov %vm10983_vm0  ;;  %v3393_v27 = vmul.f32 %v8570_v17, %v10980_v58 }
 0x8bc   :  { %v8746_v0 = vsel %vm10992_vm15, %v3561_v39, %v3563_v55  ;;  %v8749_v59 = vsel %vm10993_vm2, %v3662_v40, %v3663_v7  ;;  %v8752_v23 = vsel %vm10994_vm4, %v3559_v46, %v3561_v39  ;;  %vm10995_vm11 = vmmov %vm10983_vm0  ;;  %v3667_v36 = vrot.slane %v3394_v13, 2 }
 0x8bd   :  { %v8755_v12 = vsel %vm10995_vm11, %v3557_v28, %v3559_v46  ;;  %v3669_v14 = vrot.slane %v3395_v6, 2  ;;  %v3363_v34 = vmul.f32 %v8627_v47, %v10882_v5  ;;  %v3364_v40 = vmul.f32 %v8686_v48, %v10996_v31  ;;  %vm10998_vm5 = vmmov %vm10983_vm0 }
 0x8be   :  { %3613 = vrot.lane.b32.xlu2 %v3387_v3, %s6085_s28  ;;  %v3362_v39 = vmul.f32 %v8598_v42, %v10997_v24  ;;  %v3380_v28 = vmul.f32 %v8686_v48, %v10882_v5  ;;  %3617 = vrot.lane.b32.xlu1 %v3389_v22, %s6085_s28  ;;  %v3665_v13 = vrot.slane %v3393_v27, 2  ;;  %v3381_v3 = vmul.f32 %v3339_v54, %v10996_v31  ;;  %vm10999_vm10 = vmmov %vm10983_vm0 }
 0x8bf   :  { %3609 = vrot.lane.b32.xlu0 %v3385_v30, %s6085_s28  ;;  %v8771_v6 = vsel %vm10998_vm5, %v3667_v36, %v3669_v14  ;;  %v3458_v46 = vrot.slane %v3363_v34, 2  ;;  %v3460_v61 = vrot.slane %v3364_v40, 2  ;;  %v3379_v58 = vmul.f32 %v8627_v47, %v10997_v24  ;;  %vm11000_vm7 = vmmov %vm10983_vm0 }
 0x8c0   :  { %v3456_v41 = vrot.slane %v3362_v39, 2  ;;  %v3567_v25 = vrot.slane %v3380_v28, 2  ;;  %v8777_v62 = vsel %vm10999_vm10, %v3665_v13, %v3667_v36  ;;  %v8780_v22 = vsel %vm11000_vm7, %v3663_v7, %v3665_v13  ;;  %vm11001_vm9 = vmmov %vm10983_vm0 }
 0x8c1   :  { %v3569_v30 = vrot.slane %v3381_v3, 2  ;;  %v3397_v2 = vmul.f32 %v3339_v54, %v10882_v5  ;;  %v8784_v27 = vsel %vm10983_vm0, %v3458_v46, %v3460_v61  ;;  %vm11002_vm3 = vmmov %vm10983_vm0  ;;  %v3565_v39 = vrot.slane %v3379_v58, 2 }
 0x8c2   :  { %v8787_v34 = vsel %vm11001_vm9, %v3456_v41, %v3458_v46  ;;  %v8790_v40 = vsel %vm11002_vm3, %v3454_v38, %v3456_v41  ;;  %vm11003_vm1 = vmmov %vm10983_vm0  ;;  %v8797_v7 = vmul.f32 %v8723_v57, %v10996_v31  ;;  %v3396_v13 = vmul.f32 %v8686_v48, %v10997_v24 }
 0x8c3   :  { %v8793_v28 = vsel %vm11003_vm1, %v3567_v25, %v3569_v30  ;;  %v3673_v36 = vrot.slane %v3397_v2, 2  ;;  %v3373_v3 = vmul.f32 %v6639_v33, %v3339_v54  ;;  %vm11004_vm13 = vmmov %vm10983_vm0  ;;  %v3371_v58 = vmul.f32 %v6400_v16, %v8627_v47 }
 0x8c4   :  { %v8803_v46 = vsel %vm11004_vm13, %v3565_v39, %v3567_v25  ;;  %vm11005_vm12 = vmmov %vm10983_vm0  ;;  %v3675_v38 = vrot.slane %v8797_v7, 2  ;;  %v3671_v5 = vrot.slane %v3396_v13, 2  ;;  %v3365_v31 = vmul.f32 %v3339_v54, %v10884_v29 }
 0x8c5   :  { %v8806_v41 = vsel %vm11005_vm12, %v3563_v55, %v3565_v39  ;;  %v3382_v2 = vmul.f32 %v8723_v57, %v10884_v29  ;;  %vm11006_vm6 = vmmov %vm10983_vm0  ;;  %vm11012_vm4 = vcmask 1046528   ;;  %vm11030_vm7 = vcmask 31744  }
 0x8c6   :  { %3510 = vrot.lane.b32.xlu2 %v3373_v3, %s6084_s27  ;;  %3630 = vrot.lane.b32.xlu1 %v8630_v4, %s6086_s29  ;;  %v8821_v25 = vsel %vm11006_vm6, %v3673_v36, %v3675_v38  ;;  %vm11007_vm8 = vmmov %vm10983_vm0  ;;  %v3462_v39 = vrot.slane %v3365_v31, 2  ;;  %v11013_v31 = vrot.slane %v8646_v35, 2  ;;  %vm11032_vm9 = vcmask 97280  }
 0x8c7   :  { %3506 = vrot.lane.b32.xlu0 %v3371_v58, %s6084_s27  ;;  %v8824_v55 = vsel %vm11007_vm8, %v3671_v5, %v3673_v36  ;;  %vm11008_vm14 = vmmov %vm10983_vm0  ;;  %v3571_v13 = vrot.slane %v3382_v2, 2  ;;  %v3388_v58 = vmul.f32 %v6400_v16, %v8686_v48  ;;  %vm11033_vm3 = vcmask 130048  }
 0x8c8   :  { %v8827_v54 = vsel %vm11008_vm14, %v3669_v14, %v3671_v5  ;;  %vm11009_vm15 = vmmov %vm10983_vm0  ;;  %v11011_v5 = vrot.slane %v8582_v32, 1  ;;  %vm11034_vm1 = vcmask 162816   ;;  %vm11035_vm13 = vcmask 195584  }
 0x8c9   :  { %v8830_v3 = vsel %vm11009_vm15, %v3460_v61, %v3462_v39  ;;  %vm11010_vm2 = vmmov %vm10983_vm0  ;;  %v11024_v39 = vrot.slane %v8723_v57, 1  ;;  %vm11036_vm12 = vcmask 228352   ;;  %vm11037_vm6 = vcmask 261120  }
 0x8ca   :  { %v8833_v29 = vsel %vm11010_vm2, %v3569_v30, %v3571_v13  ;;  %v3401_v61 = vsel %vm11012_vm4, %v10886_v21, %v11011_v5  ;;  %vm11014_vm11 = vmmov %vm10983_vm0  ;;  %vm11039_vm14 = vcmask 293888  }
 0x8cb   :  { %vm11025_vm5 = vmmov %vm11012_vm4 }
 0x8cc   :  { %v3629_v13 = vsel %vm11025_vm5, %v11024_v39, %v10886_v21  ;;  %vm11027_vm10 = vmmov %vm10983_vm0  ;;  %vm11031_vm0 = vcmask 64512  }
 0x8cd   :  { %vm11038_vm8 = vmmov %vm11030_vm7 }
 0x8ce   :  { %3418 = vrot.lane.b32.xlu2 %v8660_v11, %s6087_s30  ;;  %3632 = vrot.lane.b32.xlu1 %v8638_v1, %s6086_s29  ;;  %vm11040_vm15 = vmmov %vm11031_vm0 }
 0x8cf   :  { %3615 = vrot.lane.b32.xlu0 %v3388_v58, %s6085_s28  ;;  %vm11041_vm2 = vmmov %vm11032_vm9 }
 0x8d0   :  { %vm11042_vm4 = vmmov %vm11033_vm3 }
 0x8d1   :  { %vm11044_vm5 = vmmov %vm11034_vm1 }
 0x8d6   :  { %3525 = vrot.lane.b32.xlu2 %v8630_v4, %s6088_s10  ;;  %3424 = vrot.lane.b32.xlu1 %v8663_v63, %s6087_s30 }
 0x8d7   :  { %3416 = vrot.lane.b32.xlu0 %v3401_v61, %s6087_s30 }
 0x8de   :  { %3420 = vrot.lane.b32.xlu2 %v8630_v4, %s6087_s30  ;;  %3531 = vrot.lane.b32.xlu1 %v8667_v37, %s6088_s10  ;;  %v3449_v4 = vsel %vm11014_vm11, %v10888_v43, %v11013_v31  ;;  %v11026_v31 = vld [vmem:[#allocation17_spill] sm:$0xff]  ;;  %vm11043_vm11 = vmmov %vm11030_vm7 }
 0x8df   :  { %3523 = vrot.lane.b32.xlu0 %v8660_v11, %s6088_s10 }
 0x8e6   :  { %3527 = vrot.lane.b32.xlu2 %v8638_v1, %s6088_s10  ;;  %3638 = vrot.lane.b32.xlu1 %v8715_v26, %s6086_s29 }
 0x8e7   :  { %3422 = vrot.lane.b32.xlu0 %v8638_v1, %s6087_s30  ;;  %v8878_v1 = vpop.f32.mrf.mxu0 }
 0x8ee   :  { %3634 = vrot.lane.b32.xlu2 %v8663_v63, %s6086_s29  ;;  %3430 = vrot.lane.b32.xlu1 %v8734_v51, %s6087_s30 }
 0x8ef   :  { %3529 = vrot.lane.b32.xlu0 %v8663_v63, %s6088_s10  ;;  %v8894_v11 = vpop.f32.mrf.mxu0 }
 0x8f0   :  { %11015 = vst [vmem:[#allocation4_spill] sm:$0xff] %v8894_v11 }
 0x8f6   :  { %3426 = vrot.lane.b32.xlu2 %v8667_v37, %s6087_s30  ;;  %3464 = vrot.lane.b32.xlu1 %v3449_v4, %s6089_s11 }
 0x8f7   :  { %3636 = vrot.lane.b32.xlu0 %v8667_v37, %s6086_s29 }
 0x8fe   :  { %3533 = vrot.lane.b32.xlu2 %v8715_v26, %s6088_s10  ;;  %3573 = vrot.lane.b32.xlu1 %v8698_v60, %s6090_s12  ;;  %v8906_v60 = vpop.f32.mrf.mxu0 }
 0x8ff   :  { %3428 = vrot.lane.b32.xlu0 %v8715_v26, %s6087_s30  ;;  %11016 = vst [vmem:[#allocation35_spill] sm:$0xff] %v8906_v60 }
 0x900   :  { %v8886_v35 = vpop.permute.xlu2 %3496 }
 0x906   :  { %3640 = vrot.lane.b32.xlu2 %v8734_v51, %s6086_s29  ;;  %3466 = vrot.lane.b32.xlu1 %v8704_v45, %s6089_s11 }
 0x907   :  { %3535 = vrot.lane.b32.xlu0 %v8734_v51, %s6088_s10 }
 0x908   :  { %v8896_v63 = vpop.permute.xlu2 %3607 }
 0x90e   :  { %3470 = vrot.lane.b32.xlu2 %v8707_v20, %s6089_s11  ;;  %3468 = vrot.lane.b32.xlu1 %v8710_v52, %s6089_s11  ;;  %v8920_v52 = vpop.f32.mrf.mxu0 }
 0x90f   :  { %3642 = vrot.lane.b32.xlu0 %v8739_v53, %s6086_s29  ;;  %11017 = vst [vmem:[#allocation36_spill] sm:$0xff] %v8920_v52 }
 0x910   :  { %v8904_v37 = vpop.permute.xlu2 %3504 }
 0x915   :  { %v8908_v26 = vpop.permute.xlu1 %3502 }
 0x916   :  { %3579 = vrot.lane.b32.xlu2 %v8746_v0, %s6090_s12  ;;  %3577 = vrot.lane.b32.xlu1 %v8752_v23, %s6090_s12  ;;  %v8934_v23 = vpop.f32.mrf.mxu0 }
 0x917   :  { %3678 = vrot.lane.b32.xlu0 %v8749_v59, %s6091_s13  ;;  %11019 = vst [vmem:[#allocation38_spill] sm:$0xff] %v8934_v23 }
 0x918   :  { %v8916_v45 = vpop.permute.xlu2 %3613 }
 0x919   :  { %v8918_v20 = vpop.permute.xlu0 %3605 }
 0x91d   :  { %v8928_v0 = vpop.permute.xlu1 %3611 }
 0x91e   :  { %3684 = vrot.lane.b32.xlu2 %v8771_v6, %s6091_s13  ;;  %3682 = vrot.lane.b32.xlu1 %v8777_v62, %s6091_s13  ;;  %v8954_v6 = vpop.f32.mrf.mxu0 }
 0x91f   :  { %3575 = vrot.lane.b32.xlu0 %v8755_v12, %s6090_s12  ;;  %11020 = vst [vmem:[#allocation39_spill] sm:$0xff] %v8954_v6 }
 0x920   :  { %v8930_v51 = vpop.permute.xlu2 %3510 }
 0x921   :  { %11018 = vst [vmem:[#allocation37_spill] sm:$0xff] %v8930_v51  ;;  %v8932_v59 = vpop.permute.xlu0 %3498 }
 0x926   :  { %3476 = vrot.lane.b32.xlu2 %v8784_v27, %s6089_s11  ;;  %3474 = vrot.lane.b32.xlu1 %v8787_v34, %s6089_s11  ;;  %v8972_v36 = vpop.f32.mrf.mxu0 }
 0x927   :  { %3680 = vrot.lane.b32.xlu0 %v8780_v22, %s6091_s13  ;;  %11022 = vst [vmem:[#allocation41_spill] sm:$0xff] %v8972_v36 }
 0x928   :  { %v8942_v12 = vpop.permute.xlu2 %3418  ;;  %v8946_v14 = vpop.permute.xlu1 %3508 }
 0x929   :  { %v8944_v62 = vpop.permute.xlu0 %3500 }
 0x92e   :  { %3585 = vrot.lane.b32.xlu2 %v8793_v28, %s6090_s12  ;;  %3583 = vrot.lane.b32.xlu1 %v8803_v46, %s6090_s12  ;;  %v3390_v46 = vmul.f32 %v6639_v33, %v8723_v57 }
 0x92f   :  { %3472 = vrot.lane.b32.xlu0 %v8790_v40, %s6089_s11 }
 0x930   :  { %v8956_v22 = vpop.permute.xlu2 %3525  ;;  %v8960_v27 = vpop.permute.xlu1 %3617 }
 0x931   :  { %v8958_v30 = vpop.permute.xlu0 %3609  ;;  %11021 = vst [vmem:[#allocation40_spill] sm:$0xff] %v8960_v27 }
 0x936   :  { %3690 = vrot.lane.b32.xlu2 %v8821_v25, %s6091_s13  ;;  %3688 = vrot.lane.b32.xlu1 %v8824_v55, %s6091_s13  ;;  %v8987_v55 = vpop.f32.mrf.mxu0 }
 0x937   :  { %3581 = vrot.lane.b32.xlu0 %v8806_v41, %s6090_s12  ;;  %11023 = vst [vmem:[#allocation42_spill] sm:$0xff] %v8987_v55 }
 0x938   :  { %v8968_v34 = vpop.permute.xlu2 %3420  ;;  %v3631_v28 = vpop.permute.xlu1 %3630 }
 0x939   :  { %v8970_v40 = vpop.permute.xlu0 %3506 }
 0x93e   :  { %3619 = vrot.lane.b32.xlu2 %v3390_v46, %s6085_s28  ;;  %3537 = vrot.lane.b32.xlu1 %v8739_v53, %s6088_s10 }
 0x93f   :  { %3686 = vrot.lane.b32.xlu0 %v8827_v54, %s6091_s13 }
 0x940   :  { %v8981_v41 = vpop.permute.xlu2 %3527  ;;  %v8985_v25 = vpop.permute.xlu1 %3632 }
 0x941   :  { %v8983_v2 = vpop.permute.xlu0 %3615 }
 0x946   :  { %2573 = vrot.lane.b32.xlu2 %v8987_v55, %s6095_s21  ;;  %3644 = vrot.lane.b32.xlu1 %v3629_v13, %s6086_s29  ;;  %v11029_v55 = vld [vmem:[#allocation18_spill] sm:$0xff] }
 0x947   :  { %3478 = vrot.lane.b32.xlu0 %v8830_v3, %s6089_s11  ;;  %v3677_v3 = vsel %vm11027_vm10, %v3675_v38, %v11026_v31  ;;  %vm11045_vm10 = vmmov %vm11031_vm0 }
 0x948   :  { %v8998_v53 = vpop.permute.xlu2 %3634  ;;  %v9000_v58 = vpop.permute.xlu1 %3424 }
 0x949   :  { %v3417_v54 = vpop.permute.xlu0 %3416 }
 0x94e   :  { %2571 = vrot.lane.b32.xlu1 %v8972_v36, %s6095_s21  ;;  %v3702_v36 = vsel %vm11030_vm7, %v11029_v55, %v3417_v54  ;;  %vm11046_vm7 = vmmov %vm11035_vm13 }
 0x94f   :  { %3587 = vrot.lane.b32.xlu0 %v8833_v29, %s6090_s12 }
 0x950   :  { %v3427_v57 = vpop.permute.xlu2 %3426  ;;  %v9006_v61 = vpop.permute.xlu1 %3531 }
 0x951   :  { %v3524_v5 = vpop.permute.xlu0 %3523 }
 0x957   :  { %3692 = vrot.lane.b32.xlu0 %v3677_v3, %s6091_s13 }
 0x958   :  { %v9013_v4 = vpop.permute.xlu2 %3533  ;;  %v9015_v39 = vpop.permute.xlu1 %3638 }
 0x959   :  { %v3423_v46 = vpop.permute.xlu0 %3422 }
 0x95f   :  { %2569 = vrot.lane.b32.xlu0 %v8954_v6, %s6095_s21 }
 0x960   :  { %v9019_v29 = vpop.permute.xlu2 %3640  ;;  %v9023_v43 = vpop.permute.xlu1 %3430 }
 0x961   :  { %v9021_v13 = vpop.permute.xlu0 %3529  ;;  %11028 = vst [vmem:[#allocation43_spill] sm:$0xff] %v9023_v43 }
 0x967   :  { %2567 = vrot.lane.b32.xlu0 %v8934_v23, %s6095_s21 }
 0x968   :  { %v3471_v7 = vpop.permute.xlu2 %3470  ;;  %v3465_v3 = vpop.permute.xlu1 %3464 }
 0x969   :  { %v9027_v38 = vpop.permute.xlu0 %3636  ;;  %v3710_v6 = vsel %vm11031_vm0, %v3702_v36, %v3465_v3  ;;  %vm11047_vm0 = vmmov %vm11041_vm2 }
 0x96a   :  { %v3718_v23 = vsel %vm11032_vm9, %v3710_v6, %v8886_v35  ;;  %v3351_v35 = vmul.f32 %v6397_v15, %v8582_v32  ;;  %v3352_v32 = vmul.f32 %v6357_v9, %v8590_v49  ;;  %v3355_v49 = vmul.f32 %v6400_v16, %v8598_v42  ;;  %vm11048_vm9 = vmmov %vm11036_vm12 }
 0x96b   :  { %v3726_v27 = vsel %vm11033_vm3, %v3718_v23, %v3524_v5  ;;  %vm11049_vm3 = vmmov %vm11038_vm8 }
 0x96f   :  { %2565 = vrot.lane.b32.xlu0 %v8920_v52, %s6095_s21 }
 0x970   :  { %v9031_v31 = vpop.permute.xlu2 %3579  ;;  %v3574_v24 = vpop.permute.xlu1 %3573 }
 0x971   :  { %v9033_v21 = vpop.permute.xlu0 %3428  ;;  %v3734_v43 = vsel %vm11034_vm1, %v3726_v27, %v3574_v24  ;;  %v3703_v24 = vsel %vm11038_vm8, %v3351_v35, %v8942_v12  ;;  %v3704_v12 = vsel %vm11043_vm11, %v3352_v32, %v8968_v34  ;;  %vm11050_vm1 = vmmov %vm11042_vm4 }
 0x972   :  { %v3742_v54 = vsel %vm11035_vm13, %v3734_v43, %v8918_v20  ;;  %vm11051_vm13 = vmmov %vm11037_vm6 }
 0x973   :  { %v3750_v3 = vsel %vm11036_vm12, %v3742_v54, %v3631_v28  ;;  %vm11052_vm12 = vmmov %vm11049_vm3 }
 0x974   :  { %vm11054_vm8 = vmmov %vm11045_vm10 }
 0x975   :  { %vm11058_vm11 = vmmov %vm11047_vm0 }
 0x977   :  { %2563 = vrot.lane.b32.xlu0 %v8906_v60, %s6095_s21 }
 0x978   :  { %v9037_v56 = vpop.permute.xlu2 %3684  ;;  %v3467_v50 = vpop.permute.xlu1 %3466 }
 0x979   :  { %v9039_v18 = vpop.permute.xlu0 %3535  ;;  %v3711_v43 = vsel %vm11040_vm15, %v3703_v24, %v3467_v50  ;;  %vm11055_vm15 = vmmov %vm11054_vm8 }
 0x97a   :  { %v3719_v20 = vsel %vm11041_vm2, %v3711_v43, %v8932_v59  ;;  %vm11056_vm2 = vmmov %vm11046_vm7 }
 0x97b   :  { %v3727_v5 = vsel %vm11042_vm4, %v3719_v20, %v8956_v22  ;;  %v3353_v22 = vmul.f32 %v6392_v10, %v8593_v44  ;;  %vm11057_vm4 = vmmov %vm11047_vm0 }
 0x97d   :  { %v3705_v24 = vsel %vm11052_vm12, %v3353_v22, %v3423_v46  ;;  %v3354_v46 = vmul.f32 %v6570_v19, %v8570_v17 }
 0x97e   :  { %v3713_v44 = vsel %vm11055_vm15, %v3705_v24, %v3471_v7  ;;  %vm11070_vm15 = vmmov %vm11056_vm2 }
 0x97f   :  { %2561 = vrot.lane.b32.xlu0 %v8894_v11, %s6095_s21 }
 0x980   :  { %v9048_v52 = vpop.permute.xlu2 %3476  ;;  %v3469_v60 = vpop.permute.xlu1 %3468 }
 0x981   :  { %v9050_v51 = vpop.permute.xlu0 %3642  ;;  %v3712_v50 = vsel %vm11045_vm10, %v3704_v12, %v3469_v60  ;;  %v3707_v60 = vsel %vm11049_vm3, %v3355_v49, %v3427_v57  ;;  %vm11060_vm10 = vmmov %vm11054_vm8 }
 0x982   :  { %v3720_v54 = vsel %vm11047_vm0, %v3712_v50, %v8944_v62  ;;  %vm11062_vm0 = vmmov %vm11050_vm1 }
 0x983   :  { %vm11064_vm3 = vmmov %vm11051_vm13 }
 0x987   :  { %2559 = vrot.lane.b32.xlu0 %v8878_v1, %s6095_s21 }
 0x988   :  { %v9058_v36 = vpop.permute.xlu2 %3585  ;;  %v3578_v55 = vpop.permute.xlu1 %3577 }
 0x989   :  { %v3679_v6 = vpop.permute.xlu0 %3678 }
 0x98a   :  { %v3758_v11 = vsel %vm11037_vm6, %v3750_v3, %v3679_v6  ;;  %vm11053_vm6 = vmmov %vm11044_vm5 }
 0x98b   :  { %5603 = vmatmul.msk.f32.vlgmr.msra.gmra.mxu2 %vm11039_vm14, %v3758_v11 }
 0x990   :  { %v9070_v23 = vpop.permute.xlu2 %3690  ;;  %v3683_v28 = vpop.permute.xlu1 %3682 }
 0x991   :  { %v3576_v27 = vpop.permute.xlu0 %3575 }
 0x992   :  { %v3735_v11 = vsel %vm11044_vm5, %v3727_v5, %v3576_v27  ;;  %vm11059_vm5 = vmmov %vm11050_vm1 }
 0x993   :  { %v3743_v59 = vsel %vm11046_vm7, %v3735_v11, %v8896_v63  ;;  %v3728_v63 = vsel %vm11050_vm1, %v3720_v54, %v8981_v41  ;;  %v3721_v41 = vsel %vm11058_vm11, %v3713_v44, %v8908_v26  ;;  %vm11061_vm7 = vmmov %vm11048_vm9 }
 0x994   :  { %v3751_v3 = vsel %vm11048_vm9, %v3743_v59, %v8985_v25  ;;  %v3736_v42 = vsel %vm11053_vm6, %v3728_v63, %v3578_v55  ;;  %vm11063_vm9 = vmmov %vm11053_vm6  ;;  %v11091_v63 = vld [vmem:[#allocation37_spill] sm:$0xff] }
 0x995   :  { %v3744_v25 = vsel %vm11056_vm2, %v3736_v42, %v8958_v30  ;;  %vm11065_vm1 = vmmov %vm11052_vm12 }
 0x996   :  { %v3752_v30 = vsel %vm11061_vm7, %v3744_v25, %v8998_v53  ;;  %v3706_v17 = vsel %vm11065_vm1, %v3354_v46, %v9000_v58  ;;  %vm11067_vm12 = vmmov %vm11056_vm2 }
 0x997   :  { %v3760_v26 = vsel %vm11064_vm3, %v3752_v30, %v3683_v28  ;;  %vm11071_vm2 = vmmov %vm11057_vm4  ;;  %v6062_v30 = vld [vmem:[%s10678_s3 + $0x38] sm:$0xff] }
 0x998   :  { %v9086_v35 = vpop.permute.xlu2 %3619  ;;  %v3475_v34 = vpop.permute.xlu1 %3474  ;;  %vm11073_vm11 = vmmov %vm11062_vm0 }
 0x999   :  { %v3681_v6 = vpop.permute.xlu0 %3680  ;;  %v3715_v43 = vsel %vm11054_vm8, %v3707_v60, %v3475_v34 }
 0x99a   :  { %v3759_v62 = vsel %vm11051_vm13, %v3751_v3, %v3681_v6  ;;  %v3723_v57 = vsel %vm11057_vm4, %v3715_v43, %v8970_v40  ;;  %v3729_v40 = vsel %vm11062_vm0, %v3721_v41, %v9021_v13  ;;  %vm11066_vm13 = vmmov %vm11053_vm6  ;;  %v11084_v3 = vld [vmem:[#allocation43_spill] sm:$0xff] }
 0x99b   :  { %5604 = vmatmul.msk.f32.gmra.mxu2 %vm11039_vm14, %v3759_v62  ;;  %v3731_v32 = vsel %vm11059_vm5, %v3723_v57, %v9013_v4  ;;  %v3737_v5 = vsel %vm11066_vm13, %v3729_v40, %v9031_v31  ;;  %vm11068_vm6 = vmmov %vm11039_vm14  ;;  %v6063_v40 = vld [vmem:[%s10678_s3 + $0x30] sm:$0xff] }
 0x99c   :  { %vm11069_vm14 = vmmov %vm11061_vm7  ;;  %v3745_v12 = vsel %vm11070_vm15, %v3737_v5, %v8928_v0  ;;  %v6066_v5 = vld [vmem:[%s10678_s3 + $0x18] sm:$0xff] }
 0x99d   :  { %vm11072_vm4 = vmmov %vm11061_vm7 }
 0x99e   :  { %v3753_v31 = vsel %vm11072_vm4, %v3745_v12, %v9027_v38  ;;  %vm11074_vm5 = vmmov %vm11064_vm3  ;;  %v11111_v12 = vld [vmem:[#allocation35_spill] sm:$0xff] }
 0x99f   :  { %v3761_v50 = vsel %vm11074_vm5, %v3753_v31, %v9037_v56  ;;  %vm11076_vm7 = vmmov %vm11068_vm6 }
 0x9a0   :  { %v2574_v20 = vpop.permute.xlu2 %2573  ;;  %v3584_v27 = vpop.permute.xlu1 %3583  ;;  %vm11077_vm0 = vmmov %vm11067_vm12 }
 0x9a1   :  { %v3473_v55 = vpop.permute.xlu0 %3472  ;;  %5562 = vmatpush.xpose.msk.msrb.mxu3 %vm11060_vm10, %v2574_v20  ;;  %v3739_v7 = vsel %vm11063_vm9, %v3731_v32, %v3584_v27  ;;  %vm11075_vm10 = vmmov %vm11063_vm9  ;;  %v6061_v27 = vld [vmem:[%s10678_s3 + $0x40] sm:$0xff] }
 0x9a2   :  { %v3747_v4 = vsel %vm11067_vm12, %v3739_v7, %v8983_v2  ;;  %v3714_v53 = vsel %vm11054_vm8, %v3706_v17, %v3473_v55  ;;  %vm11078_vm9 = vmmov %vm11072_vm4  ;;  %v6064_v7 = vld [vmem:[%s10678_s3 + $0x28] sm:$0xff]  ;;  %v11109_v17 = vld [vmem:[#allocation4_spill] sm:$0xff] }
 0x9a3   :  { %5605 = vmatmul.msk.f32.gmra.mxu2 %vm11068_vm6, %v3760_v26  ;;  %v3755_v13 = vsel %vm11069_vm14, %v3747_v4, %v9019_v29  ;;  %v3722_v28 = vsel %vm11071_vm2, %v3714_v53, %v8904_v37  ;;  %v3356_v37 = vmul.f32 %v6552_v8, %v8627_v47  ;;  %vm11079_vm13 = vmmov %vm11068_vm6  ;;  %v3357_v47 = vmul.f32 %v6639_v33, %v8686_v48  ;;  %v6065_v26 = vld [vmem:[%s10678_s3 + $0x20] sm:$0xff]  ;;  %v6067_v4 = vld [vmem:[%s10678_s3 + $0x10] sm:$0xff] }
 0x9a4   :  { %v3730_v2 = vsel %vm11073_vm11, %v3722_v28, %v9006_v61  ;;  %vm11080_vm12 = vmmov %vm11054_vm8  ;;  %v6068_v53 = vld [vmem:[%s10678_s3 + $0x8] sm:$0xff]  ;;  %v11113_v28 = vld [vmem:[#allocation36_spill] sm:$0xff] }
 0x9a5   :  { %v3708_v56 = vsel %vm11065_vm1, %v3356_v37, %v9033_v21  ;;  %vm11081_vm6 = vmmov %vm11071_vm2  ;;  %v11121_v37 = vld [vmem:[#allocation20_spill] sm:$0xff] }
 0x9a6   :  { %v3716_v49 = vsel %vm11080_vm12, %v3708_v56, %v9048_v52  ;;  %vm11082_vm8 = vmmov %vm11073_vm11 }
 0x9a7   :  { %vm11083_vm14 = vmmov %vm11064_vm3 }
 0x9a8   :  { %v3689_v11 = vpop.permute.xlu1 %3688  ;;  %vm11085_vm15 = vmmov %vm11065_vm1 }
 0x9a9   :  { %v3582_v58 = vpop.permute.xlu0 %3581  ;;  %v3763_v34 = vsel %vm11083_vm14, %v3755_v13, %v3689_v11  ;;  %v3709_v21 = vsel %vm11085_vm15, %v3357_v47, %v11084_v3  ;;  %vm11086_vm2 = vmmov %vm11075_vm10  ;;  %v6069_v13 = vld [vmem:[%s10678_s3] sm:$0xff] }
 0x9aa   :  { %v3738_v59 = vsel %vm11075_vm10, %v3730_v2, %v3582_v58  ;;  %vm11087_vm4 = vmmov %vm11076_vm7  ;;  %v11115_v11 = vld [vmem:[#allocation38_spill] sm:$0xff]  ;;  %v11117_v2 = vld [vmem:[#allocation39_spill] sm:$0xff] }
 0x9ab   :  { %5606 = vmatmul.msk.f32.gmra.mxu2 %vm11076_vm7, %v3761_v50  ;;  %v3746_v0 = vsel %vm11077_vm0, %v3738_v59, %v8916_v45  ;;  %v3724_v45 = vsel %vm11081_vm6, %v3716_v49, %v8946_v14  ;;  %vm11088_vm11 = vmmov %vm11080_vm12  ;;  %v11089_v14 = vld [vmem:[#allocation40_spill] sm:$0xff]  ;;  %v11119_v59 = vld [vmem:[#allocation41_spill] sm:$0xff] }
 0x9ac   :  { %v3754_v38 = vsel %vm11078_vm9, %v3746_v0, %v9015_v39  ;;  %v3732_v39 = vsel %vm11082_vm8, %v3724_v45, %v9039_v18  ;;  %vm11090_vm5 = vmmov %vm11077_vm0 }
 0x9ad   :  { %v3740_v60 = vsel %vm11086_vm2, %v3732_v39, %v9058_v36  ;;  %vm11092_vm10 = vmmov %vm11081_vm6 }
 0x9ae   :  { %v3748_v48 = vsel %vm11090_vm5, %v3740_v60, %v11089_v14  ;;  %vm11093_vm7 = vmmov %vm11078_vm9 }
 0x9af   :  { %v3756_v42 = vsel %vm11093_vm7, %v3748_v48, %v9050_v51  ;;  %vm11094_vm0 = vmmov %vm11082_vm8 }
 0x9b0   :  { %v3538_v54 = vpop.permute.xlu1 %3537  ;;  %vm11095_vm9 = vmmov %vm11088_vm11  ;;  %v3764_v36 = vsel %vm11064_vm3, %v3756_v42, %v9070_v23 }
 0x9b1   :  { %v3687_v29 = vpop.permute.xlu0 %3686  ;;  %vm11096_vm1 = vmmov %vm11086_vm2 }
 0x9b2   :  { %v3762_v61 = vsel %vm11064_vm3, %v3754_v38, %v3687_v29  ;;  %vm11098_vm12 = vmmov %vm11090_vm5 }
 0x9b3   :  { %5607 = vmatmul.msk.f32.gmra.mxu2 %vm11079_vm13, %v3762_v61  ;;  %vm11097_vm13 = vmmov %vm11087_vm4  ;;  %v11124_v61 = vld [vmem:[#allocation19_spill] sm:$0xff] }
 0x9b4   :  { %vm11099_vm6 = vmmov %vm11093_vm7  ;;  %v9233_v56 = vperm.slane %v11124_v61, 1 }
 0x9b5   :  { %vm11100_vm8 = vmmov %vm11064_vm3 }
 0x9b6   :  { %vm11101_vm14 = vmmov %vm11087_vm4 }
 0x9b7   :  { %vm11102_vm15 = vmmov %vm11095_vm9 }
 0x9b8   :  { %v3645_v6 = vpop.permute.xlu1 %3644  ;;  %vm11103_vm2 = vmmov %vm11095_vm9 }
 0x9b9   :  { %v3479_v22 = vpop.permute.xlu0 %3478  ;;  %vm11106_vm5 = vmmov %vm11103_vm2 }
 0x9ba   :  { %v3717_v52 = vsel %vm11088_vm11, %v3709_v21, %v3479_v22  ;;  %vm11105_vm11 = vmmov %vm11103_vm2  ;;  %v11126_v21 = vld [vmem:[#allocation21_spill] sm:$0xff] }
 0x9bb   :  { %5608 = vmatmul.msk.f32.gmra.mxu2 %vm11087_vm4, %v3763_v34  ;;  %v3725_v62 = vsel %vm11092_vm10, %v3717_v52, %v11091_v63  ;;  %vm11104_vm4 = vmmov %vm11103_vm2  ;;  %v11125_v34 = vld [vmem:[#allocation22_spill] sm:$0xff] }
 0x9bc   :  { %v3733_v43 = vsel %vm11094_vm0, %v3725_v62, %v3538_v54  ;;  %vm11107_vm10 = vmmov %vm11103_vm2  ;;  %v11122_v54 = vld [vmem:[#allocation42_spill] sm:$0xff] }
 0x9bd   :  { %vm11108_vm7 = vmmov %vm11103_vm2 }
 0x9be   :  { %vm11110_vm0 = vmmov %vm11103_vm2 }
 0x9bf   :  { %vm11114_vm3 = vmmov %vm11110_vm0 }
 0x9c0   :  { %v2572_v18 = vpop.permute.xlu1 %2571 }
 0x9c1   :  { %v3588_v24 = vpop.permute.xlu0 %3587  ;;  %5563 = vmatpush.xpose.msk.msrb.mxu3 %vm11095_vm9, %v2572_v18  ;;  %vm11112_vm9 = vmmov %vm11110_vm0 }
 0x9c2   :  { %v3741_v44 = vsel %vm11096_vm1, %v3733_v43, %v3588_v24  ;;  %vm11116_vm1 = vmmov %vm11110_vm0 }
 0x9c3   :  { %5609 = vmatmul.msk.f32.gmra.mxu2 %vm11097_vm13, %v3764_v36  ;;  %v3749_v25 = vsel %vm11098_vm12, %v3741_v44, %v9086_v35  ;;  %vm11118_vm13 = vmmov %vm11110_vm0 }
 0x9c4   :  { %v3757_v41 = vsel %vm11099_vm6, %v3749_v25, %v3645_v6  ;;  %vm11120_vm12 = vmmov %vm11110_vm0 }
 0x9c5   :  { %vm11123_vm6 = vmmov %vm11110_vm0 }
 0x9c9   :  { %v3693_v57 = vpop.permute.xlu0 %3692 }
 0x9ca   :  { %v3765_v20 = vsel %vm11100_vm8, %v3757_v41, %v3693_v57  ;;  %vm11127_vm8 = vmmov %vm11110_vm0 }
 0x9cb   :  { %5610 = vmatmul.msk.f32.gmra.mxu2 %vm11101_vm14, %v3765_v20  ;;  %vm11128_vm14 = vmmov %vm11110_vm0 }
 0x9d1   :  { %v2570_v51 = vpop.permute.xlu0 %2569 }
 0x9d2   :  { %5564 = vmatpush.xpose.msk.msrb.mxu3 %vm11102_vm15, %v2570_v51  ;;  %vm11129_vm15 = vmmov %vm11110_vm0 }
 0x9d9   :  { %v2568_v46 = vpop.permute.xlu0 %2567 }
 0x9da   :  { %5565 = vmatpush.xpose.msk.msrb.mxu3 %vm11103_vm2, %v2568_v46  ;;  %vm11130_vm2 = vmmov %vm11110_vm0 }
 0x9e1   :  { %v2566_v23 = vpop.permute.xlu0 %2565 }
 0x9e2   :  { %5566 = vmatpush.xpose.msk.msrb.mxu3 %vm11104_vm4, %v2566_v23  ;;  %vm11131_vm4 = vmmov %vm11110_vm0 }
 0x9e9   :  { %v2564_v55 = vpop.permute.xlu0 %2563 }
 0x9ea   :  { %5567 = vmatpush.xpose.msk.msrb.mxu3 %vm11105_vm11, %v2564_v55  ;;  %vm11132_vm11 = vmmov %vm11110_vm0 }
 0x9f1   :  { %v2562_v35 = vpop.permute.xlu0 %2561 }
 0x9f2   :  { %5568 = vmatpush.xpose.msk.msrb.mxu3 %vm11106_vm5, %v2562_v35  ;;  %vm11133_vm5 = vmmov %vm11110_vm0 }
 0x9f9   :  { %v2560_v32 = vpop.permute.xlu0 %2559 }
 0x9fa   :  { %5569 = vmatpush.xpose.msk.msrb.mxu3 %vm11107_vm10, %v2560_v32  ;;  %vm11134_vm10 = vmmov %vm11110_vm0 }
 0x9fd   :  { %5570 = vmatmul.msk.f32.vlgmr.msrb.gmra.mxu3 %vm11108_vm7, %v8878_v1  ;;  %vm11135_vm7 = vmmov %vm11110_vm0 }
 0x9fe   :  { %4712 = vmatpush.msra.mxu3 %v6061_v27 }
 0xa00   :  { %4713 = vmatpush.msra.mxu3 %v6062_v30 }
 0xa02   :  { %4714 = vmatpush.msra.mxu3 %v6063_v40 }
 0xa04   :  { %4715 = vmatpush.msra.mxu3 %v6064_v7 }
 0xa05   :  { %5571 = vmatmul.msk.f32.gmra.mxu3 %vm11110_vm0, %v11109_v17 }
 0xa06   :  { %4716 = vmatpush.msra.mxu3 %v6065_v26 }
 0xa08   :  { %4717 = vmatpush.msra.mxu3 %v6066_v5 }
 0xa0a   :  { %4718 = vmatpush.msra.mxu3 %v6067_v4 }
 0xa0c   :  { %4719 = vmatpush.msra.mxu3 %v6068_v53 }
 0xa0d   :  { %5572 = vmatmul.msk.f32.gmra.mxu3 %vm11112_vm9, %v11111_v12  ;;  %vm11136_vm9 = vmmov %vm11110_vm0 }
 0xa0e   :  { %4720 = vmatpush.msra.mxu3 %v6069_v13  ;;  %v3807_v58 = vpop.f32.mrf.mxu2 }
 0xa0f   :  { %v3808_v29 = vadd.f32 %v3807_v58, %v11121_v37 }
 0xa11   :  { %v9238_v47 = vadd.f32 %v9233_v56, %v3808_v29 }
 0xa13   :  { %v3943_v3 = vmul.f32 %v11125_v34, %v9238_v47  ;;  %v3840_v60 = vmul.f32 %v11126_v21, %v9238_v47 }
 0xa15   :  { %5573 = vmatmul.msk.f32.gmra.mxu3 %vm11114_vm3, %v11113_v28  ;;  %v3984_v18 = vmul.f32 %v3943_v3, %v9238_v47  ;;  %v3881_v43 = vmul.f32 %v3840_v60, %v9238_v47  ;;  %v3848_v57 = vsel %vm11127_vm8, %v3840_v60, 0.0  ;;  %v3951_v32 = vsel %vm11130_vm2, %v3943_v3, 0.0  ;;  %vm11137_vm3 = vmmov %vm11110_vm0 }
 0xa16   :  { %vm11142_vm8 = vmmov %vm11110_vm0 }
 0xa17   :  { %v3992_v35 = vsel %vm11129_vm15, %v3984_v18, 0.0  ;;  %v3889_v7 = vsel %vm11131_vm4, %v3881_v43, 0.0  ;;  %vm11144_vm15 = vmmov %vm11110_vm0 }
 0xa18   :  { %vm11145_vm2 = vmmov %vm11110_vm0 }
 0xa19   :  { %vm11146_vm4 = vmmov %vm11110_vm0 }
 0xa1d   :  { %5574 = vmatmul.msk.f32.gmra.mxu3 %vm11116_vm1, %v11115_v11  ;;  %vm11138_vm1 = vmmov %vm11110_vm0 }
 0xa1e   :  { %v3810_v31 = vpop.f32.mrf.mxu2 }
 0xa1f   :  { %v3811_v49 = vadd.f32 %v3810_v31, %v11121_v37 }
 0xa21   :  { %v9241_v22 = vadd.f32 %v9233_v56, %v3811_v49 }
 0xa23   :  { %v3944_v48 = vmul.f32 %v11125_v34, %v9241_v22  ;;  %v3841_v63 = vmul.f32 %v11126_v21, %v9241_v22 }
 0xa25   :  { %5575 = vmatmul.msk.f32.gmra.mxu3 %vm11118_vm13, %v11117_v2  ;;  %v3985_v44 = vmul.f32 %v3944_v48, %v9241_v22  ;;  %v3882_v41 = vmul.f32 %v3841_v63, %v9241_v22  ;;  %v3849_v46 = vsel %vm11128_vm14, %v3841_v63, 0.0  ;;  %v3952_v26 = vsel %vm11132_vm11, %v3944_v48, 0.0  ;;  %vm11139_vm13 = vmmov %vm11110_vm0 }
 0xa26   :  { %v3813_v50 = vpop.f32.mrf.mxu2  ;;  %v3850_v53 = vadd.f32 %v3849_v46, %v3848_v57  ;;  %v3953_v60 = vadd.f32 %v3952_v26, %v3951_v32  ;;  %vm11143_vm14 = vmmov %vm11110_vm0 }
 0xa27   :  { %v3814_v45 = vadd.f32 %v3813_v50, %v11121_v37  ;;  %v3993_v13 = vsel %vm11133_vm5, %v3985_v44, 0.0  ;;  %vm11147_vm11 = vmmov %vm11110_vm0 }
 0xa28   :  { %vm11148_vm5 = vmmov %vm11110_vm0 }
 0xa29   :  { %v9244_v6 = vadd.f32 %v9233_v56, %v3814_v45 }
 0xa2b   :  { %v3945_v62 = vmul.f32 %v11125_v34, %v9244_v6  ;;  %v3842_v25 = vmul.f32 %v11126_v21, %v9244_v6 }
 0xa2d   :  { %5576 = vmatmul.msk.f32.gmra.mxu3 %vm11120_vm12, %v11119_v59  ;;  %v3986_v20 = vmul.f32 %v3945_v62, %v9244_v6  ;;  %v3883_v5 = vmul.f32 %v3842_v25, %v9244_v6  ;;  %v3851_v58 = vsel %vm11134_vm10, %v3842_v25, 0.0  ;;  %vm11140_vm12 = vmmov %vm11110_vm0 }
 0xa2e   :  { %v3816_v0 = vpop.f32.mrf.mxu2  ;;  %v3852_v18 = vadd.f32 %v3851_v58, %v3850_v53  ;;  %v3954_v58 = vsel %vm11144_vm15, %v3945_v62, 0.0  ;;  %vm11149_vm10 = vmmov %vm11110_vm0 }
 0xa2f   :  { %v3817_v39 = vadd.f32 %v3816_v0, %v11121_v37  ;;  %v3995_v50 = vsel %vm11135_vm7, %v3986_v20, 0.0  ;;  %v3890_v0 = vsel %vm11110_vm0, %v3882_v41, 0.0  ;;  %v3892_v63 = vsel %vm11137_vm3, %v3883_v5, 0.0  ;;  %vm11150_vm7 = vmmov %vm11110_vm0 }
 0xa30   :  { %v3891_v44 = vadd.f32 %v3890_v0, %v3889_v7  ;;  %vm11152_vm3 = vmmov %vm11110_vm0 }
 0xa31   :  { %v9259_v24 = vadd.f32 %v9233_v56, %v3817_v39  ;;  %v3994_v39 = vadd.f32 %v3993_v13, %v3992_v35 }
 0xa32   :  { %v3893_v32 = vadd.f32 %v3892_v63, %v3891_v44 }
 0xa33   :  { %v3946_v51 = vmul.f32 %v11125_v34, %v9259_v24  ;;  %v3843_v55 = vmul.f32 %v11126_v21, %v9259_v24 }
 0xa35   :  { %5577 = vmatmul.msk.f32.gmra.mxu3 %vm11123_vm6, %v11122_v54  ;;  %v3987_v31 = vmul.f32 %v3946_v51, %v9259_v24  ;;  %v3884_v49 = vmul.f32 %v3843_v55, %v9259_v24  ;;  %vm11141_vm6 = vmmov %vm11110_vm0 }
 0xa36   :  { %v3819_v38 = vpop.f32.mrf.mxu2 }
 0xa37   :  { %v3820_v52 = vadd.f32 %v3819_v38, %v11121_v37  ;;  %v3997_v43 = vsel %vm11138_vm1, %v3987_v31, 0.0  ;;  %v3894_v20 = vsel %vm11140_vm12, %v3884_v49, 0.0  ;;  %vm11153_vm1 = vmmov %vm11110_vm0 }
 0xa38   :  { %v3895_v13 = vadd.f32 %v3894_v20, %v3893_v32  ;;  %vm11155_vm12 = vmmov %vm11110_vm0 }
 0xa39   :  { %v9265_v36 = vadd.f32 %v9233_v56, %v3820_v52 }
 0xa3b   :  { %v3844_v30 = vmul.f32 %v11126_v21, %v9265_v36  ;;  %v9287_v40 = vmul.f32 %v11125_v34, %v9265_v36 }
 0xa3d   :  { %v3988_v45 = vmul.f32 %v9287_v40, %v9265_v36  ;;  %v3885_v3 = vmul.f32 %v3844_v30, %v9265_v36  ;;  %v3855_v25 = vsel %vm11139_vm13, %v3844_v30, 0.0  ;;  %vm11154_vm13 = vmmov %vm11110_vm0 }
 0xa3e   :  { %v3822_v14 = vpop.f32.mrf.mxu2 }
 0xa3f   :  { %v3823_v42 = vadd.f32 %v3822_v14, %v11121_v37  ;;  %v3853_v14 = vsel %vm11136_vm9, %v3843_v55, 0.0  ;;  %v3999_v35 = vsel %vm11141_vm6, %v3988_v45, 0.0  ;;  %vm11151_vm9 = vmmov %vm11110_vm0 }
 0xa40   :  { %v3854_v55 = vadd.f32 %v3853_v14, %v3852_v18  ;;  %vm11156_vm6 = vmmov %vm11110_vm0 }
 0xa41   :  { %v9277_v23 = vadd.f32 %v9233_v56, %v3823_v42  ;;  %v3996_v42 = vadd.f32 %v3995_v50, %v3994_v39  ;;  %v3956_v39 = vsel %vm11148_vm5, %v3946_v51, 0.0 }
 0xa43   :  { %v3845_v38 = vmul.f32 %v11126_v21, %v9277_v23  ;;  %v3948_v61 = vmul.f32 %v11125_v34, %v9277_v23  ;;  %v3998_v53 = vadd.f32 %v3997_v43, %v3996_v42  ;;  %v3955_v42 = vadd.f32 %v3954_v58, %v3953_v60 }
 0xa45   :  { %v3989_v57 = vmul.f32 %v3948_v61, %v9277_v23  ;;  %v3886_v41 = vmul.f32 %v3845_v38, %v9277_v23  ;;  %v3857_v5 = vsel %vm11143_vm14, %v3845_v38, 0.0  ;;  %v4000_v38 = vadd.f32 %v3999_v35, %v3998_v53 }
 0xa46   :  { %v3825_v27 = vpop.f32.mrf.mxu2  ;;  %v3960_v32 = vsel %vm11154_vm13, %v3948_v61, 0.0 }
 0xa47   :  { %v3826_v4 = vadd.f32 %v3825_v27, %v11121_v37  ;;  %v3896_v27 = vsel %vm11142_vm8, %v3885_v3, 0.0  ;;  %v4001_v0 = vsel %vm11146_vm4, %v3989_v57, 0.0  ;;  %vm11158_vm8 = vcmask 523264  }
 0xa48   :  { %v3897_v45 = vadd.f32 %v3896_v27, %v3895_v13  ;;  %v4002_v63 = vadd.f32 %v4001_v0, %v4000_v38  ;;  %vm11159_vm14 = vmmov %vm11158_vm8 }
 0xa49   :  { %v9299_v29 = vadd.f32 %v9233_v56, %v3826_v4  ;;  %v3856_v4 = vadd.f32 %v3855_v25, %v3854_v55  ;;  %v3958_v25 = vsel %vm11151_vm9, %v9287_v40, 0.0  ;;  %vm11160_vm15 = vmmov %vm11158_vm8  ;;  %vm11165_vm9 = vcmask 1043456  }
 0xa4b   :  { %v3846_v52 = vmul.f32 %v11126_v21, %v9299_v29  ;;  %v3949_v48 = vmul.f32 %v11125_v34, %v9299_v29  ;;  %v3858_v49 = vadd.f32 %v3857_v5, %v3856_v4 }
 0xa4d   :  { %v3990_v7 = vmul.f32 %v3949_v48, %v9299_v29  ;;  %v3887_v30 = vmul.f32 %v3846_v52, %v9299_v29  ;;  %v3859_v50 = vsel %vm11145_vm2, %v3846_v52, 0.0  ;;  %v3962_v5 = vsel %vm11155_vm12, %v3949_v48, 0.0  ;;  %vm11161_vm2 = vmmov %vm11158_vm8 }
 0xa4e   :  { %v3828_v46 = vpop.f32.mrf.mxu2  ;;  %v3860_v52 = vadd.f32 %v3859_v50, %v3858_v49 }
 0xa4f   :  { %v3829_v26 = vadd.f32 %v3828_v46, %v11121_v37  ;;  %v3898_v37 = vsel %vm11147_vm11, %v3886_v41, 0.0  ;;  %v3900_v14 = vsel %vm11150_vm7, %v3887_v30, 0.0  ;;  %v3957_v46 = vadd.f32 %v3956_v39, %v3955_v42  ;;  %vm11162_vm11 = vmmov %vm11161_vm2 }
 0xa50   :  { %v3899_v18 = vadd.f32 %v3898_v37, %v3897_v45  ;;  %vm11163_vm7 = vmmov %vm11161_vm2 }
 0xa51   :  { %v9328_v31 = vadd.f32 %v9233_v56, %v3829_v26  ;;  %v4003_v56 = vsel %vm11149_vm10, %v3990_v7, 0.0  ;;  %v3959_v26 = vadd.f32 %v3958_v25, %v3957_v46 }
 0xa52   :  { %v4004_v41 = vadd.f32 %v4003_v56, %v4002_v63  ;;  %v3901_v20 = vadd.f32 %v3900_v14, %v3899_v18  ;;  %v5799_v56 = vpack.i.bf16 %v8878_v1, %v11109_v17  ;;  %v5784_v14 = vpack.i.bf16 %v11119_v59, %v11122_v54 }
 0xa53   :  { %v3847_v3 = vmul.f32 %v11126_v21, %v9328_v31  ;;  %v3950_v62 = vmul.f32 %v11125_v34, %v9328_v31  ;;  %v3961_v7 = vadd.f32 %v3960_v32, %v3959_v26  ;;  %v5794_v1 = vpack.i.bf16 %v11111_v12, %v11113_v28 }
 0xa55   :  { %v3861_v43 = vsel %vm11110_vm0, %v3847_v3, 0.0  ;;  %v3991_v44 = vmul.f32 %v3950_v62, %v9328_v31  ;;  %v3888_v51 = vmul.f32 %v3847_v3, %v9328_v31  ;;  %v3964_v40 = vsel %vm11156_vm6, %v3950_v62, 0.0  ;;  %vm11164_vm0 = vmmov %vm11161_vm2 }
 0xa56   :  { %v3862_v57 = vadd.f32 %v3861_v43, %v3860_v52  ;;  %v3963_v30 = vadd.f32 %v3962_v5, %v3961_v7  ;;  %v5789_v62 = vpack.i.bf16 %v11115_v11, %v11117_v2  ;;  %vm11166_vm12 = vmmov %vm11164_vm0 }
 0xa57   :  { %v4005_v55 = vsel %vm11152_vm3, %v3991_v44, 0.0  ;;  %v3902_v35 = vsel %vm11153_vm1, %v3888_v51, 0.0  ;;  %vm11167_vm6 = vmmov %vm11164_vm0 }
 0xa58   :  { %3863 = vadd.xlane.f32.xlu2 %v3862_v57  ;;  %v4006_v60 = vadd.f32 %v4005_v55, %v4004_v41  ;;  %v3903_v27 = vadd.f32 %v3902_v35, %v3901_v20  ;;  %v3965_v4 = vadd.f32 %v3964_v40, %v3963_v30 }
 0xa5a   :  { %4007 = vadd.xlane.f32.xlu0 %v4006_v60  ;;  %3904 = vadd.xlane.f32.xlu1 %v3903_v27 }
 0xa60   :  { %3966 = vadd.xlane.f32.xlu2 %v3965_v4 }
 0xa80   :  { %v9350_v53 = vpop.f32.mrf.mxu3 }
 0xa81   :  { %11157 = vst [vmem:[#allocation43_spill] sm:$0xff] %v9350_v53 }
 0xa88   :  { %v9352_v13 = vpop.f32.mrf.mxu3 }
 0xa90   :  { %v9354_v58 = vpop.f32.mrf.mxu3 }
 0xa98   :  { %v9356_v61 = vpop.f32.mrf.mxu3 }
 0xaa0   :  { %v2636_v50 = vpop.f32.mrf.mxu3 }
 0xaa1   :  { %v2652_v0 = vmul.f32 0.35355338, %v2636_v50 }
 0xaa3   :  { %v2668_v48 = vsel %vm11158_vm8, %v2652_v0, -inf  ;;  %vm11168_vm8 = vmmov %vm11164_vm0 }
 0xaa4   :  { %2669 = vmax.xlane.f32.xlu1 %v2668_v48 }
 0xaa8   :  { %v2639_v37 = vpop.f32.mrf.mxu3 }
 0xaa9   :  { %v9359_v49 = vmul.f32 0.35355338, %v2639_v37 }
 0xaab   :  { %v2671_v38 = vsel %vm11159_vm14, %v9359_v49, -inf  ;;  %vm11170_vm14 = vmmov %vm11164_vm0 }
 0xaac   :  { %2672 = vmax.xlane.f32.xlu2 %v2671_v38 }
 0xab0   :  { %v2642_v45 = vpop.f32.mrf.mxu3 }
 0xab1   :  { %v9363_v39 = vmul.f32 0.35355338, %v2642_v45 }
 0xab3   :  { %v2674_v3 = vsel %vm11160_vm15, %v9363_v39, -inf }
 0xab4   :  { %2675 = vmax.xlane.f32.xlu1 %v2674_v3 }
 0xab8   :  { %v2645_v41 = vpop.f32.mrf.mxu3 }
 0xab9   :  { %v9379_v20 = vmul.f32 0.35355338, %v2645_v41 }
 0xabb   :  { %v2677_v46 = vsel %vm11161_vm2, %v9379_v20, -inf }
 0xac4   :  { %5790 = vrot.lane.b32.xlu2 %v5789_v62, %s6094_s20 }
 0xacb   :  { %v3864_v52 = vpop.xlane.xlu2 %3863 }
 0xacc   :  { %v3865_v63 = vrot.slane %v3864_v52, 4  ;;  %5800 = vrot.lane.b32.xlu2 %v5799_v56, %s6094_s20 }
 0xacd   :  { %5785 = vrot.lane.b32.xlu1 %v5784_v14, %s6094_s20  ;;  %v3905_v18 = vpop.xlane.xlu1 %3904  ;;  %v4008_v28 = vpop.xlane.xlu0 %4007 }
 0xace   :  { %v3866_v42 = vadd.f32 %v3865_v63, %v3864_v52  ;;  %v3906_v43 = vrot.slane %v3905_v18, 4  ;;  %v4009_v35 = vrot.slane %v4008_v28, 4 }
 0xad0   :  { %v3867_v44 = vrot.slane %v3866_v42, 2  ;;  %v3907_v51 = vadd.f32 %v3906_v43, %v3905_v18  ;;  %v4010_v27 = vadd.f32 %v4009_v35, %v4008_v28 }
 0xad2   :  { %v3908_v11 = vrot.slane %v3907_v51, 2  ;;  %v3868_v2 = vadd.f32 %v3867_v44, %v3866_v42  ;;  %v4011_v30 = vrot.slane %v4010_v27, 2 }
 0xad3   :  { %v3967_v12 = vpop.xlane.xlu2 %3966 }
 0xad4   :  { %v3869_v17 = vrot.slane %v3868_v2, 1  ;;  %v3909_v59 = vadd.f32 %v3908_v11, %v3907_v51  ;;  %v3968_v55 = vrot.slane %v3967_v12, 4  ;;  %v4012_v38 = vadd.f32 %v4011_v30, %v4010_v27 }
 0xad5   :  { %5795 = vrot.lane.b32.xlu1 %v5794_v1, %s6094_s20 }
 0xad6   :  { %v3870_v54 = vadd.f32 %v3869_v17, %v3868_v2  ;;  %v3910_v25 = vrot.slane %v3909_v59, 1  ;;  %v3969_v60 = vadd.f32 %v3968_v55, %v3967_v12 }
 0xad8   :  { %5737 = vpush %v3870_v54  ;;  %v3911_v57 = vadd.f32 %v3910_v25, %v3909_v59  ;;  %v3970_v7 = vrot.slane %v3969_v60, 2 }
 0xada   :  { %5739 = vpush %v3911_v57  ;;  %v3971_v37 = vadd.f32 %v3970_v7, %v3969_v60 }
 0xadc   :  { %v3972_v14 = vrot.slane %v3971_v37, 1 }
 0xade   :  { %v3973_v44 = vadd.f32 %v3972_v14, %v3971_v37 }
 0xaf5   :  { %2678 = vmax.xlane.f32.xlu2 %v2677_v46 }
 0xb09   :  { %s5738_s3 = spop %5737 }
 0xb0a   :  { %s9384_s12 = smul.f32 %s5738_s3, %s7345_s23 }
 0xb0b   :  { %s5740_s22 = spop %5739 }
 0xb0c   :  { %s3922_s19 = smul.f32 %s9384_s12, %s9384_s12 }
 0xb0d   :  { %s3921_s2 = smul.f32 %s5740_s22, %s7345_s23 }
 0xb0f   :  { %s3923_s25 = ssub.f32 %s3921_s2, %s3922_s19 }
 0xb11   :  { %s3927_s15 = sadd.f32 1e-05, %s3923_s25 }
 0xb13   :  { %v3928_v32 = vstv %s3927_s15 }
 0xb14   :  { %5941 = vrsqrt.f32 %v3928_v32  ;;  %vm3935_vm5 = vweird.f32 %v3928_v32 }
 0xb17   :  { %v2670_v26 = vpop.xlane.xlu1 %2669 }
 0xb18   :  { %v2684_v5 = vsub.f32 %v2652_v0, %v2670_v26  ;;  %v4013_v0 = vrot.slane %v4012_v38, 1  ;;  %v6070_v26 = vld [vmem:[%s10679_s5] sm:$0xf] }
 0xb1a   :  { %v5942_v40 = vpop.eup %5941  ;;  %v2696_v4 = vmul.f32 1.442695, %v2684_v5  ;;  %v4014_v51 = vadd.f32 %v4013_v0, %v4012_v38  ;;  %v3924_v5 = vstv %s9384_s12 }
 0xb1b   :  { %v3930_v50 = vmul.f32 %v5942_v40, %v3928_v32  ;;  %vm3936_vm4 = vweird.f32 %v5942_v40 }
 0xb1c   :  { %5943 = vpow2.f32 %v2696_v4  ;;  %vm3937_vm10 = vmor %vm3935_vm5, %vm3936_vm4 }
 0xb1d   :  { %v3931_v48 = vmul.f32 %v5942_v40, %v3930_v50 }
 0xb1f   :  { %v2673_v45 = vpop.xlane.xlu2 %2672  ;;  %v3932_v3 = vmul.f32 0.5, %v3931_v48 }
 0xb20   :  { %v2685_v62 = vsub.f32 %v9359_v49, %v2673_v45 }
 0xb21   :  { %v3933_v56 = vsub.f32 1.5, %v3932_v3 }
 0xb22   :  { %v9390_v52 = vpop.eup %5943  ;;  %v2698_v63 = vmul.f32 1.442695, %v2685_v62 }
 0xb23   :  { %v2716_v18 = vsel %vm11162_vm11, %v9390_v52, 0.0  ;;  %v3934_v42 = vmul.f32 %v5942_v40, %v3933_v56 }
 0xb24   :  { %5945 = vpow2.f32 %v2698_v63  ;;  %2717 = vadd.xlane.f32.xlu0 %v2716_v18 }
 0xb25   :  { %v3938_v43 = vsel %vm3937_vm10, %v5942_v40, %v3934_v42  ;;  %v3925_v40 = vmul.f32 %v11126_v21, %v3924_v5 }
 0xb26   :  { %5741 = vpush %v3938_v43 }
 0xb27   :  { %5743 = vpush %v3973_v44  ;;  %v2676_v49 = vpop.xlane.xlu1 %2675  ;;  %v5791_v25 = vpop.permute.xlu2 %5790 }
 0xb28   :  { %5745 = vpush %v4014_v51  ;;  %v2686_v11 = vsub.f32 %v9363_v39, %v2676_v49  ;;  %v5792_v39 = vunpack.i.l.bf16 %v5791_v25  ;;  %v5793_v12 = vunpack.i.h.bf16 %v5791_v25 }
 0xb2a   :  { %v9395_v2 = vpop.eup %5945  ;;  %v2700_v1 = vmul.f32 1.442695, %v2686_v11 }
 0xb2b   :  { %v2719_v17 = vsel %vm11163_vm7, %v9395_v2, 0.0 }
 0xb2c   :  { %5947 = vpow2.f32 %v2700_v1  ;;  %2720 = vadd.xlane.f32.xlu0 %v2719_v17 }
 0xb2f   :  { %v5801_v35 = vpop.permute.xlu2 %5800 }
 0xb30   :  { %v5802_v60 = vunpack.i.l.bf16 %v5801_v35  ;;  %v5803_v27 = vunpack.i.h.bf16 %v5801_v35 }
 0xb32   :  { %v9399_v59 = vpop.eup %5947 }
 0xb33   :  { %v2722_v54 = vsel %vm11164_vm0, %v9399_v59, 0.0 }
 0xb34   :  { %2723 = vadd.xlane.f32.xlu1 %v2722_v54 }
 0xb3f   :  { %v5786_v57 = vpop.permute.xlu1 %5785 }
 0xb40   :  { %v5787_v41 = vunpack.i.l.bf16 %v5786_v57  ;;  %v5788_v46 = vunpack.i.h.bf16 %v5786_v57 }
 0xb42   :  { %2800 = vmatpush.msra.mxu0 %v5787_v41  ;;  %5677 = vmatpush.msrb.mxu1 %v5787_v41 }
 0xb44   :  { %2801 = vmatpush.msra.mxu0 %v5788_v46  ;;  %5678 = vmatpush.msrb.mxu1 %v5788_v46  ;;  %v11169_v46 = vld [vmem:[#allocation23_spill] sm:$0xff] }
 0xb46   :  { %2802 = vmatpush.msra.mxu0 %v5792_v39  ;;  %5679 = vmatpush.msrb.mxu1 %v5792_v39 }
 0xb47   :  { %v5796_v28 = vpop.permute.xlu1 %5795 }
 0xb48   :  { %v5797_v55 = vunpack.i.l.bf16 %v5796_v28  ;;  %2803 = vmatpush.msra.mxu0 %v5793_v12  ;;  %5680 = vmatpush.msrb.mxu1 %v5793_v12  ;;  %v5798_v32 = vunpack.i.h.bf16 %v5796_v28 }
 0xb4a   :  { %2804 = vmatpush.msra.mxu0 %v5797_v55  ;;  %5681 = vmatpush.msrb.mxu1 %v5797_v55 }
 0xb4c   :  { %2805 = vmatpush.msra.mxu0 %v5798_v32  ;;  %5682 = vmatpush.msrb.mxu1 %v5798_v32 }
 0xb4e   :  { %2806 = vmatpush.msra.mxu0 %v5802_v60  ;;  %5683 = vmatpush.msrb.mxu1 %v5802_v60 }
 0xb50   :  { %2807 = vmatpush.msra.mxu0 %v5803_v27  ;;  %5684 = vmatpush.msrb.mxu1 %v5803_v27 }
 0xb52   :  { %5627 = vmatpush.msk.msra.mxu1 %vm11165_vm9, %v6070_v26 }
 0xb57   :  { %s9407_s18 = spop %5741 }
 0xb58   :  { %s5744_s26 = spop %5743  ;;  %v3940_v49 = vstv %s9407_s18 }
 0xb59   :  { %s3983_s14 = smul.f32 %s5744_s26, %s7345_s23  ;;  %s5746_s1 = spop %5745  ;;  %v3941_v17 = vmul.f32 %v11126_v21, %v3940_v49 }
 0xb5a   :  { %s4024_s27 = smul.f32 %s5746_s1, %s7345_s23 }
 0xb5b   :  { %s4025_s29 = smul.f32 %s3983_s14, %s3983_s14  ;;  %v4027_v7 = vstv %s3983_s14 }
 0xb5c   :  { %v4028_v30 = vmul.f32 %v11125_v34, %v4027_v7 }
 0xb5d   :  { %s4026_s30 = ssub.f32 %s4024_s27, %s4025_s29 }
 0xb5e   :  { %v9414_v4 = vadd.f32 %v4028_v30, %v3925_v40 }
 0xb5f   :  { %s4030_s3 = sadd.f32 1e-05, %s4026_s30 }
 0xb60   :  { %v4048_v12 = vsub.f32 %v9244_v6, %v9414_v4  ;;  %v4049_v28 = vsub.f32 %v9259_v24, %v9414_v4  ;;  %v4046_v55 = vsub.f32 %v9238_v47, %v9414_v4  ;;  %v4050_v32 = vsub.f32 %v9265_v36, %v9414_v4  ;;  %v11171_v36 = vld [vmem:[#allocation24_spill] sm:$0xff] }
 0xb61   :  { %v4031_v50 = vstv %s4030_s3  ;;  %v4051_v60 = vsub.f32 %v9277_v23, %v9414_v4  ;;  %v4052_v27 = vsub.f32 %v9299_v29, %v9414_v4  ;;  %v4053_v47 = vsub.f32 %v9328_v31, %v9414_v4  ;;  %s11249_s3 = smov 40  }
 0xb62   :  { %5949 = vrsqrt.f32 %v4031_v50  ;;  %vm4038_vm1 = vweird.f32 %v4031_v50 }
 0xb68   :  { %v5950_v48 = vpop.eup %5949  ;;  %v2679_v37 = vpop.xlane.xlu2 %2678 }
 0xb69   :  { %v4033_v38 = vmul.f32 %v5950_v48, %v4031_v50  ;;  %v2687_v45 = vsub.f32 %v9379_v20, %v2679_v37  ;;  %vm4039_vm3 = vweird.f32 %v5950_v48 }
 0xb6a   :  { %vm4040_vm13 = vmor %vm4038_vm1, %vm4039_vm3 }
 0xb6b   :  { %v4034_v3 = vmul.f32 %v5950_v48, %v4033_v38  ;;  %v2702_v62 = vmul.f32 1.442695, %v2687_v45 }
 0xb6d   :  { %5951 = vpow2.f32 %v2702_v62  ;;  %v4035_v56 = vmul.f32 0.5, %v4034_v3 }
 0xb6f   :  { %v4036_v14 = vsub.f32 1.5, %v4035_v56 }
 0xb71   :  { %v4037_v63 = vmul.f32 %v5950_v48, %v4036_v14 }
 0xb73   :  { %v9417_v0 = vpop.eup %5951  ;;  %v4041_v18 = vsel %vm4040_vm13, %v5950_v48, %v4037_v63 }
 0xb74   :  { %5747 = vpush %v4041_v18  ;;  %v2725_v42 = vsel %vm11166_vm12, %v9417_v0, 0.0 }
 0xb75   :  { %2726 = vadd.xlane.f32.xlu2 %v2725_v42 }
 0xb97   :  { %v2718_v43 = vpop.xlane.xlu0 %2717 }
 0xb98   :  { %5953 = vrcp.f32 %v2718_v43 }
 0xb9e   :  { %v5954_v20 = vpop.eup %5953 }
 0xb9f   :  { %v2721_v44 = vpop.xlane.xlu0 %2720  ;;  %v2740_v51 = vmul.f32 %v5954_v20, %v9390_v52 }
 0xba0   :  { %5955 = vrcp.f32 %v2721_v44 }
 0xba1   :  { %5582 = vmatmul.msk.f32.vlgmr.msrb.gmra.mxu1 %vm11167_vm6, %v2740_v51 }
 0xba5   :  { %s5748_s5 = spop %5747 }
 0xba6   :  { %v5956_v11 = vpop.eup %5955  ;;  %v4043_v1 = vstv %s5748_s5 }
 0xba7   :  { %v4044_v54 = vmul.f32 %v11125_v34, %v4043_v1  ;;  %v2724_v25 = vpop.xlane.xlu1 %2723  ;;  %v2741_v57 = vmul.f32 %v5956_v11, %v9395_v2  ;;  %v4047_v2 = vsub.f32 %v9241_v22, %v9414_v4 }
 0xba8   :  { %5957 = vrcp.f32 %v2724_v25 }
 0xba9   :  { %v4045_v41 = vadd.f32 %v4044_v54, %v3941_v17  ;;  %5583 = vmatmul.msk.f32.gmra.mxu1 %vm11168_vm8, %v2741_v57 }
 0xbab   :  { %v4054_v52 = vmul.f32 %v4045_v41, %v11169_v46 }
 0xbad   :  { %v4055_v39 = vperm.slane %v4054_v52, 0 }
 0xbae   :  { %v5958_v35 = vpop.eup %5957 }
 0xbaf   :  { %v2742_v6 = vmul.f32 %v5958_v35, %v9399_v59  ;;  %v4058_v26 = vmul.f32 %v4055_v39, %v4048_v12  ;;  %v4059_v24 = vmul.f32 %v4055_v39, %v4049_v28  ;;  %v4056_v5 = vmul.f32 %v4055_v39, %v4046_v55 }
 0xbb0   :  { %v4057_v7 = vmul.f32 %v4055_v39, %v4047_v2  ;;  %v4060_v40 = vmul.f32 %v4055_v39, %v4050_v32  ;;  %v4061_v22 = vmul.f32 %v4055_v39, %v4051_v60  ;;  %v4062_v29 = vmul.f32 %v4055_v39, %v4052_v27 }
 0xbb1   :  { %5584 = vmatmul.msk.f32.gmra.mxu1 %vm11170_vm14, %v2742_v6  ;;  %v9448_v30 = vadd.f32 %v4058_v26, %v11171_v36  ;;  %v9451_v23 = vadd.f32 %v4059_v24, %v11171_v36  ;;  %v4063_v50 = vmul.f32 %v4055_v39, %v4053_v47  ;;  %v9454_v59 = vadd.f32 %v4056_v5, %v11171_v36 }
 0xbb2   :  { %v9457_v48 = vadd.f32 %v4057_v7, %v11171_v36  ;;  %v9460_v31 = vadd.f32 %v4060_v40, %v11171_v36  ;;  %v9463_v4 = vadd.f32 %v4061_v22, %v11171_v36  ;;  %v9471_v56 = vadd.f32 %v4062_v29, %v11171_v36 }
 0xbb3   :  { %v5613_v37 = vmul.f32 -1.442695, %v9448_v30  ;;  %v5614_v38 = vmul.f32 -1.442695, %v9451_v23  ;;  %v5611_v45 = vmul.f32 -1.442695, %v9454_v59  ;;  %v9476_v18 = vadd.f32 %v4063_v50, %v11171_v36 }
 0xbb4   :  { %v5612_v3 = vmul.f32 -1.442695, %v9457_v48  ;;  %v5615_v62 = vmul.f32 -1.442695, %v9460_v31  ;;  %v5616_v14 = vmul.f32 -1.442695, %v9463_v4 }
 0xbb5   :  { %5959 = vpow2.f32 %v5613_v37  ;;  %v5617_v63 = vmul.f32 -1.442695, %v9471_v56  ;;  %v5618_v49 = vmul.f32 -1.442695, %v9476_v18 }
 0xbb6   :  { %5961 = vpow2.f32 %v5614_v38 }
 0xbb7   :  { %5963 = vpow2.f32 %v5611_v45 }
 0xbb8   :  { %5965 = vpow2.f32 %v5612_v3 }
 0xbb9   :  { %5967 = vpow2.f32 %v5615_v62 }
 0xbba   :  { %5969 = vpow2.f32 %v5616_v14 }
 0xbbb   :  { %v5960_v42 = vpop.eup %5959  ;;  %5971 = vpow2.f32 %v5617_v63 }
 0xbbc   :  { %v5962_v43 = vpop.eup %5961  ;;  %v9478_v20 = vadd.f32 1.0, %v5960_v42 }
 0xbbd   :  { %v5964_v44 = vpop.eup %5963  ;;  %v9480_v51 = vadd.f32 1.0, %v5962_v43 }
 0xbbe   :  { %v5966_v11 = vpop.eup %5965  ;;  %5973 = vrcp.f32 %v9478_v20  ;;  %v9485_v54 = vadd.f32 1.0, %v5964_v44  ;;  %v4143_v57 = vand.u32 2147483647, %v9478_v20  ;;  %v4145_v41 = vand.u32 2147483648, %v9478_v20 }
 0xbbf   :  { %v5968_v1 = vpop.eup %5967  ;;  %5975 = vrcp.f32 %v9480_v51  ;;  %v9487_v25 = vadd.f32 1.0, %v5966_v11  ;;  %v4158_v52 = vand.u32 2147483647, %v9480_v51  ;;  %v4160_v39 = vand.u32 2147483648, %v9480_v51 }
 0xbc0   :  { %v5970_v17 = vpop.eup %5969  ;;  %v9491_v46 = vadd.f32 1.0, %v5968_v1  ;;  %5977 = vpow2.f32 %v5618_v49  ;;  %v4115_v28 = vand.u32 2147483648, %v9485_v54  ;;  %vm4139_vm15 = vweird.f32 %v9478_v20 }
 0xbc1   :  { %5979 = vrcp.f32 %v9485_v54  ;;  %v5972_v12 = vpop.eup %5971  ;;  %v9498_v55 = vadd.f32 1.0, %v5970_v17  ;;  %vm4154_vm2 = vweird.f32 %v9480_v51  ;;  %v4130_v2 = vand.u32 2147483648, %v9487_v25 }
 0xbc2   :  { %5981 = vrcp.f32 %v9487_v25  ;;  %vm9505_vm4 = vcmp.eq.f32.partialorder %v4143_v57, 8.507059e+37  ;;  %v4146_v6 = vor.u32 1.1754944e-38, %v4145_v41  ;;  %v4113_v26 = vand.u32 2147483647, %v9485_v54 }
 0xbc3   :  { %5983 = vrcp.f32 %v9491_v46  ;;  %vm9511_vm11 = vcmp.eq.f32.partialorder %v4158_v52, 8.507059e+37  ;;  %v4161_v5 = vor.u32 1.1754944e-38, %v4160_v39  ;;  %v4128_v7 = vand.u32 2147483647, %v9487_v25 }
 0xbc4   :  { %v5974_v35 = vpop.eup %5973  ;;  %v4175_v40 = vand.u32 2147483648, %v9491_v46  ;;  %vm4109_vm5 = vweird.f32 %v9485_v54  ;;  %v4116_v29 = vor.u32 1.1754944e-38, %v4115_v28  ;;  %v4173_v50 = vand.u32 2147483647, %v9491_v46 }
 0xbc5   :  { %v5976_v32 = vpop.eup %5975  ;;  %v4135_v60 = vmul.f32 %v5974_v35, %v9478_v20  ;;  %5985 = vrcp.f32 %v9498_v55  ;;  %vm4140_vm10 = vweird.f32 %v5974_v35  ;;  %v4131_v45 = vor.u32 1.1754944e-38, %v4130_v2 }
 0xbc6   :  { %v4150_v24 = vmul.f32 %v5976_v32, %v9480_v51  ;;  %v9517_v22 = vpop.eup %5977  ;;  %v9523_v3 = vadd.f32 1.0, %v5972_v12  ;;  %vm4155_vm0 = vweird.f32 %v5976_v32  ;;  %vm9526_vm9 = vcmp.eq.f32.partialorder %v4113_v26, 8.507059e+37  ;;  %vm4141_vm6 = vmor %vm4139_vm15, %vm4140_vm10 }
 0xbc7   :  { %v4136_v36 = vsub.f32 1.0, %v4135_v60  ;;  %v5980_v37 = vpop.eup %5979  ;;  %v4176_v43 = vor.u32 1.1754944e-38, %v4175_v40  ;;  %vm9532_vm13 = vcmp.eq.f32.partialorder %v4128_v7, 8.507059e+37  ;;  %v4188_v17 = vand.u32 2147483647, %v9498_v55  ;;  %vm4156_vm3 = vmor %vm4154_vm2, %vm4155_vm0 }
 0xbc8   :  { %v4151_v38 = vsub.f32 1.0, %v4150_v24  ;;  %v5982_v62 = vpop.eup %5981  ;;  %v4105_v63 = vmul.f32 %v5980_v37, %v9485_v54  ;;  %vm4110_vm1 = vweird.f32 %v5980_v37  ;;  %vm9538_vm12 = vcmp.eq.f32.partialorder %v4173_v50, 8.507059e+37 }
 0xbc9   :  { %v4137_v14 = vmul.f32 %v5974_v35, %v4136_v36  ;;  %v5984_v44 = vpop.eup %5983  ;;  %v4120_v11 = vmul.f32 %v5982_v62, %v9487_v25  ;;  %v4190_v12 = vand.u32 2147483648, %v9498_v55  ;;  %vm4125_vm8 = vweird.f32 %v5982_v62  ;;  %vm4111_vm15 = vmor %vm4109_vm5, %vm4110_vm1 }
 0xbca   :  { %v4152_v49 = vmul.f32 %v5976_v32, %v4151_v38  ;;  %v4106_v41 = vsub.f32 1.0, %v4105_v63  ;;  %v4165_v52 = vmul.f32 %v5984_v44, %v9491_v46  ;;  %vm4184_vm14 = vweird.f32 %v9498_v55 }
 0xbcb   :  { %v4138_v57 = vadd.f32 %v5974_v35, %v4137_v14  ;;  %v4121_v2 = vsub.f32 1.0, %v4120_v11  ;;  %5987 = vrcp.f32 %v9523_v3  ;;  %v5986_v60 = vpop.eup %5985  ;;  %vm4170_vm7 = vweird.f32 %v5984_v44 }
 0xbcc   :  { %v4153_v28 = vadd.f32 %v5976_v32, %v4152_v49  ;;  %v4107_v24 = vmul.f32 %v5980_v37, %v4106_v41  ;;  %v4166_v7 = vsub.f32 1.0, %v4165_v52  ;;  %v4180_v50 = vmul.f32 %v5986_v60, %v9498_v55 }
 0xbcd   :  { %v4142_v26 = vsel %vm4141_vm6, %v5974_v35, %v4138_v57  ;;  %v4122_v36 = vmul.f32 %v5982_v62, %v4121_v2  ;;  %vm9561_vm2 = vcmp.eq.f32.partialorder %v4188_v17, 8.507059e+37  ;;  %vm4185_vm10 = vweird.f32 %v5986_v60 }
 0xbce   :  { %v4147_v20 = vsel %vm9505_vm4, %v4146_v6, %v4142_v26  ;;  %v4157_v40 = vsel %vm4156_vm3, %v5976_v32, %v4153_v28  ;;  %v4108_v35 = vadd.f32 %v5980_v37, %v4107_v24  ;;  %v4167_v63 = vmul.f32 %v5984_v44, %v4166_v7 }
 0xbcf   :  { %v4162_v38 = vsel %vm9511_vm11, %v4161_v5, %v4157_v40  ;;  %v4226_v14 = vmul.f32 %v4147_v20, %v9448_v30  ;;  %v4123_v49 = vadd.f32 %v5982_v62, %v4122_v36  ;;  %v4181_v27 = vsub.f32 1.0, %v4180_v50 }
 0xbd0   :  { %v4227_v51 = vmul.f32 %v4162_v38, %v9451_v23  ;;  %v4112_v11 = vsel %vm4111_vm15, %v5980_v37, %v4108_v35  ;;  %vm11184_vm4 = vweird.f32 %v9487_v25  ;;  %v4168_v30 = vadd.f32 %v5984_v44, %v4167_v63 }
 0xbd1   :  { %v4243_v6 = vrot.slane %v4226_v14, 7  ;;  %vm4126_vm11 = vmor %vm11184_vm4, %vm4125_vm8  ;;  %v5988_v47 = vpop.eup %5987  ;;  %v4117_v54 = vsel %vm9526_vm9, %v4116_v29, %v4112_v11  ;;  %vm11185_vm5 = vweird.f32 %v9491_v46  ;;  %v4182_v17 = vmul.f32 %v5986_v60, %v4181_v27 }
 0xbd2   :  { %v4245_v23 = vrot.slane %v4227_v51, 7  ;;  %v4127_v5 = vsel %vm4126_vm11, %v5982_v62, %v4123_v49  ;;  %vm4171_vm0 = vmor %vm11185_vm5, %vm4170_vm7  ;;  %v4224_v57 = vmul.f32 %v4117_v54, %v9454_v59  ;;  %v4195_v41 = vmul.f32 %v5988_v47, %v9523_v3 }
 0xbd3   :  { %v4132_v37 = vsel %vm9532_vm13, %v4131_v45, %v4127_v5  ;;  %v4172_v25 = vsel %vm4171_vm0, %v5984_v44, %v4168_v30  ;;  %vm11186_vm3 = vcmask 1040384   ;;  %v4183_v62 = vadd.f32 %v5986_v60, %v4182_v17  ;;  %vm4186_vm7 = vmor %vm4184_vm14, %vm4185_vm10 }
 0xbd4   :  { %v9578_v52 = vsel %vm11186_vm3, %v4243_v6, %v4245_v23  ;;  %v4225_v42 = vmul.f32 %v4132_v37, %v9457_v48  ;;  %v4177_v29 = vsel %vm9538_vm12, %v4176_v43, %v4172_v25  ;;  %v4240_v28 = vrot.slane %v4224_v57, 7  ;;  %vm11187_vm9 = vmmov %vm11186_vm3 }
 0xbd5   :  { %v4284_v46 = vmul.f32 %v6392_v10, %v9578_v52  ;;  %v4228_v59 = vmul.f32 %v4177_v29, %v9460_v31  ;;  %v4191_v45 = vor.u32 1.1754944e-38, %v4190_v12  ;;  %v4187_v1 = vsel %vm4186_vm7, %v5986_v60, %v4183_v62  ;;  %v11188_v31 = vld [vmem:[#allocation5_spill] sm:$0xff]  ;;  %vm11189_vm13 = vmmov %vm11186_vm3 }
 0xbd6   :  { %v4241_v44 = vrot.slane %v4225_v42, 7  ;;  %v4196_v2 = vsub.f32 1.0, %v4195_v41  ;;  %v4203_v48 = vand.u32 2147483647, %v9523_v3  ;;  %v9592_v43 = vsel %vm11187_vm9, 0.0, %v4240_v28  ;;  %vm11190_vm12 = vmmov %vm11186_vm3  ;;  %v11195_v42 = vld [vmem:[#allocation6_spill] sm:$0xff] }
 0xbd7   :  { %4417 = vrot.lane.b32.xlu2 %v4284_v46, %s6085_s28  ;;  %v4247_v39 = vrot.slane %v4228_v59, 7  ;;  %v4192_v26 = vsel %vm9561_vm2, %v4191_v45, %v4187_v1  ;;  %vm4200_vm1 = vweird.f32 %v5988_v47  ;;  %v4281_v55 = vmul.f32 %v11188_v31, %v9592_v43  ;;  %vm11191_vm6 = vmmov %vm11186_vm3  ;;  %v11199_v59 = vld [vmem:[#allocation7_spill] sm:$0xff] }
 0xbd8   :  { %v9599_v12 = vsel %vm11189_vm13, %v4241_v44, %v4243_v6  ;;  %v9602_v60 = vsel %vm11190_vm12, %v4240_v28, %v4241_v44  ;;  %v4197_v24 = vmul.f32 %v5988_v47, %v4196_v2  ;;  %v4205_v40 = vand.u32 2147483648, %v9523_v3  ;;  %vm11192_vm2 = vmmov %vm11186_vm3 }
 0xbd9   :  { %v4283_v7 = vmul.f32 %v6357_v9, %v9599_v12  ;;  %v9607_v20 = vsel %vm11191_vm6, %v4245_v23, %v4247_v39  ;;  %4411 = vrot.lane.b32.xlu0 %v4281_v55, %s6085_s28  ;;  %vm4199_vm8 = vweird.f32 %v9523_v3  ;;  %v4229_v50 = vmul.f32 %v4192_v26, %v9463_v4  ;;  %vm11196_vm10 = vmmov %vm11192_vm2 }
 0xbda   :  { %v4198_v36 = vadd.f32 %v5988_v47, %v4197_v24  ;;  %vm4201_vm14 = vmor %vm4199_vm8, %vm4200_vm1  ;;  %v4206_v38 = vor.u32 1.1754944e-38, %v4205_v40  ;;  %v9615_v14 = vadd.f32 1.0, %v9517_v22  ;;  %v10812_v35 = vrot.slane %v9592_v43, 1  ;;  %v11202_v40 = vld [vmem:[#allocation8_spill] sm:$0xff] }
 0xbdb   :  { %4415 = vrot.lane.b32.xlu1 %v4283_v7, %s6085_s28  ;;  %vm4204_vm15 = vcmp.eq.f32.partialorder %v4203_v48, 8.507059e+37  ;;  %v4249_v51 = vrot.slane %v4229_v50, 7  ;;  %v4317_v49 = vrot.slane %v9602_v60, 1  ;;  %v4301_v27 = vmul.f32 %v6392_v10, %v9607_v20  ;;  %v11203_v50 = vld [vmem:[#allocation9_spill] sm:$0xff] }
 0xbdc   :  { %v4202_v63 = vsel %vm4201_vm14, %v5988_v47, %v4198_v36  ;;  %v4300_v4 = vmul.f32 %v6357_v9, %v9578_v52  ;;  %5989 = vrcp.f32 %v9615_v14  ;;  %v4298_v22 = vmul.f32 %v11188_v31, %v9602_v60 }
 0xbdd   :  { %v4207_v3 = vsel %vm4204_vm15, %v4206_v38, %v4202_v63  ;;  %v9630_v6 = vsel %vm11192_vm2, %v4247_v39, %v4249_v51  ;;  %vm11193_vm4 = vcmask 1046528   ;;  %v4282_v30 = vmul.f32 %v6397_v15, %v9602_v60 }
 0xbde   :  { %v9627_v32 = vmul.f32 %v4207_v3, %v9471_v56  ;;  %v9635_v11 = vsel %vm11193_vm4, %v10812_v35, %v4317_v49  ;;  %v4220_v47 = vand.u32 2147483648, %v9615_v14  ;;  %v9643_v23 = vmul.f32 %v6397_v15, %v9599_v12  ;;  %vm11194_vm11 = vmmov %vm11193_vm4 }
 0xbdf   :  { %4526 = vrot.lane.b32.xlu2 %v4301_v27, %s6097_s16  ;;  %v4319_v56 = vrot.slane %v9599_v12, 1  ;;  %v4218_v5 = vand.u32 2147483647, %v9615_v14  ;;  %v4321_v17 = vrot.slane %v9578_v52, 1  ;;  %v4323_v57 = vrot.slane %v9607_v20, 1  ;;  %vm11197_vm0 = vmmov %vm11193_vm4 }
 0xbe0   :  { %v4251_v54 = vrot.slane %v9627_v32, 7  ;;  %v4286_v37 = vmul.f32 %v6400_v16, %v9630_v6  ;;  %v4325_v41 = vrot.slane %v9630_v6, 1  ;;  %v4289_v29 = vmul.f32 %v9592_v43, %v11195_v42  ;;  %vm11198_vm3 = vmmov %vm11197_vm0 }
 0xbe1   :  { %v9653_v25 = vsel %vm11194_vm11, %v4317_v49, %v4319_v56  ;;  %4520 = vrot.lane.b32.xlu0 %v4298_v22, %s6097_s16  ;;  %vm4214_vm5 = vweird.f32 %v9615_v14  ;;  %v9666_v46 = vsel %vm11197_vm0, %v4319_v56, %v4321_v17  ;;  %v9669_v28 = vsel %vm11198_vm3, %v4321_v17, %v4323_v57  ;;  %vm11200_vm7 = vmmov %vm11197_vm0 }
 0xbe2   :  { %v9662_v62 = vsel %vm11196_vm10, %v4249_v51, %v4251_v54  ;;  %v4290_v45 = vmul.f32 %v9602_v60, %v11199_v59  ;;  %v5990_v44 = vpop.eup %5989  ;;  %v4221_v2 = vor.u32 1.1754944e-38, %v4220_v47  ;;  %v9677_v48 = vsel %vm11200_vm7, %v4323_v57, %v4325_v41  ;;  %vm11201_vm1 = vmmov %vm11197_vm0 }
 0xbe3   :  { %4524 = vrot.lane.b32.xlu1 %v4300_v4, %s6097_s16  ;;  %v4287_v1 = vmul.f32 %v6552_v8, %v9662_v62  ;;  %v10814_v39 = vrot.slane %v9662_v62, 1  ;;  %v4210_v26 = vmul.f32 %v5990_v44, %v9615_v14  ;;  %vm4215_vm9 = vweird.f32 %v5990_v44 }
 0xbe4   :  { %v4471_v31 = vrot.slane %v4289_v29, 2  ;;  %v4472_v55 = vrot.slane %v4290_v45, 2  ;;  %v9688_v7 = vmul.f32 %v9592_v43, %v11199_v59  ;;  %v4274_v36 = vmul.f32 %v9602_v60, %v11202_v40  ;;  %vm4216_vm15 = vmor %vm4214_vm5, %vm4215_vm9 }
 0xbe5   :  { %v9684_v24 = vsel %vm11201_vm1, %v4325_v41, %v10814_v39  ;;  %v4275_v38 = vmul.f32 %v9599_v12, %v11203_v50  ;;  %v4211_v63 = vsub.f32 1.0, %v4210_v26  ;;  %vm11204_vm13 = vcmask 1045504  }
 0xbe6   :  { %v9695_v51 = vsel %vm11204_vm13, %v4471_v31, %v4472_v55  ;;  %v4291_v49 = vmul.f32 %v9599_v12, %v11202_v40  ;;  %v9701_v27 = vmul.f32 %v9578_v52, %v11203_v50  ;;  %v10811_v4 = vrot.slane %v9688_v7, 2  ;;  %vm11205_vm12 = vmmov %vm11204_vm13 }
 0xbe7   :  { %4423 = vrot.lane.b32.xlu2 %v4287_v1, %s6085_s28  ;;  %v4365_v3 = vrot.slane %v4274_v36, 2  ;;  %v4367_v22 = vrot.slane %v4275_v38, 2  ;;  %v9707_v47 = vmul.f32 %v9599_v12, %v11199_v59  ;;  %v4212_v17 = vmul.f32 %v5990_v44, %v4211_v63  ;;  %vm11206_vm6 = vmmov %vm11205_vm12 }
 0xbe8   :  { %v2727_v56 = vpop.xlane.xlu2 %2726  ;;  %v4474_v57 = vrot.slane %v4291_v49, 2  ;;  %v10813_v41 = vrot.slane %v9701_v27, 2  ;;  %v4308_v29 = vmul.f32 %v9578_v52, %v11202_v40  ;;  %vm11207_vm8 = vmmov %vm11206_vm6  ;;  %v4309_v38 = vmul.f32 %v9607_v20, %v11203_v50 }
 0xbe9   :  { %5991 = vrcp.f32 %v2727_v56  ;;  %v9715_v45 = vsel %vm11205_vm12, %v10811_v4, %v4365_v3  ;;  %v9718_v1 = vsel %vm11206_vm6, %v4365_v3, %v4367_v22  ;;  %v4578_v59 = vrot.slane %v9707_v47, 2  ;;  %4413 = vrot.lane.b32.xlu0 %v4282_v30, %s6085_s28  ;;  %vm11208_vm14 = vmmov %vm11206_vm6  ;;  %v11209_v30 = vld [vmem:[#allocation13_spill] sm:$0xff]  ;;  %v11211_v3 = vld [vmem:[#allocation11_spill] sm:$0xff] }
 0xbea   :  { %v4213_v26 = vadd.f32 %v5990_v44, %v4212_v17  ;;  %v9723_v31 = vsel %vm11207_vm8, %v4472_v55, %v4474_v57  ;;  %v9728_v40 = vsel %vm11208_vm14, %v4474_v57, %v10813_v41  ;;  %v4580_v36 = vrot.slane %v4308_v29, 2  ;;  %v11210_v55 = vld [vmem:[#allocation10_spill] sm:$0xff]  ;;  %vm11212_vm4 = vmmov %vm11206_vm6 }
 0xbeb   :  { %4421 = vrot.lane.b32.xlu1 %v4286_v37, %s6085_s28  ;;  %v4276_v63 = vmul.f32 %v9578_v52, %v11209_v30  ;;  %v4277_v49 = vmul.f32 %v9607_v20, %v11210_v55  ;;  %v9742_v47 = vmul.f32 %v9630_v6, %v11211_v3  ;;  %vm4219_vm2 = vcmp.eq.f32.partialorder %v4218_v5, 8.507059e+37  ;;  %vm11213_vm11 = vmmov %vm11212_vm4 }
 0xbec   :  { %v4217_v56 = vsel %vm4216_vm15, %v5990_v44, %v4213_v26  ;;  %v9745_v37 = vsel %vm11212_vm4, %v4578_v59, %v4580_v36  ;;  %v4293_v14 = vmul.f32 %v9607_v20, %v11209_v30  ;;  %v4582_v50 = vrot.slane %v4309_v38, 2  ;;  %vm11214_vm10 = vmmov %vm11212_vm4 }
 0xbed   :  { %v4222_v17 = vsel %vm4219_vm2, %v4221_v2, %v4217_v56  ;;  %v4369_v57 = vrot.slane %v4276_v63, 2  ;;  %v4371_v29 = vrot.slane %v4277_v49, 2  ;;  %v4373_v35 = vrot.slane %v9742_v47, 2  ;;  %vm11215_vm5 = vmmov %vm11212_vm4 }
 0xbee   :  { %v4231_v4 = vmul.f32 %v4222_v17, %v9476_v18  ;;  %v4294_v41 = vmul.f32 %v9630_v6, %v11210_v55  ;;  %v4478_v39 = vrot.slane %v4293_v14, 2  ;;  %v4303_v5 = vmul.f32 %v6400_v16, %v9662_v62  ;;  %vm11219_vm9 = vmmov %vm11212_vm4 }
 0xbef   :  { %v5992_v44 = vpop.eup %5991  ;;  %v9756_v26 = vsel %vm11213_vm11, %v4580_v36, %v4582_v50  ;;  %v9759_v2 = vsel %vm11214_vm10, %v4369_v57, %v4371_v29  ;;  %v4295_v38 = vmul.f32 %v9662_v62, %v11211_v3  ;;  %v9765_v49 = vsel %vm11215_vm5, %v4371_v29, %v4373_v35  ;;  %vm11220_vm1 = vmmov %vm11212_vm4 }
 0xbf0   :  { %v4253_v18 = vrot.slane %v4231_v4, 7  ;;  %v2743_v63 = vmul.f32 %v5992_v44, %v9417_v0  ;;  %v4480_v47 = vrot.slane %v4294_v41, 2  ;;  %v4306_v14 = vmul.f32 %v9602_v60, %v11195_v42  ;;  %vm11221_vm13 = vmmov %vm11220_vm1 }
 0xbf1   :  { %v4482_v56 = vrot.slane %v4295_v38, 2  ;;  %v4310_v36 = vmul.f32 %v9630_v6, %v11209_v30  ;;  %v4311_v17 = vmul.f32 %v9662_v62, %v11210_v55  ;;  %vm11216_vm0 = vcmask 1040384   ;;  %4522 = vrot.lane.b32.xlu0 %v9643_v23, %s6097_s16  ;;  %vm11226_vm8 = vmmov %vm11220_vm1 }
 0xbf2   :  { %v4254_v4 = vsel %vm11216_vm0, %v4251_v54, %v4253_v18  ;;  %vm11217_vm3 = vcmask 523264   ;;  %vm11218_vm7 = vmmov %vm11216_vm0  ;;  %v9783_v42 = vsel %vm11219_vm9, %v4478_v39, %v4480_v47  ;;  %v9786_v41 = vsel %vm11220_vm1, %v4367_v22, %v4369_v57 }
 0xbf3   :  { %5585 = vmatmul.msk.f32.gmra.mxu1 %vm11217_vm3, %v2743_v63  ;;  %v9780_v0 = vsel %vm11218_vm7, %v4253_v18, 0.0  ;;  %v4304_v30 = vmul.f32 %v6552_v8, %v4254_v4  ;;  %4530 = vrot.lane.b32.xlu1 %v4303_v5, %s6097_s16  ;;  %v4329_v32 = vrot.slane %v4254_v4, 1  ;;  %v9792_v23 = vsel %vm11221_vm13, %v4480_v47, %v4482_v56  ;;  %v11225_v18 = vld [vmem:[#allocation14_spill] sm:$0xff]  ;;  %vm11227_vm14 = vmmov %vm11220_vm1 }
 0xbf4   :  { %v10815_v54 = vrot.slane %v9780_v0, 1  ;;  %v4577_v55 = vrot.slane %v4306_v14, 2  ;;  %v4584_v29 = vrot.slane %v4310_v36, 2  ;;  %v4586_v44 = vrot.slane %v4311_v17, 2  ;;  %v11228_v36 = vld [vmem:[#allocation12_spill] sm:$0xff]  ;;  %vm11230_vm15 = vmmov %vm11220_vm1 }
 0xbf5   :  { %4532 = vrot.lane.b32.xlu2 %v4304_v30, %s6097_s16  ;;  %v11222_v38 = vrot.slane %v9662_v62, 1  ;;  %vm11223_vm12 = vcmask 1046528   ;;  %v4312_v5 = vmul.f32 %v4254_v4, %v11211_v3  ;;  %v4279_v63 = vmul.f32 %v9662_v62, %v11225_v18  ;;  %vm11231_vm2 = vmmov %vm11220_vm1 }
 0xbf6   :  { %vm11224_vm6 = vmmov %vm11223_vm12  ;;  %v9809_v47 = vsel %vm11226_vm8, %v4577_v55, %v4578_v59  ;;  %v9812_v14 = vsel %vm11227_vm14, %v4584_v29, %v4586_v44  ;;  %v4280_v17 = vmul.f32 %v4254_v4, %v11228_v36  ;;  %v11229_v30 = vrot.slane %v9701_v27, 2 }
 0xbf7   :  { %v9798_v22 = vsel %vm11223_vm12, %v11222_v38, %v4329_v32  ;;  %v9803_v57 = vsel %vm11224_vm6, %v4329_v32, %v10815_v54  ;;  %v4588_v32 = vrot.slane %v4312_v5, 2  ;;  %v4375_v54 = vrot.slane %v4279_v63, 2  ;;  %vm11232_vm4 = vmmov %vm11220_vm1 }
 0xbf8   :  { %v9818_v38 = vsel %vm11230_vm15, %v11229_v30, %v4478_v39  ;;  %v4296_v3 = vmul.f32 %v4254_v4, %v11225_v18  ;;  %v4297_v34 = vmul.f32 %v9780_v0, %v11228_v36  ;;  %v4285_v59 = vmul.f32 %v6570_v19, %v9607_v20  ;;  %vm11233_vm11 = vmmov %vm11220_vm1  ;;  %v11242_v30 = vld [vmem:[#allocation15_spill] sm:$0xff] }
 0xbf9   :  { %v4377_v55 = vrot.slane %v4280_v17, 2  ;;  %v9826_v21 = vsel %vm11231_vm2, %v4582_v50, %v4584_v29  ;;  %v9829_v53 = vsel %vm11232_vm4, %v4586_v44, %v4588_v32  ;;  %v9833_v5 = vmul.f32 %v9780_v0, %v11225_v18  ;;  %vm11234_vm10 = vmmov %vm11220_vm1  ;;  %v6071_v44 = vld [vmem:[%s10673_s0 + $0x40] sm:$0xff]  ;;  %v6073_v18 = vld [vmem:[%s10673_s0 + $0x50] sm:$0xff] }
 0xbfa   :  { %v4484_v27 = vrot.slane %v4296_v3, 2  ;;  %v4486_v39 = vrot.slane %v4297_v34, 2  ;;  %4419 = vrot.lane.b32.xlu0 %v4285_v59, %s6085_s28  ;;  %v9840_v36 = vsel %vm11234_vm10, %v4373_v35, %v4375_v54  ;;  %vm11235_vm5 = vmmov %vm11220_vm1  ;;  %vm11237_vm3 = vcmask 31744   ;;  %v6075_v3 = vld [vmem:[%s10673_s0 + $0x60] sm:$0xff]  ;;  %v6076_v59 = vld [vmem:[%s10673_s0 + $0x68] sm:$0xff] }
 0xbfb   :  { %v9837_v63 = vsel %vm11233_vm11, %v4375_v54, %v4377_v55  ;;  %4438 = vrot.lane.b32.xlu1 %v9635_v11, %s6091_s13  ;;  %v4590_v34 = vrot.slane %v9833_v5, 2  ;;  %vm11236_vm0 = vmmov %vm11220_vm1  ;;  %5628 = vmatmul.msk.f32.vlgmr.msra.gmra.mxu1 %vm11237_vm3, %v6071_v44  ;;  %v4302_v54 = vmul.f32 %v6570_v19, %v9630_v6  ;;  %v11241_v17 = vrot.slane %v9592_v43, 1 }
 0xbfc   :  { %v9845_v50 = vsel %vm11235_vm5, %v4484_v27, %v4486_v39  ;;  %v9849_v29 = vsel %vm11236_vm0, %v4482_v56, %v4484_v27  ;;  %vm11238_vm7 = vmmov %vm11236_vm0  ;;  %v6072_v56 = vld [vmem:[%s10673_s0 + $0x48] sm:$0xff]  ;;  %vm11254_vm4 = vcmask 64512  }
 0xbfd   :  { %4333 = vrot.lane.b32.xlu2 %v9635_v11, %s6089_s11  ;;  %v9860_v35 = vsel %vm11238_vm7, %v4588_v32, %v4590_v34  ;;  %vm11239_vm9 = vmmov %vm11237_vm3  ;;  %v4288_v11 = vmul.f32 %v6639_v33, %v4254_v4  ;;  %v6074_v4 = vld [vmem:[%s10673_s0 + $0x58] sm:$0xff] }
 0xbfe   :  { %vm11240_vm1 = vmmov %vm11237_vm3 }
 0xbff   :  { %vm11243_vm13 = vmmov %vm11224_vm6 }
 0xc00   :  { %v4316_v32 = vsel %vm11243_vm13, %v11242_v30, %v11241_v17  ;;  %vm11244_vm12 = vmmov %vm11240_vm1 }
 0xc01   :  { %vm11245_vm6 = vmmov %vm11240_vm1 }
 0xc02   :  { %4528 = vrot.lane.b32.xlu0 %v4302_v54, %s6097_s16  ;;  %vm11246_vm8 = vmmov %vm11240_vm1 }
 0xc03   :  { %4337 = vrot.lane.b32.xlu1 %v9666_v46, %s6089_s11  ;;  %5629 = vmatmul.msk.f32.gmra.mxu1 %vm11239_vm9, %v6072_v56  ;;  %vm11247_vm14 = vmmov %vm11240_vm1 }
 0xc04   :  { %vm11248_vm15 = vmmov %vm11240_vm1 }
 0xc05   :  { %4440 = vrot.lane.b32.xlu2 %v9653_v25, %s6091_s13  ;;  %vm11253_vm2 = vmmov %vm11236_vm0 }
 0xc06   :  { %vm11255_vm11 = vmmov %vm11254_vm4 }
 0xc07   :  { %vm11257_vm10 = vmmov %vm11236_vm0 }
 0xc08   :  { %vm11259_vm5 = vmmov %vm11243_vm13 }
 0xc09   :  { %vm11260_vm0 = vmmov %vm11254_vm4 }
 0xc0a   :  { %4425 = vrot.lane.b32.xlu0 %v4288_v11, %s6085_s28  ;;  %v4272_v11 = vmul.f32 %v6639_v33, %v9662_v62  ;;  %vm11261_vm3 = vmmov %vm11260_vm0  ;;  %v4267_v62 = vmul.f32 %v6357_v9, %v9602_v60  ;;  %v10085_v9 = vmul.f32 0.35355338, %v9356_v61 }
 0xc0b   :  { %4444 = vrot.lane.b32.xlu1 %v9669_v28, %s6091_s13  ;;  %5630 = vmatmul.msk.f32.gmra.mxu1 %vm11240_vm1, %v6073_v18  ;;  %vm11262_vm7 = vmmov %vm11260_vm0  ;;  %vm11264_vm1 = vcmask 523264  }
 0xc0c   :  { %vm11263_vm9 = vmmov %vm11260_vm0 }
 0xc0d   :  { %4547 = vrot.lane.b32.xlu2 %v9666_v46, %s6098_s4  ;;  %vm11265_vm13 = vmmov %vm11264_vm1 }
 0xc12   :  { %4331 = vrot.lane.b32.xlu0 %v4316_v32, %s6089_s11 }
 0xc13   :  { %4551 = vrot.lane.b32.xlu1 %v9677_v48, %s6098_s4  ;;  %5631 = vmatmul.msk.f32.gmra.mxu1 %vm11244_vm12, %v6074_v4  ;;  %v4305_v4 = vmul.f32 %v6639_v33, %v9780_v0  ;;  %vm11266_vm12 = vmmov %vm11264_vm1 }
 0xc15   :  { %4339 = vrot.lane.b32.xlu2 %v9669_v28, %s6089_s11 }
 0xc1a   :  { %4545 = vrot.lane.b32.xlu0 %v9653_v25, %s6098_s4 }
 0xc1b   :  { %4343 = vrot.lane.b32.xlu1 %v9684_v24, %s6089_s11  ;;  %5632 = vmatmul.msk.f32.gmra.mxu1 %vm11245_vm6, %v6075_v3  ;;  %vm11267_vm6 = vmmov %vm11260_vm0 }
 0xc1d   :  { %4446 = vrot.lane.b32.xlu2 %v9677_v48, %s6091_s13 }
 0xc22   :  { %4335 = vrot.lane.b32.xlu0 %v9653_v25, %s6089_s11  ;;  %v6077_v25 = vld [vmem:[%s10673_s0 + $0x70] sm:$0xff] }
 0xc23   :  { %4450 = vrot.lane.b32.xlu1 %v9798_v22, %s6091_s13  ;;  %5633 = vmatmul.msk.f32.gmra.mxu1 %vm11246_vm8, %v6076_v59  ;;  %vm11269_vm8 = vmmov %vm11264_vm1 }
 0xc25   :  { %4553 = vrot.lane.b32.xlu2 %v9684_v24, %s6098_s4 }
 0xc2a   :  { %4442 = vrot.lane.b32.xlu0 %v9666_v46, %s6091_s13  ;;  %v6078_v46 = vld [vmem:[%s10673_s0 + $0x78] sm:$0xff]  ;;  %s11250_s0 = smov 64  }
 0xc2b   :  { %4557 = vrot.lane.b32.xlu1 %v9803_v57, %s6098_s4  ;;  %5634 = vmatmul.msk.f32.gmra.mxu1 %vm11247_vm14, %v6077_v25  ;;  %vm11271_vm14 = vmmov %vm11260_vm0 }
 0xc2d   :  { %4345 = vrot.lane.b32.xlu2 %v9798_v22, %s6089_s11 }
 0xc31   :  { %v9926_v55 = vpop.permute.xlu2 %4417 }
 0xc32   :  { %4549 = vrot.lane.b32.xlu0 %v9669_v28, %s6098_s4 }
 0xc33   :  { %4381 = vrot.lane.b32.xlu1 %v9715_v45, %s6088_s10  ;;  %5635 = vmatmul.msk.f32.gmra.mxu1 %vm11248_vm15, %v6078_v46  ;;  %v11251_v45 = vrot.slane %v9688_v7, 2  ;;  %vm11272_vm15 = vcmask 130048  }
 0xc35   :  { %4488 = vrot.lane.b32.xlu2 %v9695_v51, %s11249_s3 }
 0xc39   :  { %v9942_v27 = vpop.permute.xlu2 %4526 }
 0xc3a   :  { %4341 = vrot.lane.b32.xlu0 %v9677_v48, %s6089_s11 }
 0xc3b   :  { %4490 = vrot.lane.b32.xlu1 %v9723_v31, %s11249_s3 }
 0xc3d   :  { %4383 = vrot.lane.b32.xlu2 %v9718_v1, %s6088_s10  ;;  %v11252_v1 = vld [vmem:[#allocation16_spill] sm:$0xff] }
 0xc3e   :  { %v4364_v31 = vsel %vm11253_vm2, %v11252_v1, %v11251_v45  ;;  %vm11273_vm2 = vcmask 195584  }
 0xc41   :  { %v9952_v28 = vpop.permute.xlu2 %4423 }
 0xc42   :  { %4448 = vrot.lane.b32.xlu0 %v9684_v24, %s6091_s13 }
 0xc43   :  { %4595 = vrot.lane.b32.xlu1 %v9745_v37, %s11250_s0 }
 0xc45   :  { %4492 = vrot.lane.b32.xlu2 %v9728_v40, %s11249_s3 }
 0xc4a   :  { %4555 = vrot.lane.b32.xlu0 %v9798_v22, %s6098_s4 }
 0xc4b   :  { %4387 = vrot.lane.b32.xlu1 %v9759_v2, %s6088_s10  ;;  %v9958_v48 = vpop.permute.xlu0 %4411 }
 0xc4d   :  { %4597 = vrot.lane.b32.xlu2 %v9756_v26, %s11250_s0  ;;  %v9962_v24 = vpop.permute.xlu1 %4415  ;;  %v4266_v26 = vmul.f32 %v6397_v15, %v9592_v43 }
 0xc4f   :  { %v9964_v51 = vpop.permute.xlu2 %4532 }
 0xc52   :  { %4379 = vrot.lane.b32.xlu0 %v4364_v31, %s6088_s10 }
 0xc53   :  { %4496 = vrot.lane.b32.xlu1 %v9783_v42, %s11249_s3  ;;  %v9973_v40 = vpop.permute.xlu0 %4520 }
 0xc55   :  { %4389 = vrot.lane.b32.xlu2 %v9765_v49, %s6088_s10  ;;  %v9977_v37 = vpop.permute.xlu1 %4524 }
 0xc57   :  { %v4334_v2 = vpop.permute.xlu2 %4333 }
 0xc58   :  { %v9982_v7 = vsel %vm11254_vm4, %v4266_v26, %v4334_v2  ;;  %v11268_v2 = vld [vmem:[#allocation43_spill] sm:$0xff]  ;;  %vm11274_vm4 = vmmov %vm11272_vm15 }
 0xc5a   :  { %4593 = vrot.lane.b32.xlu0 %v9809_v47, %s11250_s0 }
 0xc5b   :  { %4601 = vrot.lane.b32.xlu1 %v9812_v14, %s11250_s0  ;;  %v9988_v42 = vpop.permute.xlu0 %4413 }
 0xc5d   :  { %4498 = vrot.lane.b32.xlu2 %v9792_v23, %s11249_s3  ;;  %v9992_v49 = vpop.permute.xlu1 %4421 }
 0xc5f   :  { %v9994_v22 = vpop.permute.xlu2 %4440 }
 0xc62   :  { %4385 = vrot.lane.b32.xlu0 %v9786_v41, %s6088_s10 }
 0xc63   :  { %4393 = vrot.lane.b32.xlu1 %v9837_v63, %s6088_s10  ;;  %v10000_v15 = vpop.permute.xlu0 %4522 }
 0xc65   :  { %4603 = vrot.lane.b32.xlu2 %v9829_v53, %s11250_s0  ;;  %v10004_v43 = vpop.permute.xlu1 %4530  ;;  %v4269_v53 = vmul.f32 %v6570_v19, %v9578_v52  ;;  %v4268_v52 = vmul.f32 %v6392_v10, %v9599_v12 }
 0xc67   :  { %v10006_v47 = vpop.permute.xlu2 %4547 }
 0xc6a   :  { %4494 = vrot.lane.b32.xlu0 %v9818_v38, %s11249_s3  ;;  %v11256_v38 = vld [vmem:[#allocation17_spill] sm:$0xff] }
 0xc6b   :  { %4502 = vrot.lane.b32.xlu1 %v9845_v50, %s11249_s3  ;;  %v4592_v63 = vsel %vm11257_vm10, %v4590_v34, %v11256_v38  ;;  %vm11276_vm10 = vcmask 326656  }
 0xc6c   :  { %v10012_v23 = vpop.permute.xlu0 %4419 }
 0xc6d   :  { %4452 = vrot.lane.b32.xlu2 %v9803_v57, %s6091_s13  ;;  %v10016_v41 = vpop.permute.xlu1 %4438  ;;  %v11258_v57 = vrot.slane %v9780_v0, 1 }
 0xc6f   :  { %v4340_v14 = vpop.permute.xlu2 %4339  ;;  %v4544_v50 = vsel %vm11259_vm5, %v11258_v57, %v11242_v30  ;;  %v4271_v30 = vmul.f32 %v6552_v8, %v9630_v6  ;;  %v10078_v8 = vmul.f32 0.35355338, %v9352_v13  ;;  %v4270_v13 = vmul.f32 %v6400_v16, %v9607_v20  ;;  %v11270_v20 = vld [vmem:[#allocation18_spill] sm:$0xff] }
 0xc70   :  { %v10021_v39 = vsel %vm11255_vm11, %v4269_v53, %v4340_v14  ;;  %v10099_v53 = vmul.f32 0.35355338, %v11268_v2  ;;  %vm11275_vm11 = vcmask 261120   ;;  %vm11277_vm5 = vcmask 392192  }
 0xc71   :  { %v2659_v33 = vsel %vm11265_vm13, %v10078_v8, -inf  ;;  %vm11283_vm13 = vcmask 588800  }
 0xc72   :  { %4599 = vrot.lane.b32.xlu0 %v9826_v21, %s11250_s0  ;;  %v2656_v14 = vsel %vm11269_vm8, %v10099_v53, -inf }
 0xc73   :  { %4607 = vrot.lane.b32.xlu1 %v4592_v63, %s11250_s0 }
 0xc74   :  { %v10034_v19 = vpop.permute.xlu0 %4528 }
 0xc75   :  { %4559 = vrot.lane.b32.xlu2 %v4544_v50, %s6098_s4  ;;  %v4338_v21 = vpop.permute.xlu1 %4337 }
 0xc76   :  { %v10040_v44 = vsel %vm11260_vm0, %v4268_v52, %v4338_v21  ;;  %vm11278_vm0 = vmmov %vm11273_vm2 }
 0xc77   :  { %v10042_v5 = vpop.permute.xlu2 %4446  ;;  %vm11286_vm8 = vmmov %vm11278_vm0 }
 0xc7a   :  { %4391 = vrot.lane.b32.xlu0 %v9840_v36, %s6088_s10 }
 0xc7c   :  { %v10046_v34 = vpop.permute.xlu0 %4425 }
 0xc7d   :  { %v10048_v54 = vpop.permute.xlu1 %4444 }
 0xc7f   :  { %v10050_v56 = vpop.permute.xlu2 %4553 }
 0xc82   :  { %4500 = vrot.lane.b32.xlu0 %v9849_v29, %s11249_s3 }
 0xc84   :  { %v4332_v10 = vpop.permute.xlu0 %4331 }
 0xc85   :  { %v10054_v12 = vpop.permute.xlu1 %4551  ;;  %v4617_v57 = vsel %vm11271_vm14, %v11270_v20, %v4332_v10 }
 0xc87   :  { %v4346_v18 = vpop.permute.xlu2 %4345 }
 0xc88   :  { %v10059_v17 = vsel %vm11261_vm3, %v4272_v11, %v4346_v18  ;;  %vm11279_vm3 = vcmask 457728  }
 0xc8a   :  { %4605 = vrot.lane.b32.xlu0 %v9860_v35, %s11250_s0  ;;  %v10075_v35 = vmul.f32 0.35355338, %v9354_v58  ;;  %v2665_v58 = vsel %vm11266_vm12, %v10085_v9, -inf  ;;  %vm11284_vm12 = vmmov %vm11274_vm4 }
 0xc8c   :  { %v4546_v36 = vpop.permute.xlu0 %4545  ;;  %v2662_v25 = vsel %vm11264_vm1, %v10075_v35, -inf }
 0xc8d   :  { %v4344_v32 = vpop.permute.xlu1 %4343 }
 0xc8e   :  { %v10066_v29 = vsel %vm11262_vm7, %v4271_v30, %v4344_v32  ;;  %vm11280_vm7 = vmmov %vm11275_vm11 }
 0xc8f   :  { %v4489_v26 = vpop.permute.xlu2 %4488  ;;  %vm11287_vm14 = vmmov %vm11280_vm7 }
 0xc92   :  { %4534 = vrot.lane.b32.xlu0 %v4305_v4, %s6097_s16 }
 0xc94   :  { %v4336_v3 = vpop.permute.xlu0 %4335 }
 0xc95   :  { %v4619_v59 = vsel %vm11263_vm9, %v4267_v62, %v4336_v3  ;;  %v10087_v60 = vpop.permute.xlu1 %4450  ;;  %vm11281_vm9 = vmmov %vm11264_vm1 }
 0xc96   :  { %vm11282_vm1 = vmmov %vm11276_vm10 }
 0xc97   :  { %v4384_v63 = vpop.permute.xlu2 %4383 }
 0xc9c   :  { %v4443_v6 = vpop.permute.xlu0 %4442 }
 0xc9d   :  { %2663 = vmax.xlane.f32.xlu1 %v2662_v25  ;;  %v10093_v46 = vpop.permute.xlu1 %4557 }
 0xc9e   :  { %2660 = vmax.xlane.f32.xlu2 %v2659_v33  ;;  %v4627_v33 = vsel %vm11284_vm12, %v4619_v59, %v4384_v63 }
 0xc9f   :  { %v4493_v32 = vpop.permute.xlu2 %4492 }
 0xca4   :  { %v4550_v0 = vpop.permute.xlu0 %4549 }
 0xca5   :  { %v4382_v61 = vpop.permute.xlu1 %4381 }
 0xca6   :  { %2666 = vmax.xlane.f32.xlu2 %v2665_v58  ;;  %v4626_v11 = vsel %vm11274_vm4, %v9982_v7, %v4382_v61 }
 0xca7   :  { %v4634_v10 = vsel %vm11278_vm0, %v4626_v11, %v9988_v42  ;;  %v4635_v42 = vsel %vm11286_vm8, %v4627_v33, %v9962_v24 }
 0xca8   :  { %v4643_v58 = vsel %vm11287_vm14, %v4635_v42, %v4443_v6 }
 0xcac   :  { %v4342_v45 = vpop.permute.xlu0 %4341 }
 0xcad   :  { %v4622_v1 = vsel %vm11267_vm6, %v4270_v13, %v4342_v45  ;;  %v4491_v16 = vpop.permute.xlu1 %4490  ;;  %vm11285_vm6 = vmmov %vm11277_vm5 }
 0xcb4   :  { %v10096_v31 = vpop.permute.xlu0 %4448 }
 0xcb5   :  { %v4596_v62 = vpop.permute.xlu1 %4595 }
 0xcbc   :  { %2657 = vmax.xlane.f32.xlu0 %v2656_v14  ;;  %v10103_v38 = vpop.permute.xlu0 %4555 }
 0xcbd   :  { %v4388_v13 = vpop.permute.xlu1 %4387 }
 0xcc4   :  { %v4380_v50 = vpop.permute.xlu0 %4379 }
 0xcc5   :  { %v4625_v52 = vsel %vm11272_vm15, %v4617_v57, %v4380_v50  ;;  %vm11288_vm15 = vmmov %vm11279_vm3  ;;  %v4497_v63 = vpop.permute.xlu1 %4496 }
 0xcc6   :  { %v4633_v21 = vsel %vm11273_vm2, %v4625_v52, %v9958_v48  ;;  %v4642_v48 = vsel %vm11280_vm7, %v4634_v10, %v9994_v22  ;;  %vm11289_vm2 = vmmov %vm11274_vm4 }
 0xcc7   :  { %v4641_v18 = vsel %vm11275_vm11, %v4633_v21, %v10016_v41  ;;  %v4650_v41 = vsel %vm11282_vm1, %v4642_v48, %v4491_v16  ;;  %vm11290_vm4 = vmmov %vm11281_vm9 }
 0xcc8   :  { %v4649_v30 = vsel %vm11276_vm10, %v4641_v18, %v4489_v26  ;;  %vm11291_vm11 = vmmov %vm11282_vm1 }
 0xcc9   :  { %v4657_v4 = vsel %vm11277_vm5, %v4649_v30, %v9973_v40  ;;  %v4658_v40 = vsel %vm11285_vm6, %v4650_v41, %v10000_v15  ;;  %v4651_v59 = vsel %vm11291_vm11, %v4643_v58, %v4493_v32  ;;  %vm11292_vm10 = vmmov %vm11278_vm0 }
 0xcca   :  { %v4665_v25 = vsel %vm11279_vm3, %v4657_v4, %v4546_v36  ;;  %v4598_v36 = vpop.permute.xlu2 %4597  ;;  %v4666_v22 = vsel %vm11288_vm15, %v4658_v40, %v10006_v47  ;;  %vm11293_vm5 = vmmov %vm11283_vm13 }
 0xccb   :  { %v4674_v61 = vsel %vm11290_vm4, %v4666_v22, %v4596_v62  ;;  %vm11294_vm0 = vmmov %vm11280_vm7 }
 0xccc   :  { %v4594_v3 = vpop.permute.xlu0 %4593  ;;  %vm11295_vm3 = vmmov %vm11285_vm6 }
 0xccd   :  { %v4673_v7 = vsel %vm11281_vm9, %v4665_v25, %v4594_v3  ;;  %v4659_v6 = vsel %vm11295_vm3, %v4651_v59, %v9977_v37  ;;  %vm11296_vm7 = vmmov %vm11288_vm15 }
 0xcce   :  { %5619 = vmatmul.msk.f32.vlgmr.msra.gmra.mxu3 %vm11283_vm13, %v4673_v7  ;;  %v4667_v47 = vsel %vm11296_vm7, %v4659_v6, %v4550_v0  ;;  %vm11297_vm9 = vmmov %vm11290_vm4 }
 0xccf   :  { %vm11298_vm13 = vmmov %vm11293_vm5 }
 0xcd0   :  { %vm11299_vm12 = vmmov %vm11289_vm2 }
 0xcd1   :  { %vm11300_vm6 = vmmov %vm11295_vm3 }
 0xcd2   :  { %v4390_v14 = vpop.permute.xlu2 %4389  ;;  %vm11301_vm14 = vmmov %vm11296_vm7 }
 0xcd3   :  { %vm11302_vm15 = vmmov %vm11294_vm0 }
 0xcd4   :  { %v4386_v45 = vpop.permute.xlu0 %4385  ;;  %vm11305_vm11 = vmmov %vm11293_vm5 }
 0xcd5   :  { %v4628_v26 = vsel %vm11289_vm2, %v10040_v44, %v4386_v45  ;;  %v4675_v44 = vsel %vm11297_vm9, %v4667_v47, %v4598_v36  ;;  %vm11303_vm2 = vmmov %vm11290_vm4 }
 0xcd6   :  { %v4636_v15 = vsel %vm11292_vm10, %v4628_v26, %v9926_v55  ;;  %5620 = vmatmul.msk.f32.gmra.mxu3 %vm11293_vm5, %v4674_v61  ;;  %v4629_v55 = vsel %vm11299_vm12, %v10021_v39, %v4388_v13  ;;  %vm11304_vm4 = vmmov %vm11282_vm1  ;;  %v10207_v61 = vpop.f32.mrf.mxu1 }
 0xcd7   :  { %v4644_v24 = vsel %vm11294_vm0, %v4636_v15, %v10048_v54  ;;  %v4637_v37 = vsel %vm11286_vm8, %v4629_v55, %v10012_v23  ;;  %vm11306_vm10 = vmmov %vm11299_vm12 }
 0xcd8   :  { %v4645_v57 = vsel %vm11302_vm15, %v4637_v37, %v10042_v5  ;;  %v4630_v39 = vsel %vm11306_vm10, %v4622_v1, %v4390_v14  ;;  %vm11307_vm5 = vmmov %vm11295_vm3  ;;  %v11333_v37 = vld [vmem:[#allocation25_spill] sm:$0xff] }
 0xcd9   :  { %v4653_v52 = vsel %vm11304_vm4, %v4645_v57, %v4497_v63  ;;  %vm11308_vm0 = vmmov %vm11286_vm8 }
 0xcda   :  { %v4499_v21 = vpop.permute.xlu2 %4498  ;;  %v4661_v23 = vsel %vm11307_vm5, %v4653_v52, %v10034_v19  ;;  %v4638_v11 = vsel %vm11308_vm0, %v4630_v39, %v9992_v49  ;;  %vm11309_vm3 = vmmov %vm11302_vm15 }
 0xcdb   :  { %v4669_v18 = vsel %vm11296_vm7, %v4661_v23, %v10050_v56  ;;  %vm11310_vm9 = vmmov %vm11306_vm10 }
 0xcdc   :  { %v4495_v2 = vpop.permute.xlu0 %4494  ;;  %vm11313_vm12 = vmmov %vm11308_vm0 }
 0xcdd   :  { %v4652_v16 = vsel %vm11282_vm1, %v4644_v24, %v4495_v2  ;;  %vm11311_vm1 = vmmov %vm11303_vm2 }
 0xcde   :  { %5621 = vmatmul.msk.f32.gmra.mxu3 %vm11298_vm13, %v4675_v44  ;;  %v4660_v54 = vsel %vm11300_vm6, %v4652_v16, %v9942_v27  ;;  %v4602_v27 = vpop.permute.xlu1 %4601  ;;  %vm11312_vm13 = vmmov %vm11304_vm4  ;;  %v10209_v59 = vpop.f32.mrf.mxu1 }
 0xcdf   :  { %v4668_v0 = vsel %vm11301_vm14, %v4660_v54, %v10054_v12  ;;  %v4646_v12 = vsel %vm11309_vm3, %v4638_v11, %v10096_v31  ;;  %v4677_v1 = vsel %vm11311_vm1, %v4669_v18, %v4602_v27  ;;  %vm11314_vm6 = vmmov %vm11305_vm11 }
 0xce0   :  { %v4654_v32 = vsel %vm11312_vm13, %v4646_v12, %v4499_v21  ;;  %vm11315_vm8 = vmmov %vm11309_vm3  ;;  %v11334_v12 = vld [vmem:[#allocation26_spill] sm:$0xff] }
 0xce1   :  { %vm11316_vm14 = vmmov %vm11307_vm5 }
 0xce2   :  { %v4604_v31 = vpop.permute.xlu2 %4603  ;;  %v4662_v4 = vsel %vm11316_vm14, %v4654_v32, %v10004_v43  ;;  %vm11317_vm15 = vmmov %vm11296_vm7 }
 0xce3   :  { %v4670_v56 = vsel %vm11317_vm15, %v4662_v4, %v10103_v38  ;;  %vm11320_vm10 = vmmov %vm11307_vm5 }
 0xce4   :  { %v4600_v20 = vpop.permute.xlu0 %4599  ;;  %vm11321_vm5 = vmmov %vm11296_vm7 }
 0xce5   :  { %v4676_v50 = vsel %vm11303_vm2, %v4668_v0, %v4600_v20  ;;  %vm11318_vm2 = vmmov %vm11311_vm1 }
 0xce6   :  { %5622 = vmatmul.msk.f32.gmra.mxu3 %vm11305_vm11, %v4676_v50  ;;  %v4678_v62 = vsel %vm11318_vm2, %v4670_v56, %v4604_v31  ;;  %vm11319_vm11 = vmmov %vm11314_vm6  ;;  %v10211_v15 = vpop.f32.mrf.mxu1 }
 0xce7   :  { %vm11322_vm0 = vmmov %vm11310_vm9 }
 0xce8   :  { %vm11323_vm3 = vmmov %vm11311_vm1 }
 0xce9   :  { %vm11324_vm7 = vmmov %vm11314_vm6 }
 0xcea   :  { %v4453_v25 = vpop.permute.xlu2 %4452  ;;  %vm11326_vm1 = vmmov %vm11315_vm8 }
 0xceb   :  { %vm11327_vm13 = vmmov %vm11304_vm4 }
 0xcec   :  { %v4392_v5 = vpop.permute.xlu0 %4391  ;;  %vm11331_vm14 = vmmov %vm11324_vm7 }
 0xced   :  { %v4631_v30 = vsel %vm11310_vm9, %v10066_v29, %v4392_v5  ;;  %v4394_v29 = vpop.permute.xlu1 %4393  ;;  %vm11325_vm9 = vmmov %vm11313_vm12 }
 0xcee   :  { %v4639_v19 = vsel %vm11313_vm12, %v4631_v30, %v9952_v28  ;;  %5623 = vmatmul.msk.f32.gmra.mxu3 %vm11314_vm6, %v4677_v1  ;;  %v4632_v38 = vsel %vm11322_vm0, %v10059_v17, %v4394_v29  ;;  %vm11328_vm12 = vmmov %vm11320_vm10  ;;  %v10213_v24 = vpop.f32.mrf.mxu1 }
 0xcef   :  { %v4647_v49 = vsel %vm11315_vm8, %v4639_v19, %v10087_v60  ;;  %v4640_v41 = vsel %vm11325_vm9, %v4632_v38, %v10046_v34  ;;  %vm11329_vm6 = vmmov %vm11321_vm5 }
 0xcf0   :  { %v4648_v33 = vsel %vm11326_vm1, %v4640_v41, %v4453_v25  ;;  %vm11330_vm8 = vmmov %vm11318_vm2 }
 0xcf1   :  { %vm11332_vm15 = vmmov %vm11318_vm2  ;;  %vm11337_vm2 = vcmask 64512  }
 0xcf2   :  { %v4560_v42 = vpop.permute.xlu2 %4559  ;;  %vm11342_vm0 = vmmov %vm11337_vm2 }
 0xcf3   :  { %vm11345_vm9 = vmmov %vm11342_vm0 }
 0xcf4   :  { %v4501_v10 = vpop.permute.xlu0 %4500  ;;  %vm11346_vm1 = vmmov %vm11342_vm0 }
 0xcf5   :  { %v4655_v3 = vsel %vm11304_vm4, %v4647_v49, %v4501_v10  ;;  %v4503_v60 = vpop.permute.xlu1 %4502  ;;  %v11335_v49 = vld [vmem:[#allocation21_spill] sm:$0xff]  ;;  %vm11338_vm4 = vmmov %vm11337_vm2 }
 0xcf6   :  { %5624 = vmatmul.msk.f32.gmra.mxu3 %vm11319_vm11, %v4678_v62  ;;  %v4663_v28 = vsel %vm11320_vm10, %v4655_v3, %v9964_v51  ;;  %v4656_v51 = vsel %vm11327_vm13, %v4648_v33, %v4503_v60  ;;  %v4787_v6 = vpop.f32.mrf.mxu1  ;;  %v11336_v60 = vld [vmem:[#allocation22_spill] sm:$0xff]  ;;  %vm11339_vm11 = vmmov %vm11337_vm2 }
 0xcf7   :  { %v4671_v43 = vsel %vm11321_vm5, %v4663_v28, %v10093_v46  ;;  %vm11340_vm10 = vmmov %vm11337_vm2 }
 0xcf8   :  { %vm11341_vm5 = vmmov %vm11337_vm2 }
 0xcf9   :  { %vm11347_vm13 = vmmov %vm11342_vm0 }
 0xcfc   :  { %v4606_v48 = vpop.permute.xlu0 %4605 }
 0xcfd   :  { %v4679_v7 = vsel %vm11323_vm3, %v4671_v43, %v4606_v48  ;;  %v4608_v36 = vpop.permute.xlu1 %4607  ;;  %vm11343_vm3 = vmmov %vm11342_vm0 }
 0xcfe   :  { %5625 = vmatmul.msk.f32.gmra.mxu3 %vm11324_vm7, %v4679_v7  ;;  %v4790_v47 = vpop.f32.mrf.mxu1  ;;  %vm11344_vm7 = vmmov %vm11342_vm0 }
 0xd04   :  { %v4535_v40 = vpop.permute.xlu0 %4534 }
 0xd05   :  { %v4664_v58 = vsel %vm11328_vm12, %v4656_v51, %v4535_v40  ;;  %vm11348_vm12 = vmmov %vm11342_vm0 }
 0xd06   :  { %v4672_v46 = vsel %vm11329_vm6, %v4664_v58, %v4560_v42  ;;  %v4793_v14 = vpop.f32.mrf.mxu1  ;;  %vm11349_vm6 = vmmov %vm11342_vm0 }
 0xd07   :  { %v4680_v17 = vsel %vm11330_vm8, %v4672_v46, %v4608_v36  ;;  %vm11350_vm8 = vmmov %vm11342_vm0 }
 0xd08   :  { %5626 = vmatmul.msk.f32.gmra.mxu3 %vm11331_vm14, %v4680_v17  ;;  %vm11351_vm14 = vmmov %vm11342_vm0 }
 0xd0e   :  { %v4796_v63 = vpop.f32.mrf.mxu1 }
 0xd10   :  { %v10237_v29 = vpop.xlane.xlu1 %2663 }
 0xd11   :  { %v2661_v13 = vpop.xlane.xlu2 %2660  ;;  %v2682_v33 = vsub.f32 %v10075_v35, %v10237_v29 }
 0xd12   :  { %v2681_v45 = vsub.f32 %v10078_v8, %v2661_v13 }
 0xd14   :  { %v2690_v22 = vmul.f32 1.442695, %v2681_v45 }
 0xd16   :  { %5993 = vpow2.f32 %v2690_v22  ;;  %v4799_v55 = vpop.f32.mrf.mxu1 }
 0xd1c   :  { %v10203_v34 = vpop.eup %5993 }
 0xd1d   :  { %v2707_v26 = vsel %vm11332_vm15, %v10203_v34, 0.0  ;;  %vm11352_vm15 = vmmov %vm11342_vm0 }
 0xd1e   :  { %2708 = vadd.xlane.f32.xlu2 %v2707_v26  ;;  %v4802_v21 = vpop.f32.mrf.mxu1 }
 0xd26   :  { %v4805_v25 = vpop.f32.mrf.mxu1 }
 0xd2f   :  { %v10239_v10 = vpop.xlane.xlu0 %2657 }
 0xd30   :  { %v2680_v42 = vsub.f32 %v10099_v53, %v10239_v10 }
 0xd51   :  { %v4722_v2 = vpop.f32.mrf.mxu3 }
 0xd52   :  { %v4723_v0 = vadd.f32 %v4722_v2, %v11333_v37 }
 0xd54   :  { %v4811_v52 = vadd.f32 %v4787_v6, %v4723_v0 }
 0xd56   :  { %v10224_v18 = vadd.f32 %v4811_v52, %v11334_v12 }
 0xd58   :  { %v4827_v56 = vmul.f32 %v11335_v49, %v10224_v18  ;;  %v10246_v48 = vmul.f32 %v11336_v60, %v10224_v18 }
 0xd59   :  { %v4725_v8 = vpop.f32.mrf.mxu3 }
 0xd5a   :  { %v4726_v20 = vadd.f32 %v4725_v8, %v11333_v37  ;;  %v4868_v40 = vmul.f32 %v4827_v56, %v10224_v18  ;;  %v4938_v17 = vsel %vm11337_vm2, %v10246_v48, 0.0  ;;  %v4835_v2 = vsel %vm11341_vm5, %v4827_v56, 0.0  ;;  %vm11353_vm2 = vmmov %vm11342_vm0 }
 0xd5b   :  { %vm11357_vm5 = vmmov %vm11342_vm0 }
 0xd5c   :  { %v4812_v50 = vadd.f32 %v4790_v47, %v4726_v20 }
 0xd5e   :  { %v10221_v5 = vadd.f32 %v4812_v50, %v11334_v12 }
 0xd60   :  { %v4828_v31 = vmul.f32 %v11335_v49, %v10221_v5  ;;  %v10250_v43 = vmul.f32 %v11336_v60, %v10221_v5 }
 0xd61   :  { %v4728_v44 = vpop.f32.mrf.mxu3 }
 0xd62   :  { %v4729_v57 = vadd.f32 %v4728_v44, %v11333_v37  ;;  %v4869_v41 = vmul.f32 %v4828_v31, %v10221_v5  ;;  %v4939_v35 = vsel %vm11338_vm4, %v10250_v43, 0.0  ;;  %v4836_v26 = vsel %vm11339_vm11, %v4828_v31, 0.0  ;;  %vm11354_vm4 = vmmov %vm11342_vm0 }
 0xd63   :  { %v4940_v44 = vadd.f32 %v4939_v35, %v4938_v17  ;;  %v2667_v35 = vpop.xlane.xlu2 %2666  ;;  %vm11355_vm11 = vmmov %vm11342_vm0 }
 0xd64   :  { %v4813_v27 = vadd.f32 %v4793_v14, %v4729_v57  ;;  %v4877_v6 = vsel %vm11340_vm10, %v4869_v41, 0.0  ;;  %v4876_v14 = vsel %vm11342_vm0, %v4868_v40, 0.0  ;;  %vm11356_vm10 = vmmov %vm11342_vm0 }
 0xd65   :  { %v4878_v0 = vadd.f32 %v4877_v6, %v4876_v14 }
 0xd66   :  { %v10228_v32 = vadd.f32 %v4813_v27, %v11334_v12 }
 0xd68   :  { %v4829_v38 = vmul.f32 %v11335_v49, %v10228_v32  ;;  %v10268_v46 = vmul.f32 %v11336_v60, %v10228_v32 }
 0xd69   :  { %v4731_v16 = vpop.f32.mrf.mxu3 }
 0xd6a   :  { %v4732_v39 = vadd.f32 %v4731_v16, %v11333_v37  ;;  %v4870_v45 = vmul.f32 %v4829_v38, %v10228_v32 }
 0xd6c   :  { %v4814_v30 = vadd.f32 %v4796_v63, %v4732_v39  ;;  %v4941_v63 = vsel %vm11343_vm3, %v10268_v46, 0.0  ;;  %v4879_v57 = vsel %vm11345_vm9, %v4870_v45, 0.0  ;;  %vm11358_vm3 = vmmov %vm11342_vm0 }
 0xd6d   :  { %vm11360_vm9 = vmmov %vm11342_vm0 }
 0xd6e   :  { %v10233_v4 = vadd.f32 %v4814_v30, %v11334_v12 }
 0xd70   :  { %v4830_v51 = vmul.f32 %v11335_v49, %v10233_v4  ;;  %v10282_v22 = vmul.f32 %v11336_v60, %v10233_v4 }
 0xd71   :  { %v4734_v54 = vpop.f32.mrf.mxu3 }
 0xd72   :  { %v4735_v23 = vadd.f32 %v4734_v54, %v11333_v37  ;;  %v4871_v8 = vmul.f32 %v4830_v51, %v10233_v4  ;;  %v4837_v54 = vadd.f32 %v4836_v26, %v4835_v2  ;;  %v4943_v52 = vsel %vm11346_vm1, %v10282_v22, 0.0  ;;  %vm11361_vm1 = vmmov %vm11342_vm0 }
 0xd73   :  { %v2688_v2 = vmul.f32 1.442695, %v2680_v42 }
 0xd74   :  { %v4815_v19 = vadd.f32 %v4799_v55, %v4735_v23  ;;  %v4838_v55 = vsel %vm11344_vm7, %v4829_v38, 0.0  ;;  %v4808_v23 = vpop.f32.mrf.mxu1  ;;  %vm11359_vm7 = vmmov %vm11342_vm0 }
 0xd75   :  { %5995 = vpow2.f32 %v2688_v2 }
 0xd76   :  { %v10242_v3 = vadd.f32 %v4815_v19, %v11334_v12  ;;  %v4881_v19 = vsel %vm11349_vm6, %v4871_v8, 0.0  ;;  %vm11364_vm6 = vcmask 523264  }
 0xd78   :  { %v4831_v13 = vmul.f32 %v11335_v49, %v10242_v3  ;;  %v10288_v47 = vmul.f32 %v11336_v60, %v10242_v3 }
 0xd79   :  { %v4737_v11 = vpop.f32.mrf.mxu3 }
 0xd7a   :  { %v4738_v1 = vadd.f32 %v4737_v11, %v11333_v37  ;;  %v4872_v20 = vmul.f32 %v4831_v13, %v10242_v3  ;;  %v4942_v11 = vadd.f32 %v4941_v63, %v4940_v44  ;;  %v4945_v30 = vsel %vm11348_vm12, %v10288_v47, 0.0  ;;  %vm11363_vm12 = vmmov %vm11342_vm0 }
 0xd7b   :  { %v4842_v29 = vsel %vm11350_vm8, %v4831_v13, 0.0  ;;  %v2692_v63 = vmul.f32 1.442695, %v2682_v33  ;;  %v4972_v33 = vmul.f32 %v10250_v43, %v10221_v5  ;;  %vm11365_vm8 = vmmov %vm11342_vm0 }
 0xd7c   :  { %v4816_v62 = vadd.f32 %v4802_v21, %v4738_v1  ;;  %v4840_v21 = vsel %vm11347_vm13, %v4830_v51, 0.0  ;;  %v4839_v1 = vadd.f32 %v4838_v55, %v4837_v54  ;;  %v4883_v38 = vsel %vm11351_vm14, %v4872_v20, 0.0  ;;  %vm11362_vm13 = vmmov %vm11342_vm0 }
 0xd7d   :  { %v2683_v54 = vsub.f32 %v10085_v9, %v2667_v35  ;;  %v4971_v9 = vmul.f32 %v10246_v48, %v10224_v18  ;;  %5997 = vpow2.f32 %v2692_v63  ;;  %v4980_v43 = vsel %vm11360_vm9, %v4972_v33, 0.0  ;;  %vm11366_vm14 = vmmov %vm11364_vm6 }
 0xd7e   :  { %v10264_v58 = vadd.f32 %v4816_v62, %v11334_v12  ;;  %v4944_v62 = vadd.f32 %v4943_v52, %v4942_v11 }
 0xd80   :  { %v4832_v16 = vmul.f32 %v11335_v49, %v10264_v58  ;;  %v10302_v50 = vmul.f32 %v11336_v60, %v10264_v58  ;;  %v4946_v40 = vadd.f32 %v4945_v30, %v4944_v62  ;;  %v4973_v30 = vmul.f32 %v10268_v46, %v10228_v32  ;;  %v5996_v62 = vpop.eup %5995 }
 0xd81   :  { %v4740_v28 = vpop.f32.mrf.mxu3 }
 0xd82   :  { %v4741_v7 = vadd.f32 %v4740_v28, %v11333_v37  ;;  %v4873_v10 = vmul.f32 %v4832_v16, %v10264_v58  ;;  %v4841_v28 = vadd.f32 %v4840_v21, %v4839_v1  ;;  %v4947_v41 = vsel %vm11352_vm15, %v10302_v50, 0.0  ;;  %vm11367_vm15 = vmmov %vm11342_vm0 }
 0xd83   :  { %v4844_v51 = vsel %vm11353_vm2, %v4832_v16, 0.0  ;;  %v4948_v8 = vadd.f32 %v4947_v41, %v4946_v40  ;;  %v4982_v48 = vsel %vm11362_vm13, %v4973_v30, 0.0  ;;  %vm11368_vm2 = vmmov %vm11342_vm0 }
 0xd84   :  { %v4817_v36 = vadd.f32 %v4805_v25, %v4741_v7  ;;  %v4880_v25 = vadd.f32 %v4879_v57, %v4878_v0  ;;  %v4885_v6 = vsel %vm11356_vm10, %v4873_v10, 0.0  ;;  %v4979_v10 = vsel %vm11361_vm1, %v4971_v9, 0.0  ;;  %vm11371_vm10 = vmmov %vm11364_vm6 }
 0xd85   :  { %v4981_v46 = vadd.f32 %v4980_v43, %v4979_v10  ;;  %vm11375_vm13 = vmmov %vm11368_vm2 }
 0xd86   :  { %v10278_v53 = vadd.f32 %v4817_v36, %v11334_v12  ;;  %v4843_v36 = vadd.f32 %v4842_v29, %v4841_v28  ;;  %v4882_v17 = vadd.f32 %v4881_v19, %v4880_v25  ;;  %v4974_v19 = vmul.f32 %v10282_v22, %v10233_v4 }
 0xd87   :  { %v4975_v29 = vmul.f32 %v10288_v47, %v10242_v3  ;;  %v4976_v28 = vmul.f32 %v10302_v50, %v10264_v58  ;;  %v4983_v22 = vadd.f32 %v4982_v48, %v4981_v46 }
 0xd88   :  { %v4833_v39 = vmul.f32 %v11335_v49, %v10278_v53  ;;  %v4936_v56 = vmul.f32 %v11336_v60, %v10278_v53  ;;  %v4845_v14 = vadd.f32 %v4844_v51, %v4843_v36  ;;  %v4884_v44 = vadd.f32 %v4883_v38, %v4882_v17  ;;  %v5998_v38 = vpop.eup %5997 }
 0xd89   :  { %v4984_v25 = vsel %vm11363_vm12, %v4974_v19, 0.0  ;;  %v4986_v47 = vsel %vm11365_vm8, %v4975_v29, 0.0  ;;  %v4988_v36 = vsel %vm11367_vm15, %v4976_v28, 0.0  ;;  %vm11376_vm12 = vmmov %vm11368_vm2 }
 0xd8a   :  { %v4949_v45 = vsel %vm11354_vm4, %v4936_v56, 0.0  ;;  %v4846_v26 = vsel %vm11355_vm11, %v4833_v39, 0.0  ;;  %v4886_v57 = vadd.f32 %v4885_v6, %v4884_v44  ;;  %v4977_v41 = vmul.f32 %v4936_v56, %v10278_v53  ;;  %vm11369_vm4 = vmmov %vm11342_vm0 }
 0xd8b   :  { %v4743_v27 = vpop.f32.mrf.mxu3  ;;  %v4950_v20 = vadd.f32 %v4949_v45, %v4948_v8  ;;  %v4847_v0 = vadd.f32 %v4846_v26, %v4845_v14  ;;  %v4985_v51 = vadd.f32 %v4984_v25, %v4983_v22  ;;  %vm11370_vm11 = vmmov %vm11364_vm6 }
 0xd8c   :  { %v4744_v31 = vadd.f32 %v4743_v27, %v11333_v37  ;;  %v4874_v37 = vmul.f32 %v4833_v39, %v10278_v53  ;;  %v4990_v17 = vsel %vm11368_vm2, %v4977_v41, 0.0 }
 0xd8d   :  { %v4987_v50 = vadd.f32 %v4986_v47, %v4985_v51 }
 0xd8e   :  { %v4818_v7 = vadd.f32 %v4808_v23, %v4744_v31  ;;  %v2694_v31 = vmul.f32 1.442695, %v2683_v54 }
 0xd8f   :  { %v4989_v45 = vadd.f32 %v4988_v36, %v4987_v50 }
 0xd90   :  { %v10323_v13 = vadd.f32 %v4818_v7, %v11334_v12  ;;  %v4887_v12 = vsel %vm11357_vm5, %v4874_v37, 0.0  ;;  %5999 = vpow2.f32 %v2694_v31  ;;  %v2704_v7 = vsel %vm11364_vm6, %v5996_v62, 0.0  ;;  %vm11372_vm5 = vmmov %vm11364_vm6 }
 0xd91   :  { %v4888_v23 = vadd.f32 %v4887_v12, %v4886_v57  ;;  %v2710_v37 = vsel %vm11366_vm14, %v5998_v38, 0.0  ;;  %v4991_v6 = vadd.f32 %v4990_v17, %v4989_v45  ;;  %v2709_v33 = vpop.xlane.xlu2 %2708  ;;  %vm11377_vm6 = vmmov %vm11368_vm2 }
 0xd92   :  { %v4937_v16 = vmul.f32 %v11336_v60, %v10323_v13  ;;  %v4834_v55 = vmul.f32 %v11335_v49, %v10323_v13 }
 0xd94   :  { %v4951_v52 = vsel %vm11342_vm0, %v4937_v16, 0.0  ;;  %v4848_v42 = vsel %vm11358_vm3, %v4834_v55, 0.0  ;;  %v4875_v39 = vmul.f32 %v4834_v55, %v10323_v13  ;;  %v4978_v40 = vmul.f32 %v4937_v16, %v10323_v13  ;;  %vm11373_vm0 = vmmov %vm11372_vm5 }
 0xd95   :  { %v4952_v21 = vadd.f32 %v4951_v52, %v4950_v20  ;;  %v4849_v27 = vadd.f32 %v4848_v42, %v4847_v0  ;;  %vm11374_vm3 = vmmov %vm11373_vm0 }
 0xd96   :  { %v4889_v11 = vsel %vm11359_vm7, %v4875_v39, 0.0  ;;  %v6000_v35 = vpop.eup %5999  ;;  %v4992_v26 = vsel %vm11369_vm4, %v4978_v40, 0.0  ;;  %vm11378_vm4 = vmmov %vm11368_vm2 }
 0xd97   :  { %4953 = vadd.xlane.f32.xlu2 %v4952_v21  ;;  %4850 = vadd.xlane.f32.xlu0 %v4849_v27  ;;  %v4890_v1 = vadd.f32 %v4889_v11, %v4888_v23  ;;  %v2713_v56 = vsel %vm11370_vm11, %v6000_v35, 0.0  ;;  %v4993_v2 = vadd.f32 %v4992_v26, %v4991_v6  ;;  %vm11379_vm11 = vmmov %vm11368_vm2 }
 0xd99   :  { %4891 = vadd.xlane.f32.xlu1 %v4890_v1 }
 0xd9f   :  { %2705 = vadd.xlane.f32.xlu0 %v2704_v7 }
 0xda1   :  { %2711 = vadd.xlane.f32.xlu1 %v2710_v37 }
 0xda7   :  { %2714 = vadd.xlane.f32.xlu0 %v2713_v56  ;;  %v222_v56 = vld [vmem:[%s10681_s7] sm:$0xff] }
 0xda8   :  { %2875 = vmatpush.msrb.mxu0 %v222_v56  ;;  %5445 = vmatpush.msrb.mxu1 %v222_v56 }
 0xda9   :  { %4994 = vadd.xlane.f32.xlu1 %v4993_v2  ;;  %v6079_v2 = vld [vmem:[%s10680_s6] sm:$0xff] }
 0xe0a   :  { %v4851_v8 = vpop.xlane.xlu0 %4850 }
 0xe0b   :  { %v4852_v14 = vrot.slane %v4851_v8, 4 }
 0xe0c   :  { %v4892_v44 = vpop.xlane.xlu1 %4891 }
 0xe0d   :  { %v4853_v63 = vadd.f32 %v4852_v14, %v4851_v8  ;;  %v4893_v16 = vrot.slane %v4892_v44, 4 }
 0xe0f   :  { %v4854_v55 = vrot.slane %v4853_v63, 2  ;;  %v4894_v12 = vadd.f32 %v4893_v16, %v4892_v44 }
 0xe11   :  { %v4895_v54 = vrot.slane %v4894_v12, 2  ;;  %v4855_v20 = vadd.f32 %v4854_v55, %v4853_v63 }
 0xe12   :  { %v2706_v0 = vpop.xlane.xlu0 %2705 }
 0xe13   :  { %6001 = vrcp.f32 %v2706_v0  ;;  %v4856_v57 = vrot.slane %v4855_v20, 1  ;;  %v4896_v52 = vadd.f32 %v4895_v54, %v4894_v12 }
 0xe14   :  { %6003 = vrcp.f32 %v2709_v33  ;;  %v2712_v11 = vpop.xlane.xlu1 %2711 }
 0xe15   :  { %v4857_v42 = vadd.f32 %v4856_v57, %v4855_v20  ;;  %v4897_v39 = vrot.slane %v4896_v52, 1  ;;  %6005 = vrcp.f32 %v2712_v11 }
 0xe17   :  { %5749 = vpush %v4857_v42  ;;  %v4898_v21 = vadd.f32 %v4897_v39, %v4896_v52 }
 0xe19   :  { %v6002_v27 = vpop.eup %6001  ;;  %5751 = vpush %v4898_v21 }
 0xe1a   :  { %v2736_v23 = vmul.f32 %v6002_v27, %v5996_v62  ;;  %v6004_v9 = vpop.eup %6003  ;;  %v2715_v1 = vpop.xlane.xlu0 %2714 }
 0xe1b   :  { %v2737_v30 = vmul.f32 %v6004_v9, %v10203_v34  ;;  %v6006_v19 = vpop.eup %6005  ;;  %6007 = vrcp.f32 %v2715_v1  ;;  %v4954_v34 = vpop.xlane.xlu2 %4953 }
 0xe1c   :  { %5578 = vmatmul.msk.f32.vlgmr.msra.gmra.mxu0 %vm11371_vm10, %v2736_v23  ;;  %v2738_v43 = vmul.f32 %v6006_v19, %v5998_v38  ;;  %v4995_v10 = vpop.xlane.xlu1 %4994  ;;  %v4955_v48 = vrot.slane %v4954_v34, 4  ;;  %vm11380_vm10 = vmmov %vm11368_vm2  ;;  %v11382_v19 = vld [vmem:[#allocation2_spill] sm:$0xff] }
 0xe1d   :  { %v4996_v62 = vrot.slane %v4995_v10, 4  ;;  %5098 = vmatpush.msra.mxu0 %v6079_v2 }
 0xe1e   :  { %v4956_v28 = vadd.f32 %v4955_v48, %v4954_v34 }
 0xe1f   :  { %v4997_v25 = vadd.f32 %v4996_v62, %v4995_v10 }
 0xe20   :  { %v4957_v38 = vrot.slane %v4956_v28, 2 }
 0xe21   :  { %v6008_v31 = vpop.eup %6007  ;;  %v4998_v7 = vrot.slane %v4997_v25, 2 }
 0xe22   :  { %v2739_v29 = vmul.f32 %v6008_v31, %v6000_v35  ;;  %v4958_v51 = vadd.f32 %v4957_v38, %v4956_v28 }
 0xe23   :  { %v4999_v37 = vadd.f32 %v4998_v7, %v4997_v25  ;;  %v11383_v25 = vld [vmem:[#allocation3_spill] sm:$0xff] }
 0xe24   :  { %5579 = vmatmul.msk.f32.gmra.mxu0 %vm11372_vm5, %v2737_v30  ;;  %v4959_v50 = vrot.slane %v4958_v51, 1  ;;  %vm11381_vm5 = vmmov %vm11368_vm2 }
 0xe25   :  { %v5000_v17 = vrot.slane %v4999_v37, 1 }
 0xe26   :  { %v4960_v26 = vadd.f32 %v4959_v50, %v4958_v51 }
 0xe27   :  { %v5001_v6 = vadd.f32 %v5000_v17, %v4999_v37 }
 0xe2c   :  { %5580 = vmatmul.msk.f32.gmra.mxu0 %vm11373_vm0, %v2738_v43  ;;  %vm11384_vm0 = vmmov %vm11368_vm2 }
 0xe34   :  { %5581 = vmatmul.msk.f32.gmra.mxu0 %vm11374_vm3, %v2739_v29  ;;  %vm11385_vm3 = vmmov %vm11384_vm0 }
 0xe48   :  { %s5750_s10 = spop %5749 }
 0xe49   :  { %s10369_s11 = smul.f32 %s5750_s10, %s7345_s23 }
 0xe4a   :  { %s5752_s13 = spop %5751 }
 0xe4b   :  { %s4909_s16 = smul.f32 %s10369_s11, %s10369_s11  ;;  %v4911_v8 = vstv %s10369_s11 }
 0xe4c   :  { %s4908_s5 = smul.f32 %s5752_s13, %s7345_s23  ;;  %v4912_v63 = vmul.f32 %v11335_v49, %v4911_v8 }
 0xe4e   :  { %s4910_s12 = ssub.f32 %s4908_s5, %s4909_s16 }
 0xe50   :  { %s4914_s22 = sadd.f32 1e-05, %s4910_s12 }
 0xe52   :  { %v4915_v46 = vstv %s4914_s22 }
 0xe53   :  { %6009 = vrsqrt.f32 %v4915_v46  ;;  %vm4922_vm9 = vweird.f32 %v4915_v46 }
 0xe59   :  { %v6010_v22 = vpop.eup %6009 }
 0xe5a   :  { %v4917_v41 = vmul.f32 %v6010_v22, %v4915_v46  ;;  %vm4923_vm7 = vweird.f32 %v6010_v22 }
 0xe5b   :  { %vm4924_vm1 = vmor %vm4922_vm9, %vm4923_vm7 }
 0xe5c   :  { %v4918_v47 = vmul.f32 %v6010_v22, %v4917_v41  ;;  %vm11386_vm7 = vmmov %vm11384_vm0 }
 0xe5d   :  { %vm11387_vm9 = vmmov %vm11384_vm0 }
 0xe5e   :  { %v4919_v40 = vmul.f32 0.5, %v4918_v47 }
 0xe60   :  { %v4920_v36 = vsub.f32 1.5, %v4919_v40 }
 0xe62   :  { %v4921_v35 = vmul.f32 %v6010_v22, %v4920_v36 }
 0xe64   :  { %v4925_v45 = vsel %vm4924_vm1, %v6010_v22, %v4921_v35  ;;  %vm11388_vm1 = vmmov %vm11384_vm0 }
 0xe65   :  { %5753 = vpush %v4925_v45 }
 0xe66   :  { %5755 = vpush %v4960_v26 }
 0xe67   :  { %5757 = vpush %v5001_v6 }
 0xe96   :  { %s10380_s28 = spop %5753 }
 0xe97   :  { %s5756_s24 = spop %5755  ;;  %v4927_v23 = vstv %s10380_s28 }
 0xe98   :  { %s4970_s17 = smul.f32 %s5756_s24, %s7345_s23  ;;  %s5758_s18 = spop %5757  ;;  %v4928_v9 = vmul.f32 %v11335_v49, %v4927_v23 }
 0xe99   :  { %s5011_s26 = smul.f32 %s5758_s18, %s7345_s23  ;;  %v2809_v14 = vpop.f32.mrf.mxu0 }
 0xe9a   :  { %s5012_s14 = smul.f32 %s4970_s17, %s4970_s17  ;;  %v5014_v44 = vstv %s4970_s17  ;;  %5586 = vmatmul.msk.f32.vlgmr.msrb.gmra.mxu0 %vm11375_vm13, %v2809_v14  ;;  %vm11389_vm13 = vmmov %vm11384_vm0 }
 0xe9b   :  { %v5015_v16 = vmul.f32 %v11336_v60, %v5014_v44 }
 0xe9c   :  { %s5013_s7 = ssub.f32 %s5011_s26, %s5012_s14 }
 0xe9d   :  { %v5016_v55 = vadd.f32 %v5015_v16, %v4912_v63 }
 0xe9e   :  { %s5017_s6 = sadd.f32 1e-05, %s5013_s7 }
 0xe9f   :  { %v5036_v29 = vsub.f32 %v10233_v4, %v5016_v55  ;;  %v5039_v46 = vsub.f32 %v10278_v53, %v5016_v55  ;;  %v5040_v28 = vsub.f32 %v10323_v13, %v5016_v55 }
 0xea0   :  { %v5018_v12 = vstv %s5017_s6 }
 0xea1   :  { %6011 = vrsqrt.f32 %v5018_v12  ;;  %v2812_v54 = vpop.f32.mrf.mxu0  ;;  %vm5025_vm14 = vweird.f32 %v5018_v12 }
 0xea2   :  { %5587 = vmatmul.msk.f32.gmra.mxu0 %vm11376_vm12, %v2812_v54  ;;  %vm11390_vm12 = vmmov %vm11384_vm0 }
 0xea7   :  { %v6012_v20 = vpop.eup %6011 }
 0xea8   :  { %v5020_v0 = vmul.f32 %v6012_v20, %v5018_v12  ;;  %vm5026_vm8 = vweird.f32 %v6012_v20 }
 0xea9   :  { %v2815_v57 = vpop.f32.mrf.mxu0  ;;  %vm5027_vm15 = vmor %vm5025_vm14, %vm5026_vm8 }
 0xeaa   :  { %v5021_v52 = vmul.f32 %v6012_v20, %v5020_v0  ;;  %5588 = vmatmul.msk.f32.gmra.mxu0 %vm11377_vm6, %v2815_v57  ;;  %vm11391_vm6 = vmmov %vm11384_vm0 }
 0xeab   :  { %vm11392_vm8 = vmmov %vm11384_vm0 }
 0xeac   :  { %v5022_v42 = vmul.f32 0.5, %v5021_v52  ;;  %vm11393_vm14 = vmmov %vm11384_vm0 }
 0xeae   :  { %v5023_v39 = vsub.f32 1.5, %v5022_v42 }
 0xeb0   :  { %v5024_v33 = vmul.f32 %v6012_v20, %v5023_v39 }
 0xeb1   :  { %v2818_v21 = vpop.f32.mrf.mxu0 }
 0xeb2   :  { %v5028_v27 = vsel %vm5027_vm15, %v6012_v20, %v5024_v33  ;;  %5589 = vmatmul.msk.f32.gmra.mxu0 %vm11368_vm2, %v2818_v21  ;;  %vm11394_vm15 = vmmov %vm11384_vm0 }
 0xeb3   :  { %5759 = vpush %v5028_v27  ;;  %vm11395_vm2 = vmmov %vm11384_vm0 }
 0xeba   :  { %5590 = vmatmul.msk.f32.gmra.mxu0 %vm11378_vm4, %v10207_v61  ;;  %v5033_v61 = vsub.f32 %v10224_v18, %v5016_v55  ;;  %vm11396_vm4 = vmmov %vm11384_vm0 }
 0xec2   :  { %5591 = vmatmul.msk.f32.gmra.mxu0 %vm11379_vm11, %v10209_v59  ;;  %v5034_v59 = vsub.f32 %v10221_v5, %v5016_v55  ;;  %vm11397_vm11 = vmmov %vm11384_vm0 }
 0xeca   :  { %5592 = vmatmul.msk.f32.gmra.mxu0 %vm11380_vm10, %v10211_v15  ;;  %v5035_v15 = vsub.f32 %v10228_v32, %v5016_v55  ;;  %vm11398_vm10 = vmmov %vm11384_vm0 }
 0xed2   :  { %5593 = vmatmul.msk.f32.gmra.mxu0 %vm11381_vm5, %v10213_v24  ;;  %v5037_v24 = vsub.f32 %v10242_v3, %v5016_v55  ;;  %vm11399_vm5 = vmmov %vm11384_vm0 }
 0xee4   :  { %s5760_s23 = spop %5759 }
 0xee5   :  { %v5030_v11 = vstv %s5760_s23 }
 0xee6   :  { %v5031_v30 = vmul.f32 %v11336_v60, %v5030_v11  ;;  %v5038_v60 = vsub.f32 %v10264_v58, %v5016_v55 }
 0xee8   :  { %v5032_v1 = vadd.f32 %v5031_v30, %v4928_v9 }
 0xeea   :  { %v5041_v43 = vmul.f32 %v5032_v1, %v11382_v19 }
 0xeec   :  { %v5042_v31 = vperm.slane %v5041_v43, 0 }
 0xeee   :  { %v5043_v34 = vmul.f32 %v5042_v31, %v5033_v61  ;;  %v5044_v10 = vmul.f32 %v5042_v31, %v5034_v59  ;;  %v5045_v48 = vmul.f32 %v5042_v31, %v5035_v15  ;;  %v5046_v49 = vmul.f32 %v5042_v31, %v5036_v29 }
 0xeef   :  { %v5047_v62 = vmul.f32 %v5042_v31, %v5037_v24  ;;  %v5048_v22 = vmul.f32 %v5042_v31, %v5038_v60  ;;  %v5049_v7 = vmul.f32 %v5042_v31, %v5039_v46  ;;  %v5050_v41 = vmul.f32 %v5042_v31, %v5040_v28 }
 0xef0   :  { %v5051_v38 = vadd.f32 %v5043_v34, %v11383_v25  ;;  %v5052_v47 = vadd.f32 %v5044_v10, %v11383_v25  ;;  %v5053_v51 = vadd.f32 %v5045_v48, %v11383_v25  ;;  %v5054_v37 = vadd.f32 %v5046_v49, %v11383_v25 }
 0xef1   :  { %v5055_v40 = vadd.f32 %v5047_v62, %v11383_v25  ;;  %v5056_v36 = vadd.f32 %v5048_v22, %v11383_v25  ;;  %v5057_v50 = vadd.f32 %v5049_v7, %v11383_v25  ;;  %v5058_v35 = vadd.f32 %v5050_v41, %v11383_v25 }
 0xef2   :  { %5636 = vmatmul.msk.f32.vlgmr.msra.gmra.mxu0 %vm11384_vm0, %v5051_v38 }
 0xefa   :  { %5637 = vmatmul.msk.f32.gmra.mxu0 %vm11385_vm3, %v5052_v47  ;;  %vm11400_vm3 = vmmov %vm11384_vm0 }
 0xf02   :  { %5638 = vmatmul.msk.f32.gmra.mxu0 %vm11386_vm7, %v5053_v51  ;;  %vm11401_vm7 = vmmov %vm11384_vm0 }
 0xf0a   :  { %5639 = vmatmul.msk.f32.gmra.mxu0 %vm11387_vm9, %v5054_v37  ;;  %vm11402_vm9 = vmmov %vm11384_vm0 }
 0xf12   :  { %5640 = vmatmul.msk.f32.gmra.mxu0 %vm11388_vm1, %v5055_v40  ;;  %vm11403_vm1 = vmmov %vm11384_vm0 }
 0xf17   :  { %v10424_v17 = vpop.f32.mrf.mxu0 }
 0xf1a   :  { %5641 = vmatmul.msk.f32.gmra.mxu0 %vm11389_vm13, %v5056_v36  ;;  %vm11404_vm13 = vmmov %vm11384_vm0 }
 0xf1f   :  { %v10429_v45 = vpop.f32.mrf.mxu0 }
 0xf22   :  { %5642 = vmatmul.msk.f32.gmra.mxu0 %vm11390_vm12, %v5057_v50  ;;  %vm11405_vm12 = vmmov %vm11384_vm0 }
 0xf27   :  { %v10431_v26 = vpop.f32.mrf.mxu0 }
 0xf2a   :  { %5643 = vmatmul.msk.f32.gmra.mxu0 %vm11391_vm6, %v5058_v35  ;;  %vm11406_vm6 = vmmov %vm11384_vm0 }
 0xf2f   :  { %v10433_v6 = vpop.f32.mrf.mxu0 }
 0xf37   :  { %v10435_v56 = vpop.f32.mrf.mxu0 }
 0xf3f   :  { %v10437_v2 = vpop.f32.mrf.mxu0 }
 0xf47   :  { %v10439_v8 = vpop.f32.mrf.mxu0 }
 0xf4f   :  { %v10441_v14 = vpop.f32.mrf.mxu0 }
 0xf6f   :  { %v10443_v44 = vpop.f32.mrf.mxu0 }
 0xf77   :  { %v10445_v63 = vpop.f32.mrf.mxu0 }
 0xf78   :  { %v5819_v51 = vpack.i.bf16 %v10443_v44, %v10445_v63 }
 0xf7f   :  { %v10447_v16 = vpop.f32.mrf.mxu0 }
 0xf87   :  { %v10449_v55 = vpop.f32.mrf.mxu0 }
 0xf8f   :  { %v5112_v12 = vpop.f32.mrf.mxu0 }
 0xf97   :  { %v5115_v54 = vpop.f32.mrf.mxu0 }
 0xf98   :  { %5142 = vrot.lane.b32.xlu1 %v5115_v54, %s6095_s21  ;;  %v5809_v49 = vpack.i.bf16 %v5112_v12, %v5115_v54 }
 0xf9f   :  { %v5118_v20 = vpop.f32.mrf.mxu0 }
 0xfa0   :  { %5134 = vrot.lane.b32.xlu1 %v10445_v63, %s6095_s21  ;;  %5144 = vrot.lane.b32.xlu2 %v5118_v20, %s6095_s21 }
 0xfa7   :  { %v5121_v0 = vpop.f32.mrf.mxu0 }
 0xfa8   :  { %5136 = vrot.lane.b32.xlu2 %v10447_v16, %s6095_s21  ;;  %5146 = vrot.lane.b32.xlu0 %v5121_v0, %s6095_s21  ;;  %v5804_v28 = vpack.i.bf16 %v5118_v20, %v5121_v0 }
 0xfb0   :  { %5140 = vrot.lane.b32.xlu0 %v5112_v12, %s6095_s21 }
 0xfb8   :  { %5138 = vrot.lane.b32.xlu0 %v10449_v55, %s6095_s21 }
 0xfc0   :  { %5132 = vrot.lane.b32.xlu0 %v10443_v44, %s6095_s21 }
 0xffa   :  { %v5145_v52 = vpop.permute.xlu2 %5144 }
0x1002   :  { %v5137_v21 = vpop.permute.xlu2 %5136 }
0x100a   :  { %v5143_v42 = vpop.permute.xlu1 %5142 }
0x1012   :  { %v5135_v27 = vpop.permute.xlu1 %5134 }
0x101a   :  { %v5147_v57 = vpop.permute.xlu0 %5146 }
0x101b   :  { %5644 = vmatpush.xpose.msk.msrb.mxu2 %vm11392_vm8, %v5147_v57  ;;  %vm11407_vm8 = vcmask 523264  }
0x101f   :  { %5645 = vmatpush.xpose.msk.msrb.mxu2 %vm11393_vm14, %v5145_v52  ;;  %vm11408_vm14 = vmmov %vm11407_vm8 }
0x1022   :  { %v5141_v39 = vpop.permute.xlu0 %5140 }
0x1023   :  { %5646 = vmatpush.xpose.msk.msrb.mxu2 %vm11394_vm15, %v5143_v42  ;;  %vm11409_vm15 = vmmov %vm11407_vm8 }
0x1027   :  { %5647 = vmatpush.xpose.msk.msrb.mxu2 %vm11395_vm2, %v5141_v39  ;;  %vm11410_vm2 = vmmov %vm11407_vm8 }
0x102a   :  { %v5139_v33 = vpop.permute.xlu0 %5138 }
0x102b   :  { %5648 = vmatpush.xpose.msk.msrb.mxu2 %vm11396_vm4, %v5139_v33  ;;  %vm11411_vm4 = vmmov %vm11410_vm2 }
0x102f   :  { %5649 = vmatpush.xpose.msk.msrb.mxu2 %vm11397_vm11, %v5137_v21  ;;  %vm11412_vm11 = vmmov %vm11410_vm2 }
0x1032   :  { %v5133_v23 = vpop.permute.xlu0 %5132 }
0x1033   :  { %5650 = vmatpush.xpose.msk.msrb.mxu2 %vm11398_vm10, %v5135_v27  ;;  %vm11413_vm10 = vmmov %vm11410_vm2 }
0x1037   :  { %5651 = vmatpush.xpose.msk.msrb.mxu2 %vm11399_vm5, %v5133_v23  ;;  %vm11414_vm5 = vmmov %vm11410_vm2 }
0x103a   :  { %5652 = vmatmul.msk.f32.vlgmr.msrb.gmra.mxu2 %vm11384_vm0, %v10443_v44  ;;  %vm11415_vm0 = vmmov %vm11410_vm2 }
0x1042   :  { %5653 = vmatmul.msk.f32.gmra.mxu2 %vm11400_vm3, %v10445_v63  ;;  %vm11416_vm3 = vmmov %vm11415_vm0 }
0x104a   :  { %5654 = vmatmul.msk.f32.gmra.mxu2 %vm11401_vm7, %v10447_v16  ;;  %vm11417_vm7 = vmmov %vm11415_vm0 }
0x1052   :  { %5655 = vmatmul.msk.f32.gmra.mxu2 %vm11402_vm9, %v10449_v55  ;;  %vm11418_vm9 = vmmov %vm11415_vm0 }
0x105a   :  { %5656 = vmatmul.msk.f32.gmra.mxu2 %vm11403_vm1, %v5112_v12  ;;  %vm11419_vm1 = vmmov %vm11415_vm0 }
0x1062   :  { %5657 = vmatmul.msk.f32.gmra.mxu2 %vm11404_vm13, %v5115_v54  ;;  %vm11420_vm13 = vmmov %vm11415_vm0 }
0x106a   :  { %5658 = vmatmul.msk.f32.gmra.mxu2 %vm11405_vm12, %v5118_v20  ;;  %vm11421_vm12 = vmmov %vm11415_vm0 }
0x1072   :  { %5659 = vmatmul.msk.f32.gmra.mxu2 %vm11406_vm6, %v5121_v0  ;;  %vm11422_vm6 = vmmov %vm11415_vm0 }
0x10bd   :  { %v5197_v11 = vpop.f32.mrf.mxu2 }
0x10be   :  { %v5221_v9 = vmul.f32 0.35355338, %v5197_v11 }
0x10c0   :  { %v5229_v30 = vsel %vm11407_vm8, %v5221_v9, -inf  ;;  %vm11423_vm8 = vmmov %vm11415_vm0 }
0x10c1   :  { %5230 = vmax.xlane.f32.xlu2 %v5229_v30 }
0x10c5   :  { %v5200_v1 = vpop.f32.mrf.mxu2 }
0x10c6   :  { %v5222_v19 = vmul.f32 0.35355338, %v5200_v1  ;;  %v5814_v1 = vpack.i.bf16 %v10447_v16, %v10449_v55 }
0x10c8   :  { %v5232_v43 = vsel %vm11408_vm14, %v5222_v19, -inf  ;;  %vm11424_vm14 = vmmov %vm11415_vm0 }
0x10c9   :  { %5233 = vmax.xlane.f32.xlu1 %v5232_v43 }
0x10cd   :  { %v5203_v61 = vpop.f32.mrf.mxu2 }
0x10ce   :  { %v10485_v31 = vmul.f32 0.35355338, %v5203_v61 }
0x10d0   :  { %v5235_v59 = vsel %vm11409_vm15, %v10485_v31, -inf  ;;  %vm11425_vm15 = vmmov %vm11415_vm0 }
0x10d1   :  { %5236 = vmax.xlane.f32.xlu0 %v5235_v59 }
0x10d5   :  { %v5206_v15 = vpop.f32.mrf.mxu2 }
0x10d6   :  { %v5224_v29 = vmul.f32 0.35355338, %v5206_v15 }
0x10d8   :  { %v5238_v24 = vsel %vm11410_vm2, %v5224_v29, -inf  ;;  %vm11426_vm2 = vmmov %vm11415_vm0 }
0x10d9   :  { %5239 = vmax.xlane.f32.xlu2 %v5238_v24 }
0x10dd   :  { %v5209_v34 = vpop.f32.mrf.mxu2 }
0x10de   :  { %v5225_v10 = vmul.f32 0.35355338, %v5209_v34 }
0x10e0   :  { %v5241_v48 = vsel %vm11411_vm4, %v5225_v10, -inf  ;;  %vm11427_vm4 = vmmov %vm11415_vm0 }
0x10e1   :  { %5242 = vmax.xlane.f32.xlu1 %v5241_v48 }
0x10e5   :  { %5810 = vrot.lane.b32.xlu0 %v5809_v49, %s6094_s20  ;;  %v5212_v62 = vpop.f32.mrf.mxu2 }
0x10e6   :  { %v10494_v38 = vmul.f32 0.35355338, %v5212_v62 }
0x10e8   :  { %v5244_v22 = vsel %vm11413_vm10, %v10494_v38, -inf }
0x10ed   :  { %v5215_v60 = vpop.f32.mrf.mxu2 }
0x10ee   :  { %v5227_v46 = vmul.f32 0.35355338, %v5215_v60 }
0x10f0   :  { %v5247_v25 = vsel %vm11412_vm11, %v5227_v46, -inf  ;;  %vm11433_vm11 = vcmask 64512  }
0x10f1   :  { %5805 = vrot.lane.b32.xlu2 %v5804_v28, %s6094_s20  ;;  %5248 = vmax.xlane.f32.xlu1 %v5247_v25  ;;  %vm11435_vm10 = vmmov %vm11433_vm11 }
0x10f5   :  { %v5218_v7 = vpop.f32.mrf.mxu2 }
0x10f6   :  { %v10498_v41 = vmul.f32 0.35355338, %v5218_v7 }
0x10f8   :  { %v5250_v47 = vsel %vm11414_vm5, %v10498_v41, -inf  ;;  %vm11437_vm5 = vmmov %vm11435_vm10 }
0x110f   :  { %5245 = vmax.xlane.f32.xlu0 %v5244_v22 }
0x111a   :  { %5251 = vmax.xlane.f32.xlu2 %v5250_v47 }
0x1123   :  { %5820 = vrot.lane.b32.xlu0 %v5819_v51, %s6094_s20 }
0x1134   :  { %v5231_v37 = vpop.xlane.xlu2 %5230 }
0x1135   :  { %v5253_v40 = vsub.f32 %v5221_v9, %v5231_v37  ;;  %v6080_v37 = vld [vmem:[%s10674_s8] ss:$0 sm:$0xff] }
0x1137   :  { %v5261_v36 = vmul.f32 1.442695, %v5253_v40 }
0x1139   :  { %6013 = vpow2.f32 %v5261_v36 }
0x113c   :  { %v5234_v50 = vpop.xlane.xlu1 %5233 }
0x113d   :  { %v5254_v35 = vsub.f32 %v5222_v19, %v5234_v50 }
0x113f   :  { %v10505_v12 = vpop.eup %6013  ;;  %v5263_v54 = vmul.f32 1.442695, %v5254_v35 }
0x1140   :  { %v5277_v20 = vsel %vm11415_vm0, %v10505_v12, 0.0  ;;  %vm11439_vm0 = vmmov %vm11437_vm5 }
0x1141   :  { %5278 = vadd.xlane.f32.xlu1 %v5277_v20  ;;  %6015 = vpow2.f32 %v5263_v54 }
0x1144   :  { %v5237_v52 = vpop.xlane.xlu0 %5236 }
0x1147   :  { %v10509_v0 = vpop.eup %6015 }
0x1148   :  { %v5280_v44 = vsel %vm11416_vm3, %v10509_v0, 0.0  ;;  %vm11440_vm3 = vmmov %vm11439_vm0 }
0x114c   :  { %v5240_v57 = vpop.xlane.xlu2 %5239 }
0x114d   :  { %v5256_v63 = vsub.f32 %v5224_v29, %v5240_v57  ;;  %5281 = vadd.xlane.f32.xlu0 %v5280_v44 }
0x114f   :  { %v5267_v42 = vmul.f32 1.442695, %v5256_v63 }
0x1151   :  { %6017 = vpow2.f32 %v5267_v42 }
0x1154   :  { %v5806_v39 = vpop.permute.xlu2 %5805  ;;  %v5243_v33 = vpop.xlane.xlu1 %5242 }
0x1155   :  { %v5807_v21 = vunpack.i.l.bf16 %v5806_v39  ;;  %v5257_v27 = vsub.f32 %v5225_v10, %v5243_v33  ;;  %v5808_v11 = vunpack.i.h.bf16 %v5806_v39  ;;  %v5255_v10 = vsub.f32 %v10485_v31, %v5237_v52 }
0x1157   :  { %v10513_v23 = vpop.eup %6017  ;;  %v5269_v9 = vmul.f32 1.442695, %v5257_v27  ;;  %v5811_v30 = vpop.permute.xlu0 %5810  ;;  %5373 = vmatpush.msrb.mxu3 %v5807_v21  ;;  %v5265_v48 = vmul.f32 1.442695, %v5255_v10  ;;  %v11430_v10 = vld [vmem:[#allocation33_spill] sm:$0xff] }
0x1158   :  { %v5812_v19 = vunpack.i.l.bf16 %v5811_v30  ;;  %v5286_v43 = vsel %vm11417_vm7, %v10513_v23, 0.0  ;;  %v5813_v61 = vunpack.i.h.bf16 %v5811_v30  ;;  %vm11441_vm7 = vmmov %vm11439_vm0 }
0x1159   :  { %6019 = vpow2.f32 %v5269_v9  ;;  %5374 = vmatpush.msrb.mxu3 %v5808_v11  ;;  %5287 = vadd.xlane.f32.xlu2 %v5286_v43 }
0x115a   :  { %5815 = vrot.lane.b32.xlu1 %v5814_v1, %s6094_s20 }
0x115b   :  { %5375 = vmatpush.msrb.mxu3 %v5812_v19 }
0x115d   :  { %5376 = vmatpush.msrb.mxu3 %v5813_v61 }
0x115f   :  { %v10520_v59 = vpop.eup %6019 }
0x1160   :  { %v5289_v15 = vsel %vm11418_vm9, %v10520_v59, 0.0  ;;  %vm11442_vm9 = vmmov %vm11419_vm1 }
0x1161   :  { %5290 = vadd.xlane.f32.xlu2 %v5289_v15 }
0x1164   :  { %v5249_v29 = vpop.xlane.xlu1 %5248 }
0x1165   :  { %v5259_v16 = vsub.f32 %v5227_v46, %v5249_v29 }
0x1167   :  { %v5273_v55 = vmul.f32 1.442695, %v5259_v16 }
0x1169   :  { %6021 = vpow2.f32 %v5273_v55 }
0x116a   :  { %6023 = vpow2.f32 %v5265_v48 }
0x116f   :  { %v10524_v24 = vpop.eup %6021 }
0x1170   :  { %v5295_v34 = vsel %vm11419_vm1, %v10524_v24, 0.0  ;;  %v6024_v49 = vpop.eup %6023  ;;  %vm11443_vm1 = vmmov %vm11439_vm0 }
0x1171   :  { %5296 = vadd.xlane.f32.xlu2 %v5295_v34  ;;  %v5283_v28 = vsel %vm11420_vm13, %v6024_v49, 0.0  ;;  %vm11444_vm13 = vmmov %vm11439_vm0 }
0x1182   :  { %v5246_v62 = vpop.xlane.xlu0 %5245 }
0x1183   :  { %v5258_v60 = vsub.f32 %v10494_v38, %v5246_v62 }
0x1184   :  { %5284 = vadd.xlane.f32.xlu1 %v5283_v28 }
0x1185   :  { %v5271_v46 = vmul.f32 1.442695, %v5258_v60  ;;  %v11432_v60 = vld [vmem:[#allocation28_spill] sm:$0xff] }
0x1187   :  { %6025 = vpow2.f32 %v5271_v46  ;;  %v11436_v46 = vld [vmem:[#allocation32_spill] sm:$0xff] }
0x118d   :  { %v10531_v25 = vpop.eup %6025  ;;  %v5252_v22 = vpop.xlane.xlu2 %5251 }
0x118e   :  { %v5260_v7 = vsub.f32 %v10498_v41, %v5252_v22  ;;  %v5292_v47 = vsel %vm11421_vm12, %v10531_v25, 0.0  ;;  %v11438_v22 = vld [vmem:[#allocation34_spill] sm:$0xff]  ;;  %vm11445_vm12 = vmmov %vm11426_vm2 }
0x118f   :  { %5293 = vadd.xlane.f32.xlu0 %v5292_v47 }
0x1190   :  { %v5275_v31 = vmul.f32 1.442695, %v5260_v7 }
0x1192   :  { %6027 = vpow2.f32 %v5275_v31 }
0x1195   :  { %v5821_v41 = vpop.permute.xlu0 %5820 }
0x1196   :  { %v5822_v57 = vunpack.i.l.bf16 %v5821_v41  ;;  %v5823_v44 = vunpack.i.h.bf16 %v5821_v41 }
0x1198   :  { %v10536_v51 = vpop.eup %6027 }
0x1199   :  { %v5298_v38 = vsel %vm11422_vm6, %v10536_v51, 0.0  ;;  %vm11446_vm6 = vmmov %vm11426_vm2 }
0x119a   :  { %5299 = vadd.xlane.f32.xlu0 %v5298_v38 }
0x119d   :  { %2833 = vrot.lane.b32.xlu1 %v6080_v37, %s6098_s4 }
0x11b4   :  { %v5279_v40 = vpop.xlane.xlu1 %5278 }
0x11b5   :  { %6029 = vrcp.f32 %v5279_v40 }
0x11bb   :  { %v6030_v20 = vpop.eup %6029 }
0x11bc   :  { %v5309_v63 = vmul.f32 %v6030_v20, %v10505_v12 }
0x11c0   :  { %v5282_v54 = vpop.xlane.xlu0 %5281 }
0x11c1   :  { %6031 = vrcp.f32 %v5282_v54 }
0x11c7   :  { %v6032_v52 = vpop.eup %6031 }
0x11c8   :  { %v5310_v42 = vmul.f32 %v6032_v52, %v10509_v0 }
0x11cc   :  { %v5816_v36 = vpop.permute.xlu1 %5815  ;;  %v5288_v33 = vpop.xlane.xlu2 %5287 }
0x11cd   :  { %v5817_v50 = vunpack.i.l.bf16 %v5816_v36  ;;  %v5818_v35 = vunpack.i.h.bf16 %v5816_v36 }
0x11cf   :  { %5377 = vmatpush.msrb.mxu3 %v5817_v50 }
0x11d1   :  { %5378 = vmatpush.msrb.mxu3 %v5818_v35 }
0x11d3   :  { %5379 = vmatpush.msrb.mxu3 %v5822_v57 }
0x11d4   :  { %v5291_v11 = vpop.xlane.xlu2 %5290 }
0x11d5   :  { %5380 = vmatpush.msrb.mxu3 %v5823_v44 }
0x11d6   :  { %5660 = vmatmul.msk.f32.vlgmr.msrb.gmra.mxu3 %vm11423_vm8, %v5309_v63  ;;  %vm11447_vm8 = vmmov %vm11439_vm0 }
0x11de   :  { %5661 = vmatmul.msk.f32.gmra.mxu3 %vm11424_vm14, %v5310_v42  ;;  %vm11448_vm14 = vmmov %vm11439_vm0 }
0x11e4   :  { %v5297_v48 = vpop.xlane.xlu2 %5296 }
0x11f7   :  { %v5285_v39 = vpop.xlane.xlu1 %5284 }
0x11f8   :  { %6033 = vrcp.f32 %v5285_v39 }
0x11f9   :  { %6035 = vrcp.f32 %v5288_v33 }
0x11fa   :  { %6037 = vrcp.f32 %v5291_v11 }
0x11fe   :  { %v6034_v21 = vpop.eup %6033 }
0x11ff   :  { %v5311_v27 = vmul.f32 %v6034_v21, %v6024_v49  ;;  %v6036_v9 = vpop.eup %6035  ;;  %v11431_v49 = vld [vmem:[#allocation27_spill] sm:$0xff] }
0x1200   :  { %v5312_v12 = vmul.f32 %v6036_v9, %v10513_v23  ;;  %v6038_v1 = vpop.eup %6037 }
0x1201   :  { %5662 = vmatmul.msk.f32.gmra.mxu3 %vm11425_vm15, %v5311_v27  ;;  %v5313_v19 = vmul.f32 %v6038_v1, %v10520_v59  ;;  %v11428_v59 = vld [vmem:[#allocation29_spill] sm:$0xff]  ;;  %vm11449_vm15 = vmmov %vm11439_vm0 }
0x1202   :  { %v5294_v30 = vpop.xlane.xlu0 %5293 }
0x1203   :  { %6039 = vrcp.f32 %v5294_v30 }
0x1204   :  { %6041 = vrcp.f32 %v5297_v48 }
0x1209   :  { %5663 = vmatmul.msk.f32.gmra.mxu3 %vm11426_vm2, %v5312_v12  ;;  %v6040_v62 = vpop.eup %6039  ;;  %vm11450_vm2 = vmmov %vm11439_vm0 }
0x120a   :  { %v5314_v47 = vmul.f32 %v6040_v62, %v10531_v25  ;;  %v6042_v25 = vpop.eup %6041 }
0x120b   :  { %v5315_v38 = vmul.f32 %v6042_v25, %v10524_v24 }
0x120d   :  { %v5300_v31 = vpop.xlane.xlu0 %5299 }
0x120e   :  { %6043 = vrcp.f32 %v5300_v31 }
0x120f   :  { %v10551_v0 = vpop.permute.xlu1 %2833 }
0x1210   :  { %v2878_v43 = vadd.f32 %v10424_v17, %v10551_v0  ;;  %v2881_v61 = vadd.f32 %v10429_v45, %v10551_v0  ;;  %v2884_v15 = vadd.f32 %v10431_v26, %v10551_v0  ;;  %v2887_v23 = vadd.f32 %v10433_v6, %v10551_v0  ;;  %v11429_v45 = vld [vmem:[#allocation30_spill] sm:$0xff] }
0x1211   :  { %v2890_v29 = vadd.f32 %v10435_v56, %v10551_v0  ;;  %v2893_v16 = vadd.f32 %v10437_v2, %v10551_v0  ;;  %5664 = vmatmul.msk.f32.gmra.mxu3 %vm11427_vm4, %v5313_v19  ;;  %v2896_v17 = vadd.f32 %v10439_v8, %v10551_v0  ;;  %v2899_v6 = vadd.f32 %v10441_v14, %v10551_v0  ;;  %v11434_v8 = vld [vmem:[#allocation31_spill] sm:$0xff]  ;;  %vm11451_vm4 = vmmov %vm11439_vm0 }
0x1212   :  { %v2901_v55 = vadd.f32 %v2878_v43, %v11428_v59  ;;  %v2902_v34 = vadd.f32 %v2881_v61, %v11429_v45  ;;  %v2903_v26 = vadd.f32 %v2884_v15, %v11430_v10  ;;  %v2904_v56 = vadd.f32 %v2887_v23, %v11431_v49 }
0x1213   :  { %v2905_v2 = vadd.f32 %v2890_v29, %v11432_v60  ;;  %v2906_v28 = vadd.f32 %v2893_v16, %v11434_v8  ;;  %v2907_v14 = vadd.f32 %v2896_v17, %v11436_v46  ;;  %v2908_v7 = vadd.f32 %v2899_v6, %v11438_v22 }
0x1214   :  { %2909 = vst.msk [vmem:[%s10682_s9] sm:$0xff] %vm11433_vm11, %v2901_v55  ;;  %v6044_v37 = vpop.eup %6043  ;;  %vm11452_vm11 = vmmov %vm11439_vm0 }
0x1215   :  { %2910 = vst.msk [vmem:[%s10682_s9 + $0x8] sm:$0xff] %vm11435_vm10, %v2902_v34  ;;  %v5316_v40 = vmul.f32 %v6044_v37, %v10536_v51  ;;  %vm11453_vm10 = vmmov %vm11439_vm0 }
0x1216   :  { %2911 = vst.msk [vmem:[%s10682_s9 + $0x10] sm:$0xff] %vm11437_vm5, %v2903_v26  ;;  %vm11454_vm5 = vmmov %vm11439_vm0 }
0x1217   :  { %2912 = vst.msk [vmem:[%s10682_s9 + $0x18] sm:$0xff] %vm11439_vm0, %v2904_v56 }
0x1218   :  { %2913 = vst.msk [vmem:[%s10682_s9 + $0x20] sm:$0xff] %vm11440_vm3, %v2905_v2  ;;  %vm11455_vm3 = vmmov %vm11439_vm0 }
0x1219   :  { %2914 = vst.msk [vmem:[%s10682_s9 + $0x28] sm:$0xff] %vm11441_vm7, %v2906_v28  ;;  %5665 = vmatmul.msk.f32.gmra.mxu3 %vm11442_vm9, %v5314_v47  ;;  %vm11456_vm7 = vmmov %vm11439_vm0 }
0x121a   :  { %2915 = vst.msk [vmem:[%s10682_s9 + $0x30] sm:$0xff] %vm11443_vm1, %v2907_v14  ;;  %vm11457_vm9 = vmmov %vm11439_vm0 }
0x121b   :  { %2916 = vst.msk [vmem:[%s10682_s9 + $0x38] sm:$0xff] %vm11444_vm13, %v2908_v7  ;;  %vm11458_vm1 = vmmov %vm11439_vm0 }
0x121c   :  { %vm11459_vm13 = vmmov %vm11439_vm0 }
0x1221   :  { %5666 = vmatmul.msk.f32.gmra.mxu3 %vm11445_vm12, %v5315_v38  ;;  %vm11460_vm12 = vmmov %vm11439_vm0 }
0x1229   :  { %5667 = vmatmul.msk.f32.gmra.mxu3 %vm11446_vm6, %v5316_v40  ;;  %vm11461_vm6 = vmmov %vm11439_vm0 }
0x1259   :  { %v5382_v41 = vpop.f32.mrf.mxu3 }
0x125a   :  { %5668 = vmatmul.msk.f32.vlgmr.msrb.gmra.mxu1 %vm11447_vm8, %v5382_v41 }
0x1261   :  { %v5385_v36 = vpop.f32.mrf.mxu3 }
0x1262   :  { %5669 = vmatmul.msk.f32.gmra.mxu1 %vm11448_vm14, %v5385_v36 }
0x1284   :  { %v5388_v50 = vpop.f32.mrf.mxu3 }
0x1285   :  { %5670 = vmatmul.msk.f32.gmra.mxu1 %vm11449_vm15, %v5388_v50 }
0x128c   :  { %v5391_v35 = vpop.f32.mrf.mxu3 }
0x128d   :  { %5671 = vmatmul.msk.f32.gmra.mxu1 %vm11450_vm2, %v5391_v35 }
0x1294   :  { %v5394_v24 = vpop.f32.mrf.mxu3 }
0x1295   :  { %5672 = vmatmul.msk.f32.gmra.mxu1 %vm11451_vm4, %v5394_v24 }
0x129c   :  { %v5397_v54 = vpop.f32.mrf.mxu3 }
0x129d   :  { %5673 = vmatmul.msk.f32.gmra.mxu1 %vm11452_vm11, %v5397_v54 }
0x12a4   :  { %v5400_v51 = vpop.f32.mrf.mxu3 }
0x12a5   :  { %5674 = vmatmul.msk.f32.gmra.mxu1 %vm11453_vm10, %v5400_v51 }
0x12ac   :  { %v5403_v20 = vpop.f32.mrf.mxu3 }
0x12ad   :  { %5675 = vmatmul.msk.f32.gmra.mxu1 %vm11454_vm5, %v5403_v20 }
0x12d7   :  { %v5447_v57 = vpop.f32.mrf.mxu1 }
0x12d8   :  { %v5448_v44 = vadd.f32 %v5447_v57, %v10551_v0 }
0x12da   :  { %v5471_v63 = vadd.f32 %v5448_v44, %v10224_v18 }
0x12dc   :  { %5479 = vst.msk [vmem:[%s10682_s9 + $0x40] sm:$0xff] %vm11439_vm0, %v5471_v63 }
0x12df   :  { %v5450_v52 = vpop.f32.mrf.mxu1 }
0x12e0   :  { %v5451_v42 = vadd.f32 %v5450_v52, %v10551_v0 }
0x12e2   :  { %v5472_v39 = vadd.f32 %v5451_v42, %v10221_v5 }
0x12e4   :  { %5480 = vst.msk [vmem:[%s10682_s9 + $0x48] sm:$0xff] %vm11455_vm3, %v5472_v39 }
0x1302   :  { %v5453_v33 = vpop.f32.mrf.mxu1 }
0x1303   :  { %v5454_v21 = vadd.f32 %v5453_v33, %v10551_v0 }
0x1305   :  { %v5473_v18 = vadd.f32 %v5454_v21, %v10228_v32 }
0x1307   :  { %5481 = vst.msk [vmem:[%s10682_s9 + $0x50] sm:$0xff] %vm11456_vm7, %v5473_v18 }
0x130a   :  { %v5456_v27 = vpop.f32.mrf.mxu1 }
0x130b   :  { %v5457_v11 = vadd.f32 %v5456_v27, %v10551_v0 }
0x130d   :  { %v5474_v5 = vadd.f32 %v5457_v11, %v10233_v4 }
0x130f   :  { %5482 = vst.msk [vmem:[%s10682_s9 + $0x58] sm:$0xff] %vm11457_vm9, %v5474_v5 }
0x1312   :  { %v5459_v9 = vpop.f32.mrf.mxu1 }
0x1313   :  { %v5460_v12 = vadd.f32 %v5459_v9, %v10551_v0 }
0x1315   :  { %v5475_v32 = vadd.f32 %v5460_v12, %v10242_v3 }
0x1317   :  { %5483 = vst.msk [vmem:[%s10682_s9 + $0x60] sm:$0xff] %vm11458_vm1, %v5475_v32 }
0x131a   :  { %v5462_v30 = vpop.f32.mrf.mxu1 }
0x131b   :  { %v5463_v1 = vadd.f32 %v5462_v30, %v10551_v0 }
0x131d   :  { %v5476_v4 = vadd.f32 %v5463_v1, %v10264_v58 }
0x131f   :  { %5484 = vst.msk [vmem:[%s10682_s9 + $0x68] sm:$0xff] %vm11459_vm13, %v5476_v4 }
0x1322   :  { %v5465_v19 = vpop.f32.mrf.mxu1 }
0x1323   :  { %v5466_v43 = vadd.f32 %v5465_v19, %v10551_v0 }
0x1325   :  { %v5477_v3 = vadd.f32 %v5466_v43, %v10278_v53 }
0x1327   :  { %5485 = vst.msk [vmem:[%s10682_s9 + $0x70] sm:$0xff] %vm11460_vm12, %v5477_v3 }
0x132a   :  { %v5468_v61 = vpop.f32.mrf.mxu1 }
0x132b   :  { %v5469_v15 = vadd.f32 %v5468_v61, %v10551_v0 }
0x132d   :  { %v5478_v58 = vadd.f32 %v5469_v15, %v10323_v13 }
0x132f   :  { %5486 = vst.msk [vmem:[%s10682_s9 + $0x78] sm:$0xff] %vm11461_vm6, %v5478_v58 }

</bundles_post_ra>
